<compile_context>
chip_gen: v6e
topology: v6e:2x2x1
jax: 0.10.0
libtpu: 0.0.40
codegen_flags: <defaults>
</compile_context>

<pallas_src>
import functools

import jax
import jax.numpy as jnp
from jax.experimental import pallas as pl
from jax.experimental.pallas import tpu as pltpu


# ---------------------------------------------------------------------------
# Pallas kernels
# ---------------------------------------------------------------------------
def _dense_kernel_nosplit(x_ref, w_ref, b_ref, o_ref, *, apply_relu):
    """Single-K-step matmul + bias (+ReLU). No accumulator scratch needed."""
    y = jnp.dot(x_ref[...], w_ref[...], preferred_element_type=jnp.float32)
    y = y + b_ref[...]
    if apply_relu:
        y = jnp.maximum(y, 0.0)
    o_ref[...] = y.astype(o_ref.dtype)


def _dense_kernel_ksplit(x_ref, w_ref, b_ref, o_ref, acc_ref, *, apply_relu):
    """K-tiled matmul + bias (+ReLU). Grid = (M tiles [parallel], K tiles [arbitrary])."""
    @pl.when(pl.program_id(1) == 0)
    def _init():
        acc_ref[...] = jnp.zeros_like(acc_ref)

    acc_ref[...] += jnp.dot(
        x_ref[...], w_ref[...], preferred_element_type=jnp.float32
    )

    @pl.when(pl.program_id(1) == pl.num_programs(1) - 1)
    def _finalize():
        y = acc_ref[...] + b_ref[...]
        if apply_relu:
            y = jnp.maximum(y, 0.0)
        o_ref[...] = y.astype(o_ref.dtype)


# ---------------------------------------------------------------------------
# Pallas wrappers
# ---------------------------------------------------------------------------
_VMEM_LIMIT = 48 * 1024 * 1024  # safe on v5e/v6e (128 MiB phys) and v7x (64 MiB phys)


def dense(x, w, b, *, relu, tm=256, tk=None):
    """y = act(x @ w + b) with the matmul done in a Pallas kernel on the MXU.

    x: [M, K] (any float dtype), w: [K, N] (stored bf16), b: [N] (f32).
    N must be a multiple of 128 (lane-dense stores).  M is tiled on a
    "parallel" grid axis; K is tiled only if `tk` is given.
    """
    M, K = x.shape
    Kw, N = w.shape
    assert Kw == K, (Kw, K)
    assert N % 128 == 0, N
    assert b.shape == (N,)

    x = x.astype(jnp.bfloat16)
    w = w.astype(jnp.bfloat16)
    b2 = b.reshape(1, N).astype(jnp.float32)

    # ---- M tiling (parallel axis) ----
    if M <= tm:
        tm_eff, Mp = M, M              # full-dim block: no 8-alignment needed
    else:
        tm_eff = tm                    # multiple of 8
        Mp = ((M + tm - 1) // tm) * tm
        if Mp != M:
            x = jnp.pad(x, ((0, Mp - M), (0, 0)))
    nm = Mp // tm_eff

    # ---- optional K tiling (reduction axis, kept last / "arbitrary") ----
    if tk is None or tk >= K:
        nk, tk_eff = 1, K
    else:
        assert tk % 128 == 0, tk
        Kp = ((K + tk - 1) // tk) * tk
        if Kp != K:
            x = jnp.pad(x, ((0, 0), (0, Kp - K)))
            w = jnp.pad(w, ((0, Kp - K), (0, 0)))
        tk_eff, nk = tk, Kp // tk

    if nk == 1:
        out = pl.pallas_call(
            functools.partial(_dense_kernel_nosplit, apply_relu=relu),
            out_shape=jax.ShapeDtypeStruct((Mp, N), jnp.float32),
            grid_spec=pltpu.PrefetchScalarGridSpec(
                num_scalar_prefetch=0,
                grid=(nm,),
                in_specs=[
                    pl.BlockSpec((tm_eff, tk_eff), lambda i: (i, 0)),
                    pl.BlockSpec((tk_eff, N), lambda i: (0, 0)),
                    pl.BlockSpec((1, N), lambda i: (0, 0)),
                ],
                out_specs=pl.BlockSpec((tm_eff, N), lambda i: (i, 0)),
            ),
            compiler_params=pltpu.CompilerParams(
                dimension_semantics=("parallel",),
                vmem_limit_bytes=_VMEM_LIMIT,
            ),
        )(x, w, b2)
    else:
        out = pl.pallas_call(
            functools.partial(_dense_kernel_ksplit, apply_relu=relu),
            out_shape=jax.ShapeDtypeStruct((Mp, N), jnp.float32),
            grid_spec=pltpu.PrefetchScalarGridSpec(
                num_scalar_prefetch=0,
                grid=(nm, nk),
                in_specs=[
                    pl.BlockSpec((tm_eff, tk_eff), lambda i, k: (i, k)),
                    pl.BlockSpec((tk_eff, N), lambda i, k: (k, 0)),
                    pl.BlockSpec((1, N), lambda i, k: (0, 0)),
                ],
                out_specs=pl.BlockSpec((tm_eff, N), lambda i, k: (i, 0)),
                scratch_shapes=[pltpu.VMEM((tm_eff, N), jnp.float32)],
            ),
            compiler_params=pltpu.CompilerParams(
                dimension_semantics=("parallel", "arbitrary"),
                vmem_limit_bytes=_VMEM_LIMIT,
            ),
        )(x, w, b2)

    return out[:M] if Mp != M else out


def maxpool2x2(y):
    """2x2 max-pool, stride 2.  y: [B, H, W, C] -> [B, H//2, W//2, C].

    C must be a multiple of 128.  The column pairing uses a metadata-only
    reshape [B,H,W,C] -> [B,H,W//2,2C] so the kernel only does lane-aligned
    slices; rows are paired by the block shape (1, 2, Wo, 2C).
    """
    B, H, W, C = y.shape
    assert C % 128 == 0, C
    Ho, Wo = H // 2, W // 2
    y2 = y.reshape(B, H, Wo, 2 * C)        # contiguous => free reshape

    def pool_kernel(x_ref, o_ref):
        m = jnp.maximum(x_ref[0, 0], x_ref[0, 1])        # (Wo, 2C): max over rows
        o_ref[0, 0] = jnp.maximum(m[:, :C], m[:, C:])    # max over column pairs

    out = pl.pallas_call(
        pool_kernel,
        out_shape=jax.ShapeDtypeStruct((B, Ho, Wo, C), y.dtype),
        grid_spec=pltpu.PrefetchScalarGridSpec(
            num_scalar_prefetch=0,
            grid=(B, Ho),
            in_specs=[pl.BlockSpec((1, 2, Wo, 2 * C), lambda b, h: (b, h, 0, 0))],
            out_specs=pl.BlockSpec((1, 1, Wo, C), lambda b, h: (b, h, 0, 0)),
        ),
        compiler_params=pltpu.CompilerParams(
            dimension_semantics=("parallel", "parallel"),
            vmem_limit_bytes=_VMEM_LIMIT,
        ),
    )(y2)
    return out


# ---------------------------------------------------------------------------
# SimpleCNN forward
# ---------------------------------------------------------------------------
def im2col_5x5_pad2(x):
    """x: [B, H, W, Cin] -> [B*H*W, 25*Cin] patches for a 5x5 conv, padding=2."""
    B, H, W, Cin = x.shape
    xp = jnp.pad(x, ((0, 0), (2, 2), (2, 2), (0, 0)))
    cols = []
    for dy in range(5):
        for dx in range(5):
            cols.append(xp[:, dy:dy + H, dx:dx + W, :])
    patches = jnp.stack(cols, axis=3)          # [B, H, W, 25, Cin]
    return patches.reshape(B * H * W, 25 * Cin)


def _pad2d(w2d, kp, np_):
    k, n = w2d.shape
    return jnp.pad(w2d, ((0, kp - k), (0, np_ - n)))


def init_params(key):
    ks = jax.random.split(key, 8)
    # PyTorch-native layouts, then converted to (padded, bf16) matmul layouts.
    wc1 = jax.random.normal(ks[0], (32, 1, 5, 5), jnp.float32) * 0.1    # [Cout,Cin,kh,kw]
    bc1 = jax.random.normal(ks[1], (32,), jnp.float32) * 0.1
    wc2 = jax.random.normal(ks[2], (64, 32, 5, 5), jnp.float32) * 0.05
    bc2 = jax.random.normal(ks[3], (64,), jnp.float32) * 0.05
    wf1 = jax.random.normal(ks[4], (1000, 64 * 7 * 7), jnp.float32) * 0.02  # [out,in]
    bf1 = jax.random.normal(ks[5], (1000,), jnp.float32) * 0.02
    wf2 = jax.random.normal(ks[6], (10, 1000), jnp.float32) * 0.02
    bf2 = jax.random.normal(ks[7], (10,), jnp.float32) * 0.02

    # conv weights -> [kh, kw, Cin, Cout] -> [25*Cin, Cout]
    wc1_m = jnp.transpose(wc1, (2, 3, 1, 0)).reshape(25 * 1, 32)     # [25, 32]
    wc2_m = jnp.transpose(wc2, (2, 3, 1, 0)).reshape(25 * 32, 64)    # [800, 64]

    return {
        # K padded 25->32, N padded 32->128
        "wc1": _pad2d(wc1_m, 32, 128).astype(jnp.bfloat16),
        "bc1": jnp.pad(bc1, (0, 128 - 32)),
        # N padded 64->128
        "wc2": _pad2d(wc2_m, 800, 128).astype(jnp.bfloat16),
        "bc2": jnp.pad(bc2, (0, 128 - 64)),
        # linear weights -> [in, out]; N padded 1000->1024
        "wf1": _pad2d(wf1.T, 3136, 1024).astype(jnp.bfloat16),
        "bf1": jnp.pad(bf1, (0, 1024 - 1000)),
        # K padded 1000->1024 (zero rows), N padded 10->128
        "wf2": _pad2d(wf2.T, 1024, 128).astype(jnp.bfloat16),
        "bf2": jnp.pad(bf2, (0, 128 - 10)),
    }


@jax.jit
def simple_cnn_forward(x_nchw, params):
    B = x_nchw.shape[0]
    x = jnp.transpose(x_nchw, (0, 2, 3, 1))            # NHWC [B, 28, 28, 1]

    # conv1 (1->32, k=5, pad=2) + ReLU + pool   (Cout carried lane-dense at 128)
    p1 = im2col_5x5_pad2(x)                            # [B*784, 25]
    p1 = jnp.pad(p1, ((0, 0), (0, 32 - 25)))           # K aligned 25 -> 32
    y1 = dense(p1, params["wc1"], params["bc1"], relu=True)   # [B*784, 128]
    y1 = maxpool2x2(y1.reshape(B, 28, 28, 128))               # [B, 14, 14, 128]

    # conv2 (32->64, k=5, pad=2) + ReLU + pool  (logical 32 in-channels only)
    p2 = im2col_5x5_pad2(y1[..., :32])                 # [B*196, 800]
    y2 = dense(p2, params["wc2"], params["bc2"], relu=True)   # [B*196, 128]
    y2 = maxpool2x2(y2.reshape(B, 14, 14, 128))               # [B, 7, 7, 128]

    # flatten in PyTorch (NCHW) order over the 64 logical channels: view(-1, 64*7*7)
    flat = jnp.transpose(y2[..., :64], (0, 3, 1, 2)).reshape(B, 64 * 7 * 7)

    # fc1 + ReLU: whole bf16 weight resident (no K split), lane-dense N=1024.
    h = dense(flat, params["wf1"], params["bf1"], relu=True)   # [B, 1024]
    # fc2: padded fc1 columns hit zero weight rows, so no slicing needed first.
    out = dense(h, params["wf2"], params["bf2"], relu=False)   # [B, 128]
    return out[:, :10]


# ---------------------------------------------------------------------------
if __name__ == "__main__":
    key = jax.random.PRNGKey(0)
    pkey, xkey = jax.random.split(key)
    params = init_params(pkey)

    # MNIST-sized input implied by fc1 (64*7*7): [B, 1, 28, 28]
    x = jax.random.normal(xkey, (2, 1, 28, 28), jnp.float32)

    logits = simple_cnn_forward(x, params)
    jax.block_until_ready(logits)
    assert logits.shape == (2, 10) and logits.dtype == jnp.float32
    assert bool(jnp.all(jnp.isfinite(logits)))
    print("KERNEL_OK")
</pallas_src>

<mosaic_0001>
module attributes {stable_mosaic.version = 11 : i64} {
  func.func @_dense_kernel_nosplit(%arg0: i32, %arg1: memref<256x32xbf16, #tpu.memory_space<vmem>>, %arg2: memref<32x128xbf16, #tpu.memory_space<vmem>>, %arg3: memref<1x128xf32, #tpu.memory_space<vmem>>, %arg4: memref<256x128xf32, #tpu.memory_space<vmem>>) attributes {dimension_semantics = [#tpu.dimension_semantics<parallel>], iteration_bounds = array<i64: 7>, scalar_prefetch = 0 : i64, scratch_operands = 0 : i64, tpu.core_type = #tpu.core_type<tc>, window_params = [{transform_indices = @transform_0, window_bounds = array<i64: 256, 32>}, {pipeline_mode = #tpu.pipeline_mode<synchronous>, transform_indices = @transform_1, window_bounds = array<i64: 32, 128>}, {pipeline_mode = #tpu.pipeline_mode<synchronous>, transform_indices = @transform_2, window_bounds = array<i64: 1, 128>}, {transform_indices = @transform_3, window_bounds = array<i64: 256, 128>}]} {
    %c0 = arith.constant 0 : index
    %c0_0 = arith.constant 0 : index
    %0 = vector.load %arg1[%c0, %c0_0] : memref<256x32xbf16, #tpu.memory_space<vmem>>, vector<256x32xbf16>
    %c0_1 = arith.constant 0 : index
    %c0_2 = arith.constant 0 : index
    %1 = vector.load %arg2[%c0_1, %c0_2] : memref<32x128xbf16, #tpu.memory_space<vmem>>, vector<32x128xbf16>
    %cst = arith.constant dense<0.000000e+00> : vector<256x128xf32>
    %2 = tpu.matmul %0, %1, %cst {dimension_numbers = #tpu.dot_dimension_numbers<[1], [0], [0], [1], [0, 0, 1, 1], [], []>} : vector<256x32xbf16>, vector<32x128xbf16>, vector<256x128xf32> -> vector<256x128xf32>
    %c0_3 = arith.constant 0 : index
    %c0_4 = arith.constant 0 : index
    %3 = vector.load %arg3[%c0_3, %c0_4] : memref<1x128xf32, #tpu.memory_space<vmem>>, vector<1x128xf32>
    %4 = vector.broadcast %3 : vector<1x128xf32> to vector<256x128xf32>
    %5 = arith.addf %2, %4 : vector<256x128xf32>
    %cst_5 = arith.constant 0.000000e+00 : f32
    %6 = vector.broadcast %cst_5 : f32 to vector<256x128xf32>
    %7 = arith.maximumf %5, %6 : vector<256x128xf32>
    %c0_6 = arith.constant 0 : index
    %c0_7 = arith.constant 0 : index
    %8 = vector.load %arg4[%c0_6, %c0_7] : memref<256x128xf32, #tpu.memory_space<vmem>>, vector<256x128xf32>
    tpu.vector_store %arg4[%c0_6, %c0_7], %7 {strides = array<i32>} : memref<256x128xf32, #tpu.memory_space<vmem>>, vector<256x128xf32>,
    return
  }
  func.func @transform_0(%arg0: i32) -> (i32, i32) {
    %c0_i32 = arith.constant 0 : i32
    %c0_i32_0 = arith.constant 0 : i32
    return %arg0, %c0_i32 : i32, i32
  }
  func.func @transform_1(%arg0: i32) -> (i32, i32) {
    %c0_i32 = arith.constant 0 : i32
    %c0_i32_0 = arith.constant 0 : i32
    %c0_i32_1 = arith.constant 0 : i32
    return %c0_i32, %c0_i32_0 : i32, i32
  }
  func.func @transform_2(%arg0: i32) -> (i32, i32) {
    %c0_i32 = arith.constant 0 : i32
    %c0_i32_0 = arith.constant 0 : i32
    %c0_i32_1 = arith.constant 0 : i32
    return %c0_i32, %c0_i32_0 : i32, i32
  }
  func.func @transform_3(%arg0: i32) -> (i32, i32) {
    %c0_i32 = arith.constant 0 : i32
    %c0_i32_0 = arith.constant 0 : i32
    return %arg0, %c0_i32 : i32, i32
  }
}

module attributes {stable_mosaic.version = 11 : i64} {
  func.func @pool_kernel(%arg0: i32, %arg1: i32, %arg2: memref<1x2x14x256xf32, #tpu.memory_space<vmem>>, %arg3: memref<1x1x14x128xf32, #tpu.memory_space<vmem>>) attributes {dimension_semantics = [#tpu.dimension_semantics<parallel>, #tpu.dimension_semantics<parallel>], iteration_bounds = array<i64: 2, 14>, scalar_prefetch = 0 : i64, scratch_operands = 0 : i64, tpu.core_type = #tpu.core_type<tc>, window_params = [{transform_indices = @transform_0, window_bounds = array<i64: 1, 2, 14, 256>}, {transform_indices = @transform_1, window_bounds = array<i64: 1, 1, 14, 128>}]} {
    %c0 = arith.constant 0 : index
    %c0_0 = arith.constant 0 : index
    %c0_1 = arith.constant 0 : index
    %c0_2 = arith.constant 0 : index
    %0 = vector.load %arg2[%c0, %c0_0, %c0_1, %c0_2] : memref<1x2x14x256xf32, #tpu.memory_space<vmem>>, vector<1x1x14x256xf32>
    %1 = vector.shape_cast %0 : vector<1x1x14x256xf32> to vector<14x256xf32>
    %c0_3 = arith.constant 0 : index
    %c1 = arith.constant 1 : index
    %c0_4 = arith.constant 0 : index
    %c0_5 = arith.constant 0 : index
    %2 = vector.load %arg2[%c0_3, %c1, %c0_4, %c0_5] : memref<1x2x14x256xf32, #tpu.memory_space<vmem>>, vector<1x1x14x256xf32>
    %3 = vector.shape_cast %2 : vector<1x1x14x256xf32> to vector<14x256xf32>
    %4 = arith.maximumf %1, %3 : vector<14x256xf32>
    %5 = vector.extract_strided_slice %4 {offsets = [0, 0], sizes = [14, 128], strides = [1, 1]} : vector<14x256xf32> to vector<14x128xf32>
    %6 = vector.extract_strided_slice %4 {offsets = [0, 128], sizes = [14, 128], strides = [1, 1]} : vector<14x256xf32> to vector<14x128xf32>
    %7 = arith.maximumf %5, %6 : vector<14x128xf32>
    %c0_6 = arith.constant 0 : index
    %c0_7 = arith.constant 0 : index
    %c0_8 = arith.constant 0 : index
    %c0_9 = arith.constant 0 : index
    %8 = vector.load %arg3[%c0_6, %c0_7, %c0_8, %c0_9] : memref<1x1x14x128xf32, #tpu.memory_space<vmem>>, vector<1x1x14x128xf32>
    %9 = vector.shape_cast %8 : vector<1x1x14x128xf32> to vector<14x128xf32>
    %10 = vector.shape_cast %7 : vector<14x128xf32> to vector<1x1x14x128xf32>
    tpu.vector_store %arg3[%c0_6, %c0_7, %c0_8, %c0_9], %10 {strides = array<i32>} : memref<1x1x14x128xf32, #tpu.memory_space<vmem>>, vector<1x1x14x128xf32>,
    return
  }
  func.func @transform_0(%arg0: i32, %arg1: i32) -> (i32, i32, i32, i32) {
    %c0_i32 = arith.constant 0 : i32
    %c0_i32_0 = arith.constant 0 : i32
    %c0_i32_1 = arith.constant 0 : i32
    return %arg0, %arg1, %c0_i32, %c0_i32_0 : i32, i32, i32, i32
  }
  func.func @transform_1(%arg0: i32, %arg1: i32) -> (i32, i32, i32, i32) {
    %c0_i32 = arith.constant 0 : i32
    %c0_i32_0 = arith.constant 0 : i32
    %c0_i32_1 = arith.constant 0 : i32
    return %arg0, %arg1, %c0_i32, %c0_i32_0 : i32, i32, i32, i32
  }
}

module attributes {stable_mosaic.version = 11 : i64} {
  func.func @_dense_kernel_nosplit(%arg0: i32, %arg1: memref<256x800xbf16, #tpu.memory_space<vmem>>, %arg2: memref<800x128xbf16, #tpu.memory_space<vmem>>, %arg3: memref<1x128xf32, #tpu.memory_space<vmem>>, %arg4: memref<256x128xf32, #tpu.memory_space<vmem>>) attributes {dimension_semantics = [#tpu.dimension_semantics<parallel>], iteration_bounds = array<i64: 2>, scalar_prefetch = 0 : i64, scratch_operands = 0 : i64, tpu.core_type = #tpu.core_type<tc>, window_params = [{transform_indices = @transform_0, window_bounds = array<i64: 256, 800>}, {pipeline_mode = #tpu.pipeline_mode<synchronous>, transform_indices = @transform_1, window_bounds = array<i64: 800, 128>}, {pipeline_mode = #tpu.pipeline_mode<synchronous>, transform_indices = @transform_2, window_bounds = array<i64: 1, 128>}, {transform_indices = @transform_3, window_bounds = array<i64: 256, 128>}]} {
    %c0 = arith.constant 0 : index
    %c0_0 = arith.constant 0 : index
    %0 = vector.load %arg1[%c0, %c0_0] : memref<256x800xbf16, #tpu.memory_space<vmem>>, vector<256x800xbf16>
    %c0_1 = arith.constant 0 : index
    %c0_2 = arith.constant 0 : index
    %1 = vector.load %arg2[%c0_1, %c0_2] : memref<800x128xbf16, #tpu.memory_space<vmem>>, vector<800x128xbf16>
    %cst = arith.constant dense<0.000000e+00> : vector<256x128xf32>
    %2 = tpu.matmul %0, %1, %cst {dimension_numbers = #tpu.dot_dimension_numbers<[1], [0], [0], [1], [0, 0, 1, 1], [], []>} : vector<256x800xbf16>, vector<800x128xbf16>, vector<256x128xf32> -> vector<256x128xf32>
    %c0_3 = arith.constant 0 : index
    %c0_4 = arith.constant 0 : index
    %3 = vector.load %arg3[%c0_3, %c0_4] : memref<1x128xf32, #tpu.memory_space<vmem>>, vector<1x128xf32>
    %4 = vector.broadcast %3 : vector<1x128xf32> to vector<256x128xf32>
    %5 = arith.addf %2, %4 : vector<256x128xf32>
    %cst_5 = arith.constant 0.000000e+00 : f32
    %6 = vector.broadcast %cst_5 : f32 to vector<256x128xf32>
    %7 = arith.maximumf %5, %6 : vector<256x128xf32>
    %c0_6 = arith.constant 0 : index
    %c0_7 = arith.constant 0 : index
    %8 = vector.load %arg4[%c0_6, %c0_7] : memref<256x128xf32, #tpu.memory_space<vmem>>, vector<256x128xf32>
    tpu.vector_store %arg4[%c0_6, %c0_7], %7 {strides = array<i32>} : memref<256x128xf32, #tpu.memory_space<vmem>>, vector<256x128xf32>,
    return
  }
  func.func @transform_0(%arg0: i32) -> (i32, i32) {
    %c0_i32 = arith.constant 0 : i32
    %c0_i32_0 = arith.constant 0 : i32
    return %arg0, %c0_i32 : i32, i32
  }
  func.func @transform_1(%arg0: i32) -> (i32, i32) {
    %c0_i32 = arith.constant 0 : i32
    %c0_i32_0 = arith.constant 0 : i32
    %c0_i32_1 = arith.constant 0 : i32
    return %c0_i32, %c0_i32_0 : i32, i32
  }
  func.func @transform_2(%arg0: i32) -> (i32, i32) {
    %c0_i32 = arith.constant 0 : i32
    %c0_i32_0 = arith.constant 0 : i32
    %c0_i32_1 = arith.constant 0 : i32
    return %c0_i32, %c0_i32_0 : i32, i32
  }
  func.func @transform_3(%arg0: i32) -> (i32, i32) {
    %c0_i32 = arith.constant 0 : i32
    %c0_i32_0 = arith.constant 0 : i32
    return %arg0, %c0_i32 : i32, i32
  }
}

module attributes {stable_mosaic.version = 11 : i64} {
  func.func @pool_kernel(%arg0: i32, %arg1: i32, %arg2: memref<1x2x7x256xf32, #tpu.memory_space<vmem>>, %arg3: memref<1x1x7x128xf32, #tpu.memory_space<vmem>>) attributes {dimension_semantics = [#tpu.dimension_semantics<parallel>, #tpu.dimension_semantics<parallel>], iteration_bounds = array<i64: 2, 7>, scalar_prefetch = 0 : i64, scratch_operands = 0 : i64, tpu.core_type = #tpu.core_type<tc>, window_params = [{transform_indices = @transform_0, window_bounds = array<i64: 1, 2, 7, 256>}, {transform_indices = @transform_1, window_bounds = array<i64: 1, 1, 7, 128>}]} {
    %c0 = arith.constant 0 : index
    %c0_0 = arith.constant 0 : index
    %c0_1 = arith.constant 0 : index
    %c0_2 = arith.constant 0 : index
    %0 = vector.load %arg2[%c0, %c0_0, %c0_1, %c0_2] : memref<1x2x7x256xf32, #tpu.memory_space<vmem>>, vector<1x1x7x256xf32>
    %1 = vector.shape_cast %0 : vector<1x1x7x256xf32> to vector<7x256xf32>
    %c0_3 = arith.constant 0 : index
    %c1 = arith.constant 1 : index
    %c0_4 = arith.constant 0 : index
    %c0_5 = arith.constant 0 : index
    %2 = vector.load %arg2[%c0_3, %c1, %c0_4, %c0_5] : memref<1x2x7x256xf32, #tpu.memory_space<vmem>>, vector<1x1x7x256xf32>
    %3 = vector.shape_cast %2 : vector<1x1x7x256xf32> to vector<7x256xf32>
    %4 = arith.maximumf %1, %3 : vector<7x256xf32>
    %5 = vector.extract_strided_slice %4 {offsets = [0, 0], sizes = [7, 128], strides = [1, 1]} : vector<7x256xf32> to vector<7x128xf32>
    %6 = vector.extract_strided_slice %4 {offsets = [0, 128], sizes = [7, 128], strides = [1, 1]} : vector<7x256xf32> to vector<7x128xf32>
    %7 = arith.maximumf %5, %6 : vector<7x128xf32>
    %c0_6 = arith.constant 0 : index
    %c0_7 = arith.constant 0 : index
    %c0_8 = arith.constant 0 : index
    %c0_9 = arith.constant 0 : index
    %8 = vector.load %arg3[%c0_6, %c0_7, %c0_8, %c0_9] : memref<1x1x7x128xf32, #tpu.memory_space<vmem>>, vector<1x1x7x128xf32>
    %9 = vector.shape_cast %8 : vector<1x1x7x128xf32> to vector<7x128xf32>
    %10 = vector.shape_cast %7 : vector<7x128xf32> to vector<1x1x7x128xf32>
    tpu.vector_store %arg3[%c0_6, %c0_7, %c0_8, %c0_9], %10 {strides = array<i32>} : memref<1x1x7x128xf32, #tpu.memory_space<vmem>>, vector<1x1x7x128xf32>,
    return
  }
  func.func @transform_0(%arg0: i32, %arg1: i32) -> (i32, i32, i32, i32) {
    %c0_i32 = arith.constant 0 : i32
    %c0_i32_0 = arith.constant 0 : i32
    %c0_i32_1 = arith.constant 0 : i32
    return %arg0, %arg1, %c0_i32, %c0_i32_0 : i32, i32, i32, i32
  }
  func.func @transform_1(%arg0: i32, %arg1: i32) -> (i32, i32, i32, i32) {
    %c0_i32 = arith.constant 0 : i32
    %c0_i32_0 = arith.constant 0 : i32
    %c0_i32_1 = arith.constant 0 : i32
    return %arg0, %arg1, %c0_i32, %c0_i32_0 : i32, i32, i32, i32
  }
}

module attributes {stable_mosaic.version = 11 : i64} {
  func.func @_dense_kernel_nosplit(%arg0: i32, %arg1: memref<2x3136xbf16, #tpu.memory_space<vmem>>, %arg2: memref<3136x1024xbf16, #tpu.memory_space<vmem>>, %arg3: memref<1x1024xf32, #tpu.memory_space<vmem>>, %arg4: memref<2x1024xf32, #tpu.memory_space<vmem>>) attributes {dimension_semantics = [#tpu.dimension_semantics<parallel>], iteration_bounds = array<i64: 1>, scalar_prefetch = 0 : i64, scratch_operands = 0 : i64, tpu.core_type = #tpu.core_type<tc>, window_params = [{transform_indices = @transform_0, window_bounds = array<i64: 2, 3136>}, {pipeline_mode = #tpu.pipeline_mode<synchronous>, transform_indices = @transform_1, window_bounds = array<i64: 3136, 1024>}, {pipeline_mode = #tpu.pipeline_mode<synchronous>, transform_indices = @transform_2, window_bounds = array<i64: 1, 1024>}, {transform_indices = @transform_3, window_bounds = array<i64: 2, 1024>}]} {
    %c0 = arith.constant 0 : index
    %c0_0 = arith.constant 0 : index
    %0 = vector.load %arg1[%c0, %c0_0] : memref<2x3136xbf16, #tpu.memory_space<vmem>>, vector<2x3136xbf16>
    %c0_1 = arith.constant 0 : index
    %c0_2 = arith.constant 0 : index
    %1 = vector.load %arg2[%c0_1, %c0_2] : memref<3136x1024xbf16, #tpu.memory_space<vmem>>, vector<3136x1024xbf16>
    %cst = arith.constant dense<0.000000e+00> : vector<2x1024xf32>
    %2 = tpu.matmul %0, %1, %cst {dimension_numbers = #tpu.dot_dimension_numbers<[1], [0], [0], [1], [0, 0, 1, 1], [], []>} : vector<2x3136xbf16>, vector<3136x1024xbf16>, vector<2x1024xf32> -> vector<2x1024xf32>
    %c0_3 = arith.constant 0 : index
    %c0_4 = arith.constant 0 : index
    %3 = vector.load %arg3[%c0_3, %c0_4] : memref<1x1024xf32, #tpu.memory_space<vmem>>, vector<1x1024xf32>
    %4 = vector.broadcast %3 : vector<1x1024xf32> to vector<2x1024xf32>
    %5 = arith.addf %2, %4 : vector<2x1024xf32>
    %cst_5 = arith.constant 0.000000e+00 : f32
    %6 = vector.broadcast %cst_5 : f32 to vector<2x1024xf32>
    %7 = arith.maximumf %5, %6 : vector<2x1024xf32>
    %c0_6 = arith.constant 0 : index
    %c0_7 = arith.constant 0 : index
    %8 = vector.load %arg4[%c0_6, %c0_7] : memref<2x1024xf32, #tpu.memory_space<vmem>>, vector<2x1024xf32>
    tpu.vector_store %arg4[%c0_6, %c0_7], %7 {strides = array<i32>} : memref<2x1024xf32, #tpu.memory_space<vmem>>, vector<2x1024xf32>,
    return
  }
  func.func @transform_0(%arg0: i32) -> (i32, i32) {
    %c0_i32 = arith.constant 0 : i32
    %c0_i32_0 = arith.constant 0 : i32
    return %arg0, %c0_i32 : i32, i32
  }
  func.func @transform_1(%arg0: i32) -> (i32, i32) {
    %c0_i32 = arith.constant 0 : i32
    %c0_i32_0 = arith.constant 0 : i32
    %c0_i32_1 = arith.constant 0 : i32
    return %c0_i32, %c0_i32_0 : i32, i32
  }
  func.func @transform_2(%arg0: i32) -> (i32, i32) {
    %c0_i32 = arith.constant 0 : i32
    %c0_i32_0 = arith.constant 0 : i32
    %c0_i32_1 = arith.constant 0 : i32
    return %c0_i32, %c0_i32_0 : i32, i32
  }
  func.func @transform_3(%arg0: i32) -> (i32, i32) {
    %c0_i32 = arith.constant 0 : i32
    %c0_i32_0 = arith.constant 0 : i32
    return %arg0, %c0_i32 : i32, i32
  }
}

module attributes {stable_mosaic.version = 11 : i64} {
  func.func @_dense_kernel_nosplit(%arg0: i32, %arg1: memref<2x1024xbf16, #tpu.memory_space<vmem>>, %arg2: memref<1024x128xbf16, #tpu.memory_space<vmem>>, %arg3: memref<1x128xf32, #tpu.memory_space<vmem>>, %arg4: memref<2x128xf32, #tpu.memory_space<vmem>>) attributes {dimension_semantics = [#tpu.dimension_semantics<parallel>], iteration_bounds = array<i64: 1>, scalar_prefetch = 0 : i64, scratch_operands = 0 : i64, tpu.core_type = #tpu.core_type<tc>, window_params = [{transform_indices = @transform_0, window_bounds = array<i64: 2, 1024>}, {pipeline_mode = #tpu.pipeline_mode<synchronous>, transform_indices = @transform_1, window_bounds = array<i64: 1024, 128>}, {pipeline_mode = #tpu.pipeline_mode<synchronous>, transform_indices = @transform_2, window_bounds = array<i64: 1, 128>}, {transform_indices = @transform_3, window_bounds = array<i64: 2, 128>}]} {
    %c0 = arith.constant 0 : index
    %c0_0 = arith.constant 0 : index
    %0 = vector.load %arg1[%c0, %c0_0] : memref<2x1024xbf16, #tpu.memory_space<vmem>>, vector<2x1024xbf16>
    %c0_1 = arith.constant 0 : index
    %c0_2 = arith.constant 0 : index
    %1 = vector.load %arg2[%c0_1, %c0_2] : memref<1024x128xbf16, #tpu.memory_space<vmem>>, vector<1024x128xbf16>
    %cst = arith.constant dense<0.000000e+00> : vector<2x128xf32>
    %2 = tpu.matmul %0, %1, %cst {dimension_numbers = #tpu.dot_dimension_numbers<[1], [0], [0], [1], [0, 0, 1, 1], [], []>} : vector<2x1024xbf16>, vector<1024x128xbf16>, vector<2x128xf32> -> vector<2x128xf32>
    %c0_3 = arith.constant 0 : index
    %c0_4 = arith.constant 0 : index
    %3 = vector.load %arg3[%c0_3, %c0_4] : memref<1x128xf32, #tpu.memory_space<vmem>>, vector<1x128xf32>
    %4 = vector.broadcast %3 : vector<1x128xf32> to vector<2x128xf32>
    %5 = arith.addf %2, %4 : vector<2x128xf32>
    %c0_5 = arith.constant 0 : index
    %c0_6 = arith.constant 0 : index
    %6 = vector.load %arg4[%c0_5, %c0_6] : memref<2x128xf32, #tpu.memory_space<vmem>>, vector<2x128xf32>
    tpu.vector_store %arg4[%c0_5, %c0_6], %5 {strides = array<i32>} : memref<2x128xf32, #tpu.memory_space<vmem>>, vector<2x128xf32>,
    return
  }
  func.func @transform_0(%arg0: i32) -> (i32, i32) {
    %c0_i32 = arith.constant 0 : i32
    %c0_i32_0 = arith.constant 0 : i32
    return %arg0, %c0_i32 : i32, i32
  }
  func.func @transform_1(%arg0: i32) -> (i32, i32) {
    %c0_i32 = arith.constant 0 : i32
    %c0_i32_0 = arith.constant 0 : i32
    %c0_i32_1 = arith.constant 0 : i32
    return %c0_i32, %c0_i32_0 : i32, i32
  }
  func.func @transform_2(%arg0: i32) -> (i32, i32) {
    %c0_i32 = arith.constant 0 : i32
    %c0_i32_0 = arith.constant 0 : i32
    %c0_i32_1 = arith.constant 0 : i32
    return %c0_i32, %c0_i32_0 : i32, i32
  }
  func.func @transform_3(%arg0: i32) -> (i32, i32) {
    %c0_i32 = arith.constant 0 : i32
    %c0_i32_0 = arith.constant 0 : i32
    return %arg0, %c0_i32 : i32, i32
  }
}

</mosaic_0001>

<bundles_post_ra>
// kernel: simple_cnn_forward.6
= control target key start
LH: loop header
LB: loop body
LE: loop exit
PB: predicated region body
PF: predicated region fallthrough
CT: control target
= control target key end

     0   :  { %s798_s12 = smov 0   ;;  %s930_s0 = inlined_call_operand.vmem [shape: bf16[1792,32], index: 0, kind: input, shape index: {}]   ;;  %s931_s1 = inlined_call_operand.vmem [shape: bf16[32,128], index: 1, kind: input, shape index: {}]   ;;  %s932_s2 = inlined_call_operand.vmem [shape: f32[1,128], index: 2, kind: input, shape index: {}]   ;;  %s933_s3 = inlined_call_operand.vmem [shape: f32[1792,128], index: 3, kind: output, shape index: {}]  }
   0x1 LB: > { %s640_s13 = sadd.s32 4294967295, %s776_s12   ;;  %p644_p0 = scmp.ge.s32.totalorder %s776_s12, 1  ;;  %s776_s12 = sphi %s798_s12, %s13_s12  }
   0x2   : > { %p138_p1 = scmp.lt.s32.totalorder %s776_s12, 8 }
   0x4   : > { %p139_p2 = pnand %p644_p0, %p138_p1 }
   0x5   : > { %s645_s16 = sshll.u32 (!%p139_p2), %s640_s13, 5 }
   0x6   : > { %142 = sbr.rel (%p139_p2) target bundleno = 248 (0xf8), region = 32  ;;  %p163_p3 = scmp.lt.s32.totalorder (!%p139_p2), %s645_s16, 223 }
   0xb   : > { %v752_v0 = vld [vmem:[%s931_s1 + $0x8] sm:$0xff]   ;;  %v753_v1 = vld [vmem:[%s931_s1] sm:$0xff]   ;;  %s935_s16 = smov (!%p163_p3, %s645_s16), 223  ;;  %vm310_vm0 = vcmask 261120  }
   0xc   : > { %704 = vmatprep.subr.bf16.mxu0 %v752_v0  ;;  %740 = vmatprep.subr.bf16.mxu1 %v752_v0  ;;  %s646_s19 = sshll.u32 %s935_s16, 2  ;;  %v855_v18 = vld [vmem:[%s932_s2] ss:$0 sm:$0xff]  ;;  %s648_s25 = sshll.u32 %s935_s16, 3 }
   0xd   : > { %705 = vmatpush3.bf16.msra.mxu0 %v752_v0  ;;  %742 = vmatpush3.bf16.msra.mxu1 %v752_v0  ;;  %s818_s22 = scalar_lea.vmem %s930_s0, %s646_s19  ;;  %s862_s28 = scalar_lea.vmem %s933_s3, %s648_s25 }
   0xe   : > { %706 = vmatprep.subr.bf16.mxu0 %v753_v1  ;;  %741 = vmatprep.subr.bf16.mxu1 %v753_v1  ;;  %v754_v2 = vld [vmem:[%s818_s22] sm:$0xff]   ;;  %v756_v4 = vld [vmem:[%s818_s22 + $0x8] sm:$0xff]   ;;  %v758_v6 = vld [vmem:[%s818_s22 + $0x10] sm:$0xff]  }
   0xf   : > { %v755_v3 = vld [vmem:[%s818_s22 + $0x40] sm:$0xff]   ;;  %708 = vmatprep.mubr.msk.bf16.mxu0 %vm310_vm0, %v754_v2  ;;  %v757_v5 = vld [vmem:[%s818_s22 + $0x48] sm:$0xff]   ;;  %v759_v7 = vld [vmem:[%s818_s22 + $0x50] sm:$0xff]  }
  0x10   : > { %724 = vmatprep.mubr.msk.bf16.mxu1 %vm310_vm0, %v755_v3  ;;  %v760_v8 = vld [vmem:[%s818_s22 + $0x18] sm:$0xff]   ;;  %v762_v10 = vld [vmem:[%s818_s22 + $0x20] sm:$0xff]   ;;  %v764_v12 = vld [vmem:[%s818_s22 + $0x28] sm:$0xff]  }
  0x11   : > { %707 = vmatpush3.bf16.msra.mxu0 %v753_v1  ;;  %743 = vmatpush3.bf16.msra.mxu1 %v753_v1  ;;  %v761_v9 = vld [vmem:[%s818_s22 + $0x58] sm:$0xff]   ;;  %v763_v11 = vld [vmem:[%s818_s22 + $0x60] sm:$0xff]   ;;  %v765_v13 = vld [vmem:[%s818_s22 + $0x68] sm:$0xff]  }
  0x12   : > { %v766_v14 = vld [vmem:[%s818_s22 + $0x30] sm:$0xff]   ;;  %v768_v16 = vld [vmem:[%s818_s22 + $0x38] sm:$0xff]  }
  0x13   : > { %v767_v15 = vld [vmem:[%s818_s22 + $0x70] sm:$0xff]   ;;  %v769_v17 = vld [vmem:[%s818_s22 + $0x78] sm:$0xff]  }
  0x14   : > { %709 = vmatmul.mubr.msk.bf16.vlgmr.msra.gmra.mxu0 %vm310_vm0, %v756_v4  ;;  %725 = vmatmul.mubr.msk.bf16.vlgmr.msra.gmra.mxu1 %vm310_vm0, %v757_v5 }
  0x15   : > { %712 = vmatprep.mubr.msk.bf16.mxu0 %vm310_vm0, %v758_v6  ;;  %728 = vmatprep.mubr.msk.bf16.mxu1 %vm310_vm0, %v759_v7 }
  0x1c   : > { %713 = vmatmul.mubr.msk.bf16.gmra.mxu0 %vm310_vm0, %v760_v8  ;;  %729 = vmatmul.mubr.msk.bf16.gmra.mxu1 %vm310_vm0, %v761_v9 }
  0x1d   : > { %716 = vmatprep.mubr.msk.bf16.mxu0 %vm310_vm0, %v762_v10  ;;  %732 = vmatprep.mubr.msk.bf16.mxu1 %vm310_vm0, %v763_v11 }
  0x24   : > { %717 = vmatmul.mubr.msk.bf16.gmra.mxu0 %vm310_vm0, %v764_v12  ;;  %733 = vmatmul.mubr.msk.bf16.gmra.mxu1 %vm310_vm0, %v765_v13 }
  0x25   : > { %720 = vmatprep.mubr.msk.bf16.mxu0 %vm310_vm0, %v766_v14  ;;  %736 = vmatprep.mubr.msk.bf16.mxu1 %vm310_vm0, %v767_v15 }
  0x2c   : > { %721 = vmatmul.mubr.msk.bf16.gmra.mxu0 %vm310_vm0, %v768_v16  ;;  %737 = vmatmul.mubr.msk.bf16.gmra.mxu1 %vm310_vm0, %v769_v17 }
  0xd4   : > { %v710_v19 = vpop.f32.mrf.mxu0  ;;  %v726_v21 = vpop.f32.mrf.mxu1 }
  0xd5   : > { %v402_v20 = vadd.f32 %v710_v19, %v855_v18  ;;  %v466_v22 = vadd.f32 %v726_v21, %v855_v18 }
  0xd6   : > { %v393_v23 = vpop.f32.mrf.mxu0  ;;  %v457_v26 = vpop.f32.mrf.mxu1 }
  0xd7   : > { %v522_v24 = vmax.f32 %v402_v20, 0.0  ;;  %v394_v25 = vadd.f32 %v855_v18, %v393_v23  ;;  %v538_v27 = vmax.f32 %v466_v22, 0.0  ;;  %v458_v28 = vadd.f32 %v855_v18, %v457_v26 }
  0xd8   : > { %v711_v29 = vpop.f32.mrf.mxu0  ;;  %v727_v32 = vpop.f32.mrf.mxu1 }
  0xd9   : > { %554 = vst [vmem:[%s862_s28 + $0x10] sm:$0xff] %v522_v24  ;;  %v520_v30 = vmax.f32 %v394_v25, 0.0  ;;  %v405_v31 = vadd.f32 %v711_v29, %v855_v18  ;;  %570 = vst [vmem:[%s862_s28 + $0x90] sm:$0xff] %v538_v27  ;;  %v536_v33 = vmax.f32 %v458_v28, 0.0  ;;  %v469_v34 = vadd.f32 %v727_v32, %v855_v18 }
  0xda   : > { %v396_v35 = vpop.f32.mrf.mxu0  ;;  %v460_v38 = vpop.f32.mrf.mxu1 }
  0xdb   : > { %552 = vst [vmem:[%s862_s28] sm:$0xff] %v520_v30  ;;  %v523_v36 = vmax.f32 %v405_v31, 0.0  ;;  %v397_v37 = vadd.f32 %v855_v18, %v396_v35  ;;  %568 = vst [vmem:[%s862_s28 + $0x80] sm:$0xff] %v536_v33  ;;  %v539_v39 = vmax.f32 %v469_v34, 0.0  ;;  %v461_v40 = vadd.f32 %v855_v18, %v460_v38 }
  0xdc   : > { %v714_v41 = vpop.f32.mrf.mxu0  ;;  %v730_v44 = vpop.f32.mrf.mxu1 }
  0xdd   : > { %555 = vst [vmem:[%s862_s28 + $0x18] sm:$0xff] %v523_v36  ;;  %v521_v42 = vmax.f32 %v397_v37, 0.0  ;;  %v418_v43 = vadd.f32 %v714_v41, %v855_v18  ;;  %571 = vst [vmem:[%s862_s28 + $0x98] sm:$0xff] %v539_v39  ;;  %v537_v45 = vmax.f32 %v461_v40, 0.0  ;;  %v482_v46 = vadd.f32 %v730_v44, %v855_v18 }
  0xde   : > { %v409_v47 = vpop.f32.mrf.mxu0  ;;  %v473_v50 = vpop.f32.mrf.mxu1 }
  0xdf   : > { %553 = vst [vmem:[%s862_s28 + $0x8] sm:$0xff] %v521_v42  ;;  %v526_v48 = vmax.f32 %v418_v43, 0.0  ;;  %v410_v49 = vadd.f32 %v855_v18, %v409_v47  ;;  %569 = vst [vmem:[%s862_s28 + $0x88] sm:$0xff] %v537_v45  ;;  %v542_v51 = vmax.f32 %v482_v46, 0.0  ;;  %v474_v52 = vadd.f32 %v855_v18, %v473_v50 }
  0xe0   : > { %v715_v53 = vpop.f32.mrf.mxu0  ;;  %v731_v56 = vpop.f32.mrf.mxu1 }
  0xe1   : > { %558 = vst [vmem:[%s862_s28 + $0x30] sm:$0xff] %v526_v48  ;;  %v524_v54 = vmax.f32 %v410_v49, 0.0  ;;  %v421_v55 = vadd.f32 %v715_v53, %v855_v18  ;;  %574 = vst [vmem:[%s862_s28 + $0xb0] sm:$0xff] %v542_v51  ;;  %v540_v57 = vmax.f32 %v474_v52, 0.0  ;;  %v485_v58 = vadd.f32 %v731_v56, %v855_v18 }
  0xe2   : > { %v412_v59 = vpop.f32.mrf.mxu0  ;;  %v476_v62 = vpop.f32.mrf.mxu1 }
  0xe3   : > { %556 = vst [vmem:[%s862_s28 + $0x20] sm:$0xff] %v524_v54  ;;  %v527_v60 = vmax.f32 %v421_v55, 0.0  ;;  %v413_v61 = vadd.f32 %v855_v18, %v412_v59  ;;  %572 = vst [vmem:[%s862_s28 + $0xa0] sm:$0xff] %v540_v57  ;;  %v543_v63 = vmax.f32 %v485_v58, 0.0  ;;  %v477_v0 = vadd.f32 %v855_v18, %v476_v62 }
  0xe4   : > { %v718_v1 = vpop.f32.mrf.mxu0  ;;  %v734_v4 = vpop.f32.mrf.mxu1 }
  0xe5   : > { %559 = vst [vmem:[%s862_s28 + $0x38] sm:$0xff] %v527_v60  ;;  %v525_v2 = vmax.f32 %v413_v61, 0.0  ;;  %v434_v3 = vadd.f32 %v718_v1, %v855_v18  ;;  %575 = vst [vmem:[%s862_s28 + $0xb8] sm:$0xff] %v543_v63  ;;  %v541_v5 = vmax.f32 %v477_v0, 0.0  ;;  %v498_v6 = vadd.f32 %v734_v4, %v855_v18 }
  0xe6   : > { %v425_v7 = vpop.f32.mrf.mxu0  ;;  %v489_v10 = vpop.f32.mrf.mxu1 }
  0xe7   : > { %557 = vst [vmem:[%s862_s28 + $0x28] sm:$0xff] %v525_v2  ;;  %v530_v8 = vmax.f32 %v434_v3, 0.0  ;;  %v426_v9 = vadd.f32 %v855_v18, %v425_v7  ;;  %573 = vst [vmem:[%s862_s28 + $0xa8] sm:$0xff] %v541_v5  ;;  %v546_v11 = vmax.f32 %v498_v6, 0.0  ;;  %v490_v12 = vadd.f32 %v855_v18, %v489_v10 }
  0xe8   : > { %v719_v13 = vpop.f32.mrf.mxu0  ;;  %v735_v16 = vpop.f32.mrf.mxu1 }
  0xe9   : > { %562 = vst [vmem:[%s862_s28 + $0x50] sm:$0xff] %v530_v8  ;;  %v528_v14 = vmax.f32 %v426_v9, 0.0  ;;  %v437_v15 = vadd.f32 %v719_v13, %v855_v18  ;;  %578 = vst [vmem:[%s862_s28 + $0xd0] sm:$0xff] %v546_v11  ;;  %v544_v17 = vmax.f32 %v490_v12, 0.0  ;;  %v501_v19 = vadd.f32 %v735_v16, %v855_v18 }
  0xea   : > { %v428_v20 = vpop.f32.mrf.mxu0  ;;  %v492_v23 = vpop.f32.mrf.mxu1 }
  0xeb   : > { %560 = vst [vmem:[%s862_s28 + $0x40] sm:$0xff] %v528_v14  ;;  %v531_v21 = vmax.f32 %v437_v15, 0.0  ;;  %v429_v22 = vadd.f32 %v855_v18, %v428_v20  ;;  %576 = vst [vmem:[%s862_s28 + $0xc0] sm:$0xff] %v544_v17  ;;  %v547_v24 = vmax.f32 %v501_v19, 0.0  ;;  %v493_v25 = vadd.f32 %v855_v18, %v492_v23 }
  0xec   : > { %v722_v26 = vpop.f32.mrf.mxu0  ;;  %v738_v29 = vpop.f32.mrf.mxu1 }
  0xed   : > { %563 = vst [vmem:[%s862_s28 + $0x58] sm:$0xff] %v531_v21  ;;  %v529_v27 = vmax.f32 %v429_v22, 0.0  ;;  %v450_v28 = vadd.f32 %v722_v26, %v855_v18  ;;  %579 = vst [vmem:[%s862_s28 + $0xd8] sm:$0xff] %v547_v24  ;;  %v545_v30 = vmax.f32 %v493_v25, 0.0  ;;  %v514_v31 = vadd.f32 %v738_v29, %v855_v18 }
  0xee   : > { %v441_v32 = vpop.f32.mrf.mxu0  ;;  %v505_v35 = vpop.f32.mrf.mxu1 }
  0xef   : > { %561 = vst [vmem:[%s862_s28 + $0x48] sm:$0xff] %v529_v27  ;;  %v534_v33 = vmax.f32 %v450_v28, 0.0  ;;  %v442_v34 = vadd.f32 %v855_v18, %v441_v32  ;;  %577 = vst [vmem:[%s862_s28 + $0xc8] sm:$0xff] %v545_v30  ;;  %v550_v36 = vmax.f32 %v514_v31, 0.0  ;;  %v506_v37 = vadd.f32 %v855_v18, %v505_v35 }
  0xf0   : > { %v723_v38 = vpop.f32.mrf.mxu0  ;;  %v739_v41 = vpop.f32.mrf.mxu1 }
  0xf1   : > { %566 = vst [vmem:[%s862_s28 + $0x70] sm:$0xff] %v534_v33  ;;  %v532_v39 = vmax.f32 %v442_v34, 0.0  ;;  %v453_v40 = vadd.f32 %v723_v38, %v855_v18  ;;  %582 = vst [vmem:[%s862_s28 + $0xf0] sm:$0xff] %v550_v36  ;;  %v548_v42 = vmax.f32 %v506_v37, 0.0  ;;  %v517_v43 = vadd.f32 %v739_v41, %v855_v18 }
  0xf2   : > { %v444_v44 = vpop.f32.mrf.mxu0  ;;  %v508_v47 = vpop.f32.mrf.mxu1 }
  0xf3   : > { %564 = vst [vmem:[%s862_s28 + $0x60] sm:$0xff] %v532_v39  ;;  %v535_v45 = vmax.f32 %v453_v40, 0.0  ;;  %v445_v46 = vadd.f32 %v855_v18, %v444_v44  ;;  %580 = vst [vmem:[%s862_s28 + $0xe0] sm:$0xff] %v548_v42  ;;  %v551_v48 = vmax.f32 %v517_v43, 0.0  ;;  %v509_v49 = vadd.f32 %v855_v18, %v508_v47 }
  0xf5   : > { %567 = vst [vmem:[%s862_s28 + $0x78] sm:$0xff] %v535_v45  ;;  %v533_v50 = vmax.f32 %v445_v46, 0.0  ;;  %583 = vst [vmem:[%s862_s28 + $0xf8] sm:$0xff] %v551_v48  ;;  %v549_v51 = vmax.f32 %v509_v49, 0.0 }
  0xf7   : > { %565 = vst [vmem:[%s862_s28 + $0x68] sm:$0xff] %v533_v50  ;;  %581 = vst [vmem:[%s862_s28 + $0xe8] sm:$0xff] %v549_v51 }
  0xf8 PF: > { %s13_s12 = sadd.s32 1, %s776_s12  }
  0xf9   : > { %p10_p4 = scmp.ge.s32.totalorder %s13_s12, 9  }
  0xfb   :  { %12 = sbr.rel (!%p10_p4) target bundleno = 1 (0x1), region = 62 }

// kernel: simple_cnn_forward.7
= control target key start
LH: loop header
LB: loop body
LE: loop exit
PB: predicated region body
PF: predicated region fallthrough
CT: control target
= control target key end

     0   :  { %s378_s6 = smov 0   ;;  %s380_s7 = smov 0   ;;  %s429_s0 = inlined_call_operand.vmem [shape: f32[2,28,14,256], index: 0, kind: input, shape index: {}]   ;;  %s430_s1 = inlined_call_operand.vmem [shape: f32[2,14,14,128], index: 1, kind: output, shape index: {}]  }
   0x1   :  { %s382_s8 = smov 0   ;;  %s384_s9 = smov 0  }
   0x2   :  { %s386_s10 = smov 0  }
   0x3 LB: > { %s20_s11 = sadd.s32 1, %s358_s8  ;;  %s23_s12 = sadd.s32 1, %s362_s9  ;;  %s366_s10 = sphi %s386_s10, %s11_s10   ;;  %s362_s9 = sphi %s384_s9, %s434_s9   ;;  %s358_s8 = sphi %s382_s8, %s433_s8   ;;  %s354_s7 = sphi %s380_s7, %s432_s7   ;;  %s350_s6 = sphi %s378_s6, %s431_s6  }
   0x4   : > { %p21_p0 = scmp.ge.s32.totalorder %s20_s11, 14  ;;  %p274_p1 = scmp.ge.s32.totalorder %s366_s10, 1 }
   0x5   : > { %p109_p2 = scmp.lt.s32.totalorder %s366_s10, 29 }
   0x6   : > { %s436_s11 = smov (%p21_p0, %s20_s11), 0  ;;  %s438_s12 = smov (!%p21_p0, %s23_s12), %s362_s9 }
   0x7   : > { %p110_p3 = pnand %p274_p1, %p109_p2  ;;  %p25_p4 = scmp.ge.s32.totalorder %s438_s12, 2 }
   0x8   : > { %s275_s13 = sshll.u32 (!%p110_p3), %s350_s6, 1  ;;  %p139_p5 = scmp.lt.s32.totalorder (!%p110_p3), %s354_s7, 1 }
   0x9   : > { %s440_s12 = smov (%p25_p4, %s438_s12), 0  ;;  %113 = sbr.rel (%p110_p3) target bundleno = 28 (0x1c), region = 24 }
   0xa   : > { %p141_p6 = scmp.lt.s32.totalorder (!%p110_p3), %s275_s13, 27  ;;  %p151_p7 = scmp.lt.s32.totalorder (!%p110_p3), %s350_s6, 13 }
   0xe   : > { %s442_s7 = smov (!%p139_p5, %s354_s7), 1  ;;  %s444_s13 = smov (!%p141_p6, %s275_s13), 27 }
   0xf   : > { %s286_s14 = smul.u32 112, %s442_s7  ;;  %s276_s15 = sshll.u32 %s444_s13, 2 }
  0x10   : > { %s287_s21 = smul.u32 28, %s442_s7  ;;  %s446_s6 = smov (!%p151_p7, %s350_s6), 13 }
  0x11   : > { %s145_s16 = sadd.s32 %s286_s14, %s276_s15  ;;  %s278_s22 = sshll.u32 %s446_s6, 1 }
  0x12   : > { %s277_s17 = sshll.u32 %s145_s16, 3  ;;  %s155_s23 = sadd.s32 %s287_s21, %s278_s22 }
  0x13   : > { %s147_s20 = scalar_lea.vmem %s429_s0, %s277_s17  ;;  %s279_s24 = sshll.u32 %s155_s23, 3 }
  0x14   : > { %v158_v0 = vld [vmem:[%s147_s20] sm:$0xff]  ;;  %v159_v1 = vld [vmem:[%s147_s20 + $0x8] sm:$0xff]  ;;  %v160_v5 = vld [vmem:[%s147_s20 + $0x10] sm:$0x3f]  ;;  %s157_s27 = scalar_lea.vmem %s430_s1, %s279_s24 }
  0x15   : > { %v280_v2 = vld [vmem:[%s147_s20 + $0x20] sm:$0xff]  ;;  %v281_v3 = vld [vmem:[%s147_s20 + $0x28] sm:$0xff]  ;;  %v161_v6 = vld [vmem:[%s147_s20 + $0x18] sm:$0x3f] }
  0x16   : > { %v167_v4 = vmax.f32 %v158_v0, %v280_v2  ;;  %v168_v7 = vmax.f32 %v159_v1, %v281_v3  ;;  %v282_v8 = vld [vmem:[%s147_s20 + $0x30] sm:$0x3f]  ;;  %v283_v9 = vld [vmem:[%s147_s20 + $0x38] sm:$0x3f] }
  0x17   : > { %v169_v10 = vmax.f32 %v160_v5, %v282_v8  ;;  %v170_v11 = vmax.f32 %v161_v6, %v283_v9 }
  0x18   : > { %v171_v12 = vmax.f32 %v167_v4, %v168_v7 }
  0x19   : > { %v172_v13 = vmax.f32 %v169_v10, %v170_v11 }
  0x1a   : > { %173 = vst [vmem:[%s157_s27] sm:$0xff] %v171_v12 }
  0x1b   : > { %174 = vst [vmem:[%s157_s27 + $0x8] sm:$0x3f] %v172_v13 }
  0x1c PF: > { %s11_s10 = sadd.s32 1, %s366_s10   ;;  %s431_s6 = smov %s358_s8 }
  0x1d   : > { %p8_p8 = scmp.ge.s32.totalorder %s11_s10, 30   ;;  %s432_s7 = smov %s362_s9 }
  0x1e   : > { %s433_s8 = smov %s436_s11  ;;  %s434_s9 = smov %s440_s12 }
  0x1f   :  { %10 = sbr.rel (!%p8_p8) target bundleno = 3 (0x3), region = 55 }

// kernel: simple_cnn_forward.8
= control target key start
LH: loop header
LB: loop body
LE: loop exit
PB: predicated region body
PF: predicated region fallthrough
CT: control target
= control target key end

     0   :  { %s2929_s12 = smov 0   ;;  %s3589_s0 = inlined_call_operand.vmem [shape: bf16[512,800], index: 0, kind: input, shape index: {}]   ;;  %s3590_s1 = inlined_call_operand.vmem [shape: bf16[800,128], index: 1, kind: input, shape index: {}]   ;;  %s3591_s2 = inlined_call_operand.vmem [shape: f32[1,128], index: 2, kind: input, shape index: {}]   ;;  %s3592_s3 = inlined_call_operand.vmem [shape: f32[512,128], index: 3, kind: output, shape index: {}]  }
   0x1 LB: > { %s2086_s13 = sadd.s32 4294967295, %s2907_s12   ;;  %p2090_p0 = scmp.ge.s32.totalorder %s2907_s12, 1  ;;  %s2907_s12 = sphi %s2929_s12, %s13_s12  }
   0x2   : > { %p139_p1 = scmp.lt.s32.totalorder %s2907_s12, 3 }
   0x4   : > { %p140_p2 = pnand %p2090_p0, %p139_p1 }
   0x6   : > { %143 = sbr.rel (%p140_p2) target bundleno = 468 (0x1d4), region = 32 }
   0xb   : > { %v2691_v0 = vld [vmem:[%s3590_s1 + $0x78] sm:$0xff]   ;;  %s2091_s16 = sshll.u32 %s2086_s13, 5  ;;  %v2693_v2 = vld [vmem:[%s3590_s1 + $0x70] sm:$0xff]   ;;  %v2695_v4 = vld [vmem:[%s3590_s1 + $0x68] sm:$0xff]   ;;  %vm1273_vm0 = vcmask 261120  }
   0xc   : > { %v2692_v1 = vld [vmem:[%s3590_s1 + $0x38] sm:$0xff]   ;;  %2276 = vmatprep.subr.bf16.mxu0 %v2691_v0  ;;  %2666 = vmatprep.subr.bf16.mxu1 %v2691_v0  ;;  %p165_p3 = scmp.lt.s32.totalorder %s2091_s16, 63  ;;  %v2694_v3 = vld [vmem:[%s3590_s1 + $0x30] sm:$0xff]   ;;  %v2696_v5 = vld [vmem:[%s3590_s1 + $0x28] sm:$0xff]  }
   0xd   : > { %2277 = vmatpush3.bf16.msra.mxu0 %v2692_v1  ;;  %2674 = vmatpush3.bf16.msra.mxu1 %v2692_v1  ;;  %v2697_v6 = vld [vmem:[%s3590_s1 + $0x60] sm:$0xff]   ;;  %v2699_v8 = vld [vmem:[%s3590_s1 + $0x58] sm:$0xff]   ;;  %v2701_v10 = vld [vmem:[%s3590_s1 + $0x50] sm:$0xff]  }
   0xe   : > { %2278 = vmatprep.subr.bf16.mxu0 %v2693_v2  ;;  %2667 = vmatprep.subr.bf16.mxu1 %v2693_v2  ;;  %s3618_s16 = smov (!%p165_p3, %s2091_s16), 63  ;;  %v2698_v7 = vld [vmem:[%s3590_s1 + $0x20] sm:$0xff]   ;;  %v2700_v9 = vld [vmem:[%s3590_s1 + $0x18] sm:$0xff]   ;;  %v2702_v13 = vld [vmem:[%s3590_s1 + $0x10] sm:$0xff]  }
   0xf   : > { %s2682_s29 = smul.u32 28, %s3618_s16  ;;  %v2703_v14 = vld [vmem:[%s3590_s1 + $0x48] sm:$0xff]   ;;  %v2705_v16 = vld [vmem:[%s3590_s1 + $0x40] sm:$0xff]   ;;  %v2713_v18 = vld [vmem:[%s3590_s1 + $0xf8] sm:$0xff]   ;;  %s2094_s23 = sshll.u32 %s3618_s16, 3 }
  0x10   : > { %v2704_v15 = vld [vmem:[%s3590_s1 + $0x8] sm:$0xff]   ;;  %v2706_v17 = vld [vmem:[%s3590_s1] sm:$0xff]   ;;  %v2714_v21 = vld [vmem:[%s3590_s1 + $0x178] sm:$0xff]   ;;  %s3470_s26 = scalar_lea.vmem %s3592_s3, %s2094_s23 }
  0x11   : > { %2279 = vmatpush3.bf16.msra.mxu0 %v2694_v3  ;;  %2675 = vmatpush3.bf16.msra.mxu1 %v2694_v3  ;;  %s2970_s9 = scalar_lea.vmem %s3589_s0, %s2682_s29  ;;  %v2715_v22 = vld [vmem:[%s3590_s1 + $0xb8] sm:$0xff]   ;;  %v2717_v24 = vld [vmem:[%s3590_s1 + $0xf0] sm:$0xff]   ;;  %v2725_v32 = vld [vmem:[%s3590_s1 + $0xe8] sm:$0xff]  }
  0x12   : > { %2280 = vmatprep.subr.bf16.mxu0 %v2695_v4  ;;  %2668 = vmatprep.subr.bf16.mxu1 %v2695_v4  ;;  %v2709_v11 = vld [vmem:[%s2970_s9 + $0x4] ss:$28 sps:$4 sm:$0xff]   ;;  %v2716_v23 = vld [vmem:[%s3590_s1 + $0x138] sm:$0xff]   ;;  %v2728_v27 = vld [vmem:[%s3590_s1 + $0x170] sm:$0xff]  }
  0x13   : > { %v2712_v12 = vld [vmem:[%s2970_s9 + $0x2a4] ss:$28 sps:$4 sm:$0xff]   ;;  %1354 = vmatprep.mubr.bf16.mxu0 %v2709_v11  ;;  %v2719_v25 = vld [vmem:[%s2970_s9 + $0x3c] ss:$28 sps:$4 sm:$0xff]   ;;  %v2718_v28 = vld [vmem:[%s3590_s1 + $0xb0] sm:$0xff]  }
  0x14   : > { %1450 = vmatprep.mubr.bf16.mxu1 %v2712_v12  ;;  %v2707_v19 = vld [vmem:[%s2970_s9] ss:$28 sps:$4 sm:$0xff]   ;;  %v2730_v29 = vld [vmem:[%s3590_s1 + $0x130] sm:$0xff]   ;;  %v2726_v33 = vld [vmem:[%s3590_s1 + $0xa8] sm:$0xff]  }
  0x15   : > { %2281 = vmatpush3.bf16.msra.mxu0 %v2696_v5  ;;  %2676 = vmatpush3.bf16.msra.mxu1 %v2696_v5  ;;  %v2710_v20 = vld [vmem:[%s2970_s9 + $0x2a0] ss:$28 sps:$4 sm:$0xff]   ;;  %v2723_v30 = vld [vmem:[%s2970_s9 + $0x38] ss:$28 sps:$4 sm:$0xff]   ;;  %v2735_v39 = vld [vmem:[%s2970_s9 + $0x70] ss:$28 sps:$4 sm:$0xff]  }
  0x16   : > { %2282 = vmatprep.subr.bf16.mxu0 %v2697_v6  ;;  %2669 = vmatprep.subr.bf16.mxu1 %v2697_v6  ;;  %v2721_v26 = vld [vmem:[%s2970_s9 + $0x2dc] ss:$28 sps:$4 sm:$0xff]   ;;  %v2727_v34 = vld [vmem:[%s3590_s1 + $0xe0] sm:$0xff]   ;;  %v2731_v35 = vld [vmem:[%s2970_s9 + $0x74] ss:$28 sps:$4 sm:$0xff]  }
  0x17   : > { %v2724_v31 = vld [vmem:[%s2970_s9 + $0x2d8] ss:$28 sps:$4 sm:$0xff]   ;;  %v2729_v37 = vld [vmem:[%s3590_s1 + $0xa0] sm:$0xff]   ;;  %v2736_v40 = vld [vmem:[%s2970_s9 + $0x310] ss:$28 sps:$4 sm:$0xff]  }
  0x18   : > { %v2733_v36 = vld [vmem:[%s2970_s9 + $0x314] ss:$28 sps:$4 sm:$0xff]   ;;  %v2737_v38 = vld [vmem:[%s3590_s1 + $0xd8] sm:$0xff]   ;;  %v2748_v41 = vld [vmem:[%s3590_s1 + $0x168] sm:$0xff]  }
  0x19   : > { %2283 = vmatpush3.bf16.msra.mxu0 %v2698_v7  ;;  %2677 = vmatpush3.bf16.msra.mxu1 %v2698_v7  ;;  %v2738_v42 = vld [vmem:[%s3590_s1 + $0x98] sm:$0xff]   ;;  %v2739_v43 = vld [vmem:[%s3590_s1 + $0xd0] sm:$0xff]   ;;  %v2750_v44 = vld [vmem:[%s3590_s1 + $0x128] sm:$0xff]  }
  0x1a   : > { %2284 = vmatprep.subr.bf16.mxu0 %v2699_v8  ;;  %2670 = vmatprep.subr.bf16.mxu1 %v2699_v8  ;;  %v2741_v45 = vld [vmem:[%s2970_s9 + $0xac] ss:$28 sps:$4 sm:$0xff]   ;;  %v2740_v47 = vld [vmem:[%s3590_s1 + $0x90] sm:$0xff]   ;;  %v2759_v51 = vld [vmem:[%s3590_s1 + $0x160] sm:$0xff]  }
  0x1b   : > { %v2743_v46 = vld [vmem:[%s2970_s9 + $0x34c] ss:$28 sps:$4 sm:$0xff]   ;;  %v2761_v53 = vld [vmem:[%s3590_s1 + $0x120] sm:$0xff]   ;;  %v2774_v60 = vld [vmem:[%s3590_s1 + $0x158] sm:$0xff]  }
  0x1c   : > { %v2747_v48 = vld [vmem:[%s3590_s1 + $0xc8] sm:$0xff]   ;;  %v2753_v54 = vld [vmem:[%s2970_s9 + $0xe4] ss:$28 sps:$4 sm:$0xff]   ;;  %v2775_v61 = vld [vmem:[%s3590_s1 + $0x118] sm:$0xff]  }
  0x1d   : > { %2285 = vmatpush3.bf16.msra.mxu0 %v2700_v9  ;;  %2678 = vmatpush3.bf16.msra.mxu1 %v2700_v9  ;;  %v2745_v49 = vld [vmem:[%s2970_s9 + $0xa8] ss:$28 sps:$4 sm:$0xff]   ;;  %v2758_v62 = vld [vmem:[%s2970_s9 + $0xe0] ss:$28 sps:$4 sm:$0xff]   ;;  %v2782_v1 = vld [vmem:[%s3590_s1 + $0x150] sm:$0xff]  }
  0x1e   : > { %2286 = vmatprep.subr.bf16.mxu0 %v2701_v10  ;;  %2671 = vmatprep.subr.bf16.mxu1 %v2701_v10  ;;  %v2746_v50 = vld [vmem:[%s2970_s9 + $0x348] ss:$28 sps:$4 sm:$0xff]   ;;  %v2762_v63 = vld [vmem:[%s2970_s9 + $0x11c] ss:$28 sps:$4 sm:$0xff]   ;;  %v2783_v2 = vld [vmem:[%s3590_s1 + $0x110] sm:$0xff]  }
  0x1f   : > { %v2749_v52 = vld [vmem:[%s3590_s1 + $0x88] sm:$0xff]   ;;  %v2751_v55 = vld [vmem:[%s3590_s1 + $0xc0] sm:$0xff]   ;;  %v2766_v3 = vld [vmem:[%s2970_s9 + $0x118] ss:$28 sps:$4 sm:$0xff]  }
  0x20   : > { %v2757_v56 = vld [vmem:[%s2970_s9 + $0xc] ss:$28 sps:$4 sm:$0xff]   ;;  %v2752_v57 = vld [vmem:[%s3590_s1 + $0x80] sm:$0xff]   ;;  %v2768_v5 = vld [vmem:[%s2970_s9 + $0x154] ss:$28 sps:$4 sm:$0xff]  }
  0x21   : > { %2287 = vmatpush3.bf16.msra.mxu0 %v2702_v13  ;;  %2679 = vmatpush3.bf16.msra.mxu1 %v2702_v13  ;;  %v2760_v58 = vld [vmem:[%s3590_s1 + $0x188] sm:$0xff]   ;;  %v2764_v0 = vld [vmem:[%s2970_s9 + $0x44] ss:$28 sps:$4 sm:$0xff]   ;;  %v2770_v6 = vld [vmem:[%s2970_s9 + $0x7c] ss:$28 sps:$4 sm:$0xff]  }
  0x22   : > { %2288 = vmatprep.subr.bf16.mxu0 %v2703_v14  ;;  %2672 = vmatprep.subr.bf16.mxu1 %v2703_v14  ;;  %v2755_v59 = vld [vmem:[%s2970_s9 + $0x8] ss:$28 sps:$4 sm:$0xff]   ;;  %v2767_v4 = vld [vmem:[%s2970_s9 + $0x40] ss:$28 sps:$4 sm:$0xff]   ;;  %v2772_v9 = vld [vmem:[%s2970_s9 + $0x150] ss:$28 sps:$4 sm:$0xff]  }
  0x23   : > { %v2796_v7 = vld [vmem:[%s3590_s1 + $0x148] sm:$0xff]   ;;  %v2773_v10 = vld [vmem:[%s2970_s9 + $0x78] ss:$28 sps:$4 sm:$0xff]   ;;  %v2804_v12 = vld [vmem:[%s3590_s1 + $0x140] sm:$0xff]  }
  0x24   : > { %v2797_v8 = vld [vmem:[%s3590_s1 + $0x108] sm:$0xff]   ;;  %v2805_v13 = vld [vmem:[%s3590_s1 + $0x100] sm:$0xff]   ;;  %v2778_v14 = vld [vmem:[%s2970_s9 + $0xb4] ss:$28 sps:$4 sm:$0xff]  }
  0x25   : > { %2289 = vmatpush3.bf16.msra.mxu0 %v2704_v15  ;;  %2680 = vmatpush3.bf16.msra.mxu1 %v2704_v15  ;;  %v2776_v11 = vld [vmem:[%s2970_s9 + $0x18c] ss:$28 sps:$4 sm:$0xff]   ;;  %v2818_v15 = vld [vmem:[%s3590_s1 + $0x180] sm:$0xff]  }
  0x26   : > { %2290 = vmatprep.subr.bf16.mxu0 %v2705_v16  ;;  %2673 = vmatprep.subr.bf16.mxu1 %v2705_v16  ;;  %v2780_v16 = vld [vmem:[%s2970_s9 + $0x188] ss:$28 sps:$4 sm:$0xff]  }
  0x29   : > { %2291 = vmatpush3.bf16.msra.mxu0 %v2706_v17  ;;  %2681 = vmatpush3.bf16.msra.mxu1 %v2706_v17  ;;  %v2781_v17 = vld [vmem:[%s2970_s9 + $0xb0] ss:$28 sps:$4 sm:$0xff]  }
  0x2a   : > { %2388 = vmatprep.subr.bf16.mxu1 %v2713_v18  ;;  %2500 = vmatprep.subr.bf16.mxu0 %v2714_v21  ;;  %v2784_v18 = vld [vmem:[%s2970_s9 + $0x1c4] ss:$28 sps:$4 sm:$0xff]  }
  0x2b   : > { %v2789_v21 = vld [vmem:[%s2970_s9 + $0xe8] ss:$28 sps:$4 sm:$0xff]  }
  0x2c   : > { %1355 = vmatmul.mubr.bf16.vlgmr.msra.gmra.mxu0 %v2707_v19  ;;  %1451 = vmatmul.mubr.bf16.vlgmr.msra.gmra.mxu1 %v2710_v20  ;;  %v2786_v19 = vld [vmem:[%s2970_s9 + $0xec] ss:$28 sps:$4 sm:$0xff]   ;;  %v2788_v20 = vld [vmem:[%s2970_s9 + $0x1c0] ss:$28 sps:$4 sm:$0xff]  }
  0x2d   : > { %2389 = vmatpush3.bf16.msra.mxu1 %v2715_v22  ;;  %2501 = vmatpush3.bf16.msra.mxu0 %v2716_v23  ;;  %v2790_v22 = vld [vmem:[%s2970_s9 + $0x1fc] ss:$28 sps:$4 sm:$0xff]   ;;  %v2792_v23 = vld [vmem:[%s2970_s9 + $0x124] ss:$28 sps:$4 sm:$0xff]  }
  0x2e   : > { %2390 = vmatprep.subr.bf16.mxu1 %v2717_v24  ;;  %1362 = vmatprep.mubr.bf16.mxu0 %v2719_v25  ;;  %v2794_v24 = vld [vmem:[%s2970_s9 + $0x1f8] ss:$28 sps:$4 sm:$0xff]   ;;  %v2795_v25 = vld [vmem:[%s2970_s9 + $0x120] ss:$28 sps:$4 sm:$0xff]  }
  0x2f   : > { %1458 = vmatprep.mubr.bf16.mxu1 %v2721_v26  ;;  %2502 = vmatprep.subr.bf16.mxu0 %v2728_v27  ;;  %v2798_v26 = vld [vmem:[%s2970_s9 + $0x234] ss:$28 sps:$4 sm:$0xff]   ;;  %v2800_v27 = vld [vmem:[%s2970_s9 + $0x15c] ss:$28 sps:$4 sm:$0xff]  }
  0x31   : > { %2391 = vmatpush3.bf16.msra.mxu1 %v2718_v28  ;;  %2503 = vmatpush3.bf16.msra.mxu0 %v2730_v29  ;;  %v2802_v28 = vld [vmem:[%s2970_s9 + $0x230] ss:$28 sps:$4 sm:$0xff]   ;;  %v2803_v29 = vld [vmem:[%s2970_s9 + $0x158] ss:$28 sps:$4 sm:$0xff]  }
  0x32   : > { %2392 = vmatprep.subr.bf16.mxu1 %v2725_v32  ;;  %2504 = vmatprep.subr.bf16.mxu0 %v2748_v41  ;;  %v2810_v32 = vld [vmem:[%s2970_s9 + $0x268] ss:$28 sps:$4 sm:$0xff]  }
  0x33   : > { %v2824_v41 = vld [vmem:[%s2970_s9 + $0x48] ss:$28 sps:$4 sm:$0xff]  }
  0x34   : > { %1363 = vmatmul.mubr.bf16.gmra.mxu0 %v2723_v30  ;;  %1459 = vmatmul.mubr.bf16.gmra.mxu1 %v2724_v31  ;;  %v2806_v30 = vld [vmem:[%s2970_s9 + $0x26c] ss:$28 sps:$4 sm:$0xff]   ;;  %v2808_v31 = vld [vmem:[%s2970_s9 + $0x194] ss:$28 sps:$4 sm:$0xff]  }
  0x35   : > { %2393 = vmatpush3.bf16.msra.mxu1 %v2726_v33  ;;  %1370 = vmatprep.mubr.bf16.mxu0 %v2731_v35  ;;  %v2811_v33 = vld [vmem:[%s2970_s9 + $0x190] ss:$28 sps:$4 sm:$0xff]  }
  0x36   : > { %2394 = vmatprep.subr.bf16.mxu1 %v2727_v34  ;;  %1466 = vmatprep.mubr.bf16.mxu1 %v2733_v36  ;;  %v2812_v34 = vld [vmem:[%s2970_s9 + $0x1cc] ss:$28 sps:$4 sm:$0xff]   ;;  %v2816_v35 = vld [vmem:[%s2970_s9 + $0x14] ss:$28 sps:$4 sm:$0xff]  }
  0x37   : > { %2505 = vmatpush3.bf16.msra.mxu0 %v2750_v44  ;;  %v2814_v36 = vld [vmem:[%s2970_s9 + $0x10] ss:$28 sps:$4 sm:$0xff]   ;;  %v2829_v44 = vld [vmem:[%s2970_s9 + $0x238] ss:$28 sps:$4 sm:$0xff]  }
  0x38   : > { %2506 = vmatprep.subr.bf16.mxu0 %v2759_v51  ;;  %v2839_v51 = vld [vmem:[%s2970_s9 + $0xf4] ss:$28 sps:$4 sm:$0xff]  }
  0x39   : > { %2395 = vmatpush3.bf16.msra.mxu1 %v2729_v37  ;;  %v2817_v37 = vld [vmem:[%s2970_s9 + $0x1c8] ss:$28 sps:$4 sm:$0xff]  }
  0x3a   : > { %2396 = vmatprep.subr.bf16.mxu1 %v2737_v38  ;;  %v2819_v38 = vld [vmem:[%s2970_s9 + $0x204] ss:$28 sps:$4 sm:$0xff]  }
  0x3b   : > { %2507 = vmatpush3.bf16.msra.mxu0 %v2761_v53  ;;  %v2842_v53 = vld [vmem:[%s2970_s9 + $0xf0] ss:$28 sps:$4 sm:$0xff]  }
  0x3c   : > { %1371 = vmatmul.mubr.bf16.gmra.mxu0 %v2735_v39  ;;  %1467 = vmatmul.mubr.bf16.gmra.mxu1 %v2736_v40  ;;  %v2821_v39 = vld [vmem:[%s2970_s9 + $0x4c] ss:$28 sps:$4 sm:$0xff]   ;;  %v2823_v40 = vld [vmem:[%s2970_s9 + $0x200] ss:$28 sps:$4 sm:$0xff]  }
  0x3d   : > { %2397 = vmatpush3.bf16.msra.mxu1 %v2738_v42  ;;  %1378 = vmatprep.mubr.bf16.mxu0 %v2741_v45  ;;  %v2825_v42 = vld [vmem:[%s2970_s9 + $0x23c] ss:$28 sps:$4 sm:$0xff]  }
  0x3e   : > { %2398 = vmatprep.subr.bf16.mxu1 %v2739_v43  ;;  %1474 = vmatprep.mubr.bf16.mxu1 %v2743_v46  ;;  %v2827_v43 = vld [vmem:[%s2970_s9 + $0x84] ss:$28 sps:$4 sm:$0xff]   ;;  %v2831_v46 = vld [vmem:[%s2970_s9 + $0x274] ss:$28 sps:$4 sm:$0xff]  }
  0x3f   : > { %2508 = vmatprep.subr.bf16.mxu0 %v2774_v60  ;;  %v2830_v45 = vld [vmem:[%s2970_s9 + $0x80] ss:$28 sps:$4 sm:$0xff]   ;;  %v2853_v60 = vld [vmem:[%s2970_s9 + $0x318] ss:$28 sps:$4 sm:$0xff]  }
  0x40   : > { %2509 = vmatpush3.bf16.msra.mxu0 %v2775_v61  ;;  %v2854_v61 = vld [vmem:[%s2970_s9 + $0x160] ss:$28 sps:$4 sm:$0xff]  }
  0x41   : > { %2399 = vmatpush3.bf16.msra.mxu1 %v2740_v47  ;;  %2510 = vmatprep.subr.bf16.mxu0 %v2782_v1  ;;  %v2833_v47 = vld [vmem:[%s2970_s9 + $0xbc] ss:$28 sps:$4 sm:$0xff]  }
  0x42   : > { %2400 = vmatprep.subr.bf16.mxu1 %v2747_v48  ;;  %v2835_v48 = vld [vmem:[%s2970_s9 + $0x270] ss:$28 sps:$4 sm:$0xff]   ;;  %v2860_v1 = vld [vmem:[%s2970_s9 + $0x198] ss:$28 sps:$4 sm:$0xff]  }
  0x44   : > { %1379 = vmatmul.mubr.bf16.gmra.mxu0 %v2745_v49  ;;  %1475 = vmatmul.mubr.bf16.gmra.mxu1 %v2746_v50  ;;  %v2836_v49 = vld [vmem:[%s2970_s9 + $0xb8] ss:$28 sps:$4 sm:$0xff]   ;;  %v2837_v50 = vld [vmem:[%s2970_s9 + $0x2ac] ss:$28 sps:$4 sm:$0xff]  }
  0x45   : > { %2401 = vmatpush3.bf16.msra.mxu1 %v2749_v52  ;;  %1386 = vmatprep.mubr.bf16.mxu0 %v2753_v54  ;;  %v2841_v52 = vld [vmem:[%s2970_s9 + $0x2a8] ss:$28 sps:$4 sm:$0xff]  }
  0x46   : > { %2402 = vmatprep.subr.bf16.mxu1 %v2751_v55  ;;  %1515 = vmatprep.mubr.bf16.mxu1 %v2757_v56  ;;  %v2843_v54 = vld [vmem:[%s2970_s9 + $0x2e4] ss:$28 sps:$4 sm:$0xff]   ;;  %v2845_v55 = vld [vmem:[%s2970_s9 + $0x12c] ss:$28 sps:$4 sm:$0xff]  }
  0x47   : > { %2511 = vmatpush3.bf16.msra.mxu0 %v2783_v2  ;;  %v2847_v56 = vld [vmem:[%s2970_s9 + $0x2e0] ss:$28 sps:$4 sm:$0xff]   ;;  %v2861_v2 = vld [vmem:[%s2970_s9 + $0x1d4] ss:$28 sps:$4 sm:$0xff]  }
  0x48   : > { %2512 = vmatprep.subr.bf16.mxu0 %v2796_v7  ;;  %v2868_v7 = vld [vmem:[%s2970_s9 + $0x88] ss:$28 sps:$4 sm:$0xff]  }
  0x49   : > { %2403 = vmatpush3.bf16.msra.mxu1 %v2752_v57  ;;  %v2848_v57 = vld [vmem:[%s2970_s9 + $0x128] ss:$28 sps:$4 sm:$0xff]  }
  0x4a   : > { %2630 = vmatprep.subr.bf16.mxu1 %v2760_v58 }
  0x4b   : > { %2513 = vmatpush3.bf16.msra.mxu0 %v2797_v8  ;;  %v2869_v8 = vld [vmem:[%s2970_s9 + $0x208] ss:$28 sps:$4 sm:$0xff]  }
  0x4c   : > { %1387 = vmatmul.mubr.bf16.gmra.mxu0 %v2758_v62  ;;  %1516 = vmatmul.mubr.bf16.vlgmr.msra.gmra.mxu1 %v2755_v59  ;;  %v2851_v59 = vld [vmem:[%s2970_s9 + $0x164] ss:$28 sps:$4 sm:$0xff]   ;;  %v2855_v62 = vld [vmem:[%s2970_s9 + $0x354] ss:$28 sps:$4 sm:$0xff]  }
  0x4d   : > { %2631 = vmatpush3.bf16.msra.mxu1 %v2760_v58  ;;  %1394 = vmatprep.mubr.bf16.mxu0 %v2762_v63  ;;  %v2849_v58 = vld [vmem:[%s2970_s9 + $0x31c] ss:$28 sps:$4 sm:$0xff]  }
  0x4e   : > { %1523 = vmatprep.mubr.bf16.mxu1 %v2764_v0  ;;  %2514 = vmatprep.subr.bf16.mxu0 %v2804_v12  ;;  %v2857_v63 = vld [vmem:[%s2970_s9 + $0x19c] ss:$28 sps:$4 sm:$0xff]   ;;  %v2859_v0 = vld [vmem:[%s2970_s9 + $0x350] ss:$28 sps:$4 sm:$0xff]  }
  0x4f   : > { %2515 = vmatpush3.bf16.msra.mxu0 %v2805_v13  ;;  %2632 = vmatprep.subr.bf16.mxu1 %v2818_v15  ;;  %v2874_v12 = vld [vmem:[%s2970_s9 + $0x240] ss:$28 sps:$4 sm:$0xff]   ;;  %v2875_v13 = vld [vmem:[%s2970_s9 + $0x130] ss:$28 sps:$4 sm:$0xff]  }
  0x51   : > { %2633 = vmatpush3.bf16.msra.mxu1 %v2818_v15  ;;  %v2878_v15 = vld [vmem:[%s2970_s9 + $0x168] ss:$28 sps:$4 sm:$0xff]  }
  0x54   : > { %1395 = vmatmul.mubr.bf16.gmra.mxu0 %v2766_v3  ;;  %1524 = vmatmul.mubr.bf16.gmra.mxu1 %v2767_v4  ;;  %v2863_v3 = vld [vmem:[%s2970_s9 + $0x18] ss:$28 sps:$4 sm:$0xff]   ;;  %v2864_v4 = vld [vmem:[%s2970_s9 + $0x1d0] ss:$28 sps:$4 sm:$0xff]  }
  0x55   : > { %1402 = vmatprep.mubr.bf16.mxu0 %v2768_v5  ;;  %1531 = vmatprep.mubr.bf16.mxu1 %v2770_v6  ;;  %v2865_v5 = vld [vmem:[%s2970_s9 + $0x50] ss:$28 sps:$4 sm:$0xff]  }
  0x56   : > { %v2866_v6 = vld [vmem:[%s2970_s9 + $0x20c] ss:$28 sps:$4 sm:$0xff]  }
  0x5c   : > { %1403 = vmatmul.mubr.bf16.gmra.mxu0 %v2772_v9  ;;  %1532 = vmatmul.mubr.bf16.gmra.mxu1 %v2773_v10  ;;  %v2870_v9 = vld [vmem:[%s2970_s9 + $0xc0] ss:$28 sps:$4 sm:$0xff]  }
  0x5d   : > { %1410 = vmatprep.mubr.bf16.mxu0 %v2776_v11  ;;  %1539 = vmatprep.mubr.bf16.mxu1 %v2778_v14  ;;  %v2871_v10 = vld [vmem:[%s2970_s9 + $0x244] ss:$28 sps:$4 sm:$0xff]   ;;  %v2873_v11 = vld [vmem:[%s2970_s9 + $0xf8] ss:$28 sps:$4 sm:$0xff]  }
  0x5e   : > { %v2876_v14 = vld [vmem:[%s2970_s9 + $0x27c] ss:$28 sps:$4 sm:$0xff]  }
  0x64   : > { %1411 = vmatmul.mubr.bf16.gmra.mxu0 %v2780_v16  ;;  %1540 = vmatmul.mubr.bf16.gmra.mxu1 %v2781_v17  ;;  %v2879_v16 = vld [vmem:[%s2970_s9 + $0x278] ss:$28 sps:$4 sm:$0xff]   ;;  %v2880_v17 = vld [vmem:[%s2970_s9 + $0x1a0] ss:$28 sps:$4 sm:$0xff]  }
  0x65   : > { %1418 = vmatprep.mubr.bf16.mxu0 %v2784_v18  ;;  %1547 = vmatprep.mubr.bf16.mxu1 %v2786_v19  ;;  %v2881_v18 = vld [vmem:[%s2970_s9 + $0x2b4] ss:$28 sps:$4 sm:$0xff]  }
  0x66   : > { %v2883_v19 = vld [vmem:[%s2970_s9 + $0x1d8] ss:$28 sps:$4 sm:$0xff]  }
  0x6c   : > { %1419 = vmatmul.mubr.bf16.gmra.mxu0 %v2788_v20  ;;  %1548 = vmatmul.mubr.bf16.gmra.mxu1 %v2789_v21  ;;  %v2884_v20 = vld [vmem:[%s2970_s9 + $0x2b0] ss:$28 sps:$4 sm:$0xff]  }
  0x6d   : > { %1426 = vmatprep.mubr.bf16.mxu0 %v2790_v22  ;;  %1555 = vmatprep.mubr.bf16.mxu1 %v2792_v23  ;;  %v2885_v21 = vld [vmem:[%s2970_s9 + $0x210] ss:$28 sps:$4 sm:$0xff]   ;;  %v2888_v23 = vld [vmem:[%s2970_s9 + $0x248] ss:$28 sps:$4 sm:$0xff]  }
  0x6e   : > { %v2886_v22 = vld [vmem:[%s2970_s9 + $0x2ec] ss:$28 sps:$4 sm:$0xff]  }
  0x74   : > { %1427 = vmatmul.mubr.bf16.gmra.mxu0 %v2794_v24  ;;  %1556 = vmatmul.mubr.bf16.gmra.mxu1 %v2795_v25 }
  0x75   : > { %1434 = vmatprep.mubr.bf16.mxu0 %v2798_v26  ;;  %1563 = vmatprep.mubr.bf16.mxu1 %v2800_v27 }
  0x7c   : > { %1435 = vmatmul.mubr.bf16.gmra.mxu0 %v2802_v28  ;;  %1564 = vmatmul.mubr.bf16.gmra.mxu1 %v2803_v29 }
  0x7d   : > { %1442 = vmatprep.mubr.bf16.mxu0 %v2806_v30  ;;  %1571 = vmatprep.mubr.bf16.mxu1 %v2808_v31 }
  0x84   : > { %1443 = vmatmul.mubr.bf16.gmra.mxu0 %v2810_v32  ;;  %1572 = vmatmul.mubr.bf16.gmra.mxu1 %v2811_v33  ;;  %v2889_v32 = vld [vmem:[%s2970_s9 + $0x2e8] ss:$28 sps:$4 sm:$0xff]   ;;  %v2890_v33 = vld [vmem:[%s2970_s9 + $0x280] ss:$28 sps:$4 sm:$0xff]  }
  0x85   : > { %1579 = vmatprep.mubr.bf16.mxu1 %v2812_v34  ;;  %1676 = vmatprep.mubr.bf16.mxu0 %v2816_v35  ;;  %v2891_v34 = vld [vmem:[%s2970_s9 + $0x324] ss:$28 sps:$4 sm:$0xff]   ;;  %v2893_v35 = vld [vmem:[%s2970_s9 + $0x2b8] ss:$28 sps:$4 sm:$0xff]  }
  0x8c   : > { %1580 = vmatmul.mubr.bf16.gmra.mxu1 %v2817_v37  ;;  %1677 = vmatmul.mubr.bf16.vlgmr.msra.gmra.mxu0 %v2814_v36 }
  0x8d   : > { %1587 = vmatprep.mubr.bf16.mxu1 %v2819_v38  ;;  %1684 = vmatprep.mubr.bf16.mxu0 %v2821_v39 }
  0x94   : > { %1588 = vmatmul.mubr.bf16.gmra.mxu1 %v2823_v40  ;;  %1685 = vmatmul.mubr.bf16.gmra.mxu0 %v2824_v41 }
  0x95   : > { %1595 = vmatprep.mubr.bf16.mxu1 %v2825_v42  ;;  %1692 = vmatprep.mubr.bf16.mxu0 %v2827_v43 }
  0x9c   : > { %1596 = vmatmul.mubr.bf16.gmra.mxu1 %v2829_v44  ;;  %1693 = vmatmul.mubr.bf16.gmra.mxu0 %v2830_v45 }
  0x9d   : > { %1603 = vmatprep.mubr.bf16.mxu1 %v2831_v46  ;;  %1700 = vmatprep.mubr.bf16.mxu0 %v2833_v47 }
  0xa4   : > { %1604 = vmatmul.mubr.bf16.gmra.mxu1 %v2835_v48  ;;  %1701 = vmatmul.mubr.bf16.gmra.mxu0 %v2836_v49  ;;  %v2894_v48 = vld [vmem:[%s2970_s9 + $0x320] ss:$28 sps:$4 sm:$0xff]   ;;  %v2895_v49 = vld [vmem:[%s2970_s9 + $0x2f0] ss:$28 sps:$4 sm:$0xff]  }
  0xa5   : > { %1611 = vmatprep.mubr.bf16.mxu1 %v2837_v50  ;;  %1708 = vmatprep.mubr.bf16.mxu0 %v2839_v51  ;;  %v2896_v50 = vld [vmem:[%s2970_s9 + $0x35c] ss:$28 sps:$4 sm:$0xff]   ;;  %v2898_v51 = vld [vmem:[%s2970_s9 + $0x328] ss:$28 sps:$4 sm:$0xff]  }
  0xac   : > { %1612 = vmatmul.mubr.bf16.gmra.mxu1 %v2841_v52  ;;  %1709 = vmatmul.mubr.bf16.gmra.mxu0 %v2842_v53 }
  0xad   : > { %1619 = vmatprep.mubr.bf16.mxu1 %v2843_v54  ;;  %1716 = vmatprep.mubr.bf16.mxu0 %v2845_v55 }
  0xb4   : > { %1620 = vmatmul.mubr.bf16.gmra.mxu1 %v2847_v56  ;;  %1717 = vmatmul.mubr.bf16.gmra.mxu0 %v2848_v57 }
  0xb5   : > { %1627 = vmatprep.mubr.bf16.mxu1 %v2849_v58  ;;  %1724 = vmatprep.mubr.bf16.mxu0 %v2851_v59 }
  0xbc   : > { %1628 = vmatmul.mubr.bf16.gmra.mxu1 %v2853_v60  ;;  %1725 = vmatmul.mubr.bf16.gmra.mxu0 %v2854_v61 }
  0xbd   : > { %1635 = vmatprep.mubr.bf16.mxu1 %v2855_v62  ;;  %1732 = vmatprep.mubr.bf16.mxu0 %v2857_v63 }
  0xc4   : > { %1636 = vmatmul.mubr.bf16.gmra.mxu1 %v2859_v0  ;;  %1733 = vmatmul.mubr.bf16.gmra.mxu0 %v2860_v1  ;;  %v2899_v0 = vld [vmem:[%s2970_s9 + $0x358] ss:$28 sps:$4 sm:$0xff]   ;;  %v2900_v1 = vld [vmem:[%s2970_s9 + $0x360] ss:$28 sps:$4 sm:$0xff]  }
  0xc5   : > { %1740 = vmatprep.mubr.bf16.mxu0 %v2861_v2  ;;  %2634 = vmatprep.mubr.msk.bf16.mxu1 %vm1273_vm0, %v2863_v3 }
  0xcc   : > { %1741 = vmatmul.mubr.bf16.gmra.mxu0 %v2864_v4  ;;  %2635 = vmatmul.mubr.msk.bf16.vlgmr.msra.gmra.mxu1 %vm1273_vm0, %v2865_v5 }
  0xcd   : > { %1748 = vmatprep.mubr.bf16.mxu0 %v2866_v6  ;;  %2638 = vmatprep.mubr.msk.bf16.mxu1 %vm1273_vm0, %v2868_v7 }
  0xd4   : > { %1749 = vmatmul.mubr.bf16.gmra.mxu0 %v2869_v8  ;;  %2639 = vmatmul.mubr.msk.bf16.gmra.mxu1 %vm1273_vm0, %v2870_v9 }
  0xd5   : > { %1756 = vmatprep.mubr.bf16.mxu0 %v2871_v10  ;;  %2642 = vmatprep.mubr.msk.bf16.mxu1 %vm1273_vm0, %v2873_v11 }
  0xdc   : > { %1757 = vmatmul.mubr.bf16.gmra.mxu0 %v2874_v12  ;;  %2643 = vmatmul.mubr.msk.bf16.gmra.mxu1 %vm1273_vm0, %v2875_v13 }
  0xdd   : > { %1764 = vmatprep.mubr.bf16.mxu0 %v2876_v14  ;;  %2646 = vmatprep.mubr.msk.bf16.mxu1 %vm1273_vm0, %v2878_v15 }
  0xe4   : > { %1765 = vmatmul.mubr.bf16.gmra.mxu0 %v2879_v16  ;;  %2647 = vmatmul.mubr.msk.bf16.gmra.mxu1 %vm1273_vm0, %v2880_v17 }
  0xe5   : > { %1772 = vmatprep.mubr.bf16.mxu0 %v2881_v18  ;;  %2650 = vmatprep.mubr.msk.bf16.mxu1 %vm1273_vm0, %v2883_v19  ;;  %v3252_v18 = vld [vmem:[%s3591_s2] ss:$0 sm:$0xff] }
  0xec   : > { %v2292_v24 = vpop.f32.mrf.mxu0  ;;  %v2364_v25 = vpop.f32.mrf.mxu1  ;;  %1773 = vmatmul.mubr.bf16.gmra.mxu0 %v2884_v20  ;;  %2651 = vmatmul.mubr.msk.bf16.gmra.mxu1 %vm1273_vm0, %v2885_v21 }
  0xed   : > { %1780 = vmatprep.mubr.bf16.mxu0 %v2886_v22  ;;  %2654 = vmatprep.mubr.msk.bf16.mxu1 %vm1273_vm0, %v2888_v23 }
  0xee   : > { %v2293_v26 = vpop.f32.mrf.mxu0  ;;  %v2365_v27 = vpop.f32.mrf.mxu1 }
  0xef   : > { %v3208_v28 = vadd.f32 %v2293_v26, %v2292_v24  ;;  %v3210_v29 = vadd.f32 %v2365_v27, %v2364_v25 }
  0xf0   : > { %v2295_v30 = vpop.f32.mrf.mxu0  ;;  %v2367_v31 = vpop.f32.mrf.mxu1 }
  0xf1   : > { %v1357_v23 = vadd.f32 %v3208_v28, %v3252_v18 }
  0xf2   : > { %v2296_v36 = vpop.f32.mrf.mxu0  ;;  %v2368_v37 = vpop.f32.mrf.mxu1 }
  0xf3   : > { %v3216_v38 = vadd.f32 %v2296_v36, %v2295_v30  ;;  %v3218_v39 = vadd.f32 %v2368_v37, %v2367_v31 }
  0xf4   : > { %v2298_v40 = vpop.f32.mrf.mxu0  ;;  %v2370_v41 = vpop.f32.mrf.mxu1  ;;  %1781 = vmatmul.mubr.bf16.gmra.mxu0 %v2889_v32  ;;  %2655 = vmatmul.mubr.msk.bf16.gmra.mxu1 %vm1273_vm0, %v2890_v33 }
  0xf5   : > { %1788 = vmatprep.mubr.bf16.mxu0 %v2891_v34  ;;  %2658 = vmatprep.mubr.msk.bf16.mxu1 %vm1273_vm0, %v2893_v35  ;;  %v1360_v33 = vadd.f32 %v3216_v38, %v3252_v18 }
  0xf6   : > { %v2299_v42 = vpop.f32.mrf.mxu0  ;;  %v2371_v43 = vpop.f32.mrf.mxu1 }
  0xf7   : > { %v3222_v44 = vadd.f32 %v2299_v42, %v2298_v40  ;;  %v3224_v45 = vadd.f32 %v2371_v43, %v2370_v41 }
  0xf8   : > { %v2301_v46 = vpop.f32.mrf.mxu0  ;;  %v2373_v47 = vpop.f32.mrf.mxu1 }
  0xf9   : > { %v1365_v42 = vadd.f32 %v3222_v44, %v3252_v18 }
  0xfa   : > { %v2302_v52 = vpop.f32.mrf.mxu0  ;;  %v2374_v53 = vpop.f32.mrf.mxu1 }
  0xfb   : > { %v3230_v54 = vadd.f32 %v2302_v52, %v2301_v46  ;;  %v3232_v55 = vadd.f32 %v2374_v53, %v2373_v47 }
  0xfc   : > { %v2304_v56 = vpop.f32.mrf.mxu0  ;;  %v2376_v57 = vpop.f32.mrf.mxu1  ;;  %1789 = vmatmul.mubr.bf16.gmra.mxu0 %v2894_v48  ;;  %2659 = vmatmul.mubr.msk.bf16.gmra.mxu1 %vm1273_vm0, %v2895_v49 }
  0xfd   : > { %1796 = vmatprep.mubr.bf16.mxu0 %v2896_v50  ;;  %2662 = vmatprep.mubr.msk.bf16.mxu1 %vm1273_vm0, %v2898_v51  ;;  %v1368_v51 = vadd.f32 %v3230_v54, %v3252_v18 }
  0xfe   : > { %v2305_v58 = vpop.f32.mrf.mxu0  ;;  %v2377_v59 = vpop.f32.mrf.mxu1 }
  0xff   : > { %v2306_v60 = vadd.f32 %v2305_v58, %v2304_v56  ;;  %v3236_v61 = vadd.f32 %v2377_v59, %v2376_v57 }
 0x100   : > { %v2307_v62 = vpop.f32.mrf.mxu0  ;;  %v2379_v63 = vpop.f32.mrf.mxu1 }
 0x102   : > { %v2308_v2 = vpop.f32.mrf.mxu0  ;;  %v2380_v3 = vpop.f32.mrf.mxu1 }
 0x103   : > { %v2309_v4 = vadd.f32 %v2308_v2, %v2307_v62  ;;  %v3240_v5 = vadd.f32 %v2380_v3, %v2379_v63  ;;  %v1373_v62 = vadd.f32 %v2306_v60, %v3252_v18 }
 0x104   : > { %v2310_v6 = vpop.f32.mrf.mxu0  ;;  %v2382_v7 = vpop.f32.mrf.mxu1  ;;  %1797 = vmatmul.mubr.bf16.gmra.mxu0 %v2899_v0  ;;  %2663 = vmatmul.mubr.msk.bf16.gmra.mxu1 %vm1273_vm0, %v2900_v1 }
 0x106   : > { %v2311_v8 = vpop.f32.mrf.mxu0  ;;  %v2383_v9 = vpop.f32.mrf.mxu1 }
 0x107   : > { %v2312_v10 = vadd.f32 %v2311_v8, %v2310_v6  ;;  %v3243_v11 = vadd.f32 %v2383_v9, %v2382_v7  ;;  %v1376_v7 = vadd.f32 %v2309_v4, %v3252_v18 }
 0x108   : > { %v2313_v12 = vpop.f32.mrf.mxu0  ;;  %v2385_v13 = vpop.f32.mrf.mxu1 }
 0x10a   : > { %v2314_v14 = vpop.f32.mrf.mxu0  ;;  %v2386_v15 = vpop.f32.mrf.mxu1 }
 0x10b   : > { %v3245_v16 = vadd.f32 %v2314_v14, %v2313_v12  ;;  %v3247_v17 = vadd.f32 %v2386_v15, %v2385_v13 }
 0x10c   : > { %v2316_v19 = vpop.f32.mrf.mxu0  ;;  %v2404_v20 = vpop.f32.mrf.mxu1 }
 0x10e   : > { %v2317_v21 = vpop.f32.mrf.mxu0  ;;  %v2405_v22 = vpop.f32.mrf.mxu1 }
 0x10f   : > { %v3256_v24 = vadd.f32 %v2317_v21, %v2316_v19  ;;  %v2406_v25 = vadd.f32 %v2405_v22, %v2404_v20  ;;  %v1381_v19 = vadd.f32 %v2312_v10, %v3252_v18 }
 0x110   : > { %v2319_v26 = vpop.f32.mrf.mxu0  ;;  %v2407_v27 = vpop.f32.mrf.mxu1 }
 0x111   : > { %v3258_v30 = vadd.f32 %v2406_v25, %v1357_v23 }
 0x112   : > { %v2320_v31 = vpop.f32.mrf.mxu0  ;;  %v2408_v32 = vpop.f32.mrf.mxu1 }
 0x113   : > { %v3262_v34 = vadd.f32 %v2320_v31, %v2319_v26  ;;  %v2409_v35 = vadd.f32 %v2408_v32, %v2407_v27  ;;  %v1384_v27 = vadd.f32 %v3245_v16, %v3252_v18 }
 0x114   : > { %v2322_v36 = vpop.f32.mrf.mxu0  ;;  %v2410_v37 = vpop.f32.mrf.mxu1 }
 0x115   : > { %v3264_v40 = vadd.f32 %v2409_v35, %v1360_v33 }
 0x116   : > { %v2323_v28 = vpop.f32.mrf.mxu0  ;;  %v2411_v41 = vpop.f32.mrf.mxu1 }
 0x117   : > { %v3268_v43 = vadd.f32 %v2323_v28, %v2322_v36  ;;  %v2412_v46 = vadd.f32 %v2411_v41, %v2410_v37  ;;  %v1389_v28 = vadd.f32 %v3256_v24, %v3252_v18 }
 0x118   : > { %v2325_v47 = vpop.f32.mrf.mxu0  ;;  %v2413_v48 = vpop.f32.mrf.mxu1 }
 0x119   : > { %v3270_v49 = vadd.f32 %v2412_v46, %v1365_v42 }
 0x11a   : > { %v2326_v38 = vpop.f32.mrf.mxu0  ;;  %v2414_v50 = vpop.f32.mrf.mxu1 }
 0x11b   : > { %v3274_v52 = vadd.f32 %v2326_v38, %v2325_v47  ;;  %v2415_v53 = vadd.f32 %v2414_v50, %v2413_v48  ;;  %v1392_v50 = vadd.f32 %v3262_v34, %v3252_v18 }
 0x11c   : > { %v2328_v56 = vpop.f32.mrf.mxu0  ;;  %v2416_v57 = vpop.f32.mrf.mxu1 }
 0x11d   : > { %v3276_v58 = vadd.f32 %v2415_v53, %v1368_v51  ;;  %v1400_v34 = vadd.f32 %v3274_v52, %v3252_v18 }
 0x11e   : > { %v2329_v44 = vpop.f32.mrf.mxu0  ;;  %v2417_v59 = vpop.f32.mrf.mxu1 }
 0x11f   : > { %v3279_v63 = vadd.f32 %v2329_v44, %v2328_v56  ;;  %v2418_v0 = vadd.f32 %v2417_v59, %v2416_v57 }
 0x120   : > { %v2331_v1 = vpop.f32.mrf.mxu0  ;;  %v2419_v2 = vpop.f32.mrf.mxu1 }
 0x121   : > { %v3281_v3 = vadd.f32 %v2418_v0, %v1373_v62  ;;  %v1397_v62 = vadd.f32 %v3268_v43, %v3252_v18  ;;  %v1405_v43 = vadd.f32 %v3279_v63, %v3252_v18 }
 0x122   : > { %v2332_v6 = vpop.f32.mrf.mxu0  ;;  %v2420_v54 = vpop.f32.mrf.mxu1 }
 0x123   : > { %v3284_v8 = vadd.f32 %v2332_v6, %v2331_v1  ;;  %v2421_v9 = vadd.f32 %v2420_v54, %v2419_v2 }
 0x124   : > { %v2334_v12 = vpop.f32.mrf.mxu0  ;;  %v2422_v13 = vpop.f32.mrf.mxu1 }
 0x125   : > { %v3286_v14 = vadd.f32 %v2421_v9, %v1376_v7  ;;  %v1408_v52 = vadd.f32 %v3284_v8, %v3252_v18 }
 0x126   : > { %v2335_v15 = vpop.f32.mrf.mxu0  ;;  %v2423_v60 = vpop.f32.mrf.mxu1 }
 0x127   : > { %v3289_v20 = vadd.f32 %v2335_v15, %v2334_v12  ;;  %v2424_v21 = vadd.f32 %v2423_v60, %v2422_v13 }
 0x128   : > { %v2337_v22 = vpop.f32.mrf.mxu0  ;;  %v2425_v23 = vpop.f32.mrf.mxu1 }
 0x129   : > { %v3291_v25 = vadd.f32 %v2424_v21, %v1381_v19  ;;  %v1413_v63 = vadd.f32 %v3289_v20, %v3252_v18 }
 0x12a   : > { %v2338_v26 = vpop.f32.mrf.mxu0  ;;  %v2426_v4 = vpop.f32.mrf.mxu1 }
 0x12b   : > { %v3295_v31 = vadd.f32 %v2338_v26, %v2337_v22  ;;  %v2427_v32 = vadd.f32 %v2426_v4, %v2425_v23 }
 0x12c   : > { %v2340_v33 = vpop.f32.mrf.mxu0  ;;  %v2428_v35 = vpop.f32.mrf.mxu1 }
 0x12d   : > { %v3297_v36 = vadd.f32 %v2427_v32, %v1384_v27  ;;  %v1416_v8 = vadd.f32 %v3295_v31, %v3252_v18 }
 0x12e   : > { %v2341_v10 = vpop.f32.mrf.mxu0  ;;  %v2429_v37 = vpop.f32.mrf.mxu1 }
 0x12f   : > { %v3301_v41 = vadd.f32 %v2341_v10, %v2340_v33  ;;  %v2430_v42 = vadd.f32 %v2429_v37, %v2428_v35 }
 0x130   : > { %v2343_v46 = vpop.f32.mrf.mxu0  ;;  %v2431_v47 = vpop.f32.mrf.mxu1 }
 0x131   : > { %v3303_v48 = vadd.f32 %v2430_v42, %v1389_v28 }
 0x132   : > { %v2344_v16 = vpop.f32.mrf.mxu0  ;;  %v2432_v38 = vpop.f32.mrf.mxu1 }
 0x133   : > { %v2345_v51 = vadd.f32 %v2344_v16, %v2343_v46  ;;  %v2433_v53 = vadd.f32 %v2432_v38, %v2431_v47 }
 0x134   : > { %v2346_v56 = vpop.f32.mrf.mxu0  ;;  %v2434_v57 = vpop.f32.mrf.mxu1 }
 0x135   : > { %v3307_v44 = vadd.f32 %v2433_v53, %v1392_v50 }
 0x136   : > { %v2347_v59 = vpop.f32.mrf.mxu0  ;;  %v2435_v24 = vpop.f32.mrf.mxu1 }
 0x137   : > { %v2348_v0 = vadd.f32 %v2347_v59, %v2346_v56  ;;  %v2436_v1 = vadd.f32 %v2435_v24, %v2434_v57 }
 0x138   : > { %v2349_v2 = vpop.f32.mrf.mxu0  ;;  %v2437_v6 = vpop.f32.mrf.mxu1 }
 0x139   : > { %v3311_v54 = vadd.f32 %v2436_v1, %v1397_v62 }
 0x13a   : > { %v2350_v7 = vpop.f32.mrf.mxu0  ;;  %v2438_v9 = vpop.f32.mrf.mxu1 }
 0x13b   : > { %v2351_v12 = vadd.f32 %v2350_v7, %v2349_v2  ;;  %v2439_v13 = vadd.f32 %v2438_v9, %v2437_v6 }
 0x13c   : > { %v2352_v15 = vpop.f32.mrf.mxu0  ;;  %v2440_v60 = vpop.f32.mrf.mxu1 }
 0x13d   : > { %v3315_v19 = vadd.f32 %v2439_v13, %v1400_v34  ;;  %v1421_v34 = vadd.f32 %v3301_v41, %v3252_v18  ;;  %v1429_v41 = vadd.f32 %v2348_v0, %v3252_v18 }
 0x13e   : > { %v2353_v21 = vpop.f32.mrf.mxu0  ;;  %v2441_v22 = vpop.f32.mrf.mxu1 }
 0x13f   : > { %v2354_v23 = vadd.f32 %v2353_v21, %v2352_v15  ;;  %v2442_v26 = vadd.f32 %v2441_v22, %v2440_v60 }
 0x140   : > { %v2355_v4 = vpop.f32.mrf.mxu0  ;;  %v2443_v27 = vpop.f32.mrf.mxu1 }
 0x141   : > { %v3319_v32 = vadd.f32 %v2442_v26, %v1405_v43  ;;  %v1424_v43 = vadd.f32 %v2345_v51, %v3252_v18  ;;  %v1432_v51 = vadd.f32 %v2351_v12, %v3252_v18  ;;  %v1437_v0 = vadd.f32 %v2354_v23, %v3252_v18 }
 0x142   : > { %v2356_v33 = vpop.f32.mrf.mxu0  ;;  %v2444_v35 = vpop.f32.mrf.mxu1 }
 0x143   : > { %v2357_v10 = vadd.f32 %v2356_v33, %v2355_v4  ;;  %v2445_v37 = vadd.f32 %v2444_v35, %v2443_v27 }
 0x144   : > { %v2358_v28 = vpop.f32.mrf.mxu0  ;;  %v2446_v42 = vpop.f32.mrf.mxu1 }
 0x145   : > { %v3323_v46 = vadd.f32 %v2445_v37, %v1408_v52  ;;  %v1440_v12 = vadd.f32 %v2357_v10, %v3252_v18 }
 0x146   : > { %v2359_v47 = vpop.f32.mrf.mxu0  ;;  %v2447_v16 = vpop.f32.mrf.mxu1 }
 0x147   : > { %v2360_v38 = vadd.f32 %v2359_v47, %v2358_v28  ;;  %v2448_v50 = vadd.f32 %v2447_v16, %v2446_v42 }
 0x148   : > { %v2361_v53 = vpop.f32.mrf.mxu0  ;;  %v2449_v56 = vpop.f32.mrf.mxu1 }
 0x149   : > { %v3327_v57 = vadd.f32 %v2448_v50, %v1413_v63  ;;  %v1445_v23 = vadd.f32 %v2360_v38, %v3252_v18  ;;  %v1453_v38 = vadd.f32 %v3210_v29, %v3252_v18 }
 0x14a   : > { %v2362_v59 = vpop.f32.mrf.mxu0  ;;  %v2450_v24 = vpop.f32.mrf.mxu1 }
 0x14b   : > { %v2363_v62 = vadd.f32 %v2362_v59, %v2361_v53  ;;  %v2451_v1 = vadd.f32 %v2450_v24, %v2449_v56 }
 0x14c   : > { %v2452_v2 = vpop.f32.mrf.mxu1  ;;  %v3331_v6 = vpop.f32.mrf.mxu0 }
 0x14d   : > { %v3333_v7 = vadd.f32 %v2451_v1, %v1416_v8  ;;  %v1448_v10 = vadd.f32 %v2363_v62, %v3252_v18 }
 0x14e   : > { %v2453_v9 = vpop.f32.mrf.mxu1  ;;  %v3335_v20 = vpop.f32.mrf.mxu0 }
 0x14f   : > { %v2454_v13 = vadd.f32 %v2453_v9, %v2452_v2 }
 0x150   : > { %v2455_v15 = vpop.f32.mrf.mxu1  ;;  %v3339_v60 = vpop.f32.mrf.mxu0 }
 0x151   : > { %v3341_v21 = vadd.f32 %v2454_v13, %v1421_v34 }
 0x152   : > { %v2456_v31 = vpop.f32.mrf.mxu1  ;;  %v3343_v22 = vpop.f32.mrf.mxu0 }
 0x153   : > { %v2457_v26 = vadd.f32 %v2456_v31, %v2455_v15 }
 0x154   : > { %v2458_v4 = vpop.f32.mrf.mxu1  ;;  %v3346_v27 = vpop.f32.mrf.mxu0 }
 0x155   : > { %v3348_v33 = vadd.f32 %v2457_v26, %v1424_v43 }
 0x156   : > { %v2459_v35 = vpop.f32.mrf.mxu1  ;;  %v3350_v52 = vpop.f32.mrf.mxu0 }
 0x157   : > { %3593 = vst [vmem:[#allocation2_spill] sm:$0xff] %v3348_v33  ;;  %v2460_v37 = vadd.f32 %v2459_v35, %v2458_v4 }
 0x158   : > { %v2461_v28 = vpop.f32.mrf.mxu1  ;;  %v3353_v42 = vpop.f32.mrf.mxu0 }
 0x159   : > { %v3355_v47 = vadd.f32 %v2460_v37, %v1429_v41 }
 0x15a   : > { %v2462_v16 = vpop.f32.mrf.mxu1  ;;  %v3357_v63 = vpop.f32.mrf.mxu0 }
 0x15b   : > { %v2463_v50 = vadd.f32 %v2462_v16, %v2461_v28 }
 0x15c   : > { %v2464_v53 = vpop.f32.mrf.mxu1  ;;  %v3360_v56 = vpop.f32.mrf.mxu0 }
 0x15d   : > { %v3362_v59 = vadd.f32 %v2463_v50, %v1432_v51 }
 0x15e   : > { %v2465_v24 = vpop.f32.mrf.mxu1  ;;  %v3364_v8 = vpop.f32.mrf.mxu0 }
 0x15f   : > { %3594 = vst [vmem:[#allocation3_spill] sm:$0xff] %v3362_v59  ;;  %v2466_v1 = vadd.f32 %v2465_v24, %v2464_v53 }
 0x160   : > { %v2467_v2 = vpop.f32.mrf.mxu1  ;;  %v3367_v9 = vpop.f32.mrf.mxu0 }
 0x161   : > { %v3369_v34 = vadd.f32 %v2466_v1, %v1437_v0 }
 0x162   : > { %v2468_v13 = vpop.f32.mrf.mxu1  ;;  %v3371_v15 = vpop.f32.mrf.mxu0 }
 0x163   : > { %3595 = vst [vmem:[#allocation4_spill] sm:$0xff] %v3369_v34  ;;  %v2469_v31 = vadd.f32 %v2468_v13, %v2467_v2 }
 0x164   : > { %v2470_v43 = vpop.f32.mrf.mxu1  ;;  %v3374_v26 = vpop.f32.mrf.mxu0 }
 0x165   : > { %v3376_v4 = vadd.f32 %v2469_v31, %v1440_v12 }
 0x166   : > { %v2471_v35 = vpop.f32.mrf.mxu1  ;;  %v3378_v41 = vpop.f32.mrf.mxu0 }
 0x167   : > { %3596 = vst [vmem:[#allocation5_spill] sm:$0xff] %v3376_v4  ;;  %v2472_v37 = vadd.f32 %v2471_v35, %v2470_v43 }
 0x168   : > { %v2473_v28 = vpop.f32.mrf.mxu1  ;;  %v3381_v16 = vpop.f32.mrf.mxu0 }
 0x169   : > { %v3383_v51 = vadd.f32 %v2472_v37, %v1445_v23 }
 0x16a   : > { %v2474_v50 = vpop.f32.mrf.mxu1  ;;  %v3385_v53 = vpop.f32.mrf.mxu0 }
 0x16b   : > { %3597 = vst [vmem:[#allocation6_spill] sm:$0xff] %v3383_v51  ;;  %v2475_v24 = vadd.f32 %v2474_v50, %v2473_v28  ;;  %v1456_v28 = vadd.f32 %v3218_v39, %v3252_v18 }
 0x16c   : > { %v2476_v0 = vpop.f32.mrf.mxu1  ;;  %v3388_v1 = vpop.f32.mrf.mxu0 }
 0x16d   : > { %v3390_v2 = vadd.f32 %v2475_v24, %v1448_v10 }
 0x16e   : > { %v2477_v13 = vpop.f32.mrf.mxu1  ;;  %v3392_v12 = vpop.f32.mrf.mxu0 }
 0x16f   : > { %3598 = vst [vmem:[#allocation7_spill] sm:$0xff] %v3390_v2  ;;  %v2478_v31 = vadd.f32 %v2477_v13, %v2476_v0  ;;  %v1461_v0 = vadd.f32 %v3224_v45, %v3252_v18 }
 0x170   : > { %v2479_v43 = vpop.f32.mrf.mxu1  ;;  %v3396_v35 = vpop.f32.mrf.mxu0 }
 0x171   : > { %v3398_v23 = vadd.f32 %v2478_v31, %v1453_v38 }
 0x172   : > { %v2480_v37 = vpop.f32.mrf.mxu1  ;;  %v3400_v62 = vpop.f32.mrf.mxu0 }
 0x173   : > { %3599 = vst [vmem:[#allocation8_spill] sm:$0xff] %v3398_v23  ;;  %v2481_v50 = vadd.f32 %v2480_v37, %v2479_v43  ;;  %v1464_v43 = vadd.f32 %v3232_v55, %v3252_v18 }
 0x174   : > { %v2482_v10 = vpop.f32.mrf.mxu1  ;;  %v3404_v24 = vpop.f32.mrf.mxu0 }
 0x175   : > { %v3406_v4 = vadd.f32 %v2481_v50, %v1456_v28 }
 0x176   : > { %v2483_v2 = vpop.f32.mrf.mxu1  ;;  %v3408_v29 = vpop.f32.mrf.mxu0 }
 0x177   : > { %3600 = vst [vmem:[#allocation9_spill] sm:$0xff] %v3406_v4  ;;  %v2484_v13 = vadd.f32 %v2483_v2, %v2482_v10  ;;  %v1469_v2 = vadd.f32 %v3236_v61, %v3252_v18 }
 0x178   : > { %v2485_v38 = vpop.f32.mrf.mxu1  ;;  %v3412_v31 = vpop.f32.mrf.mxu0 }
 0x179   : > { %v3414_v23 = vadd.f32 %v2484_v13, %v1461_v0 }
 0x17a   : > { %v2486_v34 = vpop.f32.mrf.mxu1  ;;  %v3416_v39 = vpop.f32.mrf.mxu0 }
 0x17b   : > { %3601 = vst [vmem:[#allocation10_spill] sm:$0xff] %v3414_v23  ;;  %v2487_v37 = vadd.f32 %v2486_v34, %v2485_v38  ;;  %v1472_v34 = vadd.f32 %v3240_v5, %v3252_v18  ;;  %v2518_v5 = vadd.f32 %v3335_v20, %v3331_v6  ;;  %v2521_v6 = vadd.f32 %v3343_v22, %v3339_v60 }
 0x17c   : > { %v2488_v28 = vpop.f32.mrf.mxu1  ;;  %v3420_v50 = vpop.f32.mrf.mxu0 }
 0x17d   : > { %v3422_v4 = vadd.f32 %v2487_v37, %v1464_v43 }
 0x17e   : > { %v2489_v51 = vpop.f32.mrf.mxu1  ;;  %v3424_v45 = vpop.f32.mrf.mxu0 }
 0x17f   : > { %3602 = vst [vmem:[#allocation11_spill] sm:$0xff] %v3422_v4  ;;  %v2490_v10 = vadd.f32 %v2489_v51, %v2488_v28  ;;  %v1477_v28 = vadd.f32 %v3243_v11, %v3252_v18  ;;  %v2527_v11 = vadd.f32 %v3357_v63, %v3353_v42 }
 0x180   : > { %v2491_v0 = vpop.f32.mrf.mxu1  ;;  %v3428_v13 = vpop.f32.mrf.mxu0 }
 0x181   : > { %v3430_v23 = vadd.f32 %v2490_v10, %v1469_v2  ;;  %v2524_v2 = vadd.f32 %v3350_v52, %v3346_v27  ;;  %v1690_v22 = vadd.f32 %v2527_v11, %v3276_v58 }
 0x182   : > { %v2492_v33 = vpop.f32.mrf.mxu1  ;;  %v3432_v55 = vpop.f32.mrf.mxu0 }
 0x183   : > { %3603 = vst [vmem:[#allocation12_spill] sm:$0xff] %v3430_v23  ;;  %v2493_v38 = vadd.f32 %v2492_v33, %v2491_v0  ;;  %v1687_v27 = vadd.f32 %v2524_v2, %v3270_v49  ;;  %v2536_v49 = vadd.f32 %v3378_v41, %v3374_v26  ;;  %v2539_v26 = vadd.f32 %v3385_v53, %v3381_v16 }
 0x184   : > { %v2494_v43 = vpop.f32.mrf.mxu1  ;;  %v3436_v37 = vpop.f32.mrf.mxu0  ;;  %v2548_v16 = vadd.f32 %v3408_v29, %v3404_v24  ;;  %v2551_v24 = vadd.f32 %v3416_v39, %v3412_v31 }
 0x185   : > { %v3438_v4 = vadd.f32 %v2493_v38, %v1472_v34  ;;  %v1480_v38 = vadd.f32 %v3247_v17, %v3252_v18 }
 0x186   : > { %v2495_v61 = vpop.f32.mrf.mxu1  ;;  %v3440_v51 = vpop.f32.mrf.mxu0 }
 0x187   : > { %3604 = vst [vmem:[#allocation13_spill] sm:$0xff] %v3438_v4  ;;  %v2496_v10 = vadd.f32 %v2495_v61, %v2494_v43  ;;  %v2560_v39 = vadd.f32 %v3440_v51, %v3436_v37 }
 0x188   : > { %v2497_v23 = vpop.f32.mrf.mxu1  ;;  %v3446_v59 = vpop.f32.mrf.mxu0 }
 0x189   : > { %v3450_v33 = vadd.f32 %v2496_v10, %v1477_v28  ;;  %v1679_v28 = vadd.f32 %v2518_v5, %v3258_v30  ;;  %v1682_v10 = vadd.f32 %v2521_v6, %v3264_v40 }
 0x18a   : > { %v2498_v0 = vpop.f32.mrf.mxu1  ;;  %v3452_v34 = vpop.f32.mrf.mxu0 }
 0x18b   : > { %v2499_v4 = vadd.f32 %v2498_v0, %v2497_v23  ;;  %v2563_v51 = vadd.f32 %v3452_v34, %v3446_v59 }
 0x18c   : > { %v3460_v52 = vpop.f32.mrf.mxu0  ;;  %v2636_v43 = vpop.f32.mrf.mxu1 }
 0x18d   : > { %v3464_v20 = vadd.f32 %v2499_v4, %v1480_v38  ;;  %v1848_v61 = vadd.f32 %v2636_v43, %v1687_v27  ;;  %v2530_v4 = vadd.f32 %v3364_v8, %v3360_v56  ;;  %v1703_v38 = vadd.f32 %v2536_v49, %v3291_v25 }
 0x18e   : > { %v3472_v17 = vpop.f32.mrf.mxu0  ;;  %v1839_v18 = vpop.f32.mrf.mxu1  ;;  %v2533_v8 = vadd.f32 %v3371_v15, %v3367_v9  ;;  %v2542_v9 = vadd.f32 %v3392_v12, %v3388_v1  ;;  %v2545_v1 = vadd.f32 %v3400_v62, %v3396_v35  ;;  %v2554_v62 = vadd.f32 %v3424_v45, %v3420_v50 }
 0x18f   : > { %v1968_v42 = vmax.f32 %v1848_v61, 0.0  ;;  %v1840_v60 = vadd.f32 %v1839_v18, %v1679_v28  ;;  %v1695_v43 = vadd.f32 %v2530_v4, %v3281_v3  ;;  %v1706_v28 = vadd.f32 %v2539_v26, %v3297_v36 }
 0x190   : > { %v3477_v63 = vpop.f32.mrf.mxu0  ;;  %v2637_v30 = vpop.f32.mrf.mxu1  ;;  %v1722_v26 = vadd.f32 %v2551_v24, %v3315_v19  ;;  %v2557_v50 = vadd.f32 %v3432_v55, %v3428_v13  ;;  %v2566_v13 = vadd.f32 %v3472_v17, %v3460_v52 }
 0x191   : > { %2000 = vst [vmem:[%s3470_s26 + $0x10] sm:$0xff] %v1968_v42  ;;  %v1966_v23 = vmax.f32 %v1840_v60, 0.0  ;;  %v1851_v2 = vadd.f32 %v2637_v30, %v1690_v22  ;;  %v1698_v42 = vadd.f32 %v2533_v8, %v3286_v14  ;;  %v1719_v30 = vadd.f32 %v2548_v16, %v3311_v54 }
 0x192   : > { %v3483_v5 = vpop.f32.mrf.mxu0  ;;  %v1842_v0 = vpop.f32.mrf.mxu1 }
 0x193   : > { %1998 = vst [vmem:[%s3470_s26] sm:$0xff] %v1966_v23  ;;  %v1969_v58 = vmax.f32 %v1851_v2, 0.0  ;;  %v1843_v41 = vadd.f32 %v1842_v0, %v1682_v10  ;;  %v1711_v2 = vadd.f32 %v2542_v9, %v3303_v48  ;;  %v2569_v52 = vadd.f32 %v3483_v5, %v3477_v63 }
 0x194   : > { %v3489_v11 = vpop.f32.mrf.mxu0  ;;  %v2640_v56 = vpop.f32.mrf.mxu1 }
 0x195   : > { %2001 = vst [vmem:[%s3470_s26 + $0x18] sm:$0xff] %v1969_v58  ;;  %v1967_v40 = vmax.f32 %v1843_v41, 0.0  ;;  %v1864_v27 = vadd.f32 %v2640_v56, %v1703_v38  ;;  %v1714_v38 = vadd.f32 %v2545_v1, %v3307_v44  ;;  %v3605_v1 = vld [vmem:[#allocation3_spill] sm:$0xff] }
 0x196   : > { %v2571_v6 = vpop.f32.mrf.mxu0  ;;  %v1855_v61 = vpop.f32.mrf.mxu1 }
 0x197   : > { %1999 = vst [vmem:[%s3470_s26 + $0x8] sm:$0xff] %v1967_v40  ;;  %v1972_v25 = vmax.f32 %v1864_v27, 0.0  ;;  %v1856_v53 = vadd.f32 %v1855_v61, %v1695_v43  ;;  %v1735_v40 = vadd.f32 %v2560_v39, %v3327_v57  ;;  %v1727_v61 = vadd.f32 %v2554_v62, %v3319_v32  ;;  %v3607_v62 = vld [vmem:[#allocation6_spill] sm:$0xff] }
 0x198   : > { %v3499_v18 = vpop.f32.mrf.mxu0  ;;  %v2641_v49 = vpop.f32.mrf.mxu1  ;;  %v2572_v59 = vadd.f32 %v2571_v6, %v3489_v11  ;;  %v1738_v57 = vadd.f32 %v2563_v51, %v3333_v7  ;;  %v1730_v32 = vadd.f32 %v2557_v50, %v3323_v46  ;;  %v1743_v46 = vadd.f32 %v2566_v13, %v3341_v21  ;;  %v3608_v51 = vld [vmem:[#allocation4_spill] sm:$0xff] }
 0x199   : > { %2004 = vst [vmem:[%s3470_s26 + $0x30] sm:$0xff] %v1972_v25  ;;  %v1970_v3 = vmax.f32 %v1856_v53, 0.0  ;;  %v1867_v15 = vadd.f32 %v2641_v49, %v1706_v28 }
 0x19a   : > { %v2574_v60 = vpop.f32.mrf.mxu0  ;;  %v1858_v22 = vpop.f32.mrf.mxu1  ;;  %v1751_v7 = vadd.f32 %v2572_v59, %v3355_v47  ;;  %v3610_v59 = vld [vmem:[#allocation5_spill] sm:$0xff] }
 0x19b   : > { %2002 = vst [vmem:[%s3470_s26 + $0x20] sm:$0xff] %v1970_v3  ;;  %v1973_v36 = vmax.f32 %v1867_v15, 0.0  ;;  %v1859_v29 = vadd.f32 %v1858_v22, %v1698_v42  ;;  %v2575_v11 = vadd.f32 %v2574_v60, %v3499_v18 }
 0x19c   : > { %v3509_v4 = vpop.f32.mrf.mxu0  ;;  %v2644_v23 = vpop.f32.mrf.mxu1 }
 0x19d   : > { %2005 = vst [vmem:[%s3470_s26 + $0x38] sm:$0xff] %v1973_v36  ;;  %v1971_v14 = vmax.f32 %v1859_v29, 0.0  ;;  %v1880_v12 = vadd.f32 %v2644_v23, %v1719_v30  ;;  %v1754_v47 = vadd.f32 %v2575_v11, %v3605_v1  ;;  %v3614_v1 = vld [vmem:[#allocation9_spill] sm:$0xff] }
 0x19e   : > { %v3515_v10 = vpop.f32.mrf.mxu0  ;;  %v1871_v31 = vpop.f32.mrf.mxu1 }
 0x19f   : > { %2003 = vst [vmem:[%s3470_s26 + $0x28] sm:$0xff] %v1971_v14  ;;  %v1976_v54 = vmax.f32 %v1880_v12, 0.0  ;;  %v1872_v0 = vadd.f32 %v1871_v31, %v1711_v2  ;;  %v2578_v63 = vadd.f32 %v3515_v10, %v3509_v4  ;;  %v3606_v31 = vld [vmem:[#allocation2_spill] sm:$0xff] }
 0x1a0   : > { %v3521_v58 = vpop.f32.mrf.mxu0  ;;  %v2645_v35 = vpop.f32.mrf.mxu1  ;;  %v1746_v21 = vadd.f32 %v2569_v52, %v3606_v31 }
 0x1a1   : > { %2008 = vst [vmem:[%s3470_s26 + $0x50] sm:$0xff] %v1976_v54  ;;  %v1974_v48 = vmax.f32 %v1872_v0, 0.0  ;;  %v1883_v41 = vadd.f32 %v2645_v35, %v1722_v26 }
 0x1a2   : > { %v3527_v56 = vpop.f32.mrf.mxu0  ;;  %v1874_v37 = vpop.f32.mrf.mxu1 }
 0x1a3   : > { %2006 = vst [vmem:[%s3470_s26 + $0x40] sm:$0xff] %v1974_v48  ;;  %v1977_v19 = vmax.f32 %v1883_v41, 0.0  ;;  %v1875_v8 = vadd.f32 %v1874_v37, %v1714_v38  ;;  %v2581_v4 = vadd.f32 %v3527_v56, %v3521_v58 }
 0x1a4   : > { %v2582_v27 = vpop.f32.mrf.mxu0  ;;  %v2648_v43 = vpop.f32.mrf.mxu1 }
 0x1a5   : > { %2009 = vst [vmem:[%s3470_s26 + $0x58] sm:$0xff] %v1977_v19  ;;  %v1975_v44 = vmax.f32 %v1875_v8, 0.0  ;;  %v1896_v45 = vadd.f32 %v2648_v43, %v1735_v40  ;;  %v1759_v19 = vadd.f32 %v2578_v63, %v3608_v51 }
 0x1a6   : > { %v2583_v16 = vpop.f32.mrf.mxu0  ;;  %v1887_v25 = vpop.f32.mrf.mxu1 }
 0x1a7   : > { %2007 = vst [vmem:[%s3470_s26 + $0x48] sm:$0xff] %v1975_v44  ;;  %v1980_v34 = vmax.f32 %v1896_v45, 0.0  ;;  %v1888_v53 = vadd.f32 %v1887_v25, %v1727_v61  ;;  %v2584_v18 = vadd.f32 %v2583_v16, %v2582_v27  ;;  %v3609_v44 = vld [vmem:[#allocation7_spill] sm:$0xff] }
 0x1a8   : > { %v2585_v28 = vpop.f32.mrf.mxu0  ;;  %v2649_v49 = vpop.f32.mrf.mxu1 }
 0x1a9   : > { %2012 = vst [vmem:[%s3470_s26 + $0x70] sm:$0xff] %v1980_v34  ;;  %v1978_v55 = vmax.f32 %v1888_v53, 0.0  ;;  %v1899_v9 = vadd.f32 %v2649_v49, %v1738_v57  ;;  %v1767_v48 = vadd.f32 %v2584_v18, %v3607_v62  ;;  %v1762_v34 = vadd.f32 %v2581_v4, %v3610_v59 }
 0x1aa   : > { %v2586_v3 = vpop.f32.mrf.mxu0  ;;  %v1890_v15 = vpop.f32.mrf.mxu1 }
 0x1ab   : > { %2010 = vst [vmem:[%s3470_s26 + $0x60] sm:$0xff] %v1978_v55  ;;  %v1981_v6 = vmax.f32 %v1899_v9, 0.0  ;;  %v1891_v42 = vadd.f32 %v1890_v15, %v1730_v32  ;;  %v2587_v0 = vadd.f32 %v2586_v3, %v2585_v28  ;;  %v3611_v55 = vld [vmem:[#allocation10_spill] sm:$0xff] }
 0x1ac   : > { %v2588_v22 = vpop.f32.mrf.mxu0  ;;  %v2652_v24 = vpop.f32.mrf.mxu1 }
 0x1ad   : > { %2013 = vst [vmem:[%s3470_s26 + $0x78] sm:$0xff] %v1981_v6  ;;  %v1979_v17 = vmax.f32 %v1891_v42, 0.0  ;;  %v1912_v36 = vadd.f32 %v2652_v24, %v1751_v7  ;;  %v1770_v45 = vadd.f32 %v2587_v0, %v3609_v44  ;;  %v3612_v42 = vld [vmem:[#allocation8_spill] sm:$0xff] }
 0x1ae   : > { %v2589_v29 = vpop.f32.mrf.mxu0  ;;  %v1903_v30 = vpop.f32.mrf.mxu1 }
 0x1af   : > { %2011 = vst [vmem:[%s3470_s26 + $0x68] sm:$0xff] %v1979_v17  ;;  %v1984_v60 = vmax.f32 %v1912_v36, 0.0  ;;  %v1904_v23 = vadd.f32 %v1903_v30, %v1743_v46  ;;  %v2590_v25 = vadd.f32 %v2589_v29, %v2588_v22  ;;  %v3613_v36 = vld [vmem:[#allocation11_spill] sm:$0xff] }
 0x1b0   : > { %v2591_v14 = vpop.f32.mrf.mxu0  ;;  %v2653_v12 = vpop.f32.mrf.mxu1 }
 0x1b1   : > { %2016 = vst [vmem:[%s3470_s26 + $0x90] sm:$0xff] %v1984_v60  ;;  %v1982_v5 = vmax.f32 %v1904_v23, 0.0  ;;  %v1915_v2 = vadd.f32 %v2653_v12, %v1754_v47  ;;  %v1775_v7 = vadd.f32 %v2590_v25, %v3612_v42 }
 0x1b2   : > { %v2592_v39 = vpop.f32.mrf.mxu0  ;;  %v1906_v54 = vpop.f32.mrf.mxu1 }
 0x1b3   : > { %2014 = vst [vmem:[%s3470_s26 + $0x80] sm:$0xff] %v1982_v5  ;;  %v1985_v26 = vmax.f32 %v1915_v2, 0.0  ;;  %v1907_v35 = vadd.f32 %v1906_v54, %v1746_v21  ;;  %v2593_v15 = vadd.f32 %v2592_v39, %v2591_v14  ;;  %v3615_v54 = vld [vmem:[#allocation12_spill] sm:$0xff] }
 0x1b4   : > { %v2594_v41 = vpop.f32.mrf.mxu0  ;;  %v2656_v38 = vpop.f32.mrf.mxu1 }
 0x1b5   : > { %2017 = vst [vmem:[%s3470_s26 + $0x98] sm:$0xff] %v1985_v26  ;;  %v1983_v10 = vmax.f32 %v1907_v35, 0.0  ;;  %v1928_v37 = vadd.f32 %v2656_v38, %v1767_v48  ;;  %v1778_v47 = vadd.f32 %v2593_v15, %v3614_v1 }
 0x1b6   : > { %v2595_v8 = vpop.f32.mrf.mxu0  ;;  %v1919_v40 = vpop.f32.mrf.mxu1 }
 0x1b7   : > { %2015 = vst [vmem:[%s3470_s26 + $0x88] sm:$0xff] %v1983_v10  ;;  %v1988_v27 = vmax.f32 %v1928_v37, 0.0  ;;  %v2596_v43 = vadd.f32 %v2595_v8, %v2594_v41  ;;  %v1920_v50 = vadd.f32 %v1919_v40, %v1759_v19  ;;  %v3616_v37 = vld [vmem:[#allocation13_spill] sm:$0xff] }
 0x1b8   : > { %v2597_v61 = vpop.f32.mrf.mxu0  ;;  %v2657_v16 = vpop.f32.mrf.mxu1 }
 0x1b9   : > { %2020 = vst [vmem:[%s3470_s26 + $0xb0] sm:$0xff] %v1988_v27  ;;  %v1986_v58 = vmax.f32 %v1920_v50, 0.0  ;;  %v1931_v56 = vadd.f32 %v2657_v16, %v1770_v45  ;;  %v1783_v9 = vadd.f32 %v2596_v43, %v3611_v55 }
 0x1ba   : > { %v2598_v53 = vpop.f32.mrf.mxu0  ;;  %v1922_v57 = vpop.f32.mrf.mxu1 }
 0x1bb   : > { %2018 = vst [vmem:[%s3470_s26 + $0xa0] sm:$0xff] %v1986_v58  ;;  %v1989_v28 = vmax.f32 %v1931_v56, 0.0  ;;  %v2599_v49 = vadd.f32 %v2598_v53, %v2597_v61  ;;  %v1923_v13 = vadd.f32 %v1922_v57, %v1762_v34 }
 0x1bc   : > { %v2600_v32 = vpop.f32.mrf.mxu0  ;;  %v2660_v3 = vpop.f32.mrf.mxu1 }
 0x1bd   : > { %2021 = vst [vmem:[%s3470_s26 + $0xb8] sm:$0xff] %v1989_v28  ;;  %v1987_v11 = vmax.f32 %v1923_v13, 0.0  ;;  %v1944_v6 = vadd.f32 %v2660_v3, %v1783_v9  ;;  %v1786_v46 = vadd.f32 %v2599_v49, %v3613_v36 }
 0x1be   : > { %v2601_v22 = vpop.f32.mrf.mxu0  ;;  %v1935_v24 = vpop.f32.mrf.mxu1 }
 0x1bf   : > { %2019 = vst [vmem:[%s3470_s26 + $0xa8] sm:$0xff] %v1987_v11  ;;  %v1992_v52 = vmax.f32 %v1944_v6, 0.0  ;;  %v1936_v17 = vadd.f32 %v1935_v24, %v1775_v7  ;;  %v2602_v18 = vadd.f32 %v2601_v22, %v2600_v32 }
 0x1c0   : > { %v2603_v29 = vpop.f32.mrf.mxu0  ;;  %v2661_v30 = vpop.f32.mrf.mxu1 }
 0x1c1   : > { %2024 = vst [vmem:[%s3470_s26 + $0xd0] sm:$0xff] %v1992_v52  ;;  %v1990_v60 = vmax.f32 %v1936_v17, 0.0  ;;  %v1947_v23 = vadd.f32 %v2661_v30, %v1786_v46  ;;  %v1791_v0 = vadd.f32 %v2602_v18, %v3615_v54 }
 0x1c2   : > { %v2604_v14 = vpop.f32.mrf.mxu0  ;;  %v1938_v12 = vpop.f32.mrf.mxu1 }
 0x1c3   : > { %2022 = vst [vmem:[%s3470_s26 + $0xc0] sm:$0xff] %v1990_v60  ;;  %v1993_v63 = vmax.f32 %v1947_v23, 0.0  ;;  %v1939_v5 = vadd.f32 %v1938_v12, %v1778_v47  ;;  %v2605_v21 = vadd.f32 %v2604_v14, %v2603_v29 }
 0x1c4   : > { %v2606_v2 = vpop.f32.mrf.mxu0  ;;  %v2664_v31 = vpop.f32.mrf.mxu1 }
 0x1c5   : > { %2025 = vst [vmem:[%s3470_s26 + $0xd8] sm:$0xff] %v1993_v63  ;;  %v1991_v39 = vmax.f32 %v1939_v5, 0.0  ;;  %v1794_v51 = vadd.f32 %v2605_v21, %v3616_v37 }
 0x1c6   : > { %v2607_v26 = vpop.f32.mrf.mxu0  ;;  %v1951_v35 = vpop.f32.mrf.mxu1 }
 0x1c7   : > { %2023 = vst [vmem:[%s3470_s26 + $0xc8] sm:$0xff] %v1991_v39  ;;  %v2608_v62 = vadd.f32 %v2607_v26, %v2606_v2  ;;  %v1952_v48 = vadd.f32 %v1951_v35, %v1791_v0 }
 0x1c8   : > { %v2609_v41 = vpop.f32.mrf.mxu0  ;;  %v2665_v38 = vpop.f32.mrf.mxu1 }
 0x1c9   : > { %v1799_v4 = vadd.f32 %v2608_v62, %v3450_v33  ;;  %v1994_v10 = vmax.f32 %v1952_v48, 0.0 }
 0x1ca   : > { %v2610_v19 = vpop.f32.mrf.mxu0  ;;  %v1954_v8 = vpop.f32.mrf.mxu1 }
 0x1cb   : > { %v1960_v40 = vadd.f32 %v2664_v31, %v1799_v4  ;;  %2026 = vst [vmem:[%s3470_s26 + $0xe0] sm:$0xff] %v1994_v10  ;;  %v2611_v27 = vadd.f32 %v2610_v19, %v2609_v41  ;;  %v1955_v43 = vadd.f32 %v1954_v8, %v1794_v51 }
 0x1cd   : > { %v1996_v50 = vmax.f32 %v1960_v40, 0.0  ;;  %v1802_v44 = vadd.f32 %v2611_v27, %v3464_v20  ;;  %v1995_v45 = vmax.f32 %v1955_v43, 0.0 }
 0x1cf   : > { %2028 = vst [vmem:[%s3470_s26 + $0xf0] sm:$0xff] %v1996_v50  ;;  %v1963_v61 = vadd.f32 %v2665_v38, %v1802_v44  ;;  %2027 = vst [vmem:[%s3470_s26 + $0xe8] sm:$0xff] %v1995_v45 }
 0x1d1   : > { %v1997_v16 = vmax.f32 %v1963_v61, 0.0 }
 0x1d3   : > { %2029 = vst [vmem:[%s3470_s26 + $0xf8] sm:$0xff] %v1997_v16 }
 0x1d4 PF: > { %s13_s12 = sadd.s32 1, %s2907_s12  }
 0x1d5   : > { %p10_p4 = scmp.ge.s32.totalorder %s13_s12, 4  }
 0x1d7   :  { %12 = sbr.rel (!%p10_p4) target bundleno = 1 (0x1), region = 62 }

// kernel: simple_cnn_forward.9
= control target key start
LH: loop header
LB: loop body
LE: loop exit
PB: predicated region body
PF: predicated region fallthrough
CT: control target
= control target key end

     0   :  { %s359_s6 = smov 0   ;;  %s361_s7 = smov 0   ;;  %s410_s0 = inlined_call_operand.vmem [shape: f32[2,14,7,256], index: 0, kind: input, shape index: {}]   ;;  %s411_s1 = inlined_call_operand.vmem [shape: f32[2,7,7,128], index: 1, kind: output, shape index: {}]  }
   0x1   :  { %s363_s8 = smov 0   ;;  %s365_s9 = smov 0  }
   0x2   :  { %s367_s10 = smov 0  }
   0x3 LB: > { %s20_s11 = sadd.s32 1, %s339_s8  ;;  %s23_s12 = sadd.s32 1, %s343_s9  ;;  %s347_s10 = sphi %s367_s10, %s11_s10   ;;  %s343_s9 = sphi %s365_s9, %s415_s9   ;;  %s339_s8 = sphi %s363_s8, %s414_s8   ;;  %s335_s7 = sphi %s361_s7, %s413_s7   ;;  %s331_s6 = sphi %s359_s6, %s412_s6  }
   0x4   : > { %p21_p0 = scmp.ge.s32.totalorder %s20_s11, 7  ;;  %p258_p1 = scmp.ge.s32.totalorder %s347_s10, 1 }
   0x5   : > { %p109_p2 = scmp.lt.s32.totalorder %s347_s10, 15 }
   0x6   : > { %s417_s11 = smov (%p21_p0, %s20_s11), 0  ;;  %s419_s12 = smov (!%p21_p0, %s23_s12), %s343_s9 }
   0x7   : > { %p110_p3 = pnand %p258_p1, %p109_p2  ;;  %p25_p4 = scmp.ge.s32.totalorder %s419_s12, 2 }
   0x8   : > { %s259_s13 = sshll.u32 (!%p110_p3), %s331_s6, 1  ;;  %p138_p5 = scmp.lt.s32.totalorder (!%p110_p3), %s335_s7, 1 }
   0x9   : > { %s421_s12 = smov (%p25_p4, %s419_s12), 0  ;;  %113 = sbr.rel (%p110_p3) target bundleno = 27 (0x1b), region = 24 }
   0xa   : > { %p140_p6 = scmp.lt.s32.totalorder (!%p110_p3), %s259_s13, 13  ;;  %p150_p7 = scmp.lt.s32.totalorder (!%p110_p3), %s331_s6, 6 }
   0xe   : > { %s423_s7 = smov (!%p138_p5, %s335_s7), 1  ;;  %s425_s13 = smov (!%p140_p6, %s259_s13), 13 }
   0xf   : > { %s267_s14 = smul.u32 28, %s423_s7  ;;  %s260_s15 = sshll.u32 %s425_s13, 1 }
  0x10   : > { %s268_s18 = smul.u32 7, %s423_s7  ;;  %s427_s6 = smov (!%p150_p7, %s331_s6), 6 }
  0x11   : > { %s144_s16 = sadd.s32 %s267_s14, %s260_s15 }
  0x12   : > { %s261_s17 = sshll.u32 %s144_s16, 3  ;;  %s153_s22 = sadd.s32 %s268_s18, %s427_s6 }
  0x13   : > { %s146_s21 = scalar_lea.vmem %s410_s0, %s261_s17  ;;  %s262_s23 = sshll.u32 %s153_s22, 3 }
  0x14   : > { %v156_v0 = vld [vmem:[%s146_s21] sm:$0x7f]  ;;  %v157_v1 = vld [vmem:[%s146_s21 + $0x8] sm:$0x7f]  ;;  %v263_v2 = vld [vmem:[%s146_s21 + $0x10] sm:$0x7f]  ;;  %s155_s26 = scalar_lea.vmem %s411_s1, %s262_s23 }
  0x15   : > { %v264_v3 = vld [vmem:[%s146_s21 + $0x18] sm:$0x7f]  ;;  %v161_v4 = vmax.f32 %v156_v0, %v263_v2 }
  0x16   : > { %v162_v5 = vmax.f32 %v157_v1, %v264_v3 }
  0x18   : > { %v163_v6 = vmax.f32 %v161_v4, %v162_v5 }
  0x1a   : > { %164 = vst [vmem:[%s155_s26] sm:$0x7f] %v163_v6 }
  0x1b PF: > { %s11_s10 = sadd.s32 1, %s347_s10   ;;  %s412_s6 = smov %s339_s8 }
  0x1c   : > { %p8_p8 = scmp.ge.s32.totalorder %s11_s10, 16   ;;  %s413_s7 = smov %s343_s9 }
  0x1d   : > { %s414_s8 = smov %s417_s11  ;;  %s415_s9 = smov %s421_s12 }
  0x1e   :  { %10 = sbr.rel (!%p8_p8) target bundleno = 3 (0x3), region = 55 }

// kernel: simple_cnn_forward.11
= control target key start
LH: loop header
LB: loop body
LE: loop exit
PB: predicated region body
PF: predicated region fallthrough
CT: control target
= control target key end

     0   :  { %v157_v28 = vlaneseq  ;;  %v1011_v36 = vmov 1966171168   ;;  %s1247_s0 = inlined_call_operand.vmem [shape: bf16[2,1024], index: 0, kind: input, shape index: {}]   ;;  %s1248_s1 = inlined_call_operand.vmem [shape: bf16[1024,128], index: 1, kind: input, shape index: {}]   ;;  %s1249_s2 = inlined_call_operand.vmem [shape: f32[1,128], index: 2, kind: input, shape index: {}]   ;;  %s1250_s3 = inlined_call_operand.hbm [shape: f32[2,128], index: 3, kind: output, shape index: {}]  }
   0x1   :  { %v924_v0 = vld [vmem:[%s1248_s1 + $0x78] sm:$0xff]   ;;  %v928_v4 = vld [vmem:[%s1248_s1 + $0x70] sm:$0xff]   ;;  %v932_v8 = vld [vmem:[%s1248_s1 + $0x68] sm:$0xff]   ;;  %v155_v37 = vunpack.c.l.s4 %v1011_v36 }
   0x2   :  { %v925_v1 = vld [vmem:[%s1248_s1 + $0xf8] sm:$0xff]   ;;  %834 = vmatprep.subr.bf16.mxu0 %v924_v0  ;;  %v929_v5 = vld [vmem:[%s1248_s1 + $0xf0] sm:$0xff]   ;;  %v933_v9 = vld [vmem:[%s1248_s1 + $0xe8] sm:$0xff]   ;;  %v158_v33 = vshrl.u32 %v157_v28, 7 }
   0x3   :  { %v926_v2 = vld [vmem:[%s1248_s1 + $0x38] sm:$0xff]   ;;  %856 = vmatprep.subr.bf16.mxu1 %v925_v1  ;;  %v930_v6 = vld [vmem:[%s1248_s1 + $0x30] sm:$0xff]   ;;  %v934_v10 = vld [vmem:[%s1248_s1 + $0x28] sm:$0xff]   ;;  %v156_v40 = vunpack.c.0.s8 %v155_v37 }
   0x4   :  { %v927_v3 = vld [vmem:[%s1248_s1 + $0xb8] sm:$0xff]   ;;  %835 = vmatpush3.bf16.msra.mxu0 %v926_v2  ;;  %v931_v7 = vld [vmem:[%s1248_s1 + $0xb0] sm:$0xff]   ;;  %v935_v11 = vld [vmem:[%s1248_s1 + $0xa8] sm:$0xff]  }
   0x5   :  { %857 = vmatpush3.bf16.msra.mxu1 %v927_v3  ;;  %836 = vmatprep.subr.bf16.mxu0 %v928_v4  ;;  %v936_v12 = vld [vmem:[%s1248_s1 + $0x60] sm:$0xff]   ;;  %v940_v16 = vld [vmem:[%s1248_s1 + $0x58] sm:$0xff]   ;;  %v944_v20 = vld [vmem:[%s1248_s1 + $0x50] sm:$0xff]   ;;  %v1138_v41 = vsub.s32 %v156_v40, %v158_v33 }
   0x6   :  { %858 = vmatprep.subr.bf16.mxu1 %v929_v5  ;;  %v937_v13 = vld [vmem:[%s1248_s1 + $0xe0] sm:$0xff]   ;;  %v941_v17 = vld [vmem:[%s1248_s1 + $0xd8] sm:$0xff]   ;;  %v945_v21 = vld [vmem:[%s1248_s1 + $0xd0] sm:$0xff]  }
   0x7   :  { %v938_v14 = vld [vmem:[%s1248_s1 + $0x20] sm:$0xff]   ;;  %v942_v18 = vld [vmem:[%s1248_s1 + $0x18] sm:$0xff]   ;;  %v946_v22 = vld [vmem:[%s1248_s1 + $0x10] sm:$0xff]  }
   0x8   :  { %837 = vmatpush3.bf16.msra.mxu0 %v930_v6  ;;  %v939_v15 = vld [vmem:[%s1248_s1 + $0xa0] sm:$0xff]   ;;  %v943_v19 = vld [vmem:[%s1248_s1 + $0x98] sm:$0xff]   ;;  %v947_v23 = vld [vmem:[%s1248_s1 + $0x90] sm:$0xff]  }
   0x9   :  { %859 = vmatpush3.bf16.msra.mxu1 %v931_v7  ;;  %838 = vmatprep.subr.bf16.mxu0 %v932_v8  ;;  %v948_v24 = vld [vmem:[%s1248_s1 + $0x48] sm:$0xff]   ;;  %v952_v29 = vld [vmem:[%s1248_s1 + $0x40] sm:$0xff]   ;;  %v957_v35 = vld [vmem:[%s1248_s1 + $0x178] sm:$0xff]  }
   0xa   :  { %860 = vmatprep.subr.bf16.mxu1 %v933_v9  ;;  %v949_v25 = vld [vmem:[%s1248_s1 + $0xc8] sm:$0xff]   ;;  %v953_v30 = vld [vmem:[%s1248_s1 + $0xc0] sm:$0xff]   ;;  %v958_v38 = vld [vmem:[%s1248_s1 + $0x1f8] sm:$0xff]  }
   0xb   :  { %v950_v26 = vld [vmem:[%s1248_s1 + $0x8] sm:$0xff]   ;;  %v954_v31 = vld [vmem:[%s1248_s1] sm:$0xff]   ;;  %v959_v48 = vld [vmem:[%s1248_s1 + $0x138] sm:$0xff]  }
   0xc   :  { %839 = vmatpush3.bf16.msra.mxu0 %v934_v10  ;;  %v951_v27 = vld [vmem:[%s1248_s1 + $0x88] sm:$0xff]   ;;  %v955_v32 = vld [vmem:[%s1248_s1 + $0x80] sm:$0xff]   ;;  %v961_v51 = vld [vmem:[%s1248_s1 + $0x170] sm:$0xff]  }
   0xd   :  { %861 = vmatpush3.bf16.msra.mxu1 %v935_v11  ;;  %840 = vmatprep.subr.bf16.mxu0 %v936_v12  ;;  %v16_v34 = vld [vmem:[%s1247_s0] sm:$0xff]  ;;  %v960_v53 = vld [vmem:[%s1248_s1 + $0x1b8] sm:$0xff]   ;;  %v962_v54 = vld [vmem:[%s1248_s1 + $0x1f0] sm:$0xff]  }
   0xe   :  { %862 = vmatprep.subr.bf16.mxu1 %v937_v13  ;;  %v153_v39 = vcombine.high %v16_v34, %v16_v34  ;;  %v160_v42 = vrot.slane %v16_v34, %v1138_v41  ;;  %v963_v56 = vld [vmem:[%s1248_s1 + $0x130] sm:$0xff]   ;;  %v965_v57 = vld [vmem:[%s1248_s1 + $0x168] sm:$0xff]   ;;  %v969_v61 = vld [vmem:[%s1248_s1 + $0x160] sm:$0xff]  }
   0xf   :  { %v964_v58 = vld [vmem:[%s1248_s1 + $0x1b0] sm:$0xff]   ;;  %v966_v59 = vld [vmem:[%s1248_s1 + $0x1e8] sm:$0xff]   ;;  %v970_v63 = vld [vmem:[%s1248_s1 + $0x1e0] sm:$0xff]  }
  0x10   :  { %841 = vmatpush3.bf16.msra.mxu0 %v938_v14  ;;  %v1142_v43 = vrot.slane %v153_v39, %v1138_v41  ;;  %v168_v44 = vcombine.high %v160_v42, %v160_v42  ;;  %v176_v45 = vrot.slane %v160_v42, %v1138_v41  ;;  %v967_v60 = vld [vmem:[%s1248_s1 + $0x128] sm:$0xff]   ;;  %v971_v0 = vld [vmem:[%s1248_s1 + $0x120] sm:$0xff]   ;;  %v973_v1 = vld [vmem:[%s1248_s1 + $0x158] sm:$0xff]  }
  0x11   :  { %863 = vmatpush3.bf16.msra.mxu1 %v939_v15  ;;  %842 = vmatprep.subr.bf16.mxu0 %v940_v16  ;;  %v968_v62 = vld [vmem:[%s1248_s1 + $0x1a8] sm:$0xff]   ;;  %v972_v2 = vld [vmem:[%s1248_s1 + $0x1a0] sm:$0xff]   ;;  %v974_v3 = vld [vmem:[%s1248_s1 + $0x1d8] sm:$0xff]  }
  0x12   :  { %864 = vmatprep.subr.bf16.mxu1 %v941_v17  ;;  %v169_v46 = vcombine.high %v1142_v43, %v1142_v43  ;;  %v190_v47 = vrot.slane %v168_v44, %v1138_v41  ;;  %v198_v50 = vcombine.high %v176_v45, %v176_v45  ;;  %v975_v4 = vld [vmem:[%s1248_s1 + $0x118] sm:$0xff]   ;;  %v977_v5 = vld [vmem:[%s1248_s1 + $0x150] sm:$0xff]   ;;  %v981_v9 = vld [vmem:[%s1248_s1 + $0x148] sm:$0xff]  }
  0x13   :  { %v976_v6 = vld [vmem:[%s1248_s1 + $0x198] sm:$0xff]   ;;  %v978_v7 = vld [vmem:[%s1248_s1 + $0x1d0] sm:$0xff]  }
  0x14   :  { %843 = vmatpush3.bf16.msra.mxu0 %v942_v18  ;;  %v197_v49 = vrot.slane %v169_v46, %v1138_v41  ;;  %626 = vmatprep.mubr.bf16.mxu0 %v190_v47  ;;  %v200_v52 = vcombine.high %v190_v47, %v190_v47  ;;  %v979_v8 = vld [vmem:[%s1248_s1 + $0x110] sm:$0xff]  }
  0x15   :  { %865 = vmatpush3.bf16.msra.mxu1 %v943_v19  ;;  %844 = vmatprep.subr.bf16.mxu0 %v944_v20 }
  0x16   :  { %866 = vmatprep.subr.bf16.mxu1 %v945_v21  ;;  %v201_v55 = vcombine.high %v197_v49, %v197_v49  ;;  %666 = vmatprep.mubr.bf16.mxu1 %v200_v52 }
  0x18   :  { %845 = vmatpush3.bf16.msra.mxu0 %v946_v22 }
  0x19   :  { %867 = vmatpush3.bf16.msra.mxu1 %v947_v23  ;;  %846 = vmatprep.subr.bf16.mxu0 %v948_v24 }
  0x1a   :  { %868 = vmatprep.subr.bf16.mxu1 %v949_v25 }
  0x1c   :  { %847 = vmatpush3.bf16.msra.mxu0 %v950_v26 }
  0x1d   :  { %869 = vmatpush3.bf16.msra.mxu1 %v951_v27  ;;  %848 = vmatprep.subr.bf16.mxu0 %v952_v29 }
  0x1e   :  { %870 = vmatprep.subr.bf16.mxu1 %v953_v30 }
  0x20   :  { %849 = vmatpush3.bf16.msra.mxu0 %v954_v31 }
  0x21   :  { %871 = vmatpush3.bf16.msra.mxu1 %v955_v32  ;;  %878 = vmatprep.subr.bf16.mxu0 %v957_v35 }
  0x22   :  { %900 = vmatprep.subr.bf16.mxu1 %v958_v38 }
  0x23   :  { %627 = vmatmul.mubr.bf16.vlgmr.msra.gmra.mxu0 %v176_v45 }
  0x24   :  { %879 = vmatpush3.bf16.msra.mxu0 %v959_v48  ;;  %667 = vmatmul.mubr.bf16.vlgmr.msra.gmra.mxu1 %v198_v50 }
  0x25   :  { %880 = vmatprep.subr.bf16.mxu0 %v961_v51  ;;  %901 = vmatpush3.bf16.msra.mxu1 %v960_v53 }
  0x26   :  { %706 = vmatprep.mubr.bf16.mxu0 %v197_v49  ;;  %902 = vmatprep.subr.bf16.mxu1 %v962_v54 }
  0x27   :  { %746 = vmatprep.mubr.bf16.mxu1 %v201_v55 }
  0x28   :  { %881 = vmatpush3.bf16.msra.mxu0 %v963_v56 }
  0x29   :  { %882 = vmatprep.subr.bf16.mxu0 %v965_v57  ;;  %903 = vmatpush3.bf16.msra.mxu1 %v964_v58 }
  0x2a   :  { %904 = vmatprep.subr.bf16.mxu1 %v966_v59 }
  0x2c   :  { %883 = vmatpush3.bf16.msra.mxu0 %v967_v60 }
  0x2d   :  { %884 = vmatprep.subr.bf16.mxu0 %v969_v61  ;;  %905 = vmatpush3.bf16.msra.mxu1 %v968_v62 }
  0x2e   :  { %906 = vmatprep.subr.bf16.mxu1 %v970_v63 }
  0x30   :  { %885 = vmatpush3.bf16.msra.mxu0 %v971_v0 }
  0x31   :  { %886 = vmatprep.subr.bf16.mxu0 %v973_v1  ;;  %907 = vmatpush3.bf16.msra.mxu1 %v972_v2 }
  0x32   :  { %908 = vmatprep.subr.bf16.mxu1 %v974_v3 }
  0x34   :  { %887 = vmatpush3.bf16.msra.mxu0 %v975_v4 }
  0x35   :  { %888 = vmatprep.subr.bf16.mxu0 %v977_v5 }
  0x36   :  { %8 = vsyncpa [#allocation3], 0  ;;  %909 = vmatpush3.bf16.msra.mxu1 %v976_v6  ;;  %v980_v10 = vld [vmem:[%s1248_s1 + $0x190] sm:$0xff]   ;;  %v982_v11 = vld [vmem:[%s1248_s1 + $0x1c8] sm:$0xff]   ;;  %v183_v17 = vrot.slane %v1142_v43, %v1138_v41 }
  0x37   :  { %910 = vmatprep.subr.bf16.mxu1 %v978_v7  ;;  %v983_v12 = vld [vmem:[%s1248_s1 + $0x108] sm:$0xff]   ;;  %v985_v13 = vld [vmem:[%s1248_s1 + $0x140] sm:$0xff]  }
  0x38   :  { %889 = vmatpush3.bf16.msra.mxu0 %v979_v8  ;;  %v984_v14 = vld [vmem:[%s1248_s1 + $0x188] sm:$0xff]   ;;  %v986_v15 = vld [vmem:[%s1248_s1 + $0x1c0] sm:$0xff]   ;;  %v199_v19 = vcombine.high %v183_v17, %v183_v17 }
  0x39   :  { %890 = vmatprep.subr.bf16.mxu0 %v981_v9  ;;  %v987_v16 = vld [vmem:[%s1248_s1 + $0x100] sm:$0xff]  }
  0x3a   :  { %911 = vmatpush3.bf16.msra.mxu1 %v980_v10  ;;  %v988_v18 = vld [vmem:[%s1248_s1 + $0x180] sm:$0xff]   ;;  %s1012_s1 = smov [#allocation2]  }
  0x3b   :  { %912 = vmatprep.subr.bf16.mxu1 %v982_v11  ;;  %v769_v29 = vld [vmem:[%s1249_s2] ss:$0 sm:$0xff]  ;;  %s761_s6 = sshll.u32 %s1012_s1, 4  ;;  %s762_s6 = int_to_ptr.vmem [resolvable:$true] %s761_s6 }
  0x3c   :  { %891 = vmatpush3.bf16.msra.mxu0 %v983_v12  ;;  %s989_s2 = scalar_lea.vmem %s762_s6, 32  ;;  %p994_p1 = scmp.lt.s32.totalorder %s762_s6, %s762_s6 }
  0x3d   :  { %892 = vmatprep.subr.bf16.mxu0 %v985_v13  ;;  %p990_p0 = scmp.ne.s32.totalorder %s762_s6, %s989_s2  ;;  %p995_p2 = scmp.lt.s32.totalorder %s989_s2, %s989_s2 }
  0x3e   :  { %913 = vmatpush3.bf16.msra.mxu1 %v984_v14 }
  0x3f   :  { %914 = vmatprep.subr.bf16.mxu1 %v986_v15  ;;  %p996_p3 = por %p995_p2, %p994_p1 }
  0x40   :  { %893 = vmatpush3.bf16.msra.mxu0 %v987_v16 }
  0x41   :  { %p997_p4 = pnand %p996_p3, %p990_p0 }
  0x42   :  { %915 = vmatpush3.bf16.msra.mxu1 %v988_v18 }
  0x43   :  { %707 = vmatmul.mubr.bf16.vlgmr.msra.gmra.mxu0 %v183_v17 }
  0x45   :  { %747 = vmatmul.mubr.bf16.vlgmr.msra.gmra.mxu1 %v199_v19 }
  0xe3   :  { %v850_v20 = vpop.f32.mrf.mxu0 }
  0xe4   :  { %v872_v21 = vpop.f32.mrf.mxu1 }
  0xe5   :  { %v851_v22 = vpop.f32.mrf.mxu0 }
  0xe6   :  { %v873_v23 = vpop.f32.mrf.mxu1  ;;  %v852_v28 = vadd.f32 %v851_v22, %v850_v20 }
  0xe7   :  { %v853_v24 = vpop.f32.mrf.mxu0  ;;  %v874_v31 = vadd.f32 %v873_v23, %v872_v21 }
  0xe8   :  { %v875_v25 = vpop.f32.mrf.mxu1  ;;  %v629_v30 = vadd.f32 %v852_v28, %v769_v29 }
  0xe9   :  { %v854_v26 = vpop.f32.mrf.mxu0 }
  0xea   :  { %v876_v27 = vpop.f32.mrf.mxu1  ;;  %v669_v35 = vadd.f32 %v874_v31, %v629_v30 }
 0x103   :  { %v894_v32 = vpop.f32.mrf.mxu0 }
 0x105   :  { %v916_v33 = vpop.f32.mrf.mxu1  ;;  %v895_v34 = vpop.f32.mrf.mxu0 }
 0x106   :  { %v896_v36 = vadd.f32 %v895_v34, %v894_v32 }
 0x107   :  { %v917_v37 = vpop.f32.mrf.mxu1  ;;  %v897_v38 = vpop.f32.mrf.mxu0 }
 0x108   :  { %v709_v39 = vadd.f32 %v896_v36, %v669_v35  ;;  %v918_v40 = vadd.f32 %v917_v37, %v916_v33 }
 0x109   :  { %v919_v41 = vpop.f32.mrf.mxu1  ;;  %v898_v42 = vpop.f32.mrf.mxu0 }
 0x10a   :  { %v749_v43 = vadd.f32 %v918_v40, %v709_v39 }
 0x10b   :  { %v920_v44 = vpop.f32.mrf.mxu1 }
 0x10c   :  { %754 = vst [vmem:[#allocation2] sm:$0x3] %v749_v43 }
 0x10d   :  { %1000 = shalt.err (!%p997_p4)
}
 0x10e   :  { %764 = dma.vmem_to_hbm [thread:$0]  %s762_s6, 32, %s1250_s3, [#allocation3]  }
 0x10f   :  { %1009 = dma.done.wait [#allocation3], 32  }
 0x110   :  { %1010 = vsyncadd [#allocation3], 4294967264 }
 0x111   :  { %768 = vsyncpa [#allocation3], 1 }

// kernel: simple_cnn_forward.10
= control target key start
LH: loop header
LB: loop body
LE: loop exit
PB: predicated region body
PF: predicated region fallthrough
CT: control target
= control target key end

     0   :  { %v1589_v32 = vlaneseq  ;;  %v13434_v33 = vmov 1966171168   ;;  %vm9658_vm0 = vcmask 523264   ;;  %s18571_s1 = inlined_call_operand.vmem [shape: bf16[3136,1024], index: 1, kind: input, shape index: {}]   ;;  %s18572_s0 = inlined_call_operand.vmem [shape: bf16[2,3136], index: 0, kind: input, shape index: {}]   ;;  %s18573_s2 = inlined_call_operand.vmem [shape: f32[1,1024], index: 2, kind: input, shape index: {}]   ;;  %s18574_s3 = inlined_call_operand.vmem [shape: f32[2,1024], index: 3, kind: output, shape index: {}]  }
   0x1   :  { %v75_v0 = vld [vmem:[%s18571_s1 + $0x1c0] sm:$0xff]  ;;  %v1635_v34 = vunpack.c.l.s4 %v13434_v33 }
   0x2   :  { %v79_v1 = vld [vmem:[%s18571_s1 + $0x1e0] sm:$0xff]  ;;  %v13523_v43 = vshrl.u32 %v1589_v32, 7 }
   0x3   :  { %v203_v2 = vld [vmem:[%s18571_s1 + $0x5c0] sm:$0xff]  ;;  %v11910_v3 = vcombine.high %v75_v0, %v79_v1  ;;  %v11909_v5 = vcombine.low %v75_v0, %v79_v1  ;;  %v1636_v44 = vunpack.c.0.s8 %v1635_v34 }
   0x4   :  { %v207_v4 = vld [vmem:[%s18571_s1 + $0x5e0] sm:$0xff] }
   0x5   :  { %v67_v6 = vld [vmem:[%s18571_s1 + $0x180] sm:$0xff]  ;;  %v12038_v8 = vcombine.high %v203_v2, %v207_v4  ;;  %v12037_v9 = vcombine.low %v203_v2, %v207_v4  ;;  %9662 = vmatprep.subr.bf16.mxu0 %v11910_v3  ;;  %v13538_v53 = vsub.s32 %v1636_v44, %v13523_v43 }
   0x6   :  { %v71_v7 = vld [vmem:[%s18571_s1 + $0x1a0] sm:$0xff]  ;;  %9663 = vmatpush1.bf16.msra.mxu0 %v11909_v5 }
   0x7   :  { %v11902_v10 = vcombine.high %v67_v6, %v71_v7  ;;  %v195_v11 = vld [vmem:[%s18571_s1 + $0x580] sm:$0xff]  ;;  %9703 = vmatprep.subr.bf16.mxu1 %v12038_v8  ;;  %v11901_v18 = vcombine.low %v67_v6, %v71_v7 }
   0x8   :  { %v199_v12 = vld [vmem:[%s18571_s1 + $0x5a0] sm:$0xff]  ;;  %9704 = vmatpush1.bf16.msra.mxu1 %v12037_v9 }
   0x9   :  { %v59_v13 = vld [vmem:[%s18571_s1 + $0x140] sm:$0xff]  ;;  %v12030_v14 = vcombine.high %v195_v11, %v199_v12  ;;  %9664 = vmatprep.subr.bf16.mxu0 %v11902_v10  ;;  %v12029_v19 = vcombine.low %v195_v11, %v199_v12 }
   0xa   :  { %v63_v15 = vld [vmem:[%s18571_s1 + $0x160] sm:$0xff]  ;;  %9665 = vmatpush1.bf16.msra.mxu0 %v11901_v18 }
   0xb   :  { %v187_v16 = vld [vmem:[%s18571_s1 + $0x540] sm:$0xff]  ;;  %v11894_v20 = vcombine.high %v59_v13, %v63_v15  ;;  %9705 = vmatprep.subr.bf16.mxu1 %v12030_v14  ;;  %v11893_v26 = vcombine.low %v59_v13, %v63_v15 }
   0xc   :  { %v191_v17 = vld [vmem:[%s18571_s1 + $0x560] sm:$0xff]  ;;  %9706 = vmatpush1.bf16.msra.mxu1 %v12029_v19 }
   0xd   :  { %v12022_v21 = vcombine.high %v187_v16, %v191_v17  ;;  %v51_v22 = vld [vmem:[%s18571_s1 + $0x100] sm:$0xff]  ;;  %9666 = vmatprep.subr.bf16.mxu0 %v11894_v20  ;;  %v12021_v27 = vcombine.low %v187_v16, %v191_v17 }
   0xe   :  { %v55_v23 = vld [vmem:[%s18571_s1 + $0x120] sm:$0xff]  ;;  %9667 = vmatpush1.bf16.msra.mxu0 %v11893_v26 }
   0xf   :  { %v179_v24 = vld [vmem:[%s18571_s1 + $0x500] sm:$0xff]  ;;  %v11886_v28 = vcombine.high %v51_v22, %v55_v23  ;;  %9707 = vmatprep.subr.bf16.mxu1 %v12022_v21  ;;  %v11885_v37 = vcombine.low %v51_v22, %v55_v23 }
  0x10   :  { %v183_v25 = vld [vmem:[%s18571_s1 + $0x520] sm:$0xff]  ;;  %9708 = vmatpush1.bf16.msra.mxu1 %v12021_v27 }
  0x11   :  { %v12014_v29 = vcombine.high %v179_v24, %v183_v25  ;;  %v43_v30 = vld [vmem:[%s18571_s1 + $0xc0] sm:$0xff]  ;;  %9668 = vmatprep.subr.bf16.mxu0 %v11886_v28  ;;  %v12013_v38 = vcombine.low %v179_v24, %v183_v25 }
  0x12   :  { %v47_v31 = vld [vmem:[%s18571_s1 + $0xe0] sm:$0xff]  ;;  %9669 = vmatpush1.bf16.msra.mxu0 %v11885_v37 }
  0x13   :  { %v171_v35 = vld [vmem:[%s18571_s1 + $0x4c0] sm:$0xff]  ;;  %v11878_v39 = vcombine.high %v43_v30, %v47_v31  ;;  %9709 = vmatprep.subr.bf16.mxu1 %v12014_v29  ;;  %v11877_v47 = vcombine.low %v43_v30, %v47_v31 }
  0x14   :  { %v175_v36 = vld [vmem:[%s18571_s1 + $0x4e0] sm:$0xff]  ;;  %9710 = vmatpush1.bf16.msra.mxu1 %v12013_v38 }
  0x15   :  { %v12006_v40 = vcombine.high %v171_v35, %v175_v36  ;;  %v35_v41 = vld [vmem:[%s18571_s1 + $0x80] sm:$0xff]  ;;  %9670 = vmatprep.subr.bf16.mxu0 %v11878_v39  ;;  %v12005_v48 = vcombine.low %v171_v35, %v175_v36 }
  0x16   :  { %v39_v42 = vld [vmem:[%s18571_s1 + $0xa0] sm:$0xff]  ;;  %9671 = vmatpush1.bf16.msra.mxu0 %v11877_v47 }
  0x17   :  { %v163_v45 = vld [vmem:[%s18571_s1 + $0x480] sm:$0xff]  ;;  %v11870_v49 = vcombine.high %v35_v41, %v39_v42  ;;  %9711 = vmatprep.subr.bf16.mxu1 %v12006_v40  ;;  %v11869_v56 = vcombine.low %v35_v41, %v39_v42 }
  0x18   :  { %v167_v46 = vld [vmem:[%s18571_s1 + $0x4a0] sm:$0xff]  ;;  %9712 = vmatpush1.bf16.msra.mxu1 %v12005_v48 }
  0x19   :  { %v11998_v50 = vcombine.high %v163_v45, %v167_v46  ;;  %v27_v51 = vld [vmem:[%s18571_s1 + $0x40] sm:$0xff]  ;;  %9672 = vmatprep.subr.bf16.mxu0 %v11870_v49  ;;  %v11997_v57 = vcombine.low %v163_v45, %v167_v46 }
  0x1a   :  { %v31_v52 = vld [vmem:[%s18571_s1 + $0x60] sm:$0xff]  ;;  %9673 = vmatpush1.bf16.msra.mxu0 %v11869_v56 }
  0x1b   :  { %v155_v54 = vld [vmem:[%s18571_s1 + $0x440] sm:$0xff]  ;;  %v11862_v58 = vcombine.high %v27_v51, %v31_v52  ;;  %9713 = vmatprep.subr.bf16.mxu1 %v11998_v50  ;;  %v11861_v2 = vcombine.low %v27_v51, %v31_v52 }
  0x1c   :  { %v159_v55 = vld [vmem:[%s18571_s1 + $0x460] sm:$0xff]  ;;  %9714 = vmatpush1.bf16.msra.mxu1 %v11997_v57 }
  0x1d   :  { %v13549_v59 = vld [vmem:[%s18572_s0] sm:$0xff]  ;;  %v11990_v60 = vcombine.high %v155_v54, %v159_v55  ;;  %9674 = vmatprep.subr.bf16.mxu0 %v11862_v58  ;;  %v11989_v4 = vcombine.low %v155_v54, %v159_v55 }
  0x1e   :  { %v19_v61 = vld [vmem:[%s18571_s1] sm:$0xff]  ;;  %v13559_v63 = vrot.slane %v13549_v59, %v13538_v53  ;;  %9675 = vmatpush1.bf16.msra.mxu0 %v11861_v2 }
  0x1f   :  { %v23_v62 = vld [vmem:[%s18571_s1 + $0x20] sm:$0xff]  ;;  %9715 = vmatprep.subr.bf16.mxu1 %v11990_v60 }
  0x20   :  { %v147_v0 = vld [vmem:[%s18571_s1 + $0x400] sm:$0xff]  ;;  %v1648_v3 = vcombine.high %v13559_v63, %v13559_v63  ;;  %v11854_v5 = vcombine.high %v19_v61, %v23_v62  ;;  %v11853_v12 = vcombine.low %v19_v61, %v23_v62  ;;  %9716 = vmatpush1.bf16.msra.mxu1 %v11989_v4 }
  0x21   :  { %v151_v1 = vld [vmem:[%s18571_s1 + $0x420] sm:$0xff] }
  0x22   :  { %v11982_v6 = vcombine.high %v147_v0, %v151_v1  ;;  %v139_v7 = vld [vmem:[%s18571_s1 + $0x3c0] sm:$0xff]  ;;  %v13576_v9 = vrot.slane %v1648_v3, %v13538_v53  ;;  %9676 = vmatprep.subr.bf16.mxu0 %v11854_v5  ;;  %v11981_v14 = vcombine.low %v147_v0, %v151_v1  ;;  %v1633_v1 = vcombine.high %v13549_v59, %v13549_v59 }
  0x23   :  { %v143_v8 = vld [vmem:[%s18571_s1 + $0x3e0] sm:$0xff]  ;;  %9677 = vmatpush1.bf16.msra.mxu0 %v11853_v12 }
  0x24   :  { %v267_v10 = vld [vmem:[%s18571_s1 + $0x7c0] sm:$0xff]  ;;  %9694 = vmatprep.mubr.bf16.mxu0 %v13576_v9  ;;  %v13587_v13 = vcombine.high %v13576_v9, %v13576_v9  ;;  %v11974_v15 = vcombine.high %v139_v7, %v143_v8  ;;  %9717 = vmatprep.subr.bf16.mxu1 %v11982_v6  ;;  %v11973_v21 = vcombine.low %v139_v7, %v143_v8 }
  0x25   :  { %v271_v11 = vld [vmem:[%s18571_s1 + $0x7e0] sm:$0xff]  ;;  %9718 = vmatpush1.bf16.msra.mxu1 %v11981_v14 }
  0x26   :  { %v12102_v16 = vcombine.high %v267_v10, %v271_v11  ;;  %v131_v17 = vld [vmem:[%s18571_s1 + $0x380] sm:$0xff]  ;;  %9735 = vmatprep.mubr.bf16.mxu1 %v13587_v13  ;;  %9678 = vmatprep.subr.bf16.mxu0 %v11974_v15  ;;  %v12101_v22 = vcombine.low %v267_v10, %v271_v11  ;;  %v13677_v10 = vrot.slane %v1633_v1, %v13538_v53 }
  0x27   :  { %v135_v18 = vld [vmem:[%s18571_s1 + $0x3a0] sm:$0xff]  ;;  %9679 = vmatpush2.bf16.msra.mxu0 %v11973_v21 }
  0x28   :  { %v259_v19 = vld [vmem:[%s18571_s1 + $0x780] sm:$0xff]  ;;  %v11966_v23 = vcombine.high %v131_v17, %v135_v18  ;;  %9719 = vmatprep.subr.bf16.mxu1 %v12102_v16  ;;  %v11965_v29 = vcombine.low %v131_v17, %v135_v18 }
  0x29   :  { %v263_v20 = vld [vmem:[%s18571_s1 + $0x7a0] sm:$0xff]  ;;  %9720 = vmatpush2.bf16.msra.mxu1 %v12101_v22  ;;  %v13695_v22 = vrot.slane %v13559_v63, %v13538_v53 }
  0x2a   :  { %v12094_v24 = vcombine.high %v259_v19, %v263_v20  ;;  %v123_v25 = vld [vmem:[%s18571_s1 + $0x340] sm:$0xff]  ;;  %9680 = vmatprep.subr.bf16.mxu0 %v11966_v23  ;;  %v12093_v30 = vcombine.low %v259_v19, %v263_v20  ;;  %v1649_v20 = vcombine.high %v13677_v10, %v13677_v10 }
  0x2b   :  { %v127_v26 = vld [vmem:[%s18571_s1 + $0x360] sm:$0xff]  ;;  %9681 = vmatpush2.bf16.msra.mxu0 %v11965_v29 }
  0x2c   :  { %v251_v27 = vld [vmem:[%s18571_s1 + $0x740] sm:$0xff]  ;;  %v11958_v31 = vcombine.high %v123_v25, %v127_v26  ;;  %9721 = vmatprep.subr.bf16.mxu1 %v12094_v24  ;;  %v11957_v37 = vcombine.low %v123_v25, %v127_v26  ;;  %v13710_v29 = vrot.slane %v1649_v20, %v13538_v53 }
  0x2d   :  { %v255_v28 = vld [vmem:[%s18571_s1 + $0x760] sm:$0xff]  ;;  %9722 = vmatpush2.bf16.msra.mxu1 %v12093_v30  ;;  %v13714_v30 = vcombine.high %v13695_v22, %v13695_v22 }
  0x2e   :  { %v12086_v32 = vcombine.high %v251_v27, %v255_v28  ;;  %v115_v33 = vld [vmem:[%s18571_s1 + $0x300] sm:$0xff]  ;;  %9682 = vmatprep.subr.bf16.mxu0 %v11958_v31  ;;  %v12085_v38 = vcombine.low %v251_v27, %v255_v28 }
  0x2f   :  { %v119_v34 = vld [vmem:[%s18571_s1 + $0x320] sm:$0xff]  ;;  %9683 = vmatpush2.bf16.msra.mxu0 %v11957_v37 }
  0x30   :  { %v243_v35 = vld [vmem:[%s18571_s1 + $0x700] sm:$0xff]  ;;  %v11950_v39 = vcombine.high %v115_v33, %v119_v34  ;;  %9723 = vmatprep.subr.bf16.mxu1 %v12086_v32  ;;  %v11949_v46 = vcombine.low %v115_v33, %v119_v34 }
  0x31   :  { %v247_v36 = vld [vmem:[%s18571_s1 + $0x720] sm:$0xff]  ;;  %9724 = vmatpush2.bf16.msra.mxu1 %v12085_v38 }
  0x32   :  { %v12078_v40 = vcombine.high %v243_v35, %v247_v36  ;;  %v107_v41 = vld [vmem:[%s18571_s1 + $0x2c0] sm:$0xff]  ;;  %9684 = vmatprep.subr.bf16.mxu0 %v11950_v39  ;;  %v12077_v47 = vcombine.low %v243_v35, %v247_v36  ;;  %v13731_v39 = vcombine.high %v13710_v29, %v13710_v29 }
  0x33   :  { %v111_v42 = vld [vmem:[%s18571_s1 + $0x2e0] sm:$0xff]  ;;  %9685 = vmatpush2.bf16.msra.mxu0 %v11949_v46 }
  0x34   :  { %v235_v44 = vld [vmem:[%s18571_s1 + $0x6c0] sm:$0xff]  ;;  %v11942_v48 = vcombine.high %v107_v41, %v111_v42  ;;  %9725 = vmatprep.subr.bf16.mxu1 %v12078_v40  ;;  %v11941_v55 = vcombine.low %v107_v41, %v111_v42 }
  0x35   :  { %v239_v45 = vld [vmem:[%s18571_s1 + $0x6e0] sm:$0xff]  ;;  %9726 = vmatpush2.bf16.msra.mxu1 %v12077_v47 }
  0x36   :  { %v12070_v49 = vcombine.high %v235_v44, %v239_v45  ;;  %v99_v50 = vld [vmem:[%s18571_s1 + $0x280] sm:$0xff]  ;;  %9686 = vmatprep.subr.bf16.mxu0 %v11942_v48  ;;  %v12069_v56 = vcombine.low %v235_v44, %v239_v45 }
  0x37   :  { %v103_v51 = vld [vmem:[%s18571_s1 + $0x2a0] sm:$0xff]  ;;  %9687 = vmatpush2.bf16.msra.mxu0 %v11941_v55 }
  0x38   :  { %v227_v52 = vld [vmem:[%s18571_s1 + $0x680] sm:$0xff]  ;;  %v11934_v57 = vcombine.high %v99_v50, %v103_v51  ;;  %9727 = vmatprep.subr.bf16.mxu1 %v12070_v49  ;;  %v11933_v2 = vcombine.low %v99_v50, %v103_v51 }
  0x39   :  { %v231_v54 = vld [vmem:[%s18571_s1 + $0x6a0] sm:$0xff]  ;;  %9728 = vmatpush2.bf16.msra.mxu1 %v12069_v56 }
  0x3a   :  { %v12062_v58 = vcombine.high %v227_v52, %v231_v54  ;;  %v91_v60 = vld [vmem:[%s18571_s1 + $0x240] sm:$0xff]  ;;  %9688 = vmatprep.subr.bf16.mxu0 %v11934_v57  ;;  %v12061_v3 = vcombine.low %v227_v52, %v231_v54 }
  0x3b   :  { %v95_v61 = vld [vmem:[%s18571_s1 + $0x260] sm:$0xff]  ;;  %9689 = vmatpush2.bf16.msra.mxu0 %v11933_v2 }
  0x3c   :  { %v219_v62 = vld [vmem:[%s18571_s1 + $0x640] sm:$0xff]  ;;  %v11926_v4 = vcombine.high %v91_v60, %v95_v61  ;;  %9729 = vmatprep.subr.bf16.mxu1 %v12062_v58  ;;  %v11925_v11 = vcombine.low %v91_v60, %v95_v61 }
  0x3d   :  { %v223_v0 = vld [vmem:[%s18571_s1 + $0x660] sm:$0xff]  ;;  %9730 = vmatpush2.bf16.msra.mxu1 %v12061_v3 }
  0x3e   :  { %v12054_v5 = vcombine.high %v219_v62, %v223_v0  ;;  %v83_v6 = vld [vmem:[%s18571_s1 + $0x200] sm:$0xff]  ;;  %9690 = vmatprep.subr.bf16.mxu0 %v11926_v4  ;;  %v12053_v12 = vcombine.low %v219_v62, %v223_v0 }
  0x3f   :  { %v87_v7 = vld [vmem:[%s18571_s1 + $0x220] sm:$0xff]  ;;  %9691 = vmatpush2.bf16.msra.mxu0 %v11925_v11 }
  0x40   :  { %v211_v59 = vld [vmem:[%s18571_s1 + $0x600] sm:$0xff]  ;;  %v11918_v14 = vcombine.high %v83_v6, %v87_v7  ;;  %9731 = vmatprep.subr.bf16.mxu1 %v12054_v5  ;;  %v11917_v21 = vcombine.low %v83_v6, %v87_v7 }
  0x41   :  { %v215_v8 = vld [vmem:[%s18571_s1 + $0x620] sm:$0xff]  ;;  %9732 = vmatpush2.bf16.msra.mxu1 %v12053_v12 }
  0x42   :  { %v12046_v15 = vcombine.high %v211_v59, %v215_v8  ;;  %v331_v16 = vld [vmem:[%s18571_s1 + $0x9c0] sm:$0xff]  ;;  %9692 = vmatprep.subr.bf16.mxu0 %v11918_v14  ;;  %v12045_v23 = vcombine.low %v211_v59, %v215_v8 }
  0x43   :  { %v335_v17 = vld [vmem:[%s18571_s1 + $0x9e0] sm:$0xff]  ;;  %9693 = vmatpush2.bf16.msra.mxu0 %v11917_v21 }
  0x44   :  { %v459_v18 = vld [vmem:[%s18571_s1 + $0xdc0] sm:$0xff]  ;;  %v12166_v24 = vcombine.high %v331_v16, %v335_v17  ;;  %9733 = vmatprep.subr.bf16.mxu1 %v12046_v15  ;;  %v12165_v31 = vcombine.low %v331_v16, %v335_v17 }
  0x45   :  { %v463_v19 = vld [vmem:[%s18571_s1 + $0xde0] sm:$0xff]  ;;  %9734 = vmatpush2.bf16.msra.mxu1 %v12045_v23 }
  0x46   :  { %v12294_v25 = vcombine.high %v459_v18, %v463_v19  ;;  %v323_v26 = vld [vmem:[%s18571_s1 + $0x980] sm:$0xff]  ;;  %9744 = vmatprep.subr.bf16.mxu0 %v12166_v24  ;;  %v12293_v32 = vcombine.low %v459_v18, %v463_v19  ;;  %9695 = vmatmul.mubr.bf16.vlgmr.msra.gmra.mxu0 %v13695_v22 }
  0x47   :  { %v327_v27 = vld [vmem:[%s18571_s1 + $0x9a0] sm:$0xff]  ;;  %9745 = vmatpush1.bf16.msra.mxu0 %v12165_v31  ;;  %9776 = vmatprep.mubr.bf16.mxu0 %v13710_v29 }
  0x48   :  { %v451_v28 = vld [vmem:[%s18571_s1 + $0xd80] sm:$0xff]  ;;  %v12158_v33 = vcombine.high %v323_v26, %v327_v27  ;;  %9785 = vmatprep.subr.bf16.mxu1 %v12294_v25  ;;  %9736 = vmatmul.mubr.bf16.vlgmr.msra.gmra.mxu1 %v13714_v30  ;;  %v12157_v40 = vcombine.low %v323_v26, %v327_v27 }
  0x49   :  { %v455_v63 = vld [vmem:[%s18571_s1 + $0xda0] sm:$0xff]  ;;  %9786 = vmatpush1.bf16.msra.mxu1 %v12293_v32  ;;  %9817 = vmatprep.mubr.bf16.mxu1 %v13731_v39 }
  0x4a   :  { %v12286_v34 = vcombine.high %v451_v28, %v455_v63  ;;  %v315_v35 = vld [vmem:[%s18571_s1 + $0x940] sm:$0xff]  ;;  %9746 = vmatprep.subr.bf16.mxu0 %v12158_v33  ;;  %v12285_v41 = vcombine.low %v451_v28, %v455_v63 }
  0x4b   :  { %v319_v36 = vld [vmem:[%s18571_s1 + $0x960] sm:$0xff]  ;;  %9747 = vmatpush1.bf16.msra.mxu0 %v12157_v40 }
  0x4c   :  { %v443_v37 = vld [vmem:[%s18571_s1 + $0xd40] sm:$0xff]  ;;  %v12150_v42 = vcombine.high %v315_v35, %v319_v36  ;;  %9787 = vmatprep.subr.bf16.mxu1 %v12286_v34  ;;  %v12149_v49 = vcombine.low %v315_v35, %v319_v36 }
  0x4d   :  { %v447_v38 = vld [vmem:[%s18571_s1 + $0xd60] sm:$0xff]  ;;  %9788 = vmatpush1.bf16.msra.mxu1 %v12285_v41 }
  0x4e   :  { %v12278_v44 = vcombine.high %v443_v37, %v447_v38  ;;  %v307_v45 = vld [vmem:[%s18571_s1 + $0x900] sm:$0xff]  ;;  %9748 = vmatprep.subr.bf16.mxu0 %v12150_v42  ;;  %v12277_v50 = vcombine.low %v443_v37, %v447_v38 }
  0x4f   :  { %v311_v46 = vld [vmem:[%s18571_s1 + $0x920] sm:$0xff]  ;;  %9749 = vmatpush1.bf16.msra.mxu0 %v12149_v49 }
  0x50   :  { %v435_v47 = vld [vmem:[%s18571_s1 + $0xd00] sm:$0xff]  ;;  %v12142_v51 = vcombine.high %v307_v45, %v311_v46  ;;  %9789 = vmatprep.subr.bf16.mxu1 %v12278_v44  ;;  %v12141_v58 = vcombine.low %v307_v45, %v311_v46 }
  0x51   :  { %v439_v48 = vld [vmem:[%s18571_s1 + $0xd20] sm:$0xff]  ;;  %9790 = vmatpush1.bf16.msra.mxu1 %v12277_v50 }
  0x52   :  { %v12270_v52 = vcombine.high %v435_v47, %v439_v48  ;;  %v299_v54 = vld [vmem:[%s18571_s1 + $0x8c0] sm:$0xff]  ;;  %9750 = vmatprep.subr.bf16.mxu0 %v12142_v51  ;;  %v12269_v60 = vcombine.low %v435_v47, %v439_v48 }
  0x53   :  { %v303_v55 = vld [vmem:[%s18571_s1 + $0x8e0] sm:$0xff]  ;;  %9751 = vmatpush1.bf16.msra.mxu0 %v12141_v58 }
  0x54   :  { %v427_v56 = vld [vmem:[%s18571_s1 + $0xcc0] sm:$0xff]  ;;  %v12134_v61 = vcombine.high %v299_v54, %v303_v55  ;;  %9791 = vmatprep.subr.bf16.mxu1 %v12270_v52  ;;  %v12133_v4 = vcombine.low %v299_v54, %v303_v55 }
  0x55   :  { %v431_v57 = vld [vmem:[%s18571_s1 + $0xce0] sm:$0xff]  ;;  %9792 = vmatpush1.bf16.msra.mxu1 %v12269_v60 }
  0x56   :  { %v12262_v62 = vcombine.high %v427_v56, %v431_v57  ;;  %v291_v0 = vld [vmem:[%s18571_s1 + $0x880] sm:$0xff]  ;;  %9752 = vmatprep.subr.bf16.mxu0 %v12134_v61  ;;  %v12261_v5 = vcombine.low %v427_v56, %v431_v57 }
  0x57   :  { %v295_v1 = vld [vmem:[%s18571_s1 + $0x8a0] sm:$0xff]  ;;  %9753 = vmatpush1.bf16.msra.mxu0 %v12133_v4 }
  0x58   :  { %v419_v2 = vld [vmem:[%s18571_s1 + $0xc80] sm:$0xff]  ;;  %v12126_v6 = vcombine.high %v291_v0, %v295_v1  ;;  %9793 = vmatprep.subr.bf16.mxu1 %v12262_v62  ;;  %v12125_v14 = vcombine.low %v291_v0, %v295_v1 }
  0x59   :  { %v423_v3 = vld [vmem:[%s18571_s1 + $0xca0] sm:$0xff]  ;;  %9794 = vmatpush1.bf16.msra.mxu1 %v12261_v5 }
  0x5a   :  { %v12254_v7 = vcombine.high %v419_v2, %v423_v3  ;;  %v283_v59 = vld [vmem:[%s18571_s1 + $0x840] sm:$0xff]  ;;  %9754 = vmatprep.subr.bf16.mxu0 %v12126_v6  ;;  %v12253_v15 = vcombine.low %v419_v2, %v423_v3 }
  0x5b   :  { %v287_v8 = vld [vmem:[%s18571_s1 + $0x860] sm:$0xff]  ;;  %9755 = vmatpush1.bf16.msra.mxu0 %v12125_v14 }
  0x5c   :  { %v411_v11 = vld [vmem:[%s18571_s1 + $0xc40] sm:$0xff]  ;;  %v12118_v16 = vcombine.high %v283_v59, %v287_v8  ;;  %9795 = vmatprep.subr.bf16.mxu1 %v12254_v7  ;;  %v12117_v23 = vcombine.low %v283_v59, %v287_v8 }
  0x5d   :  { %v415_v12 = vld [vmem:[%s18571_s1 + $0xc60] sm:$0xff]  ;;  %9796 = vmatpush1.bf16.msra.mxu1 %v12253_v15 }
  0x5e   :  { %v12246_v17 = vcombine.high %v411_v11, %v415_v12  ;;  %v275_v18 = vld [vmem:[%s18571_s1 + $0x800] sm:$0xff]  ;;  %9756 = vmatprep.subr.bf16.mxu0 %v12118_v16  ;;  %v12245_v24 = vcombine.low %v411_v11, %v415_v12 }
  0x5f   :  { %v279_v19 = vld [vmem:[%s18571_s1 + $0x820] sm:$0xff]  ;;  %9757 = vmatpush1.bf16.msra.mxu0 %v12117_v23 }
  0x60   :  { %v403_v20 = vld [vmem:[%s18571_s1 + $0xc00] sm:$0xff]  ;;  %v12110_v25 = vcombine.high %v275_v18, %v279_v19  ;;  %9797 = vmatprep.subr.bf16.mxu1 %v12246_v17  ;;  %v12109_v32 = vcombine.low %v275_v18, %v279_v19 }
  0x61   :  { %v407_v21 = vld [vmem:[%s18571_s1 + $0xc20] sm:$0xff]  ;;  %9798 = vmatpush1.bf16.msra.mxu1 %v12245_v24 }
  0x62   :  { %v12238_v26 = vcombine.high %v403_v20, %v407_v21  ;;  %v395_v27 = vld [vmem:[%s18571_s1 + $0xbc0] sm:$0xff]  ;;  %9758 = vmatprep.subr.bf16.mxu0 %v12110_v25  ;;  %v12237_v33 = vcombine.low %v403_v20, %v407_v21  ;;  %v13883_v25 = vld [vmem:[%s18572_s0 + $0x8] sm:$0xff] }
  0x63   :  { %v399_v28 = vld [vmem:[%s18571_s1 + $0xbe0] sm:$0xff]  ;;  %9759 = vmatpush1.bf16.msra.mxu0 %v12109_v32 }
  0x64   :  { %v523_v63 = vld [vmem:[%s18571_s1 + $0xfc0] sm:$0xff]  ;;  %v12230_v34 = vcombine.high %v395_v27, %v399_v28  ;;  %9799 = vmatprep.subr.bf16.mxu1 %v12238_v26  ;;  %v12229_v41 = vcombine.low %v395_v27, %v399_v28 }
  0x65   :  { %v527_v31 = vld [vmem:[%s18571_s1 + $0xfe0] sm:$0xff]  ;;  %9800 = vmatpush1.bf16.msra.mxu1 %v12237_v33 }
  0x66   :  { %v12358_v35 = vcombine.high %v523_v63, %v527_v31  ;;  %v387_v36 = vld [vmem:[%s18571_s1 + $0xb80] sm:$0xff]  ;;  %9760 = vmatprep.subr.bf16.mxu0 %v12230_v34  ;;  %v12357_v42 = vcombine.low %v523_v63, %v527_v31  ;;  %v13899_v34 = vrot.slane %v13883_v25, %v13538_v53 }
  0x67   :  { %v391_v37 = vld [vmem:[%s18571_s1 + $0xba0] sm:$0xff]  ;;  %9761 = vmatpush2.bf16.msra.mxu0 %v12229_v41 }
  0x68   :  { %v515_v38 = vld [vmem:[%s18571_s1 + $0xf80] sm:$0xff]  ;;  %v12222_v44 = vcombine.high %v387_v36, %v391_v37  ;;  %9801 = vmatprep.subr.bf16.mxu1 %v12358_v35  ;;  %v12221_v50 = vcombine.low %v387_v36, %v391_v37 }
  0x69   :  { %v519_v40 = vld [vmem:[%s18571_s1 + $0xfa0] sm:$0xff]  ;;  %9802 = vmatpush2.bf16.msra.mxu1 %v12357_v42 }
  0x6a   :  { %v12350_v45 = vcombine.high %v515_v38, %v519_v40  ;;  %v379_v46 = vld [vmem:[%s18571_s1 + $0xb40] sm:$0xff]  ;;  %9762 = vmatprep.subr.bf16.mxu0 %v12222_v44  ;;  %v12349_v51 = vcombine.low %v515_v38, %v519_v40 }
  0x6b   :  { %v383_v47 = vld [vmem:[%s18571_s1 + $0xb60] sm:$0xff]  ;;  %9763 = vmatpush2.bf16.msra.mxu0 %v12221_v50 }
  0x6c   :  { %v507_v48 = vld [vmem:[%s18571_s1 + $0xf40] sm:$0xff]  ;;  %v12214_v52 = vcombine.high %v379_v46, %v383_v47  ;;  %9803 = vmatprep.subr.bf16.mxu1 %v12350_v45  ;;  %v12213_v60 = vcombine.low %v379_v46, %v383_v47  ;;  %v1697_v45 = vcombine.high %v13899_v34, %v13899_v34  ;;  %v13917_v47 = vrot.slane %v13677_v10, %v13538_v53 }
  0x6d   :  { %v511_v49 = vld [vmem:[%s18571_s1 + $0xf60] sm:$0xff]  ;;  %9804 = vmatpush2.bf16.msra.mxu1 %v12349_v51 }
  0x6e   :  { %v12342_v54 = vcombine.high %v507_v48, %v511_v49  ;;  %v371_v55 = vld [vmem:[%s18571_s1 + $0xb00] sm:$0xff]  ;;  %9764 = vmatprep.subr.bf16.mxu0 %v12214_v52  ;;  %v12341_v61 = vcombine.low %v507_v48, %v511_v49 }
  0x6f   :  { %v375_v56 = vld [vmem:[%s18571_s1 + $0xb20] sm:$0xff]  ;;  %9765 = vmatpush2.bf16.msra.mxu0 %v12213_v60 }
  0x70   :  { %v499_v57 = vld [vmem:[%s18571_s1 + $0xf00] sm:$0xff]  ;;  %v12206_v62 = vcombine.high %v371_v55, %v375_v56  ;;  %9805 = vmatprep.subr.bf16.mxu1 %v12342_v54  ;;  %v12205_v5 = vcombine.low %v371_v55, %v375_v56  ;;  %v13932_v55 = vrot.slane %v1697_v45, %v13538_v53  ;;  %v13936_v56 = vcombine.high %v13917_v47, %v13917_v47 }
  0x71   :  { %v503_v58 = vld [vmem:[%s18571_s1 + $0xf20] sm:$0xff]  ;;  %9806 = vmatpush2.bf16.msra.mxu1 %v12341_v61 }
  0x72   :  { %v12334_v0 = vcombine.high %v499_v57, %v503_v58  ;;  %v363_v1 = vld [vmem:[%s18571_s1 + $0xac0] sm:$0xff]  ;;  %9766 = vmatprep.subr.bf16.mxu0 %v12206_v62  ;;  %v12333_v6 = vcombine.low %v499_v57, %v503_v58 }
  0x73   :  { %v367_v2 = vld [vmem:[%s18571_s1 + $0xae0] sm:$0xff]  ;;  %9767 = vmatpush2.bf16.msra.mxu0 %v12205_v5 }
  0x74   :  { %v491_v3 = vld [vmem:[%s18571_s1 + $0xec0] sm:$0xff]  ;;  %v12198_v7 = vcombine.high %v363_v1, %v367_v2  ;;  %9807 = vmatprep.subr.bf16.mxu1 %v12334_v0  ;;  %v12197_v15 = vcombine.low %v363_v1, %v367_v2 }
  0x75   :  { %v495_v4 = vld [vmem:[%s18571_s1 + $0xee0] sm:$0xff]  ;;  %9808 = vmatpush2.bf16.msra.mxu1 %v12333_v6 }
  0x76   :  { %v12326_v59 = vcombine.high %v491_v3, %v495_v4  ;;  %v355_v8 = vld [vmem:[%s18571_s1 + $0xa80] sm:$0xff]  ;;  %9768 = vmatprep.subr.bf16.mxu0 %v12198_v7  ;;  %v12325_v16 = vcombine.low %v491_v3, %v495_v4  ;;  %v13953_v3 = vcombine.high %v13932_v55, %v13932_v55 }
  0x77   :  { %v359_v11 = vld [vmem:[%s18571_s1 + $0xaa0] sm:$0xff]  ;;  %9769 = vmatpush2.bf16.msra.mxu0 %v12197_v15 }
  0x78   :  { %v483_v12 = vld [vmem:[%s18571_s1 + $0xe80] sm:$0xff]  ;;  %v12190_v17 = vcombine.high %v355_v8, %v359_v11  ;;  %9809 = vmatprep.subr.bf16.mxu1 %v12326_v59  ;;  %v12189_v24 = vcombine.low %v355_v8, %v359_v11 }
  0x79   :  { %v487_v14 = vld [vmem:[%s18571_s1 + $0xea0] sm:$0xff]  ;;  %9810 = vmatpush2.bf16.msra.mxu1 %v12325_v16 }
  0x7a   :  { %v12318_v18 = vcombine.high %v483_v12, %v487_v14  ;;  %v347_v19 = vld [vmem:[%s18571_s1 + $0xa40] sm:$0xff]  ;;  %9770 = vmatprep.subr.bf16.mxu0 %v12190_v17  ;;  %v12317_v26 = vcombine.low %v483_v12, %v487_v14 }
  0x7b   :  { %v351_v20 = vld [vmem:[%s18571_s1 + $0xa60] sm:$0xff]  ;;  %9771 = vmatpush2.bf16.msra.mxu0 %v12189_v24 }
  0x7c   :  { %v475_v21 = vld [vmem:[%s18571_s1 + $0xe40] sm:$0xff]  ;;  %v12182_v27 = vcombine.high %v347_v19, %v351_v20  ;;  %9811 = vmatprep.subr.bf16.mxu1 %v12318_v18  ;;  %v12181_v35 = vcombine.low %v347_v19, %v351_v20 }
  0x7d   :  { %v479_v23 = vld [vmem:[%s18571_s1 + $0xe60] sm:$0xff]  ;;  %9812 = vmatpush2.bf16.msra.mxu1 %v12317_v26 }
  0x7e   :  { %v12310_v28 = vcombine.high %v475_v21, %v479_v23  ;;  %v339_v63 = vld [vmem:[%s18571_s1 + $0xa00] sm:$0xff]  ;;  %9772 = vmatprep.subr.bf16.mxu0 %v12182_v27  ;;  %v12309_v36 = vcombine.low %v475_v21, %v479_v23 }
  0x7f   :  { %v343_v31 = vld [vmem:[%s18571_s1 + $0xa20] sm:$0xff]  ;;  %9773 = vmatpush2.bf16.msra.mxu0 %v12181_v35 }
  0x80   :  { %v467_v32 = vld [vmem:[%s18571_s1 + $0xe00] sm:$0xff]  ;;  %v12174_v37 = vcombine.high %v339_v63, %v343_v31  ;;  %9813 = vmatprep.subr.bf16.mxu1 %v12310_v28  ;;  %v12173_v46 = vcombine.low %v339_v63, %v343_v31 }
  0x81   :  { %v471_v33 = vld [vmem:[%s18571_s1 + $0xe20] sm:$0xff]  ;;  %9814 = vmatpush2.bf16.msra.mxu1 %v12309_v36 }
  0x82   :  { %v12302_v38 = vcombine.high %v467_v32, %v471_v33  ;;  %v587_v40 = vld [vmem:[%s18571_s1 + $0x11c0] sm:$0xff]  ;;  %9774 = vmatprep.subr.bf16.mxu0 %v12174_v37  ;;  %v12301_v48 = vcombine.low %v467_v32, %v471_v33 }
  0x83   :  { %v591_v41 = vld [vmem:[%s18571_s1 + $0x11e0] sm:$0xff]  ;;  %9775 = vmatpush2.bf16.msra.mxu0 %v12173_v46 }
  0x84   :  { %v715_v42 = vld [vmem:[%s18571_s1 + $0x15c0] sm:$0xff]  ;;  %v12422_v49 = vcombine.high %v587_v40, %v591_v41  ;;  %9815 = vmatprep.subr.bf16.mxu1 %v12302_v38  ;;  %v12421_v57 = vcombine.low %v587_v40, %v591_v41 }
  0x85   :  { %v719_v44 = vld [vmem:[%s18571_s1 + $0x15e0] sm:$0xff]  ;;  %9816 = vmatpush2.bf16.msra.mxu1 %v12301_v48 }
  0x86   :  { %v12550_v50 = vcombine.high %v715_v42, %v719_v44  ;;  %v579_v51 = vld [vmem:[%s18571_s1 + $0x1180] sm:$0xff]  ;;  %9826 = vmatprep.subr.bf16.mxu0 %v12422_v49  ;;  %v12549_v58 = vcombine.low %v715_v42, %v719_v44  ;;  %9777 = vmatmul.mubr.bf16.vlgmr.msra.gmra.mxu0 %v13917_v47 }
  0x87   :  { %v583_v52 = vld [vmem:[%s18571_s1 + $0x11a0] sm:$0xff]  ;;  %9827 = vmatpush1.bf16.msra.mxu0 %v12421_v57  ;;  %9858 = vmatprep.mubr.bf16.mxu0 %v13932_v55 }
  0x88   :  { %v707_v54 = vld [vmem:[%s18571_s1 + $0x1580] sm:$0xff]  ;;  %v12414_v60 = vcombine.high %v579_v51, %v583_v52  ;;  %9867 = vmatprep.subr.bf16.mxu1 %v12550_v50  ;;  %9818 = vmatmul.mubr.bf16.vlgmr.msra.gmra.mxu1 %v13936_v56  ;;  %v12413_v4 = vcombine.low %v579_v51, %v583_v52 }
  0x89   :  { %v711_v10 = vld [vmem:[%s18571_s1 + $0x15a0] sm:$0xff]  ;;  %9868 = vmatpush1.bf16.msra.mxu1 %v12549_v58  ;;  %9899 = vmatprep.mubr.bf16.mxu1 %v13953_v3 }
  0x8a   :  { %v12542_v61 = vcombine.high %v707_v54, %v711_v10  ;;  %v571_v62 = vld [vmem:[%s18571_s1 + $0x1140] sm:$0xff]  ;;  %9828 = vmatprep.subr.bf16.mxu0 %v12414_v60  ;;  %v12541_v5 = vcombine.low %v707_v54, %v711_v10 }
  0x8b   :  { %v575_v0 = vld [vmem:[%s18571_s1 + $0x1160] sm:$0xff]  ;;  %9829 = vmatpush1.bf16.msra.mxu0 %v12413_v4 }
  0x8c   :  { %v699_v1 = vld [vmem:[%s18571_s1 + $0x1540] sm:$0xff]  ;;  %v12406_v6 = vcombine.high %v571_v62, %v575_v0  ;;  %9869 = vmatprep.subr.bf16.mxu1 %v12542_v61  ;;  %v12405_v14 = vcombine.low %v571_v62, %v575_v0 }
  0x8d   :  { %v703_v2 = vld [vmem:[%s18571_s1 + $0x1560] sm:$0xff]  ;;  %9870 = vmatpush1.bf16.msra.mxu1 %v12541_v5 }
  0x8e   :  { %v12534_v7 = vcombine.high %v699_v1, %v703_v2  ;;  %v563_v59 = vld [vmem:[%s18571_s1 + $0x1100] sm:$0xff]  ;;  %9830 = vmatprep.subr.bf16.mxu0 %v12406_v6  ;;  %v12533_v15 = vcombine.low %v699_v1, %v703_v2 }
  0x8f   :  { %v567_v8 = vld [vmem:[%s18571_s1 + $0x1120] sm:$0xff]  ;;  %9831 = vmatpush1.bf16.msra.mxu0 %v12405_v14 }
  0x90   :  { %v691_v11 = vld [vmem:[%s18571_s1 + $0x1500] sm:$0xff]  ;;  %v12398_v16 = vcombine.high %v563_v59, %v567_v8  ;;  %9871 = vmatprep.subr.bf16.mxu1 %v12534_v7  ;;  %v12397_v23 = vcombine.low %v563_v59, %v567_v8 }
  0x91   :  { %v695_v12 = vld [vmem:[%s18571_s1 + $0x1520] sm:$0xff]  ;;  %9872 = vmatpush1.bf16.msra.mxu1 %v12533_v15 }
  0x92   :  { %v12526_v17 = vcombine.high %v691_v11, %v695_v12  ;;  %v555_v18 = vld [vmem:[%s18571_s1 + $0x10c0] sm:$0xff]  ;;  %9832 = vmatprep.subr.bf16.mxu0 %v12398_v16  ;;  %v12525_v24 = vcombine.low %v691_v11, %v695_v12 }
  0x93   :  { %v559_v19 = vld [vmem:[%s18571_s1 + $0x10e0] sm:$0xff]  ;;  %9833 = vmatpush1.bf16.msra.mxu0 %v12397_v23 }
  0x94   :  { %v683_v20 = vld [vmem:[%s18571_s1 + $0x14c0] sm:$0xff]  ;;  %v12390_v26 = vcombine.high %v555_v18, %v559_v19  ;;  %9873 = vmatprep.subr.bf16.mxu1 %v12526_v17  ;;  %v12389_v33 = vcombine.low %v555_v18, %v559_v19 }
  0x95   :  { %v687_v21 = vld [vmem:[%s18571_s1 + $0x14e0] sm:$0xff]  ;;  %9874 = vmatpush1.bf16.msra.mxu1 %v12525_v24 }
  0x96   :  { %v12518_v27 = vcombine.high %v683_v20, %v687_v21  ;;  %v547_v28 = vld [vmem:[%s18571_s1 + $0x1080] sm:$0xff]  ;;  %9834 = vmatprep.subr.bf16.mxu0 %v12390_v26  ;;  %v12517_v35 = vcombine.low %v683_v20, %v687_v21 }
  0x97   :  { %v551_v63 = vld [vmem:[%s18571_s1 + $0x10a0] sm:$0xff]  ;;  %9835 = vmatpush1.bf16.msra.mxu0 %v12389_v33 }
  0x98   :  { %v675_v31 = vld [vmem:[%s18571_s1 + $0x1480] sm:$0xff]  ;;  %v12382_v36 = vcombine.high %v547_v28, %v551_v63  ;;  %9875 = vmatprep.subr.bf16.mxu1 %v12518_v27  ;;  %v12381_v44 = vcombine.low %v547_v28, %v551_v63 }
  0x99   :  { %v679_v32 = vld [vmem:[%s18571_s1 + $0x14a0] sm:$0xff]  ;;  %9876 = vmatpush1.bf16.msra.mxu1 %v12517_v35 }
  0x9a   :  { %v12510_v37 = vcombine.high %v675_v31, %v679_v32  ;;  %v539_v38 = vld [vmem:[%s18571_s1 + $0x1040] sm:$0xff]  ;;  %9836 = vmatprep.subr.bf16.mxu0 %v12382_v36  ;;  %v12509_v45 = vcombine.low %v675_v31, %v679_v32 }
  0x9b   :  { %v543_v40 = vld [vmem:[%s18571_s1 + $0x1060] sm:$0xff]  ;;  %9837 = vmatpush1.bf16.msra.mxu0 %v12381_v44 }
  0x9c   :  { %v667_v41 = vld [vmem:[%s18571_s1 + $0x1440] sm:$0xff]  ;;  %v12374_v46 = vcombine.high %v539_v38, %v543_v40  ;;  %9877 = vmatprep.subr.bf16.mxu1 %v12510_v37  ;;  %v12373_v54 = vcombine.low %v539_v38, %v543_v40 }
  0x9d   :  { %v671_v42 = vld [vmem:[%s18571_s1 + $0x1460] sm:$0xff]  ;;  %9878 = vmatpush1.bf16.msra.mxu1 %v12509_v45 }
  0x9e   :  { %v12502_v48 = vcombine.high %v667_v41, %v671_v42  ;;  %v531_v49 = vld [vmem:[%s18571_s1 + $0x1000] sm:$0xff]  ;;  %9838 = vmatprep.subr.bf16.mxu0 %v12374_v46  ;;  %v12501_v10 = vcombine.low %v667_v41, %v671_v42 }
  0x9f   :  { %v535_v50 = vld [vmem:[%s18571_s1 + $0x1020] sm:$0xff]  ;;  %9839 = vmatpush1.bf16.msra.mxu0 %v12373_v54 }
  0xa0   :  { %v659_v51 = vld [vmem:[%s18571_s1 + $0x1400] sm:$0xff]  ;;  %v12366_v57 = vcombine.high %v531_v49, %v535_v50  ;;  %9879 = vmatprep.subr.bf16.mxu1 %v12502_v48  ;;  %v12365_v1 = vcombine.low %v531_v49, %v535_v50 }
  0xa1   :  { %v663_v52 = vld [vmem:[%s18571_s1 + $0x1420] sm:$0xff]  ;;  %9880 = vmatpush1.bf16.msra.mxu1 %v12501_v10 }
  0xa2   :  { %v12494_v58 = vcombine.high %v659_v51, %v663_v52  ;;  %v651_v60 = vld [vmem:[%s18571_s1 + $0x13c0] sm:$0xff]  ;;  %9840 = vmatprep.subr.bf16.mxu0 %v12366_v57  ;;  %v12493_v2 = vcombine.low %v659_v51, %v663_v52 }
  0xa3   :  { %v655_v61 = vld [vmem:[%s18571_s1 + $0x13e0] sm:$0xff]  ;;  %9841 = vmatpush1.bf16.msra.mxu0 %v12365_v1 }
  0xa4   :  { %v779_v62 = vld [vmem:[%s18571_s1 + $0x17c0] sm:$0xff]  ;;  %v12486_v4 = vcombine.high %v651_v60, %v655_v61  ;;  %9881 = vmatprep.subr.bf16.mxu1 %v12494_v58  ;;  %v12485_v11 = vcombine.low %v651_v60, %v655_v61 }
  0xa5   :  { %v783_v0 = vld [vmem:[%s18571_s1 + $0x17e0] sm:$0xff]  ;;  %9882 = vmatpush1.bf16.msra.mxu1 %v12493_v2 }
  0xa6   :  { %v12614_v5 = vcombine.high %v779_v62, %v783_v0  ;;  %v643_v6 = vld [vmem:[%s18571_s1 + $0x1380] sm:$0xff]  ;;  %9842 = vmatprep.subr.bf16.mxu0 %v12486_v4  ;;  %v12613_v12 = vcombine.low %v779_v62, %v783_v0  ;;  %v1682_v62 = vcombine.high %v13883_v25, %v13883_v25 }
  0xa7   :  { %v647_v7 = vld [vmem:[%s18571_s1 + $0x13a0] sm:$0xff]  ;;  %9843 = vmatpush2.bf16.msra.mxu0 %v12485_v11 }
  0xa8   :  { %v771_v59 = vld [vmem:[%s18571_s1 + $0x1780] sm:$0xff]  ;;  %v12478_v14 = vcombine.high %v643_v6, %v647_v7  ;;  %9883 = vmatprep.subr.bf16.mxu1 %v12614_v5  ;;  %v12477_v20 = vcombine.low %v643_v6, %v647_v7 }
  0xa9   :  { %v775_v8 = vld [vmem:[%s18571_s1 + $0x17a0] sm:$0xff]  ;;  %9884 = vmatpush2.bf16.msra.mxu1 %v12613_v12 }
  0xaa   :  { %v12606_v15 = vcombine.high %v771_v59, %v775_v8  ;;  %v635_v16 = vld [vmem:[%s18571_s1 + $0x1340] sm:$0xff]  ;;  %9844 = vmatprep.subr.bf16.mxu0 %v12478_v14  ;;  %v12605_v21 = vcombine.low %v771_v59, %v775_v8  ;;  %v14117_v59 = vrot.slane %v1682_v62, %v13538_v53 }
  0xab   :  { %v639_v17 = vld [vmem:[%s18571_s1 + $0x1360] sm:$0xff]  ;;  %9845 = vmatpush2.bf16.msra.mxu0 %v12477_v20 }
  0xac   :  { %v763_v18 = vld [vmem:[%s18571_s1 + $0x1740] sm:$0xff]  ;;  %v12470_v23 = vcombine.high %v635_v16, %v639_v17  ;;  %9885 = vmatprep.subr.bf16.mxu1 %v12606_v15  ;;  %v12469_v31 = vcombine.low %v635_v16, %v639_v17 }
  0xad   :  { %v767_v19 = vld [vmem:[%s18571_s1 + $0x1760] sm:$0xff]  ;;  %9886 = vmatpush2.bf16.msra.mxu1 %v12605_v21  ;;  %v14135_v21 = vrot.slane %v13899_v34, %v13538_v53 }
  0xae   :  { %v12598_v24 = vcombine.high %v763_v18, %v767_v19  ;;  %v627_v26 = vld [vmem:[%s18571_s1 + $0x1300] sm:$0xff]  ;;  %9846 = vmatprep.subr.bf16.mxu0 %v12470_v23  ;;  %v12597_v32 = vcombine.low %v763_v18, %v767_v19  ;;  %v1698_v19 = vcombine.high %v14117_v59, %v14117_v59 }
  0xaf   :  { %v631_v27 = vld [vmem:[%s18571_s1 + $0x1320] sm:$0xff]  ;;  %9847 = vmatpush2.bf16.msra.mxu0 %v12469_v31 }
  0xb0   :  { %v755_v28 = vld [vmem:[%s18571_s1 + $0x1700] sm:$0xff]  ;;  %v12462_v33 = vcombine.high %v627_v26, %v631_v27  ;;  %9887 = vmatprep.subr.bf16.mxu1 %v12598_v24  ;;  %v12461_v41 = vcombine.low %v627_v26, %v631_v27  ;;  %v14150_v31 = vrot.slane %v1698_v19, %v13538_v53 }
  0xb1   :  { %v759_v63 = vld [vmem:[%s18571_s1 + $0x1720] sm:$0xff]  ;;  %9888 = vmatpush2.bf16.msra.mxu1 %v12597_v32  ;;  %v14154_v32 = vcombine.high %v14135_v21, %v14135_v21 }
  0xb2   :  { %v12590_v35 = vcombine.high %v755_v28, %v759_v63  ;;  %v619_v36 = vld [vmem:[%s18571_s1 + $0x12c0] sm:$0xff]  ;;  %9848 = vmatprep.subr.bf16.mxu0 %v12462_v33  ;;  %v12589_v42 = vcombine.low %v755_v28, %v759_v63 }
  0xb3   :  { %v623_v37 = vld [vmem:[%s18571_s1 + $0x12e0] sm:$0xff]  ;;  %9849 = vmatpush2.bf16.msra.mxu0 %v12461_v41 }
  0xb4   :  { %v747_v38 = vld [vmem:[%s18571_s1 + $0x16c0] sm:$0xff]  ;;  %v12454_v44 = vcombine.high %v619_v36, %v623_v37  ;;  %9889 = vmatprep.subr.bf16.mxu1 %v12590_v35  ;;  %v12453_v51 = vcombine.low %v619_v36, %v623_v37 }
  0xb5   :  { %v751_v40 = vld [vmem:[%s18571_s1 + $0x16e0] sm:$0xff]  ;;  %9890 = vmatpush2.bf16.msra.mxu1 %v12589_v42 }
  0xb6   :  { %v12582_v45 = vcombine.high %v747_v38, %v751_v40  ;;  %v611_v46 = vld [vmem:[%s18571_s1 + $0x1280] sm:$0xff]  ;;  %9850 = vmatprep.subr.bf16.mxu0 %v12454_v44  ;;  %v12581_v52 = vcombine.low %v747_v38, %v751_v40  ;;  %v14171_v44 = vcombine.high %v14150_v31, %v14150_v31 }
  0xb7   :  { %v615_v48 = vld [vmem:[%s18571_s1 + $0x12a0] sm:$0xff]  ;;  %9851 = vmatpush2.bf16.msra.mxu0 %v12453_v51 }
  0xb8   :  { %v739_v49 = vld [vmem:[%s18571_s1 + $0x1680] sm:$0xff]  ;;  %v12446_v54 = vcombine.high %v611_v46, %v615_v48  ;;  %9891 = vmatprep.subr.bf16.mxu1 %v12582_v45  ;;  %v12445_v0 = vcombine.low %v611_v46, %v615_v48 }
  0xb9   :  { %v743_v50 = vld [vmem:[%s18571_s1 + $0x16a0] sm:$0xff]  ;;  %9892 = vmatpush2.bf16.msra.mxu1 %v12581_v52 }
  0xba   :  { %v12574_v10 = vcombine.high %v739_v49, %v743_v50  ;;  %v603_v57 = vld [vmem:[%s18571_s1 + $0x1240] sm:$0xff]  ;;  %9852 = vmatprep.subr.bf16.mxu0 %v12446_v54  ;;  %v12573_v1 = vcombine.low %v739_v49, %v743_v50 }
  0xbb   :  { %v607_v58 = vld [vmem:[%s18571_s1 + $0x1260] sm:$0xff]  ;;  %9853 = vmatpush2.bf16.msra.mxu0 %v12445_v0 }
  0xbc   :  { %v731_v60 = vld [vmem:[%s18571_s1 + $0x1640] sm:$0xff]  ;;  %v12438_v2 = vcombine.high %v603_v57, %v607_v58  ;;  %9893 = vmatprep.subr.bf16.mxu1 %v12574_v10  ;;  %v12437_v8 = vcombine.low %v603_v57, %v607_v58 }
  0xbd   :  { %v735_v61 = vld [vmem:[%s18571_s1 + $0x1660] sm:$0xff]  ;;  %9894 = vmatpush2.bf16.msra.mxu1 %v12573_v1 }
  0xbe   :  { %v12566_v4 = vcombine.high %v731_v60, %v735_v61  ;;  %v595_v5 = vld [vmem:[%s18571_s1 + $0x1200] sm:$0xff]  ;;  %9854 = vmatprep.subr.bf16.mxu0 %v12438_v2  ;;  %v12565_v11 = vcombine.low %v731_v60, %v735_v61 }
  0xbf   :  { %v599_v6 = vld [vmem:[%s18571_s1 + $0x1220] sm:$0xff]  ;;  %9855 = vmatpush2.bf16.msra.mxu0 %v12437_v8 }
  0xc0   :  { %v723_v25 = vld [vmem:[%s18571_s1 + $0x1600] sm:$0xff]  ;;  %v12430_v12 = vcombine.high %v595_v5, %v599_v6  ;;  %9895 = vmatprep.subr.bf16.mxu1 %v12566_v4  ;;  %v12429_v20 = vcombine.low %v595_v5, %v599_v6 }
  0xc1   :  { %v727_v7 = vld [vmem:[%s18571_s1 + $0x1620] sm:$0xff]  ;;  %9896 = vmatpush2.bf16.msra.mxu1 %v12565_v11 }
  0xc2   :  { %v12558_v14 = vcombine.high %v723_v25, %v727_v7  ;;  %v843_v15 = vld [vmem:[%s18571_s1 + $0x19c0] sm:$0xff]  ;;  %9856 = vmatprep.subr.bf16.mxu0 %v12430_v12  ;;  %v12557_v23 = vcombine.low %v723_v25, %v727_v7 }
  0xc3   :  { %v847_v16 = vld [vmem:[%s18571_s1 + $0x19e0] sm:$0xff]  ;;  %9857 = vmatpush2.bf16.msra.mxu0 %v12429_v20 }
  0xc4   :  { %v971_v17 = vld [vmem:[%s18571_s1 + $0x1dc0] sm:$0xff]  ;;  %v12678_v24 = vcombine.high %v843_v15, %v847_v16  ;;  %9897 = vmatprep.subr.bf16.mxu1 %v12558_v14  ;;  %v12677_v33 = vcombine.low %v843_v15, %v847_v16 }
  0xc5   :  { %v975_v18 = vld [vmem:[%s18571_s1 + $0x1de0] sm:$0xff]  ;;  %9898 = vmatpush2.bf16.msra.mxu1 %v12557_v23 }
  0xc6   :  { %v12806_v26 = vcombine.high %v971_v17, %v975_v18  ;;  %v835_v27 = vld [vmem:[%s18571_s1 + $0x1980] sm:$0xff]  ;;  %9908 = vmatprep.subr.bf16.mxu0 %v12678_v24  ;;  %v12805_v35 = vcombine.low %v971_v17, %v975_v18  ;;  %9859 = vmatmul.mubr.bf16.vlgmr.msra.gmra.mxu0 %v14135_v21 }
  0xc7   :  { %v839_v28 = vld [vmem:[%s18571_s1 + $0x19a0] sm:$0xff]  ;;  %9909 = vmatpush1.bf16.msra.mxu0 %v12677_v33  ;;  %9940 = vmatprep.mubr.bf16.mxu0 %v14150_v31 }
  0xc8   :  { %v963_v63 = vld [vmem:[%s18571_s1 + $0x1d80] sm:$0xff]  ;;  %v12670_v36 = vcombine.high %v835_v27, %v839_v28  ;;  %9949 = vmatprep.subr.bf16.mxu1 %v12806_v26  ;;  %9900 = vmatmul.mubr.bf16.vlgmr.msra.gmra.mxu1 %v14154_v32  ;;  %v12669_v45 = vcombine.low %v835_v27, %v839_v28 }
  0xc9   :  { %v967_v34 = vld [vmem:[%s18571_s1 + $0x1da0] sm:$0xff]  ;;  %9950 = vmatpush1.bf16.msra.mxu1 %v12805_v35  ;;  %9981 = vmatprep.mubr.bf16.mxu1 %v14171_v44 }
  0xca   :  { %v12798_v37 = vcombine.high %v963_v63, %v967_v34  ;;  %v827_v38 = vld [vmem:[%s18571_s1 + $0x1940] sm:$0xff]  ;;  %9910 = vmatprep.subr.bf16.mxu0 %v12670_v36  ;;  %v12797_v46 = vcombine.low %v963_v63, %v967_v34 }
  0xcb   :  { %v831_v40 = vld [vmem:[%s18571_s1 + $0x1960] sm:$0xff]  ;;  %9911 = vmatpush1.bf16.msra.mxu0 %v12669_v45 }
  0xcc   :  { %v955_v41 = vld [vmem:[%s18571_s1 + $0x1d40] sm:$0xff]  ;;  %v12662_v48 = vcombine.high %v827_v38, %v831_v40  ;;  %9951 = vmatprep.subr.bf16.mxu1 %v12798_v37  ;;  %v12661_v10 = vcombine.low %v827_v38, %v831_v40 }
  0xcd   :  { %v959_v42 = vld [vmem:[%s18571_s1 + $0x1d60] sm:$0xff]  ;;  %9952 = vmatpush1.bf16.msra.mxu1 %v12797_v46 }
  0xce   :  { %v12790_v49 = vcombine.high %v955_v41, %v959_v42  ;;  %v819_v50 = vld [vmem:[%s18571_s1 + $0x1900] sm:$0xff]  ;;  %9912 = vmatprep.subr.bf16.mxu0 %v12662_v48  ;;  %v12789_v57 = vcombine.low %v955_v41, %v959_v42 }
  0xcf   :  { %v823_v51 = vld [vmem:[%s18571_s1 + $0x1920] sm:$0xff]  ;;  %9913 = vmatpush1.bf16.msra.mxu0 %v12661_v10 }
  0xd0   :  { %v947_v52 = vld [vmem:[%s18571_s1 + $0x1d00] sm:$0xff]  ;;  %v12654_v58 = vcombine.high %v819_v50, %v823_v51  ;;  %9953 = vmatprep.subr.bf16.mxu1 %v12790_v49  ;;  %v12653_v2 = vcombine.low %v819_v50, %v823_v51 }
  0xd1   :  { %v951_v54 = vld [vmem:[%s18571_s1 + $0x1d20] sm:$0xff]  ;;  %9954 = vmatpush1.bf16.msra.mxu1 %v12789_v57 }
  0xd2   :  { %v12782_v60 = vcombine.high %v947_v52, %v951_v54  ;;  %v811_v61 = vld [vmem:[%s18571_s1 + $0x18c0] sm:$0xff]  ;;  %9914 = vmatprep.subr.bf16.mxu0 %v12654_v58  ;;  %v12781_v4 = vcombine.low %v947_v52, %v951_v54 }
  0xd3   :  { %v815_v62 = vld [vmem:[%s18571_s1 + $0x18e0] sm:$0xff]  ;;  %9915 = vmatpush1.bf16.msra.mxu0 %v12653_v2 }
  0xd4   :  { %v939_v0 = vld [vmem:[%s18571_s1 + $0x1cc0] sm:$0xff]  ;;  %v12646_v5 = vcombine.high %v811_v61, %v815_v62  ;;  %9955 = vmatprep.subr.bf16.mxu1 %v12782_v60  ;;  %v12645_v12 = vcombine.low %v811_v61, %v815_v62 }
  0xd5   :  { %v943_v1 = vld [vmem:[%s18571_s1 + $0x1ce0] sm:$0xff]  ;;  %9956 = vmatpush1.bf16.msra.mxu1 %v12781_v4 }
  0xd6   :  { %v12774_v6 = vcombine.high %v939_v0, %v943_v1  ;;  %v803_v25 = vld [vmem:[%s18571_s1 + $0x1880] sm:$0xff]  ;;  %9916 = vmatprep.subr.bf16.mxu0 %v12646_v5  ;;  %v12773_v14 = vcombine.low %v939_v0, %v943_v1 }
  0xd7   :  { %v807_v7 = vld [vmem:[%s18571_s1 + $0x18a0] sm:$0xff]  ;;  %9917 = vmatpush1.bf16.msra.mxu0 %v12645_v12 }
  0xd8   :  { %v931_v8 = vld [vmem:[%s18571_s1 + $0x1c80] sm:$0xff]  ;;  %v12638_v15 = vcombine.high %v803_v25, %v807_v7  ;;  %9957 = vmatprep.subr.bf16.mxu1 %v12774_v6  ;;  %v12637_v23 = vcombine.low %v803_v25, %v807_v7 }
  0xd9   :  { %v935_v11 = vld [vmem:[%s18571_s1 + $0x1ca0] sm:$0xff]  ;;  %9958 = vmatpush1.bf16.msra.mxu1 %v12773_v14 }
  0xda   :  { %v12766_v16 = vcombine.high %v931_v8, %v935_v11  ;;  %v795_v17 = vld [vmem:[%s18571_s1 + $0x1840] sm:$0xff]  ;;  %9918 = vmatprep.subr.bf16.mxu0 %v12638_v15  ;;  %v12765_v24 = vcombine.low %v931_v8, %v935_v11 }
  0xdb   :  { %v799_v18 = vld [vmem:[%s18571_s1 + $0x1860] sm:$0xff]  ;;  %9919 = vmatpush1.bf16.msra.mxu0 %v12637_v23 }
  0xdc   :  { %v923_v19 = vld [vmem:[%s18571_s1 + $0x1c40] sm:$0xff]  ;;  %v12630_v26 = vcombine.high %v795_v17, %v799_v18  ;;  %9959 = vmatprep.subr.bf16.mxu1 %v12766_v16  ;;  %v12629_v35 = vcombine.low %v795_v17, %v799_v18 }
  0xdd   :  { %v927_v20 = vld [vmem:[%s18571_s1 + $0x1c60] sm:$0xff]  ;;  %9960 = vmatpush1.bf16.msra.mxu1 %v12765_v24 }
  0xde   :  { %v12758_v27 = vcombine.high %v923_v19, %v927_v20  ;;  %v787_v28 = vld [vmem:[%s18571_s1 + $0x1800] sm:$0xff]  ;;  %9920 = vmatprep.subr.bf16.mxu0 %v12630_v26  ;;  %v12757_v36 = vcombine.low %v923_v19, %v927_v20 }
  0xdf   :  { %v791_v63 = vld [vmem:[%s18571_s1 + $0x1820] sm:$0xff]  ;;  %9921 = vmatpush1.bf16.msra.mxu0 %v12629_v35 }
  0xe0   :  { %v915_v34 = vld [vmem:[%s18571_s1 + $0x1c00] sm:$0xff]  ;;  %v12622_v37 = vcombine.high %v787_v28, %v791_v63  ;;  %9961 = vmatprep.subr.bf16.mxu1 %v12758_v27  ;;  %v12621_v46 = vcombine.low %v787_v28, %v791_v63 }
  0xe1   :  { %v919_v33 = vld [vmem:[%s18571_s1 + $0x1c20] sm:$0xff]  ;;  %9962 = vmatpush1.bf16.msra.mxu1 %v12757_v36 }
  0xe2   :  { %v12750_v38 = vcombine.high %v915_v34, %v919_v33  ;;  %v907_v40 = vld [vmem:[%s18571_s1 + $0x1bc0] sm:$0xff]  ;;  %9922 = vmatprep.subr.bf16.mxu0 %v12622_v37  ;;  %v12749_v48 = vcombine.low %v915_v34, %v919_v33 }
  0xe3   :  { %v911_v41 = vld [vmem:[%s18571_s1 + $0x1be0] sm:$0xff]  ;;  %9923 = vmatpush1.bf16.msra.mxu0 %v12621_v46 }
  0xe4   :  { %v1035_v42 = vld [vmem:[%s18571_s1 + $0x1fc0] sm:$0xff]  ;;  %v12742_v49 = vcombine.high %v907_v40, %v911_v41  ;;  %9963 = vmatprep.subr.bf16.mxu1 %v12750_v38  ;;  %v12741_v57 = vcombine.low %v907_v40, %v911_v41 }
  0xe5   :  { %v1039_v45 = vld [vmem:[%s18571_s1 + $0x1fe0] sm:$0xff]  ;;  %9964 = vmatpush1.bf16.msra.mxu1 %v12749_v48 }
  0xe6   :  { %v12870_v50 = vcombine.high %v1035_v42, %v1039_v45  ;;  %v899_v51 = vld [vmem:[%s18571_s1 + $0x1b80] sm:$0xff]  ;;  %9924 = vmatprep.subr.bf16.mxu0 %v12742_v49  ;;  %v12869_v58 = vcombine.low %v1035_v42, %v1039_v45  ;;  %v14323_v49 = vld [vmem:[%s18572_s0 + $0x10] sm:$0xff] }
  0xe7   :  { %v903_v52 = vld [vmem:[%s18571_s1 + $0x1ba0] sm:$0xff]  ;;  %9925 = vmatpush2.bf16.msra.mxu0 %v12741_v57 }
  0xe8   :  { %v1027_v54 = vld [vmem:[%s18571_s1 + $0x1f80] sm:$0xff]  ;;  %v12734_v60 = vcombine.high %v899_v51, %v903_v52  ;;  %9965 = vmatprep.subr.bf16.mxu1 %v12870_v50  ;;  %v12733_v4 = vcombine.low %v899_v51, %v903_v52 }
  0xe9   :  { %v1031_v10 = vld [vmem:[%s18571_s1 + $0x1fa0] sm:$0xff]  ;;  %9966 = vmatpush2.bf16.msra.mxu1 %v12869_v58 }
  0xea   :  { %v12862_v61 = vcombine.high %v1027_v54, %v1031_v10  ;;  %v891_v62 = vld [vmem:[%s18571_s1 + $0x1b40] sm:$0xff]  ;;  %9926 = vmatprep.subr.bf16.mxu0 %v12734_v60  ;;  %v12861_v5 = vcombine.low %v1027_v54, %v1031_v10  ;;  %v14339_v60 = vrot.slane %v14323_v49, %v13538_v53 }
  0xeb   :  { %v895_v0 = vld [vmem:[%s18571_s1 + $0x1b60] sm:$0xff]  ;;  %9927 = vmatpush2.bf16.msra.mxu0 %v12733_v4 }
  0xec   :  { %v1019_v1 = vld [vmem:[%s18571_s1 + $0x1f40] sm:$0xff]  ;;  %v12726_v6 = vcombine.high %v891_v62, %v895_v0  ;;  %9967 = vmatprep.subr.bf16.mxu1 %v12862_v61  ;;  %v12725_v14 = vcombine.low %v891_v62, %v895_v0 }
  0xed   :  { %v1023_v2 = vld [vmem:[%s18571_s1 + $0x1f60] sm:$0xff]  ;;  %9968 = vmatpush2.bf16.msra.mxu1 %v12861_v5 }
  0xee   :  { %v12854_v25 = vcombine.high %v1019_v1, %v1023_v2  ;;  %v883_v7 = vld [vmem:[%s18571_s1 + $0x1b00] sm:$0xff]  ;;  %9928 = vmatprep.subr.bf16.mxu0 %v12726_v6  ;;  %v12853_v15 = vcombine.low %v1019_v1, %v1023_v2 }
  0xef   :  { %v887_v8 = vld [vmem:[%s18571_s1 + $0x1b20] sm:$0xff]  ;;  %9929 = vmatpush2.bf16.msra.mxu0 %v12725_v14 }
  0xf0   :  { %v1011_v11 = vld [vmem:[%s18571_s1 + $0x1f00] sm:$0xff]  ;;  %v12718_v16 = vcombine.high %v883_v7, %v887_v8  ;;  %9969 = vmatprep.subr.bf16.mxu1 %v12854_v25  ;;  %v12717_v24 = vcombine.low %v883_v7, %v887_v8  ;;  %v1746_v25 = vcombine.high %v14339_v60, %v14339_v60  ;;  %v1591_v8 = vsub.s32 0, %v13523_v43 }
  0xf1   :  { %v1015_v12 = vld [vmem:[%s18571_s1 + $0x1f20] sm:$0xff]  ;;  %9970 = vmatpush2.bf16.msra.mxu1 %v12853_v15 }
  0xf2   :  { %v12846_v17 = vcombine.high %v1011_v11, %v1015_v12  ;;  %v875_v18 = vld [vmem:[%s18571_s1 + $0x1ac0] sm:$0xff]  ;;  %9930 = vmatprep.subr.bf16.mxu0 %v12718_v16  ;;  %v12845_v26 = vcombine.low %v1011_v11, %v1015_v12  ;;  %v14358_v11 = vrot.slane %v14117_v59, %v13538_v53 }
  0xf3   :  { %v879_v19 = vld [vmem:[%s18571_s1 + $0x1ae0] sm:$0xff]  ;;  %9931 = vmatpush2.bf16.msra.mxu0 %v12717_v24 }
  0xf4   :  { %v1003_v20 = vld [vmem:[%s18571_s1 + $0x1ec0] sm:$0xff]  ;;  %v12710_v27 = vcombine.high %v875_v18, %v879_v19  ;;  %9971 = vmatprep.subr.bf16.mxu1 %v12846_v17  ;;  %v12709_v36 = vcombine.low %v875_v18, %v879_v19  ;;  %v1595_v17 = vsub.s32 1, %v13523_v43 }
  0xf5   :  { %v1007_v23 = vld [vmem:[%s18571_s1 + $0x1ee0] sm:$0xff]  ;;  %9972 = vmatpush2.bf16.msra.mxu1 %v12845_v26  ;;  %v14381_v26 = vcombine.high %v14358_v11, %v14358_v11 }
  0xf6   :  { %v12838_v28 = vcombine.high %v1003_v20, %v1007_v23  ;;  %v867_v63 = vld [vmem:[%s18571_s1 + $0x1a80] sm:$0xff]  ;;  %9932 = vmatprep.subr.bf16.mxu0 %v12710_v27  ;;  %v12837_v37 = vcombine.low %v1003_v20, %v1007_v23  ;;  %v14377_v23 = vrot.slane %v1746_v25, %v13538_v53 }
  0xf7   :  { %v871_v34 = vld [vmem:[%s18571_s1 + $0x1aa0] sm:$0xff]  ;;  %9933 = vmatpush2.bf16.msra.mxu0 %v12709_v36 }
  0xf8   :  { %v995_v33 = vld [vmem:[%s18571_s1 + $0x1e80] sm:$0xff]  ;;  %v12702_v38 = vcombine.high %v867_v63, %v871_v34  ;;  %9973 = vmatprep.subr.bf16.mxu1 %v12838_v28  ;;  %v12701_v48 = vcombine.low %v867_v63, %v871_v34 }
  0xf9   :  { %v999_v35 = vld [vmem:[%s18571_s1 + $0x1ea0] sm:$0xff]  ;;  %9974 = vmatpush2.bf16.msra.mxu1 %v12837_v37 }
  0xfa   :  { %v12830_v40 = vcombine.high %v995_v33, %v999_v35  ;;  %v859_v41 = vld [vmem:[%s18571_s1 + $0x1a40] sm:$0xff]  ;;  %9934 = vmatprep.subr.bf16.mxu0 %v12702_v38  ;;  %v12829_v50 = vcombine.low %v995_v33, %v999_v35 }
  0xfb   :  { %v863_v42 = vld [vmem:[%s18571_s1 + $0x1a60] sm:$0xff]  ;;  %9935 = vmatpush2.bf16.msra.mxu0 %v12701_v48 }
  0xfc   :  { %v987_v45 = vld [vmem:[%s18571_s1 + $0x1e40] sm:$0xff]  ;;  %v12694_v51 = vcombine.high %v859_v41, %v863_v42  ;;  %9975 = vmatprep.subr.bf16.mxu1 %v12830_v40  ;;  %v12693_v61 = vcombine.low %v859_v41, %v863_v42  ;;  %v14398_v41 = vcombine.high %v14377_v23, %v14377_v23 }
  0xfd   :  { %v991_v46 = vld [vmem:[%s18571_s1 + $0x1e60] sm:$0xff]  ;;  %9976 = vmatpush2.bf16.msra.mxu1 %v12829_v50 }
  0xfe   :  { %v12822_v52 = vcombine.high %v987_v45, %v991_v46  ;;  %v851_v54 = vld [vmem:[%s18571_s1 + $0x1a00] sm:$0xff]  ;;  %9936 = vmatprep.subr.bf16.mxu0 %v12694_v51  ;;  %v12821_v62 = vcombine.low %v987_v45, %v991_v46 }
  0xff   :  { %v855_v10 = vld [vmem:[%s18571_s1 + $0x1a20] sm:$0xff]  ;;  %9937 = vmatpush2.bf16.msra.mxu0 %v12693_v61 }
 0x100   :  { %v979_v57 = vld [vmem:[%s18571_s1 + $0x1e00] sm:$0xff]  ;;  %v12686_v0 = vcombine.high %v851_v54, %v855_v10  ;;  %9977 = vmatprep.subr.bf16.mxu1 %v12822_v52  ;;  %v12685_v7 = vcombine.low %v851_v54, %v855_v10 }
 0x101   :  { %v983_v58 = vld [vmem:[%s18571_s1 + $0x1e20] sm:$0xff]  ;;  %9978 = vmatpush2.bf16.msra.mxu1 %v12821_v62 }
 0x102   :  { %v12814_v1 = vcombine.high %v979_v57, %v983_v58  ;;  %v1099_v2 = vld [vmem:[%s18571_s1 + $0x21c0] sm:$0xff]  ;;  %9938 = vmatprep.subr.bf16.mxu0 %v12686_v0  ;;  %v12813_v12 = vcombine.low %v979_v57, %v983_v58 }
 0x103   :  { %v1103_v4 = vld [vmem:[%s18571_s1 + $0x21e0] sm:$0xff]  ;;  %9939 = vmatpush2.bf16.msra.mxu0 %v12685_v7 }
 0x104   :  { %v1227_v5 = vld [vmem:[%s18571_s1 + $0x25c0] sm:$0xff]  ;;  %v12934_v15 = vcombine.high %v1099_v2, %v1103_v4  ;;  %9979 = vmatprep.subr.bf16.mxu1 %v12814_v1  ;;  %v12933_v27 = vcombine.low %v1099_v2, %v1103_v4 }
 0x105   :  { %v1231_v6 = vld [vmem:[%s18571_s1 + $0x25e0] sm:$0xff]  ;;  %9980 = vmatpush2.bf16.msra.mxu1 %v12813_v12 }
 0x106   :  { %v1587_v14 = vld [vmem:[%s18573_s2] sm:$0xff]  ;;  %v13062_v16 = vcombine.high %v1227_v5, %v1231_v6  ;;  %9990 = vmatprep.subr.bf16.mxu0 %v12934_v15  ;;  %v13061_v28 = vcombine.low %v1227_v5, %v1231_v6  ;;  %v9696_v37 = vpop.f32.mrf.mxu0  ;;  %9941 = vmatmul.mubr.bf16.vlgmr.msra.gmra.mxu0 %v14358_v11 }
 0x107   :  { %v1091_v18 = vld [vmem:[%s18571_s1 + $0x2180] sm:$0xff]  ;;  %v1592_v24 = vrot.slane %v1587_v14, %v1591_v8  ;;  %v1596_v34 = vrot.slane %v1587_v14, %v1595_v17  ;;  %9991 = vmatpush1.bf16.msra.mxu0 %v12933_v27  ;;  %10022 = vmatprep.mubr.bf16.mxu0 %v14377_v23 }
 0x108   :  { %v1095_v59 = vld [vmem:[%s18571_s1 + $0x21a0] sm:$0xff]  ;;  %10031 = vmatprep.subr.bf16.mxu1 %v13062_v16  ;;  %v9737_v45 = vpop.f32.mrf.mxu1  ;;  %9982 = vmatmul.mubr.bf16.vlgmr.msra.gmra.mxu1 %v14381_v26  ;;  %v9698_v48 = vpop.f32.mrf.mxu0 }
 0x109   :  { %v1219_v19 = vld [vmem:[%s18571_s1 + $0x2580] sm:$0xff]  ;;  %v12926_v63 = vcombine.high %v1091_v18, %v1095_v59  ;;  %v9697_v42 = vadd.f32 %v9696_v37, %v1592_v24  ;;  %v12925_v46 = vcombine.low %v1091_v18, %v1095_v59  ;;  %10032 = vmatpush1.bf16.msra.mxu1 %v13061_v28  ;;  %v9699_v54 = vadd.f32 %v9698_v48, %v1596_v34 }
 0x10a   :  { %v1223_v20 = vld [vmem:[%s18571_s1 + $0x25a0] sm:$0xff]  ;;  %v9739_v10 = vpop.f32.mrf.mxu1  ;;  %v9700_v62 = vpop.f32.mrf.mxu0  ;;  %10063 = vmatprep.mubr.bf16.mxu1 %v14398_v41 }
 0x10b   :  { %v13054_v33 = vcombine.high %v1219_v19, %v1223_v20  ;;  %v1083_v35 = vld [vmem:[%s18571_s1 + $0x2140] sm:$0xff]  ;;  %9992 = vmatprep.subr.bf16.mxu0 %v12926_v63  ;;  %v13053_v50 = vcombine.low %v1219_v19, %v1223_v20  ;;  %v14401_v52 = vadd.f32 %v9737_v45, %v9697_v42  ;;  %v14417_v2 = vadd.f32 %v9739_v10, %v9699_v54 }
 0x10c   :  { %v1087_v36 = vld [vmem:[%s18571_s1 + $0x2160] sm:$0xff]  ;;  %v9741_v4 = vpop.f32.mrf.mxu1  ;;  %9993 = vmatpush1.bf16.msra.mxu0 %v12925_v46  ;;  %v9701_v6 = vpop.f32.mrf.mxu0 }
 0x10d   :  { %v1211_v38 = vld [vmem:[%s18571_s1 + $0x2540] sm:$0xff]  ;;  %v12918_v51 = vcombine.high %v1083_v35, %v1087_v36  ;;  %10033 = vmatprep.subr.bf16.mxu1 %v13054_v33  ;;  %v12917_v5 = vcombine.low %v1083_v35, %v1087_v36 }
 0x10e   :  { %v1215_v40 = vld [vmem:[%s18571_s1 + $0x2560] sm:$0xff]  ;;  %10034 = vmatpush1.bf16.msra.mxu1 %v13053_v50  ;;  %v9742_v8 = vpop.f32.mrf.mxu1 }
 0x10f   :  { %v13046_v57 = vcombine.high %v1211_v38, %v1215_v40  ;;  %v1075_v58 = vld [vmem:[%s18571_s1 + $0x2100] sm:$0xff]  ;;  %9994 = vmatprep.subr.bf16.mxu0 %v12918_v51  ;;  %v13045_v25 = vcombine.low %v1211_v38, %v1215_v40 }
 0x110   :  { %v1079_v61 = vld [vmem:[%s18571_s1 + $0x2120] sm:$0xff]  ;;  %9995 = vmatpush1.bf16.msra.mxu0 %v12917_v5 }
 0x111   :  { %v1203_v0 = vld [vmem:[%s18571_s1 + $0x2500] sm:$0xff]  ;;  %v12910_v7 = vcombine.high %v1075_v58, %v1079_v61  ;;  %10035 = vmatprep.subr.bf16.mxu1 %v13046_v57  ;;  %v12909_v18 = vcombine.low %v1075_v58, %v1079_v61 }
 0x112   :  { %v1207_v1 = vld [vmem:[%s18571_s1 + $0x2520] sm:$0xff]  ;;  %10036 = vmatpush1.bf16.msra.mxu1 %v13045_v25 }
 0x113   :  { %v13038_v12 = vcombine.high %v1203_v0, %v1207_v1  ;;  %v1067_v14 = vld [vmem:[%s18571_s1 + $0x20c0] sm:$0xff]  ;;  %9996 = vmatprep.subr.bf16.mxu0 %v12910_v7  ;;  %v13037_v59 = vcombine.low %v1203_v0, %v1207_v1 }
 0x114   :  { %v1071_v15 = vld [vmem:[%s18571_s1 + $0x20e0] sm:$0xff]  ;;  %9997 = vmatpush1.bf16.msra.mxu0 %v12909_v18 }
 0x115   :  { %v1195_v16 = vld [vmem:[%s18571_s1 + $0x24c0] sm:$0xff]  ;;  %v12902_v19 = vcombine.high %v1067_v14, %v1071_v15  ;;  %10037 = vmatprep.subr.bf16.mxu1 %v13038_v12  ;;  %v12901_v34 = vcombine.low %v1067_v14, %v1071_v15 }
 0x116   :  { %v1199_v17 = vld [vmem:[%s18571_s1 + $0x24e0] sm:$0xff]  ;;  %10038 = vmatpush1.bf16.msra.mxu1 %v13037_v59 }
 0x117   :  { %v13030_v20 = vcombine.high %v1195_v16, %v1199_v17  ;;  %v1059_v24 = vld [vmem:[%s18571_s1 + $0x2080] sm:$0xff]  ;;  %9998 = vmatprep.subr.bf16.mxu0 %v12902_v19  ;;  %v13029_v33 = vcombine.low %v1195_v16, %v1199_v17 }
 0x118   :  { %v1063_v27 = vld [vmem:[%s18571_s1 + $0x20a0] sm:$0xff]  ;;  %9999 = vmatpush1.bf16.msra.mxu0 %v12901_v34 }
 0x119   :  { %v1187_v28 = vld [vmem:[%s18571_s1 + $0x2480] sm:$0xff]  ;;  %v12894_v35 = vcombine.high %v1059_v24, %v1063_v27  ;;  %10039 = vmatprep.subr.bf16.mxu1 %v13030_v20  ;;  %v12893_v45 = vcombine.low %v1059_v24, %v1063_v27 }
 0x11a   :  { %v1191_v63 = vld [vmem:[%s18571_s1 + $0x24a0] sm:$0xff]  ;;  %10040 = vmatpush1.bf16.msra.mxu1 %v13029_v33 }
 0x11b   :  { %v13022_v36 = vcombine.high %v1187_v28, %v1191_v63  ;;  %v1051_v37 = vld [vmem:[%s18571_s1 + $0x2040] sm:$0xff]  ;;  %10000 = vmatprep.subr.bf16.mxu0 %v12894_v35  ;;  %v13021_v46 = vcombine.low %v1187_v28, %v1191_v63 }
 0x11c   :  { %v1055_v38 = vld [vmem:[%s18571_s1 + $0x2060] sm:$0xff]  ;;  %10001 = vmatpush1.bf16.msra.mxu0 %v12893_v45 }
 0x11d   :  { %v1179_v40 = vld [vmem:[%s18571_s1 + $0x2440] sm:$0xff]  ;;  %v12886_v48 = vcombine.high %v1051_v37, %v1055_v38  ;;  %10041 = vmatprep.subr.bf16.mxu1 %v13022_v36  ;;  %v12885_v58 = vcombine.low %v1051_v37, %v1055_v38 }
 0x11e   :  { %v1183_v42 = vld [vmem:[%s18571_s1 + $0x2460] sm:$0xff]  ;;  %10042 = vmatpush1.bf16.msra.mxu1 %v13021_v46 }
 0x11f   :  { %v13014_v50 = vcombine.high %v1179_v40, %v1183_v42  ;;  %v1043_v51 = vld [vmem:[%s18571_s1 + $0x2000] sm:$0xff]  ;;  %10002 = vmatprep.subr.bf16.mxu0 %v12886_v48  ;;  %v13013_v61 = vcombine.low %v1179_v40, %v1183_v42 }
 0x120   :  { %v1047_v54 = vld [vmem:[%s18571_s1 + $0x2020] sm:$0xff]  ;;  %10003 = vmatpush1.bf16.msra.mxu0 %v12885_v58 }
 0x121   :  { %v1171_v10 = vld [vmem:[%s18571_s1 + $0x2400] sm:$0xff]  ;;  %v12878_v62 = vcombine.high %v1043_v51, %v1047_v54  ;;  %10043 = vmatprep.subr.bf16.mxu1 %v13014_v50  ;;  %v12877_v25 = vcombine.low %v1043_v51, %v1047_v54 }
 0x122   :  { %v1175_v57 = vld [vmem:[%s18571_s1 + $0x2420] sm:$0xff]  ;;  %10044 = vmatpush1.bf16.msra.mxu1 %v13013_v61 }
 0x123   :  { %v13006_v0 = vcombine.high %v1171_v10, %v1175_v57  ;;  %v1163_v1 = vld [vmem:[%s18571_s1 + $0x23c0] sm:$0xff]  ;;  %10004 = vmatprep.subr.bf16.mxu0 %v12878_v62  ;;  %v13005_v7 = vcombine.low %v1171_v10, %v1175_v57 }
 0x124   :  { %v1167_v4 = vld [vmem:[%s18571_s1 + $0x23e0] sm:$0xff]  ;;  %10005 = vmatpush1.bf16.msra.mxu0 %v12877_v25 }
 0x125   :  { %v1291_v5 = vld [vmem:[%s18571_s1 + $0x27c0] sm:$0xff]  ;;  %v12998_v8 = vcombine.high %v1163_v1, %v1167_v4  ;;  %10045 = vmatprep.subr.bf16.mxu1 %v13006_v0  ;;  %v12997_v18 = vcombine.low %v1163_v1, %v1167_v4 }
 0x126   :  { %v1295_v6 = vld [vmem:[%s18571_s1 + $0x27e0] sm:$0xff]  ;;  %10046 = vmatpush1.bf16.msra.mxu1 %v13005_v7 }
 0x127   :  { %v13126_v12 = vcombine.high %v1291_v5, %v1295_v6  ;;  %v1155_v14 = vld [vmem:[%s18571_s1 + $0x2380] sm:$0xff]  ;;  %10006 = vmatprep.subr.bf16.mxu0 %v12998_v8  ;;  %v13125_v59 = vcombine.low %v1291_v5, %v1295_v6 }
 0x128   :  { %v1159_v15 = vld [vmem:[%s18571_s1 + $0x23a0] sm:$0xff]  ;;  %10007 = vmatpush2.bf16.msra.mxu0 %v12997_v18  ;;  %v1731_v18 = vcombine.high %v14323_v49, %v14323_v49 }
 0x129   :  { %v1283_v16 = vld [vmem:[%s18571_s1 + $0x2780] sm:$0xff]  ;;  %v12990_v19 = vcombine.high %v1155_v14, %v1159_v15  ;;  %10047 = vmatprep.subr.bf16.mxu1 %v13126_v12  ;;  %v12989_v34 = vcombine.low %v1155_v14, %v1159_v15 }
 0x12a   :  { %v1287_v17 = vld [vmem:[%s18571_s1 + $0x27a0] sm:$0xff]  ;;  %10048 = vmatpush2.bf16.msra.mxu1 %v13125_v59 }
 0x12b   :  { %v13118_v20 = vcombine.high %v1283_v16, %v1287_v17  ;;  %v1147_v24 = vld [vmem:[%s18571_s1 + $0x2340] sm:$0xff]  ;;  %10008 = vmatprep.subr.bf16.mxu0 %v12990_v19  ;;  %v13117_v33 = vcombine.low %v1283_v16, %v1287_v17 }
 0x12c   :  { %v1151_v27 = vld [vmem:[%s18571_s1 + $0x2360] sm:$0xff]  ;;  %10009 = vmatpush2.bf16.msra.mxu0 %v12989_v34  ;;  %v14566_v34 = vrot.slane %v1731_v18, %v13538_v53 }
 0x12d   :  { %v1275_v28 = vld [vmem:[%s18571_s1 + $0x2740] sm:$0xff]  ;;  %v12982_v35 = vcombine.high %v1147_v24, %v1151_v27  ;;  %10049 = vmatprep.subr.bf16.mxu1 %v13118_v20  ;;  %v12981_v45 = vcombine.low %v1147_v24, %v1151_v27 }
 0x12e   :  { %v1279_v63 = vld [vmem:[%s18571_s1 + $0x2760] sm:$0xff]  ;;  %10050 = vmatpush2.bf16.msra.mxu1 %v13117_v33 }
 0x12f   :  { %v13110_v36 = vcombine.high %v1275_v28, %v1279_v63  ;;  %v1139_v37 = vld [vmem:[%s18571_s1 + $0x2300] sm:$0xff]  ;;  %10010 = vmatprep.subr.bf16.mxu0 %v12982_v35  ;;  %v13109_v46 = vcombine.low %v1275_v28, %v1279_v63 }
 0x130   :  { %v1143_v38 = vld [vmem:[%s18571_s1 + $0x2320] sm:$0xff]  ;;  %10011 = vmatpush2.bf16.msra.mxu0 %v12981_v45 }
 0x131   :  { %v1267_v40 = vld [vmem:[%s18571_s1 + $0x2700] sm:$0xff]  ;;  %v12974_v48 = vcombine.high %v1139_v37, %v1143_v38  ;;  %10051 = vmatprep.subr.bf16.mxu1 %v13110_v36  ;;  %v12973_v58 = vcombine.low %v1139_v37, %v1143_v38 }
 0x132   :  { %v1271_v42 = vld [vmem:[%s18571_s1 + $0x2720] sm:$0xff]  ;;  %10052 = vmatpush2.bf16.msra.mxu1 %v13109_v46  ;;  %v1747_v46 = vcombine.high %v14566_v34, %v14566_v34 }
 0x133   :  { %v13102_v50 = vcombine.high %v1267_v40, %v1271_v42  ;;  %v1131_v51 = vld [vmem:[%s18571_s1 + $0x22c0] sm:$0xff]  ;;  %10012 = vmatprep.subr.bf16.mxu0 %v12974_v48  ;;  %v13101_v61 = vcombine.low %v1267_v40, %v1271_v42 }
 0x134   :  { %v1135_v54 = vld [vmem:[%s18571_s1 + $0x22e0] sm:$0xff]  ;;  %10013 = vmatpush2.bf16.msra.mxu0 %v12973_v58 }
 0x135   :  { %v1259_v10 = vld [vmem:[%s18571_s1 + $0x26c0] sm:$0xff]  ;;  %v12966_v62 = vcombine.high %v1131_v51, %v1135_v54  ;;  %10053 = vmatprep.subr.bf16.mxu1 %v13102_v50  ;;  %v12965_v25 = vcombine.low %v1131_v51, %v1135_v54  ;;  %v14584_v50 = vrot.slane %v14339_v60, %v13538_v53 }
 0x136   :  { %v1263_v57 = vld [vmem:[%s18571_s1 + $0x26e0] sm:$0xff]  ;;  %10054 = vmatpush2.bf16.msra.mxu1 %v13101_v61 }
 0x137   :  { %v13094_v0 = vcombine.high %v1259_v10, %v1263_v57  ;;  %v1123_v1 = vld [vmem:[%s18571_s1 + $0x2280] sm:$0xff]  ;;  %10014 = vmatprep.subr.bf16.mxu0 %v12966_v62  ;;  %v13093_v7 = vcombine.low %v1259_v10, %v1263_v57  ;;  %v14599_v62 = vrot.slane %v1747_v46, %v13538_v53 }
 0x138   :  { %v1127_v4 = vld [vmem:[%s18571_s1 + $0x22a0] sm:$0xff]  ;;  %10015 = vmatpush2.bf16.msra.mxu0 %v12965_v25 }
 0x139   :  { %v1251_v5 = vld [vmem:[%s18571_s1 + $0x2680] sm:$0xff]  ;;  %v12958_v8 = vcombine.high %v1123_v1, %v1127_v4  ;;  %10055 = vmatprep.subr.bf16.mxu1 %v13094_v0  ;;  %v12957_v59 = vcombine.low %v1123_v1, %v1127_v4  ;;  %v14603_v0 = vcombine.high %v14584_v50, %v14584_v50 }
 0x13a   :  { %v1255_v6 = vld [vmem:[%s18571_s1 + $0x26a0] sm:$0xff]  ;;  %10056 = vmatpush2.bf16.msra.mxu1 %v13093_v7 }
 0x13b   :  { %v13086_v12 = vcombine.high %v1251_v5, %v1255_v6  ;;  %v1115_v14 = vld [vmem:[%s18571_s1 + $0x2240] sm:$0xff]  ;;  %10016 = vmatprep.subr.bf16.mxu0 %v12958_v8  ;;  %v13085_v19 = vcombine.low %v1251_v5, %v1255_v6 }
 0x13c   :  { %v1119_v15 = vld [vmem:[%s18571_s1 + $0x2260] sm:$0xff]  ;;  %10017 = vmatpush2.bf16.msra.mxu0 %v12957_v59 }
 0x13d   :  { %v1243_v16 = vld [vmem:[%s18571_s1 + $0x2640] sm:$0xff]  ;;  %v12950_v20 = vcombine.high %v1115_v14, %v1119_v15  ;;  %10057 = vmatprep.subr.bf16.mxu1 %v13086_v12  ;;  %v12949_v33 = vcombine.low %v1115_v14, %v1119_v15  ;;  %v14620_v15 = vcombine.high %v14599_v62, %v14599_v62 }
 0x13e   :  { %v1247_v17 = vld [vmem:[%s18571_s1 + $0x2660] sm:$0xff]  ;;  %10058 = vmatpush2.bf16.msra.mxu1 %v13085_v19 }
 0x13f   :  { %v13078_v24 = vcombine.high %v1243_v16, %v1247_v17  ;;  %v1107_v27 = vld [vmem:[%s18571_s1 + $0x2200] sm:$0xff]  ;;  %10018 = vmatprep.subr.bf16.mxu0 %v12950_v20  ;;  %v13077_v35 = vcombine.low %v1243_v16, %v1247_v17 }
 0x140   :  { %v1111_v28 = vld [vmem:[%s18571_s1 + $0x2220] sm:$0xff]  ;;  %10019 = vmatpush2.bf16.msra.mxu0 %v12949_v33 }
 0x141   :  { %v1235_v49 = vld [vmem:[%s18571_s1 + $0x2600] sm:$0xff]  ;;  %v12942_v36 = vcombine.high %v1107_v27, %v1111_v28  ;;  %10059 = vmatprep.subr.bf16.mxu1 %v13078_v24  ;;  %v12941_v48 = vcombine.low %v1107_v27, %v1111_v28 }
 0x142   :  { %v1239_v63 = vld [vmem:[%s18571_s1 + $0x2620] sm:$0xff]  ;;  %10060 = vmatpush2.bf16.msra.mxu1 %v13077_v35 }
 0x143   :  { %v13070_v37 = vcombine.high %v1235_v49, %v1239_v63  ;;  %v1355_v38 = vld [vmem:[%s18571_s1 + $0x29c0] sm:$0xff]  ;;  %10020 = vmatprep.subr.bf16.mxu0 %v12942_v36  ;;  %v13069_v51 = vcombine.low %v1235_v49, %v1239_v63 }
 0x144   :  { %v1359_v40 = vld [vmem:[%s18571_s1 + $0x29e0] sm:$0xff]  ;;  %10021 = vmatpush2.bf16.msra.mxu0 %v12941_v48 }
 0x145   :  { %v1483_v42 = vld [vmem:[%s18571_s1 + $0x2dc0] sm:$0xff]  ;;  %v13190_v54 = vcombine.high %v1355_v38, %v1359_v40  ;;  %10061 = vmatprep.subr.bf16.mxu1 %v13070_v37  ;;  %v13189_v1 = vcombine.low %v1355_v38, %v1359_v40 }
 0x146   :  { %v1487_v45 = vld [vmem:[%s18571_s1 + $0x2de0] sm:$0xff]  ;;  %10062 = vmatpush2.bf16.msra.mxu1 %v13069_v51  ;;  %v9778_v8 = vpop.f32.mrf.mxu0 }
 0x147   :  { %v13318_v10 = vcombine.high %v1483_v42, %v1487_v45  ;;  %v1347_v57 = vld [vmem:[%s18571_s1 + $0x2980] sm:$0xff]  ;;  %10072 = vmatprep.subr.bf16.mxu0 %v13190_v54  ;;  %v13317_v4 = vcombine.low %v1483_v42, %v1487_v45  ;;  %10023 = vmatmul.mubr.bf16.vlgmr.msra.gmra.mxu0 %v14584_v50  ;;  %v9779_v16 = vadd.f32 %v9778_v8, %v14401_v52 }
 0x148   :  { %v1351_v58 = vld [vmem:[%s18571_s1 + $0x29a0] sm:$0xff]  ;;  %v9819_v17 = vpop.f32.mrf.mxu1  ;;  %10073 = vmatpush1.bf16.msra.mxu0 %v13189_v1  ;;  %v9780_v59 = vpop.f32.mrf.mxu0  ;;  %10104 = vmatprep.mubr.bf16.mxu0 %v14599_v62 }
 0x149   :  { %v1475_v61 = vld [vmem:[%s18571_s1 + $0x2d80] sm:$0xff]  ;;  %v13182_v5 = vcombine.high %v1347_v57, %v1351_v58  ;;  %10113 = vmatprep.subr.bf16.mxu1 %v13318_v10  ;;  %10064 = vmatmul.mubr.bf16.vlgmr.msra.gmra.mxu1 %v14603_v0  ;;  %v13181_v18 = vcombine.low %v1347_v57, %v1351_v58  ;;  %v14624_v24 = vadd.f32 %v9819_v17, %v9779_v16 }
 0x14a   :  { %v1479_v60 = vld [vmem:[%s18571_s1 + $0x2da0] sm:$0xff]  ;;  %10114 = vmatpush1.bf16.msra.mxu1 %v13317_v4  ;;  %v9781_v27 = vadd.f32 %v9780_v59, %v14417_v2  ;;  %v9821_v28 = vpop.f32.mrf.mxu1  ;;  %v9782_v33 = vpop.f32.mrf.mxu0  ;;  %10145 = vmatprep.mubr.bf16.mxu1 %v14620_v15 }
 0x14b   :  { %v13310_v6 = vcombine.high %v1475_v61, %v1479_v60  ;;  %v1339_v25 = vld [vmem:[%s18571_s1 + $0x2940] sm:$0xff]  ;;  %10074 = vmatprep.subr.bf16.mxu0 %v13182_v5  ;;  %v13309_v19 = vcombine.low %v1475_v61, %v1479_v60 }
 0x14c   :  { %v1343_v7 = vld [vmem:[%s18571_s1 + $0x2960] sm:$0xff]  ;;  %v14641_v36 = vadd.f32 %v9821_v28, %v9781_v27  ;;  %v9823_v37 = vpop.f32.mrf.mxu1  ;;  %10075 = vmatpush1.bf16.msra.mxu0 %v13181_v18  ;;  %v9783_v40 = vpop.f32.mrf.mxu0 }
 0x14d   :  { %v1467_v12 = vld [vmem:[%s18571_s1 + $0x2d40] sm:$0xff]  ;;  %v13174_v20 = vcombine.high %v1339_v25, %v1343_v7  ;;  %10115 = vmatprep.subr.bf16.mxu1 %v13310_v6  ;;  %v13173_v38 = vcombine.low %v1339_v25, %v1343_v7 }
 0x14e   :  { %v1471_v14 = vld [vmem:[%s18571_s1 + $0x2d60] sm:$0xff]  ;;  %10116 = vmatpush1.bf16.msra.mxu1 %v13309_v19  ;;  %v9824_v46 = vpop.f32.mrf.mxu1 }
 0x14f   :  { %v13302_v49 = vcombine.high %v1467_v12, %v1471_v14  ;;  %v1331_v52 = vld [vmem:[%s18571_s1 + $0x2900] sm:$0xff]  ;;  %10076 = vmatprep.subr.bf16.mxu0 %v13174_v20  ;;  %v13301_v42 = vcombine.low %v1467_v12, %v1471_v14 }
 0x150   :  { %v1335_v63 = vld [vmem:[%s18571_s1 + $0x2920] sm:$0xff]  ;;  %10077 = vmatpush1.bf16.msra.mxu0 %v13173_v38 }
 0x151   :  { %v1459_v35 = vld [vmem:[%s18571_s1 + $0x2d00] sm:$0xff]  ;;  %v13166_v45 = vcombine.high %v1331_v52, %v1335_v63  ;;  %10117 = vmatprep.subr.bf16.mxu1 %v13302_v49  ;;  %v13165_v58 = vcombine.low %v1331_v52, %v1335_v63 }
 0x152   :  { %v1463_v2 = vld [vmem:[%s18571_s1 + $0x2d20] sm:$0xff]  ;;  %10118 = vmatpush1.bf16.msra.mxu1 %v13301_v42 }
 0x153   :  { %v13294_v48 = vcombine.high %v1459_v35, %v1463_v2  ;;  %v1323_v51 = vld [vmem:[%s18571_s1 + $0x28c0] sm:$0xff]  ;;  %10078 = vmatprep.subr.bf16.mxu0 %v13166_v45  ;;  %v13293_v61 = vcombine.low %v1459_v35, %v1463_v2 }
 0x154   :  { %v1327_v54 = vld [vmem:[%s18571_s1 + $0x28e0] sm:$0xff]  ;;  %10079 = vmatpush1.bf16.msra.mxu0 %v13165_v58 }
 0x155   :  { %v1451_v10 = vld [vmem:[%s18571_s1 + $0x2cc0] sm:$0xff]  ;;  %v13158_v60 = vcombine.high %v1323_v51, %v1327_v54  ;;  %10119 = vmatprep.subr.bf16.mxu1 %v13294_v48  ;;  %v13157_v7 = vcombine.low %v1323_v51, %v1327_v54 }
 0x156   :  { %v1455_v57 = vld [vmem:[%s18571_s1 + $0x2ce0] sm:$0xff]  ;;  %10120 = vmatpush1.bf16.msra.mxu1 %v13293_v61 }
 0x157   :  { %v13286_v1 = vcombine.high %v1451_v10, %v1455_v57  ;;  %v1315_v4 = vld [vmem:[%s18571_s1 + $0x2880] sm:$0xff]  ;;  %10080 = vmatprep.subr.bf16.mxu0 %v13158_v60  ;;  %v13285_v8 = vcombine.low %v1451_v10, %v1455_v57 }
 0x158   :  { %v1319_v5 = vld [vmem:[%s18571_s1 + $0x28a0] sm:$0xff]  ;;  %10081 = vmatpush1.bf16.msra.mxu0 %v13157_v7 }
 0x159   :  { %v1443_v6 = vld [vmem:[%s18571_s1 + $0x2c80] sm:$0xff]  ;;  %v13150_v12 = vcombine.high %v1315_v4, %v1319_v5  ;;  %10121 = vmatprep.subr.bf16.mxu1 %v13286_v1  ;;  %v13149_v19 = vcombine.low %v1315_v4, %v1319_v5 }
 0x15a   :  { %v1447_v25 = vld [vmem:[%s18571_s1 + $0x2ca0] sm:$0xff]  ;;  %10122 = vmatpush1.bf16.msra.mxu1 %v13285_v8 }
 0x15b   :  { %v13278_v14 = vcombine.high %v1443_v6, %v1447_v25  ;;  %v1307_v16 = vld [vmem:[%s18571_s1 + $0x2840] sm:$0xff]  ;;  %10082 = vmatprep.subr.bf16.mxu0 %v13150_v12  ;;  %v13277_v20 = vcombine.low %v1443_v6, %v1447_v25 }
 0x15c   :  { %v1311_v17 = vld [vmem:[%s18571_s1 + $0x2860] sm:$0xff]  ;;  %10083 = vmatpush1.bf16.msra.mxu0 %v13149_v19 }
 0x15d   :  { %v1435_v18 = vld [vmem:[%s18571_s1 + $0x2c40] sm:$0xff]  ;;  %v13142_v27 = vcombine.high %v1307_v16, %v1311_v17  ;;  %10123 = vmatprep.subr.bf16.mxu1 %v13278_v14  ;;  %v13141_v35 = vcombine.low %v1307_v16, %v1311_v17 }
 0x15e   :  { %v1439_v59 = vld [vmem:[%s18571_s1 + $0x2c60] sm:$0xff]  ;;  %10124 = vmatpush1.bf16.msra.mxu1 %v13277_v20 }
 0x15f   :  { %v13270_v28 = vcombine.high %v1435_v18, %v1439_v59  ;;  %v1299_v49 = vld [vmem:[%s18571_s1 + $0x2800] sm:$0xff]  ;;  %10084 = vmatprep.subr.bf16.mxu0 %v13142_v27  ;;  %v13269_v2 = vcombine.low %v1435_v18, %v1439_v59 }
 0x160   :  { %v1303_v52 = vld [vmem:[%s18571_s1 + $0x2820] sm:$0xff]  ;;  %10085 = vmatpush1.bf16.msra.mxu0 %v13141_v35 }
 0x161   :  { %v1427_v63 = vld [vmem:[%s18571_s1 + $0x2c00] sm:$0xff]  ;;  %v13134_v37 = vcombine.high %v1299_v49, %v1303_v52  ;;  %10125 = vmatprep.subr.bf16.mxu1 %v13270_v28  ;;  %v13133_v48 = vcombine.low %v1299_v49, %v1303_v52 }
 0x162   :  { %v1431_v33 = vld [vmem:[%s18571_s1 + $0x2c20] sm:$0xff]  ;;  %10126 = vmatpush1.bf16.msra.mxu1 %v13269_v2 }
 0x163   :  { %v13262_v38 = vcombine.high %v1427_v63, %v1431_v33  ;;  %v1419_v40 = vld [vmem:[%s18571_s1 + $0x2bc0] sm:$0xff]  ;;  %10086 = vmatprep.subr.bf16.mxu0 %v13134_v37  ;;  %v13261_v51 = vcombine.low %v1427_v63, %v1431_v33 }
 0x164   :  { %v1423_v42 = vld [vmem:[%s18571_s1 + $0x2be0] sm:$0xff]  ;;  %10087 = vmatpush1.bf16.msra.mxu0 %v13133_v48 }
 0x165   :  { %v1547_v45 = vld [vmem:[%s18571_s1 + $0x2fc0] sm:$0xff]  ;;  %v13254_v54 = vcombine.high %v1419_v40, %v1423_v42  ;;  %10127 = vmatprep.subr.bf16.mxu1 %v13262_v38  ;;  %v13253_v1 = vcombine.low %v1419_v40, %v1423_v42 }
 0x166   :  { %v1551_v46 = vld [vmem:[%s18571_s1 + $0x2fe0] sm:$0xff]  ;;  %10128 = vmatpush1.bf16.msra.mxu1 %v13261_v51 }
 0x167   :  { %v13382_v10 = vcombine.high %v1547_v45, %v1551_v46  ;;  %v1411_v57 = vld [vmem:[%s18571_s1 + $0x2b80] sm:$0xff]  ;;  %10088 = vmatprep.subr.bf16.mxu0 %v13254_v54  ;;  %v13381_v4 = vcombine.low %v1547_v45, %v1551_v46 }
 0x168   :  { %v1415_v58 = vld [vmem:[%s18571_s1 + $0x2ba0] sm:$0xff]  ;;  %10089 = vmatpush2.bf16.msra.mxu0 %v13253_v1 }
 0x169   :  { %v1539_v61 = vld [vmem:[%s18571_s1 + $0x2f80] sm:$0xff]  ;;  %v13246_v5 = vcombine.high %v1411_v57, %v1415_v58  ;;  %10129 = vmatprep.subr.bf16.mxu1 %v13382_v10  ;;  %v13245_v14 = vcombine.low %v1411_v57, %v1415_v58 }
 0x16a   :  { %v1543_v60 = vld [vmem:[%s18571_s1 + $0x2fa0] sm:$0xff]  ;;  %10130 = vmatpush2.bf16.msra.mxu1 %v13381_v4 }
 0x16b   :  { %v13374_v6 = vcombine.high %v1539_v61, %v1543_v60  ;;  %v1403_v25 = vld [vmem:[%s18571_s1 + $0x2b40] sm:$0xff]  ;;  %10090 = vmatprep.subr.bf16.mxu0 %v13246_v5  ;;  %v13373_v16 = vcombine.low %v1539_v61, %v1543_v60 }
 0x16c   :  { %v1407_v7 = vld [vmem:[%s18571_s1 + $0x2b60] sm:$0xff]  ;;  %10091 = vmatpush2.bf16.msra.mxu0 %v13245_v14 }
 0x16d   :  { %v1531_v8 = vld [vmem:[%s18571_s1 + $0x2f40] sm:$0xff]  ;;  %v13238_v17 = vcombine.high %v1403_v25, %v1407_v7  ;;  %10131 = vmatprep.subr.bf16.mxu1 %v13374_v6  ;;  %v13237_v28 = vcombine.low %v1403_v25, %v1407_v7 }
 0x16e   :  { %v1535_v12 = vld [vmem:[%s18571_s1 + $0x2f60] sm:$0xff]  ;;  %10132 = vmatpush2.bf16.msra.mxu1 %v13373_v16 }
 0x16f   :  { %v13366_v18 = vcombine.high %v1531_v8, %v1535_v12  ;;  %v1395_v59 = vld [vmem:[%s18571_s1 + $0x2b00] sm:$0xff]  ;;  %10092 = vmatprep.subr.bf16.mxu0 %v13238_v17  ;;  %v13365_v49 = vcombine.low %v1531_v8, %v1535_v12 }
 0x170   :  { %v1399_v19 = vld [vmem:[%s18571_s1 + $0x2b20] sm:$0xff]  ;;  %10093 = vmatpush2.bf16.msra.mxu0 %v13237_v28 }
 0x171   :  { %v1523_v20 = vld [vmem:[%s18571_s1 + $0x2f00] sm:$0xff]  ;;  %v13230_v52 = vcombine.high %v1395_v59, %v1399_v19  ;;  %10133 = vmatprep.subr.bf16.mxu1 %v13366_v18  ;;  %v13229_v38 = vcombine.low %v1395_v59, %v1399_v19 }
 0x172   :  { %v1527_v27 = vld [vmem:[%s18571_s1 + $0x2f20] sm:$0xff]  ;;  %10134 = vmatpush2.bf16.msra.mxu1 %v13365_v49  ;;  %v76_v49 = vld [vmem:[%s18571_s1 + $0x1c8] sm:$0xff] }
 0x173   :  { %v13358_v63 = vcombine.high %v1523_v20, %v1527_v27  ;;  %v1387_v33 = vld [vmem:[%s18571_s1 + $0x2ac0] sm:$0xff]  ;;  %10094 = vmatprep.subr.bf16.mxu0 %v13230_v52  ;;  %v13357_v40 = vcombine.low %v1523_v20, %v1527_v27  ;;  %v80_v52 = vld [vmem:[%s18571_s1 + $0x1e8] sm:$0xff] }
 0x174   :  { %v1391_v35 = vld [vmem:[%s18571_s1 + $0x2ae0] sm:$0xff]  ;;  %10095 = vmatpush2.bf16.msra.mxu0 %v13229_v38 }
 0x175   :  { %v1515_v2 = vld [vmem:[%s18571_s1 + $0x2ec0] sm:$0xff]  ;;  %v13222_v42 = vcombine.high %v1387_v33, %v1391_v35  ;;  %10135 = vmatprep.subr.bf16.mxu1 %v13358_v63  ;;  %v13221_v10 = vcombine.low %v1387_v33, %v1391_v35  ;;  %v14801_v33 = vrot.slane %v14566_v34, %v13538_v53  ;;  %v72_v34 = vld [vmem:[%s18571_s1 + $0x1a8] sm:$0xff] }
 0x176   :  { %v1519_v37 = vld [vmem:[%s18571_s1 + $0x2ee0] sm:$0xff]  ;;  %10136 = vmatpush2.bf16.msra.mxu1 %v13357_v40 }
 0x177   :  { %v13350_v45 = vcombine.high %v1515_v2, %v1519_v37  ;;  %v1379_v46 = vld [vmem:[%s18571_s1 + $0x2a80] sm:$0xff]  ;;  %10096 = vmatprep.subr.bf16.mxu0 %v13222_v42  ;;  %v13349_v57 = vcombine.low %v1515_v2, %v1519_v37  ;;  %v11912_v37 = vcombine.high %v76_v49, %v80_v52  ;;  %v68_v42 = vld [vmem:[%s18571_s1 + $0x188] sm:$0xff] }
 0x178   :  { %v1383_v48 = vld [vmem:[%s18571_s1 + $0x2aa0] sm:$0xff]  ;;  %10097 = vmatpush2.bf16.msra.mxu0 %v13221_v10 }
 0x179   :  { %v1507_v51 = vld [vmem:[%s18571_s1 + $0x2e80] sm:$0xff]  ;;  %v13214_v58 = vcombine.high %v1379_v46, %v1383_v48  ;;  %10137 = vmatprep.subr.bf16.mxu1 %v13350_v45  ;;  %v13213_v6 = vcombine.low %v1379_v46, %v1383_v48  ;;  %v14817_v45 = vcombine.high %v14801_v33, %v14801_v33  ;;  %v11911_v48 = vcombine.low %v76_v49, %v80_v52 }
 0x17a   :  { %v1511_v54 = vld [vmem:[%s18571_s1 + $0x2ea0] sm:$0xff]  ;;  %10138 = vmatpush2.bf16.msra.mxu1 %v13349_v57 }
 0x17b   :  { %v13342_v61 = vcombine.high %v1507_v51, %v1511_v54  ;;  %v1371_v60 = vld [vmem:[%s18571_s1 + $0x2a40] sm:$0xff]  ;;  %10098 = vmatprep.subr.bf16.mxu0 %v13214_v58  ;;  %v13341_v25 = vcombine.low %v1507_v51, %v1511_v54  ;;  %v11904_v54 = vcombine.high %v68_v42, %v72_v34 }
 0x17c   :  { %v1375_v1 = vld [vmem:[%s18571_s1 + $0x2a60] sm:$0xff]  ;;  %10099 = vmatpush2.bf16.msra.mxu0 %v13213_v6 }
 0x17d   :  { %v1499_v4 = vld [vmem:[%s18571_s1 + $0x2e40] sm:$0xff]  ;;  %v13206_v7 = vcombine.high %v1371_v60, %v1375_v1  ;;  %10139 = vmatprep.subr.bf16.mxu1 %v13342_v61  ;;  %v13205_v18 = vcombine.low %v1371_v60, %v1375_v1  ;;  %v60_v61 = vld [vmem:[%s18571_s1 + $0x148] sm:$0xff] }
 0x17e   :  { %v1503_v5 = vld [vmem:[%s18571_s1 + $0x2e60] sm:$0xff]  ;;  %10140 = vmatpush2.bf16.msra.mxu1 %v13341_v25  ;;  %v64_v60 = vld [vmem:[%s18571_s1 + $0x168] sm:$0xff]  ;;  %v11903_v25 = vcombine.low %v68_v42, %v72_v34 }
 0x17f   :  { %v13334_v8 = vcombine.high %v1499_v4, %v1503_v5  ;;  %v1363_v12 = vld [vmem:[%s18571_s1 + $0x2a00] sm:$0xff]  ;;  %10100 = vmatprep.subr.bf16.mxu0 %v13206_v7  ;;  %v13333_v59 = vcombine.low %v1499_v4, %v1503_v5  ;;  %v11895_v52 = vcombine.low %v60_v61, %v64_v60  ;;  %v48_v42 = vld [vmem:[%s18571_s1 + $0xe8] sm:$0xff] }
 0x180   :  { %v1367_v14 = vld [vmem:[%s18571_s1 + $0x2a20] sm:$0xff]  ;;  %10101 = vmatpush2.bf16.msra.mxu0 %v13205_v18  ;;  %v13435_v18 = vmov 0  }
 0x181   :  { %v1491_v16 = vld [vmem:[%s18571_s1 + $0x2e00] sm:$0xff]  ;;  %v13198_v19 = vcombine.high %v1363_v12, %v1367_v14  ;;  %10141 = vmatprep.subr.bf16.mxu1 %v13334_v8  ;;  %v13197_v63 = vcombine.low %v1363_v12, %v1367_v14 }
 0x182   :  { %v1495_v17 = vld [vmem:[%s18571_s1 + $0x2e20] sm:$0xff]  ;;  %10142 = vmatpush2.bf16.msra.mxu1 %v13333_v59 }
 0x183   :  { %v13326_v20 = vcombine.high %v1491_v16, %v1495_v17  ;;  %v1579_v27 = vld [vmem:[%s18571_s1 + $0x30c0] sm:$0xff]  ;;  %10102 = vmatprep.subr.bf16.mxu0 %v13198_v19  ;;  %v13325_v35 = vcombine.low %v1491_v16, %v1495_v17  ;;  %v11896_v16 = vcombine.high %v60_v61, %v64_v60  ;;  %v52_v19 = vld [vmem:[%s18571_s1 + $0x108] sm:$0xff] }
 0x184   :  { %v1583_v28 = vld [vmem:[%s18571_s1 + $0x30e0] sm:$0xff]  ;;  %10103 = vmatpush2.bf16.msra.mxu0 %v13197_v63  ;;  %v36_v61 = vld [vmem:[%s18571_s1 + $0x88] sm:$0xff] }
 0x185   :  { %v13414_v2 = vcombine.high %v1579_v27, %v1583_v28  ;;  %10143 = vmatprep.subr.bf16.mxu1 %v13326_v20  ;;  %v1571_v38 = vld [vmem:[%s18571_s1 + $0x3080] sm:$0xff]  ;;  %v13413_v46 = vcombine.low %v1579_v27, %v1583_v28  ;;  %v40_v60 = vld [vmem:[%s18571_s1 + $0xa8] sm:$0xff] }
 0x186   :  { %v1575_v40 = vld [vmem:[%s18571_s1 + $0x30a0] sm:$0xff]  ;;  %10144 = vmatpush2.bf16.msra.mxu1 %v13325_v35  ;;  %v9860_v58 = vpop.f32.mrf.mxu0 }
 0x187   :  { %10162 = vmatprep.subr.bf16.mxu0 %v13414_v2  ;;  %v13406_v51 = vcombine.high %v1571_v38, %v1575_v40  ;;  %10195 = vmatprep.subr.bf16.mxu1 %v11912_v37  ;;  %v1563_v10 = vld [vmem:[%s18571_s1 + $0x3040] sm:$0xff]  ;;  %v9861_v1 = vadd.f32 %v9860_v58, %v14624_v24  ;;  %v13405_v5 = vcombine.low %v1571_v38, %v1575_v40  ;;  %v204_v37 = vld [vmem:[%s18571_s1 + $0x5c8] sm:$0xff] }
 0x188   :  { %v1567_v57 = vld [vmem:[%s18571_s1 + $0x3060] sm:$0xff]  ;;  %10105 = vmatmul.mubr.bf16.vlgmr.msra.gmra.mxu0 %v14801_v33  ;;  %v9901_v4 = vpop.f32.mrf.mxu1  ;;  %v9862_v6 = vpop.f32.mrf.mxu0  ;;  %v208_v38 = vld [vmem:[%s18571_s1 + $0x5e8] sm:$0xff] }
 0x189   :  { %10146 = vmatmul.mubr.bf16.vlgmr.msra.gmra.mxu1 %v14817_v45  ;;  %10163 = vmatpush1.bf16.msra.mxu0 %v13413_v46  ;;  %v13398_v7 = vcombine.high %v1563_v10, %v1567_v57  ;;  %v14834_v8 = vadd.f32 %v9901_v4, %v9861_v1  ;;  %v9863_v12 = vadd.f32 %v9862_v6, %v14641_v36  ;;  %v1555_v24 = vld [vmem:[%s18571_s1 + $0x3000] sm:$0xff]  ;;  %v56_v36 = vld [vmem:[%s18571_s1 + $0x128] sm:$0xff]  ;;  %v11852_v46 = vld.sshfl [vmem:[%s18572_s0 + $0x18] sm:$0x1 pattern:$0x75316420] }
 0x18a   :  { %10196 = vmatpush1.bf16.msra.mxu1 %v11911_v48  ;;  %10164 = vmatprep.subr.bf16.mxu0 %v13406_v51  ;;  %v9903_v14 = vpop.f32.mrf.mxu1  ;;  %v1559_v17 = vld [vmem:[%s18571_s1 + $0x3020] sm:$0xff]  ;;  %v9864_v59 = vpop.f32.mrf.mxu0  ;;  %v13397_v28 = vcombine.low %v1563_v10, %v1567_v57  ;;  %v11888_v2 = vcombine.high %v52_v19, %v56_v36  ;;  %v44_v40 = vld [vmem:[%s18571_s1 + $0xc8] sm:$0xff]  ;;  %v11887_v48 = vcombine.low %v52_v19, %v56_v36 }
 0x18b   :  { %10197 = vmatprep.subr.bf16.mxu1 %v11904_v54  ;;  %10186 = vmatprep.mubr.bf16.mxu0 %v13435_v18  ;;  %v14851_v20 = vadd.f32 %v9903_v14, %v9863_v12  ;;  %v13390_v63 = vcombine.high %v1555_v24, %v1559_v17  ;;  %v13389_v34 = vcombine.low %v1555_v24, %v1559_v17  ;;  %v196_v10 = vld [vmem:[%s18571_s1 + $0x588] sm:$0xff] }
 0x18c   :  { %10227 = vmatprep.mubr.bf16.mxu1 %v13576_v9  ;;  %v9905_v27 = vpop.f32.mrf.mxu1  ;;  %v9865_v49 = vpop.f32.mrf.mxu0  ;;  %v12040_v51 = vcombine.high %v204_v37, %v208_v38  ;;  %v11880_v54 = vcombine.high %v44_v40, %v48_v42  ;;  %v200_v57 = vld [vmem:[%s18571_s1 + $0x5a8] sm:$0xff]  ;;  %v14875_v58 = vrot.slane %v11852_v46, %v13538_v53  ;;  %v12039_v1 = vcombine.low %v204_v37, %v208_v38 }
 0x18d   :  { %10165 = vmatpush1.bf16.msra.mxu0 %v13405_v5  ;;  %v11879_v4 = vcombine.low %v44_v40, %v48_v42  ;;  %v12032_v5 = vcombine.high %v196_v10, %v200_v57  ;;  %v11872_v6 = vcombine.high %v36_v61, %v40_v60  ;;  %v188_v53 = vld [vmem:[%s18571_s1 + $0x548] sm:$0xff]  ;;  %v12031_v14 = vcombine.low %v196_v10, %v200_v57 }
 0x18e   :  { %10198 = vmatpush1.bf16.msra.mxu1 %v11903_v25  ;;  %10166 = vmatprep.subr.bf16.mxu0 %v13398_v7  ;;  %v9906_v35 = vpop.f32.mrf.mxu1  ;;  %v192_v25 = vld [vmem:[%s18571_s1 + $0x568] sm:$0xff] }
 0x18f   :  { %10199 = vmatprep.subr.bf16.mxu1 %v11896_v16  ;;  %v28_v7 = vld [vmem:[%s18571_s1 + $0x48] sm:$0xff]  ;;  %v11871_v16 = vcombine.low %v36_v61, %v40_v60  ;;  %v12024_v24 = vcombine.high %v188_v53, %v192_v25 }
 0x190   :  { %v32_v12 = vld [vmem:[%s18571_s1 + $0x68] sm:$0xff] }
 0x191   :  { %10167 = vmatpush1.bf16.msra.mxu0 %v13397_v28  ;;  %v11864_v17 = vcombine.high %v28_v7, %v32_v12  ;;  %v180_v59 = vld [vmem:[%s18571_s1 + $0x508] sm:$0xff]  ;;  %v12023_v28 = vcombine.low %v188_v53, %v192_v25  ;;  %v11863_v49 = vcombine.low %v28_v7, %v32_v12 }
 0x192   :  { %10200 = vmatpush1.bf16.msra.mxu1 %v11895_v52  ;;  %10168 = vmatprep.subr.bf16.mxu0 %v13390_v63  ;;  %v184_v19 = vld [vmem:[%s18571_s1 + $0x528] sm:$0xff] }
 0x193   :  { %10201 = vmatprep.subr.bf16.mxu1 %v11888_v2  ;;  %v20_v36 = vld [vmem:[%s18571_s1 + $0x8] sm:$0xff]  ;;  %v12016_v52 = vcombine.high %v180_v59, %v184_v19  ;;  %v12015_v40 = vcombine.low %v180_v59, %v184_v19 }
 0x194   :  { %v24_v27 = vld [vmem:[%s18571_s1 + $0x28] sm:$0xff] }
 0x195   :  { %10169 = vmatpush1.bf16.msra.mxu0 %v13389_v34  ;;  %v11856_v63 = vcombine.high %v20_v36, %v24_v27  ;;  %v172_v35 = vld [vmem:[%s18571_s1 + $0x4c8] sm:$0xff]  ;;  %v11855_v42 = vcombine.low %v20_v36, %v24_v27 }
 0x196   :  { %10202 = vmatpush1.bf16.msra.mxu1 %v11887_v48  ;;  %10236 = vmatprep.subr.bf16.mxu0 %v12040_v51  ;;  %v176_v2 = vld [vmem:[%s18571_s1 + $0x4e8] sm:$0xff] }
 0x197   :  { %10203 = vmatprep.subr.bf16.mxu1 %v11880_v54  ;;  %v140_v37 = vld [vmem:[%s18571_s1 + $0x3c8] sm:$0xff]  ;;  %v12008_v34 = vcombine.high %v172_v35, %v176_v2  ;;  %v12007_v57 = vcombine.low %v172_v35, %v176_v2 }
 0x198   :  { %13421 = vmatmul.mubr.msk.bf16.vlgmr.msra.gmra.mxu0 %vm9658_vm0, %v14875_v58  ;;  %v144_v38 = vld [vmem:[%s18571_s1 + $0x3e8] sm:$0xff] }
 0x199   :  { %10237 = vmatpush1.bf16.msra.mxu0 %v12039_v1  ;;  %10268 = vmatprep.mubr.bf16.mxu0 %v13587_v13  ;;  %v11976_v46 = vcombine.high %v140_v37, %v144_v38  ;;  %v164_v48 = vld [vmem:[%s18571_s1 + $0x488] sm:$0xff]  ;;  %v11975_v61 = vcombine.low %v140_v37, %v144_v38 }
 0x19a   :  { %10204 = vmatpush1.bf16.msra.mxu1 %v11879_v4  ;;  %10238 = vmatprep.subr.bf16.mxu0 %v12032_v5  ;;  %v168_v51 = vld [vmem:[%s18571_s1 + $0x4a8] sm:$0xff] }
 0x19b   :  { %10205 = vmatprep.subr.bf16.mxu1 %v11872_v6  ;;  %v132_v54 = vld [vmem:[%s18571_s1 + $0x388] sm:$0xff]  ;;  %v12000_v60 = vcombine.high %v164_v48, %v168_v51  ;;  %v11999_v25 = vcombine.low %v164_v48, %v168_v51 }
 0x19c   :  { %v136_v10 = vld [vmem:[%s18571_s1 + $0x3a8] sm:$0xff] }
 0x19d   :  { %10239 = vmatpush1.bf16.msra.mxu0 %v12031_v14  ;;  %v11968_v1 = vcombine.high %v132_v54, %v136_v10  ;;  %v156_v4 = vld [vmem:[%s18571_s1 + $0x448] sm:$0xff]  ;;  %v11967_v7 = vcombine.low %v132_v54, %v136_v10 }
 0x19e   :  { %10206 = vmatpush1.bf16.msra.mxu1 %v11871_v16  ;;  %10240 = vmatprep.subr.bf16.mxu0 %v12024_v24  ;;  %v160_v5 = vld [vmem:[%s18571_s1 + $0x468] sm:$0xff] }
 0x19f   :  { %10207 = vmatprep.subr.bf16.mxu1 %v11864_v17  ;;  %v124_v6 = vld [vmem:[%s18571_s1 + $0x348] sm:$0xff]  ;;  %v11992_v12 = vcombine.high %v156_v4, %v160_v5  ;;  %v11991_v19 = vcombine.low %v156_v4, %v160_v5 }
 0x1a0   :  { %v128_v53 = vld [vmem:[%s18571_s1 + $0x368] sm:$0xff] }
 0x1a1   :  { %10241 = vmatpush1.bf16.msra.mxu0 %v12023_v28  ;;  %v11960_v14 = vcombine.high %v124_v6, %v128_v53  ;;  %v148_v16 = vld [vmem:[%s18571_s1 + $0x408] sm:$0xff]  ;;  %v11959_v36 = vcombine.low %v124_v6, %v128_v53 }
 0x1a2   :  { %10208 = vmatpush1.bf16.msra.mxu1 %v11863_v49  ;;  %10242 = vmatprep.subr.bf16.mxu0 %v12016_v52  ;;  %v152_v24 = vld [vmem:[%s18571_s1 + $0x428] sm:$0xff] }
 0x1a3   :  { %10209 = vmatprep.subr.bf16.mxu1 %v11856_v63  ;;  %v116_v17 = vld [vmem:[%s18571_s1 + $0x308] sm:$0xff]  ;;  %v11984_v27 = vcombine.high %v148_v16, %v152_v24  ;;  %v11983_v2 = vcombine.low %v148_v16, %v152_v24 }
 0x1a4   :  { %v120_v59 = vld [vmem:[%s18571_s1 + $0x328] sm:$0xff] }
 0x1a5   :  { %10243 = vmatpush1.bf16.msra.mxu0 %v12015_v40  ;;  %v11952_v28 = vcombine.high %v116_v17, %v120_v59  ;;  %v268_v49 = vld [vmem:[%s18571_s1 + $0x7c8] sm:$0xff]  ;;  %v11951_v37 = vcombine.low %v116_v17, %v120_v59 }
 0x1a6   :  { %10210 = vmatpush1.bf16.msra.mxu1 %v11855_v42  ;;  %10244 = vmatprep.subr.bf16.mxu0 %v12008_v34  ;;  %v272_v52 = vld [vmem:[%s18571_s1 + $0x7e8] sm:$0xff] }
 0x1a7   :  { %10211 = vmatprep.subr.bf16.mxu1 %v11976_v46  ;;  %v108_v63 = vld [vmem:[%s18571_s1 + $0x2c8] sm:$0xff]  ;;  %v12104_v38 = vcombine.high %v268_v49, %v272_v52  ;;  %v12103_v51 = vcombine.low %v268_v49, %v272_v52 }
 0x1a8   :  { %v112_v35 = vld [vmem:[%s18571_s1 + $0x2e8] sm:$0xff] }
 0x1a9   :  { %10245 = vmatpush1.bf16.msra.mxu0 %v12007_v57  ;;  %v11944_v40 = vcombine.high %v108_v63, %v112_v35  ;;  %v260_v42 = vld [vmem:[%s18571_s1 + $0x788] sm:$0xff]  ;;  %v11943_v54 = vcombine.low %v108_v63, %v112_v35 }
 0x1aa   :  { %10212 = vmatpush2.bf16.msra.mxu1 %v11975_v61  ;;  %10246 = vmatprep.subr.bf16.mxu0 %v12000_v60  ;;  %v264_v34 = vld [vmem:[%s18571_s1 + $0x7a8] sm:$0xff] }
 0x1ab   :  { %10213 = vmatprep.subr.bf16.mxu1 %v11968_v1  ;;  %v100_v46 = vld [vmem:[%s18571_s1 + $0x288] sm:$0xff]  ;;  %v12096_v10 = vcombine.high %v260_v42, %v264_v34  ;;  %v12095_v5 = vcombine.low %v260_v42, %v264_v34 }
 0x1ac   :  { %v104_v48 = vld [vmem:[%s18571_s1 + $0x2a8] sm:$0xff] }
 0x1ad   :  { %10247 = vmatpush1.bf16.msra.mxu0 %v11999_v25  ;;  %v11936_v57 = vcombine.high %v100_v46, %v104_v48  ;;  %v252_v61 = vld [vmem:[%s18571_s1 + $0x748] sm:$0xff]  ;;  %v11935_v6 = vcombine.low %v100_v46, %v104_v48 }
 0x1ae   :  { %10214 = vmatpush2.bf16.msra.mxu1 %v11967_v7  ;;  %10248 = vmatprep.subr.bf16.mxu0 %v11992_v12  ;;  %v256_v60 = vld [vmem:[%s18571_s1 + $0x768] sm:$0xff] }
 0x1af   :  { %10215 = vmatprep.subr.bf16.mxu1 %v11960_v14  ;;  %v92_v1 = vld [vmem:[%s18571_s1 + $0x248] sm:$0xff]  ;;  %v12088_v53 = vcombine.high %v252_v61, %v256_v60  ;;  %v12087_v24 = vcombine.low %v252_v61, %v256_v60 }
 0x1b0   :  { %v96_v4 = vld [vmem:[%s18571_s1 + $0x268] sm:$0xff] }
 0x1b1   :  { %10249 = vmatpush1.bf16.msra.mxu0 %v11991_v19  ;;  %v11928_v25 = vcombine.high %v92_v1, %v96_v4  ;;  %v244_v7 = vld [vmem:[%s18571_s1 + $0x708] sm:$0xff]  ;;  %v11927_v17 = vcombine.low %v92_v1, %v96_v4 }
 0x1b2   :  { %10216 = vmatpush2.bf16.msra.mxu1 %v11959_v36  ;;  %10250 = vmatprep.subr.bf16.mxu0 %v11984_v27  ;;  %v248_v12 = vld [vmem:[%s18571_s1 + $0x728] sm:$0xff] }
 0x1b3   :  { %10217 = vmatprep.subr.bf16.mxu1 %v11952_v28  ;;  %v84_v14 = vld [vmem:[%s18571_s1 + $0x208] sm:$0xff]  ;;  %v12080_v59 = vcombine.high %v244_v7, %v248_v12  ;;  %v12079_v52 = vcombine.low %v244_v7, %v248_v12 }
 0x1b4   :  { %v88_v16 = vld [vmem:[%s18571_s1 + $0x228] sm:$0xff] }
 0x1b5   :  { %10251 = vmatpush1.bf16.msra.mxu0 %v11983_v2  ;;  %v11920_v19 = vcombine.high %v84_v14, %v88_v16  ;;  %v236_v36 = vld [vmem:[%s18571_s1 + $0x6c8] sm:$0xff]  ;;  %v11919_v63 = vcombine.low %v84_v14, %v88_v16 }
 0x1b6   :  { %10218 = vmatpush2.bf16.msra.mxu1 %v11951_v37  ;;  %10252 = vmatprep.subr.bf16.mxu0 %v12104_v38  ;;  %v240_v27 = vld [vmem:[%s18571_s1 + $0x6e8] sm:$0xff] }
 0x1b7   :  { %10219 = vmatprep.subr.bf16.mxu1 %v11944_v40  ;;  %v332_v28 = vld [vmem:[%s18571_s1 + $0x9c8] sm:$0xff]  ;;  %v12072_v35 = vcombine.high %v236_v36, %v240_v27  ;;  %v12071_v34 = vcombine.low %v236_v36, %v240_v27 }
 0x1b8   :  { %v336_v49 = vld [vmem:[%s18571_s1 + $0x9e8] sm:$0xff] }
 0x1b9   :  { %10253 = vmatpush2.bf16.msra.mxu0 %v12103_v51  ;;  %v12168_v2 = vcombine.high %v332_v28, %v336_v49  ;;  %v228_v37 = vld [vmem:[%s18571_s1 + $0x688] sm:$0xff]  ;;  %v12167_v46 = vcombine.low %v332_v28, %v336_v49 }
 0x1ba   :  { %10220 = vmatpush2.bf16.msra.mxu1 %v11943_v54  ;;  %10254 = vmatprep.subr.bf16.mxu0 %v12096_v10  ;;  %v232_v38 = vld [vmem:[%s18571_s1 + $0x6a8] sm:$0xff] }
 0x1bb   :  { %10221 = vmatprep.subr.bf16.mxu1 %v11936_v57  ;;  %v324_v40 = vld [vmem:[%s18571_s1 + $0x988] sm:$0xff]  ;;  %v12064_v48 = vcombine.high %v228_v37, %v232_v38 }
 0x1bc   :  { %v328_v42 = vld [vmem:[%s18571_s1 + $0x9a8] sm:$0xff] }
 0x1bd   :  { %10255 = vmatpush2.bf16.msra.mxu0 %v12095_v5  ;;  %v12160_v51 = vcombine.high %v324_v40, %v328_v42  ;;  %v220_v54 = vld [vmem:[%s18571_s1 + $0x648] sm:$0xff]  ;;  %v12063_v5 = vcombine.low %v228_v37, %v232_v38 }
 0x1be   :  { %10222 = vmatpush2.bf16.msra.mxu1 %v11935_v6  ;;  %10256 = vmatprep.subr.bf16.mxu0 %v12088_v53  ;;  %v224_v10 = vld [vmem:[%s18571_s1 + $0x668] sm:$0xff]  ;;  %v12159_v53 = vcombine.low %v324_v40, %v328_v42 }
 0x1bf   :  { %10223 = vmatprep.subr.bf16.mxu1 %v11928_v25  ;;  %v316_v61 = vld [vmem:[%s18571_s1 + $0x948] sm:$0xff]  ;;  %v12056_v25 = vcombine.high %v220_v54, %v224_v10  ;;  %v12055_v27 = vcombine.low %v220_v54, %v224_v10 }
 0x1c0   :  { %v320_v60 = vld [vmem:[%s18571_s1 + $0x968] sm:$0xff] }
 0x1c1   :  { %10257 = vmatpush2.bf16.msra.mxu0 %v12087_v24  ;;  %v12152_v16 = vcombine.high %v316_v61, %v320_v60  ;;  %v216_v24 = vld [vmem:[%s18571_s1 + $0x628] sm:$0xff]  ;;  %v12151_v49 = vcombine.low %v316_v61, %v320_v60 }
 0x1c2   :  { %10224 = vmatpush2.bf16.msra.mxu1 %v11927_v17  ;;  %10258 = vmatprep.subr.bf16.mxu0 %v12080_v59  ;;  %v308_v59 = vld [vmem:[%s18571_s1 + $0x908] sm:$0xff] }
 0x1c3   :  { %10225 = vmatprep.subr.bf16.mxu1 %v11920_v19  ;;  %v464_v37 = vld [vmem:[%s18571_s1 + $0xde8] sm:$0xff] }
 0x1c4   :  { %v300_v38 = vld [vmem:[%s18571_s1 + $0x8c8] sm:$0xff] }
 0x1c5   :  { %10259 = vmatpush2.bf16.msra.mxu0 %v12079_v52  ;;  %v304_v40 = vld [vmem:[%s18571_s1 + $0x8e8] sm:$0xff] }
 0x1c6   :  { %10226 = vmatpush2.bf16.msra.mxu1 %v11919_v63  ;;  %10260 = vmatprep.subr.bf16.mxu0 %v12072_v35  ;;  %v9942_v57 = vpop.f32.mrf.mxu0  ;;  %v456_v54 = vld [vmem:[%s18571_s1 + $0xda8] sm:$0xff]  ;;  %v12135_v60 = vcombine.low %v300_v38, %v304_v40 }
 0x1c7   :  { %10277 = vmatprep.subr.bf16.mxu1 %v12168_v2  ;;  %v9943_v1 = vadd.f32 %v9942_v57, %v14834_v8  ;;  %v212_v8 = vld [vmem:[%s18571_s1 + $0x608] sm:$0xff] }
 0x1c8   :  { %v9983_v4 = vpop.f32.mrf.mxu1  ;;  %v9944_v6 = vpop.f32.mrf.mxu0  ;;  %v12048_v52 = vcombine.high %v212_v8, %v216_v24  ;;  %v460_v2 = vld [vmem:[%s18571_s1 + $0xdc8] sm:$0xff]  ;;  %v12047_v42 = vcombine.low %v212_v8, %v216_v24 }
 0x1c9   :  { %10228 = vmatmul.mubr.bf16.vlgmr.msra.gmra.mxu1 %v13695_v22  ;;  %10261 = vmatpush2.bf16.msra.mxu0 %v12071_v34  ;;  %v15044_v7 = vadd.f32 %v9983_v4, %v9943_v1  ;;  %v9945_v12 = vadd.f32 %v9944_v6, %v14851_v20  ;;  %v312_v20 = vld [vmem:[%s18571_s1 + $0x928] sm:$0xff]  ;;  %v12295_v61 = vcombine.low %v460_v2, %v464_v37 }
 0x1ca   :  { %10278 = vmatpush1.bf16.msra.mxu1 %v12167_v46  ;;  %10262 = vmatprep.subr.bf16.mxu0 %v12064_v48  ;;  %v9985_v14 = vpop.f32.mrf.mxu1  ;;  %v9946_v17 = vpop.f32.mrf.mxu0  ;;  %v12144_v35 = vcombine.high %v308_v59, %v312_v20  ;;  %v12143_v34 = vcombine.low %v308_v59, %v312_v20  ;;  %v12296_v46 = vcombine.high %v460_v2, %v464_v37  ;;  %v292_v10 = vld [vmem:[%s18571_s1 + $0x888] sm:$0xff] }
 0x1cb   :  { %10279 = vmatprep.subr.bf16.mxu1 %v12160_v51  ;;  %10309 = vmatprep.mubr.bf16.mxu1 %v13710_v29  ;;  %v15060_v19 = vadd.f32 %v9985_v14, %v9945_v12  ;;  %v12136_v48 = vcombine.high %v300_v38, %v304_v40  ;;  %v452_v51 = vld [vmem:[%s18571_s1 + $0xd88] sm:$0xff] }
 0x1cc   :  { %v9987_v36 = vpop.f32.mrf.mxu1  ;;  %v9947_v28 = vpop.f32.mrf.mxu0  ;;  %v296_v57 = vld [vmem:[%s18571_s1 + $0x8a8] sm:$0xff]  ;;  %v12288_v1 = vcombine.high %v452_v51, %v456_v54  ;;  %v12287_v12 = vcombine.low %v452_v51, %v456_v54 }
 0x1cd   :  { %10263 = vmatpush2.bf16.msra.mxu0 %v12063_v5  ;;  %v12128_v4 = vcombine.high %v292_v10, %v296_v57  ;;  %v444_v5 = vld [vmem:[%s18571_s1 + $0xd48] sm:$0xff]  ;;  %v12127_v14 = vcombine.low %v292_v10, %v296_v57 }
 0x1ce   :  { %10280 = vmatpush1.bf16.msra.mxu1 %v12159_v53  ;;  %10264 = vmatprep.subr.bf16.mxu0 %v12056_v25  ;;  %v9988_v63 = vpop.f32.mrf.mxu1  ;;  %v448_v6 = vld [vmem:[%s18571_s1 + $0xd68] sm:$0xff] }
 0x1cf   :  { %10281 = vmatprep.subr.bf16.mxu1 %v12152_v16  ;;  %v284_v53 = vld [vmem:[%s18571_s1 + $0x848] sm:$0xff]  ;;  %v12280_v16 = vcombine.high %v444_v5, %v448_v6  ;;  %v12279_v36 = vcombine.low %v444_v5, %v448_v6 }
 0x1d0   :  { %v288_v25 = vld [vmem:[%s18571_s1 + $0x868] sm:$0xff] }
 0x1d1   :  { %10265 = vmatpush2.bf16.msra.mxu0 %v12055_v27  ;;  %v12120_v8 = vcombine.high %v284_v53, %v288_v25  ;;  %v436_v24 = vld [vmem:[%s18571_s1 + $0xd08] sm:$0xff]  ;;  %v12119_v27 = vcombine.low %v284_v53, %v288_v25 }
 0x1d2   :  { %10282 = vmatpush1.bf16.msra.mxu1 %v12151_v49  ;;  %10266 = vmatprep.subr.bf16.mxu0 %v12048_v52  ;;  %v440_v17 = vld [vmem:[%s18571_s1 + $0xd28] sm:$0xff] }
 0x1d3   :  { %10283 = vmatprep.subr.bf16.mxu1 %v12144_v35  ;;  %v276_v59 = vld [vmem:[%s18571_s1 + $0x808] sm:$0xff]  ;;  %v12272_v28 = vcombine.high %v436_v24, %v440_v17  ;;  %v12271_v37 = vcombine.low %v436_v24, %v440_v17 }
 0x1d4   :  { %v280_v20 = vld [vmem:[%s18571_s1 + $0x828] sm:$0xff] }
 0x1d5   :  { %10267 = vmatpush2.bf16.msra.mxu0 %v12047_v42  ;;  %v12112_v49 = vcombine.high %v276_v59, %v280_v20  ;;  %v428_v52 = vld [vmem:[%s18571_s1 + $0xcc8] sm:$0xff]  ;;  %v12111_v38 = vcombine.low %v276_v59, %v280_v20 }
 0x1d6   :  { %10284 = vmatpush1.bf16.msra.mxu1 %v12143_v34  ;;  %10318 = vmatprep.subr.bf16.mxu0 %v12296_v46  ;;  %v432_v63 = vld [vmem:[%s18571_s1 + $0xce8] sm:$0xff] }
 0x1d7   :  { %10285 = vmatprep.subr.bf16.mxu1 %v12136_v48  ;;  %v396_v35 = vld [vmem:[%s18571_s1 + $0xbc8] sm:$0xff]  ;;  %v12264_v40 = vcombine.high %v428_v52, %v432_v63  ;;  %v12263_v54 = vcombine.low %v428_v52, %v432_v63 }
 0x1d8   :  { %10269 = vmatmul.mubr.bf16.vlgmr.msra.gmra.mxu0 %v13714_v30  ;;  %v400_v2 = vld [vmem:[%s18571_s1 + $0xbe8] sm:$0xff] }
 0x1d9   :  { %10319 = vmatpush1.bf16.msra.mxu0 %v12295_v61  ;;  %10350 = vmatprep.mubr.bf16.mxu0 %v13731_v39  ;;  %v12232_v42 = vcombine.high %v396_v35, %v400_v2  ;;  %v420_v34 = vld [vmem:[%s18571_s1 + $0xc88] sm:$0xff]  ;;  %v12231_v10 = vcombine.low %v396_v35, %v400_v2 }
 0x1da   :  { %10286 = vmatpush1.bf16.msra.mxu1 %v12135_v60  ;;  %10320 = vmatprep.subr.bf16.mxu0 %v12288_v1  ;;  %v424_v46 = vld [vmem:[%s18571_s1 + $0xca8] sm:$0xff] }
 0x1db   :  { %10287 = vmatprep.subr.bf16.mxu1 %v12128_v4  ;;  %v388_v48 = vld [vmem:[%s18571_s1 + $0xb88] sm:$0xff]  ;;  %v12256_v57 = vcombine.high %v420_v34, %v424_v46  ;;  %v12255_v6 = vcombine.low %v420_v34, %v424_v46 }
 0x1dc   :  { %v392_v51 = vld [vmem:[%s18571_s1 + $0xba8] sm:$0xff] }
 0x1dd   :  { %10321 = vmatpush1.bf16.msra.mxu0 %v12287_v12  ;;  %v12224_v61 = vcombine.high %v388_v48, %v392_v51  ;;  %v412_v60 = vld [vmem:[%s18571_s1 + $0xc48] sm:$0xff]  ;;  %v12223_v53 = vcombine.low %v388_v48, %v392_v51 }
 0x1de   :  { %10288 = vmatpush1.bf16.msra.mxu1 %v12127_v14  ;;  %10322 = vmatprep.subr.bf16.mxu0 %v12280_v16  ;;  %v416_v1 = vld [vmem:[%s18571_s1 + $0xc68] sm:$0xff] }
 0x1df   :  { %10289 = vmatprep.subr.bf16.mxu1 %v12120_v8  ;;  %v380_v4 = vld [vmem:[%s18571_s1 + $0xb48] sm:$0xff]  ;;  %v12248_v25 = vcombine.high %v412_v60, %v416_v1  ;;  %v12247_v17 = vcombine.low %v412_v60, %v416_v1 }
 0x1e0   :  { %v384_v5 = vld [vmem:[%s18571_s1 + $0xb68] sm:$0xff] }
 0x1e1   :  { %10323 = vmatpush1.bf16.msra.mxu0 %v12279_v36  ;;  %v12216_v12 = vcombine.high %v380_v4, %v384_v5  ;;  %v404_v14 = vld [vmem:[%s18571_s1 + $0xc08] sm:$0xff]  ;;  %v12215_v59 = vcombine.low %v380_v4, %v384_v5 }
 0x1e2   :  { %10290 = vmatpush1.bf16.msra.mxu1 %v12119_v27  ;;  %10324 = vmatprep.subr.bf16.mxu0 %v12272_v28  ;;  %v408_v16 = vld [vmem:[%s18571_s1 + $0xc28] sm:$0xff] }
 0x1e3   :  { %10291 = vmatprep.subr.bf16.mxu1 %v12112_v49  ;;  %v372_v8 = vld [vmem:[%s18571_s1 + $0xb08] sm:$0xff]  ;;  %v12240_v20 = vcombine.high %v404_v14, %v408_v16  ;;  %v12239_v63 = vcombine.low %v404_v14, %v408_v16 }
 0x1e4   :  { %v376_v24 = vld [vmem:[%s18571_s1 + $0xb28] sm:$0xff] }
 0x1e5   :  { %10325 = vmatpush1.bf16.msra.mxu0 %v12271_v37  ;;  %v12208_v36 = vcombine.high %v372_v8, %v376_v24  ;;  %v524_v27 = vld [vmem:[%s18571_s1 + $0xfc8] sm:$0xff]  ;;  %v12207_v35 = vcombine.low %v372_v8, %v376_v24 }
 0x1e6   :  { %10292 = vmatpush1.bf16.msra.mxu1 %v12111_v38  ;;  %10326 = vmatprep.subr.bf16.mxu0 %v12264_v40  ;;  %v528_v28 = vld [vmem:[%s18571_s1 + $0xfe8] sm:$0xff] }
 0x1e7   :  { %10293 = vmatprep.subr.bf16.mxu1 %v12232_v42  ;;  %v364_v49 = vld [vmem:[%s18571_s1 + $0xac8] sm:$0xff]  ;;  %v12360_v2 = vcombine.high %v524_v27, %v528_v28  ;;  %v12359_v46 = vcombine.low %v524_v27, %v528_v28 }
 0x1e8   :  { %v368_v52 = vld [vmem:[%s18571_s1 + $0xae8] sm:$0xff] }
 0x1e9   :  { %10327 = vmatpush1.bf16.msra.mxu0 %v12263_v54  ;;  %v12200_v37 = vcombine.high %v364_v49, %v368_v52  ;;  %v516_v38 = vld [vmem:[%s18571_s1 + $0xf88] sm:$0xff]  ;;  %v12199_v48 = vcombine.low %v364_v49, %v368_v52 }
 0x1ea   :  { %10294 = vmatpush2.bf16.msra.mxu1 %v12231_v10  ;;  %10328 = vmatprep.subr.bf16.mxu0 %v12256_v57  ;;  %v520_v40 = vld [vmem:[%s18571_s1 + $0xfa8] sm:$0xff] }
 0x1eb   :  { %10295 = vmatprep.subr.bf16.mxu1 %v12224_v61  ;;  %v356_v42 = vld [vmem:[%s18571_s1 + $0xa88] sm:$0xff]  ;;  %v12352_v51 = vcombine.high %v516_v38, %v520_v40  ;;  %v12351_v1 = vcombine.low %v516_v38, %v520_v40 }
 0x1ec   :  { %v360_v34 = vld [vmem:[%s18571_s1 + $0xaa8] sm:$0xff] }
 0x1ed   :  { %10329 = vmatpush1.bf16.msra.mxu0 %v12255_v6  ;;  %v12192_v54 = vcombine.high %v356_v42, %v360_v34  ;;  %v508_v10 = vld [vmem:[%s18571_s1 + $0xf48] sm:$0xff]  ;;  %v12191_v4 = vcombine.low %v356_v42, %v360_v34 }
 0x1ee   :  { %10296 = vmatpush2.bf16.msra.mxu1 %v12223_v53  ;;  %10330 = vmatprep.subr.bf16.mxu0 %v12248_v25  ;;  %v512_v57 = vld [vmem:[%s18571_s1 + $0xf68] sm:$0xff] }
 0x1ef   :  { %10297 = vmatprep.subr.bf16.mxu1 %v12216_v12  ;;  %v348_v61 = vld [vmem:[%s18571_s1 + $0xa48] sm:$0xff]  ;;  %v12344_v5 = vcombine.high %v508_v10, %v512_v57  ;;  %v12343_v16 = vcombine.low %v508_v10, %v512_v57 }
 0x1f0   :  { %v352_v60 = vld [vmem:[%s18571_s1 + $0xa68] sm:$0xff] }
 0x1f1   :  { %10331 = vmatpush1.bf16.msra.mxu0 %v12247_v17  ;;  %v12184_v6 = vcombine.high %v348_v61, %v352_v60  ;;  %v500_v53 = vld [vmem:[%s18571_s1 + $0xf08] sm:$0xff]  ;;  %v12183_v8 = vcombine.low %v348_v61, %v352_v60 }
 0x1f2   :  { %10298 = vmatpush2.bf16.msra.mxu1 %v12215_v59  ;;  %10332 = vmatprep.subr.bf16.mxu0 %v12240_v20  ;;  %v504_v25 = vld [vmem:[%s18571_s1 + $0xf28] sm:$0xff] }
 0x1f3   :  { %10299 = vmatprep.subr.bf16.mxu1 %v12208_v36  ;;  %v340_v12 = vld [vmem:[%s18571_s1 + $0xa08] sm:$0xff]  ;;  %v12336_v24 = vcombine.high %v500_v53, %v504_v25  ;;  %v12335_v28 = vcombine.low %v500_v53, %v504_v25 }
 0x1f4   :  { %v344_v14 = vld [vmem:[%s18571_s1 + $0xa28] sm:$0xff] }
 0x1f5   :  { %10333 = vmatpush1.bf16.msra.mxu0 %v12239_v63  ;;  %v12176_v17 = vcombine.high %v340_v12, %v344_v14  ;;  %v492_v59 = vld [vmem:[%s18571_s1 + $0xec8] sm:$0xff]  ;;  %v12175_v49 = vcombine.low %v340_v12, %v344_v14 }
 0x1f6   :  { %10300 = vmatpush2.bf16.msra.mxu1 %v12207_v35  ;;  %10334 = vmatprep.subr.bf16.mxu0 %v12360_v2  ;;  %v496_v20 = vld [vmem:[%s18571_s1 + $0xee8] sm:$0xff] }
 0x1f7   :  { %10301 = vmatprep.subr.bf16.mxu1 %v12200_v37  ;;  %v588_v36 = vld [vmem:[%s18571_s1 + $0x11c8] sm:$0xff]  ;;  %v12328_v52 = vcombine.high %v492_v59, %v496_v20  ;;  %v12327_v40 = vcombine.low %v492_v59, %v496_v20 }
 0x1f8   :  { %v592_v27 = vld [vmem:[%s18571_s1 + $0x11e8] sm:$0xff] }
 0x1f9   :  { %10335 = vmatpush2.bf16.msra.mxu0 %v12359_v46  ;;  %v12424_v63 = vcombine.high %v588_v36, %v592_v27  ;;  %v484_v35 = vld [vmem:[%s18571_s1 + $0xe88] sm:$0xff]  ;;  %v12423_v42 = vcombine.low %v588_v36, %v592_v27 }
 0x1fa   :  { %10302 = vmatpush2.bf16.msra.mxu1 %v12199_v48  ;;  %10336 = vmatprep.subr.bf16.mxu0 %v12352_v51  ;;  %v488_v2 = vld [vmem:[%s18571_s1 + $0xea8] sm:$0xff] }
 0x1fb   :  { %10303 = vmatprep.subr.bf16.mxu1 %v12192_v54  ;;  %v580_v37 = vld [vmem:[%s18571_s1 + $0x1188] sm:$0xff]  ;;  %v12320_v34 = vcombine.high %v484_v35, %v488_v2 }
 0x1fc   :  { %v584_v38 = vld [vmem:[%s18571_s1 + $0x11a8] sm:$0xff] }
 0x1fd   :  { %10337 = vmatpush2.bf16.msra.mxu0 %v12351_v1  ;;  %v12416_v46 = vcombine.high %v580_v37, %v584_v38  ;;  %v476_v48 = vld [vmem:[%s18571_s1 + $0xe48] sm:$0xff]  ;;  %v12319_v1 = vcombine.low %v484_v35, %v488_v2 }
 0x1fe   :  { %10304 = vmatpush2.bf16.msra.mxu1 %v12191_v4  ;;  %10338 = vmatprep.subr.bf16.mxu0 %v12344_v5  ;;  %v480_v51 = vld [vmem:[%s18571_s1 + $0xe68] sm:$0xff]  ;;  %v12415_v5 = vcombine.low %v580_v37, %v584_v38 }
 0x1ff   :  { %10305 = vmatprep.subr.bf16.mxu1 %v12184_v6  ;;  %v572_v10 = vld [vmem:[%s18571_s1 + $0x1148] sm:$0xff]  ;;  %v12312_v6 = vcombine.high %v476_v48, %v480_v51  ;;  %v12311_v20 = vcombine.low %v476_v48, %v480_v51 }
 0x200   :  { %v576_v57 = vld [vmem:[%s18571_s1 + $0x1168] sm:$0xff] }
 0x201   :  { %10339 = vmatpush2.bf16.msra.mxu0 %v12343_v16  ;;  %v12408_v14 = vcombine.high %v572_v10, %v576_v57  ;;  %v472_v16 = vld [vmem:[%s18571_s1 + $0xe28] sm:$0xff]  ;;  %v12407_v27 = vcombine.low %v572_v10, %v576_v57 }
 0x202   :  { %10306 = vmatpush2.bf16.msra.mxu1 %v12183_v8  ;;  %10340 = vmatprep.subr.bf16.mxu0 %v12336_v24  ;;  %v564_v24 = vld [vmem:[%s18571_s1 + $0x1108] sm:$0xff] }
 0x203   :  { %10307 = vmatprep.subr.bf16.mxu1 %v12176_v17  ;;  %v720_v35 = vld [vmem:[%s18571_s1 + $0x15e8] sm:$0xff] }
 0x204   :  { %v556_v2 = vld [vmem:[%s18571_s1 + $0x10c8] sm:$0xff] }
 0x205   :  { %10341 = vmatpush2.bf16.msra.mxu0 %v12335_v28  ;;  %v560_v37 = vld [vmem:[%s18571_s1 + $0x10e8] sm:$0xff] }
 0x206   :  { %10308 = vmatpush2.bf16.msra.mxu1 %v12175_v49  ;;  %10342 = vmatprep.subr.bf16.mxu0 %v12328_v52  ;;  %v712_v48 = vld [vmem:[%s18571_s1 + $0x15a8] sm:$0xff]  ;;  %v12391_v57 = vcombine.low %v556_v2, %v560_v37 }
 0x207   :  { %10359 = vmatprep.subr.bf16.mxu1 %v12424_v63  ;;  %v10024_v54 = vpop.f32.mrf.mxu0  ;;  %v716_v63 = vld [vmem:[%s18571_s1 + $0x15c8] sm:$0xff] }
 0x208   :  { %v10025_v61 = vadd.f32 %v10024_v54, %v15044_v7  ;;  %v468_v7 = vld [vmem:[%s18571_s1 + $0xe08] sm:$0xff]  ;;  %v12551_v10 = vcombine.low %v716_v63, %v720_v35 }
 0x209   :  { %v10065_v60 = vpop.f32.mrf.mxu1  ;;  %10310 = vmatmul.mubr.bf16.vlgmr.msra.gmra.mxu1 %v13917_v47  ;;  %10343 = vmatpush2.bf16.msra.mxu0 %v12327_v40  ;;  %v10026_v4 = vpop.f32.mrf.mxu0  ;;  %v12304_v28 = vcombine.high %v468_v7, %v472_v16  ;;  %v12303_v38 = vcombine.low %v468_v7, %v472_v16  ;;  %v548_v51 = vld [vmem:[%s18571_s1 + $0x1088] sm:$0xff] }
 0x20a   :  { %10360 = vmatpush1.bf16.msra.mxu1 %v12423_v42  ;;  %10344 = vmatprep.subr.bf16.mxu0 %v12320_v34  ;;  %v15246_v53 = vadd.f32 %v10065_v60, %v10025_v61  ;;  %v10027_v25 = vadd.f32 %v10026_v4, %v15060_v19  ;;  %v568_v19 = vld [vmem:[%s18571_s1 + $0x1128] sm:$0xff]  ;;  %v12552_v42 = vcombine.high %v716_v63, %v720_v35 }
 0x20b   :  { %v10067_v12 = vpop.f32.mrf.mxu1  ;;  %10361 = vmatprep.subr.bf16.mxu1 %v12416_v46  ;;  %10391 = vmatprep.mubr.bf16.mxu1 %v13932_v55  ;;  %v10028_v8 = vpop.f32.mrf.mxu0  ;;  %v12400_v52 = vcombine.high %v564_v24, %v568_v19  ;;  %v12399_v40 = vcombine.low %v564_v24, %v568_v19  ;;  %v12392_v34 = vcombine.high %v556_v2, %v560_v37  ;;  %v708_v46 = vld [vmem:[%s18571_s1 + $0x1588] sm:$0xff] }
 0x20c   :  { %v15262_v17 = vadd.f32 %v10067_v12, %v10027_v25  ;;  %v552_v54 = vld [vmem:[%s18571_s1 + $0x10a8] sm:$0xff]  ;;  %v12544_v61 = vcombine.high %v708_v46, %v712_v48  ;;  %v12543_v25 = vcombine.low %v708_v46, %v712_v48 }
 0x20d   :  { %v10069_v59 = vpop.f32.mrf.mxu1  ;;  %10345 = vmatpush2.bf16.msra.mxu0 %v12319_v1  ;;  %v10029_v36 = vpop.f32.mrf.mxu0  ;;  %v12384_v60 = vcombine.high %v548_v51, %v552_v54  ;;  %v700_v1 = vld [vmem:[%s18571_s1 + $0x1548] sm:$0xff]  ;;  %v12383_v12 = vcombine.low %v548_v51, %v552_v54 }
 0x20e   :  { %10362 = vmatpush1.bf16.msra.mxu1 %v12415_v5  ;;  %10346 = vmatprep.subr.bf16.mxu0 %v12312_v6  ;;  %v704_v4 = vld [vmem:[%s18571_s1 + $0x1568] sm:$0xff] }
 0x20f   :  { %v10070_v49 = vpop.f32.mrf.mxu1  ;;  %10363 = vmatprep.subr.bf16.mxu1 %v12408_v14  ;;  %v540_v5 = vld [vmem:[%s18571_s1 + $0x1048] sm:$0xff]  ;;  %v12536_v14 = vcombine.high %v700_v1, %v704_v4  ;;  %v12535_v59 = vcombine.low %v700_v1, %v704_v4 }
 0x210   :  { %v544_v6 = vld [vmem:[%s18571_s1 + $0x1068] sm:$0xff] }
 0x211   :  { %10347 = vmatpush2.bf16.msra.mxu0 %v12311_v20  ;;  %v12376_v7 = vcombine.high %v540_v5, %v544_v6  ;;  %v692_v16 = vld [vmem:[%s18571_s1 + $0x1508] sm:$0xff]  ;;  %v12375_v20 = vcombine.low %v540_v5, %v544_v6 }
 0x212   :  { %10364 = vmatpush1.bf16.msra.mxu1 %v12407_v27  ;;  %10348 = vmatprep.subr.bf16.mxu0 %v12304_v28  ;;  %v696_v8 = vld [vmem:[%s18571_s1 + $0x1528] sm:$0xff] }
 0x213   :  { %10365 = vmatprep.subr.bf16.mxu1 %v12400_v52  ;;  %v532_v24 = vld [vmem:[%s18571_s1 + $0x1008] sm:$0xff]  ;;  %v12528_v36 = vcombine.high %v692_v16, %v696_v8  ;;  %v12527_v35 = vcombine.low %v692_v16, %v696_v8 }
 0x214   :  { %v536_v19 = vld [vmem:[%s18571_s1 + $0x1028] sm:$0xff] }
 0x215   :  { %10349 = vmatpush2.bf16.msra.mxu0 %v12303_v38  ;;  %v12368_v27 = vcombine.high %v532_v24, %v536_v19  ;;  %v684_v28 = vld [vmem:[%s18571_s1 + $0x14c8] sm:$0xff]  ;;  %v12367_v2 = vcombine.low %v532_v24, %v536_v19 }
 0x216   :  { %10366 = vmatpush1.bf16.msra.mxu1 %v12399_v40  ;;  %10400 = vmatprep.subr.bf16.mxu0 %v12552_v42  ;;  %v688_v49 = vld [vmem:[%s18571_s1 + $0x14e8] sm:$0xff] }
 0x217   :  { %10367 = vmatprep.subr.bf16.mxu1 %v12392_v34  ;;  %v652_v52 = vld [vmem:[%s18571_s1 + $0x13c8] sm:$0xff]  ;;  %v12520_v37 = vcombine.high %v684_v28, %v688_v49  ;;  %v12519_v48 = vcombine.low %v684_v28, %v688_v49 }
 0x218   :  { %10351 = vmatmul.mubr.bf16.vlgmr.msra.gmra.mxu0 %v13936_v56  ;;  %v656_v63 = vld [vmem:[%s18571_s1 + $0x13e8] sm:$0xff] }
 0x219   :  { %10401 = vmatpush1.bf16.msra.mxu0 %v12551_v10  ;;  %10432 = vmatprep.mubr.bf16.mxu0 %v13953_v3  ;;  %v12488_v38 = vcombine.high %v652_v52, %v656_v63  ;;  %v676_v40 = vld [vmem:[%s18571_s1 + $0x1488] sm:$0xff]  ;;  %v12487_v51 = vcombine.low %v652_v52, %v656_v63 }
 0x21a   :  { %10368 = vmatpush1.bf16.msra.mxu1 %v12391_v57  ;;  %10402 = vmatprep.subr.bf16.mxu0 %v12544_v61  ;;  %v680_v42 = vld [vmem:[%s18571_s1 + $0x14a8] sm:$0xff] }
 0x21b   :  { %10369 = vmatprep.subr.bf16.mxu1 %v12384_v60  ;;  %v644_v34 = vld [vmem:[%s18571_s1 + $0x1388] sm:$0xff]  ;;  %v12512_v54 = vcombine.high %v676_v40, %v680_v42  ;;  %v12511_v4 = vcombine.low %v676_v40, %v680_v42 }
 0x21c   :  { %v648_v46 = vld [vmem:[%s18571_s1 + $0x13a8] sm:$0xff] }
 0x21d   :  { %10403 = vmatpush1.bf16.msra.mxu0 %v12543_v25  ;;  %v12480_v10 = vcombine.high %v644_v34, %v648_v46  ;;  %v668_v57 = vld [vmem:[%s18571_s1 + $0x1448] sm:$0xff]  ;;  %v12479_v5 = vcombine.low %v644_v34, %v648_v46 }
 0x21e   :  { %10370 = vmatpush1.bf16.msra.mxu1 %v12383_v12  ;;  %10404 = vmatprep.subr.bf16.mxu0 %v12536_v14  ;;  %v672_v61 = vld [vmem:[%s18571_s1 + $0x1468] sm:$0xff] }
 0x21f   :  { %10371 = vmatprep.subr.bf16.mxu1 %v12376_v7  ;;  %v636_v60 = vld [vmem:[%s18571_s1 + $0x1348] sm:$0xff]  ;;  %v12504_v6 = vcombine.high %v668_v57, %v672_v61  ;;  %v12503_v8 = vcombine.low %v668_v57, %v672_v61 }
 0x220   :  { %v640_v1 = vld [vmem:[%s18571_s1 + $0x1368] sm:$0xff] }
 0x221   :  { %10405 = vmatpush1.bf16.msra.mxu0 %v12535_v59  ;;  %v12472_v25 = vcombine.high %v636_v60, %v640_v1  ;;  %v660_v12 = vld [vmem:[%s18571_s1 + $0x1408] sm:$0xff]  ;;  %v12471_v24 = vcombine.low %v636_v60, %v640_v1 }
 0x222   :  { %10372 = vmatpush1.bf16.msra.mxu1 %v12375_v20  ;;  %10406 = vmatprep.subr.bf16.mxu0 %v12528_v36  ;;  %v664_v14 = vld [vmem:[%s18571_s1 + $0x1428] sm:$0xff] }
 0x223   :  { %10373 = vmatprep.subr.bf16.mxu1 %v12368_v27  ;;  %v628_v7 = vld [vmem:[%s18571_s1 + $0x1308] sm:$0xff]  ;;  %v12496_v19 = vcombine.high %v660_v12, %v664_v14  ;;  %v12495_v49 = vcombine.low %v660_v12, %v664_v14 }
 0x224   :  { %v632_v16 = vld [vmem:[%s18571_s1 + $0x1328] sm:$0xff] }
 0x225   :  { %10407 = vmatpush1.bf16.msra.mxu0 %v12527_v35  ;;  %v12464_v59 = vcombine.high %v628_v7, %v632_v16  ;;  %v780_v20 = vld [vmem:[%s18571_s1 + $0x17c8] sm:$0xff]  ;;  %v12463_v52 = vcombine.low %v628_v7, %v632_v16 }
 0x226   :  { %10374 = vmatpush1.bf16.msra.mxu1 %v12367_v2  ;;  %10408 = vmatprep.subr.bf16.mxu0 %v12520_v37  ;;  %v784_v36 = vld [vmem:[%s18571_s1 + $0x17e8] sm:$0xff] }
 0x227   :  { %10375 = vmatprep.subr.bf16.mxu1 %v12488_v38  ;;  %v620_v27 = vld [vmem:[%s18571_s1 + $0x12c8] sm:$0xff]  ;;  %v12616_v63 = vcombine.high %v780_v20, %v784_v36  ;;  %v12615_v42 = vcombine.low %v780_v20, %v784_v36 }
 0x228   :  { %v624_v28 = vld [vmem:[%s18571_s1 + $0x12e8] sm:$0xff] }
 0x229   :  { %10409 = vmatpush1.bf16.msra.mxu0 %v12519_v48  ;;  %v12456_v35 = vcombine.high %v620_v27, %v624_v28  ;;  %v772_v2 = vld [vmem:[%s18571_s1 + $0x1788] sm:$0xff]  ;;  %v12455_v34 = vcombine.low %v620_v27, %v624_v28 }
 0x22a   :  { %10376 = vmatpush2.bf16.msra.mxu1 %v12487_v51  ;;  %10410 = vmatprep.subr.bf16.mxu0 %v12512_v54  ;;  %v776_v37 = vld [vmem:[%s18571_s1 + $0x17a8] sm:$0xff] }
 0x22b   :  { %10377 = vmatprep.subr.bf16.mxu1 %v12480_v10  ;;  %v612_v38 = vld [vmem:[%s18571_s1 + $0x1288] sm:$0xff]  ;;  %v12608_v46 = vcombine.high %v772_v2, %v776_v37  ;;  %v12607_v61 = vcombine.low %v772_v2, %v776_v37 }
 0x22c   :  { %v616_v40 = vld [vmem:[%s18571_s1 + $0x12a8] sm:$0xff] }
 0x22d   :  { %10411 = vmatpush1.bf16.msra.mxu0 %v12511_v4  ;;  %v12448_v48 = vcombine.high %v612_v38, %v616_v40  ;;  %v764_v51 = vld [vmem:[%s18571_s1 + $0x1748] sm:$0xff]  ;;  %v12447_v60 = vcombine.low %v612_v38, %v616_v40 }
 0x22e   :  { %10378 = vmatpush2.bf16.msra.mxu1 %v12479_v5  ;;  %10412 = vmatprep.subr.bf16.mxu0 %v12504_v6  ;;  %v768_v54 = vld [vmem:[%s18571_s1 + $0x1768] sm:$0xff] }
 0x22f   :  { %10379 = vmatprep.subr.bf16.mxu1 %v12472_v25  ;;  %v604_v10 = vld [vmem:[%s18571_s1 + $0x1248] sm:$0xff]  ;;  %v12600_v1 = vcombine.high %v764_v51, %v768_v54  ;;  %v12599_v14 = vcombine.low %v764_v51, %v768_v54 }
 0x230   :  { %v608_v57 = vld [vmem:[%s18571_s1 + $0x1268] sm:$0xff] }
 0x231   :  { %10413 = vmatpush1.bf16.msra.mxu0 %v12503_v8  ;;  %v12440_v4 = vcombine.high %v604_v10, %v608_v57  ;;  %v756_v5 = vld [vmem:[%s18571_s1 + $0x1708] sm:$0xff]  ;;  %v12439_v7 = vcombine.low %v604_v10, %v608_v57 }
 0x232   :  { %10380 = vmatpush2.bf16.msra.mxu1 %v12471_v24  ;;  %10414 = vmatprep.subr.bf16.mxu0 %v12496_v19  ;;  %v760_v6 = vld [vmem:[%s18571_s1 + $0x1728] sm:$0xff] }
 0x233   :  { %10381 = vmatprep.subr.bf16.mxu1 %v12464_v59  ;;  %v596_v25 = vld [vmem:[%s18571_s1 + $0x1208] sm:$0xff]  ;;  %v12592_v16 = vcombine.high %v756_v5, %v760_v6  ;;  %v12591_v36 = vcombine.low %v756_v5, %v760_v6 }
 0x234   :  { %v600_v12 = vld [vmem:[%s18571_s1 + $0x1228] sm:$0xff] }
 0x235   :  { %10415 = vmatpush1.bf16.msra.mxu0 %v12495_v49  ;;  %v12432_v8 = vcombine.high %v596_v25, %v600_v12  ;;  %v748_v24 = vld [vmem:[%s18571_s1 + $0x16c8] sm:$0xff]  ;;  %v12431_v27 = vcombine.low %v596_v25, %v600_v12 }
 0x236   :  { %10382 = vmatpush2.bf16.msra.mxu1 %v12463_v52  ;;  %10416 = vmatprep.subr.bf16.mxu0 %v12616_v63  ;;  %v752_v19 = vld [vmem:[%s18571_s1 + $0x16e8] sm:$0xff] }
 0x237   :  { %10383 = vmatprep.subr.bf16.mxu1 %v12456_v35  ;;  %v844_v59 = vld [vmem:[%s18571_s1 + $0x19c8] sm:$0xff]  ;;  %v12584_v28 = vcombine.high %v748_v24, %v752_v19  ;;  %v12583_v37 = vcombine.low %v748_v24, %v752_v19 }
 0x238   :  { %v848_v20 = vld [vmem:[%s18571_s1 + $0x19e8] sm:$0xff] }
 0x239   :  { %10417 = vmatpush2.bf16.msra.mxu0 %v12615_v42  ;;  %v12680_v49 = vcombine.high %v844_v59, %v848_v20  ;;  %v740_v52 = vld [vmem:[%s18571_s1 + $0x1688] sm:$0xff]  ;;  %v12679_v38 = vcombine.low %v844_v59, %v848_v20 }
 0x23a   :  { %10384 = vmatpush2.bf16.msra.mxu1 %v12455_v34  ;;  %10418 = vmatprep.subr.bf16.mxu0 %v12608_v46  ;;  %v744_v63 = vld [vmem:[%s18571_s1 + $0x16a8] sm:$0xff] }
 0x23b   :  { %10385 = vmatprep.subr.bf16.mxu1 %v12448_v48  ;;  %v836_v35 = vld [vmem:[%s18571_s1 + $0x1988] sm:$0xff]  ;;  %v12576_v40 = vcombine.high %v740_v52, %v744_v63 }
 0x23c   :  { %v840_v2 = vld [vmem:[%s18571_s1 + $0x19a8] sm:$0xff] }
 0x23d   :  { %10419 = vmatpush2.bf16.msra.mxu0 %v12607_v61  ;;  %v12672_v42 = vcombine.high %v836_v35, %v840_v2  ;;  %v732_v34 = vld [vmem:[%s18571_s1 + $0x1648] sm:$0xff]  ;;  %v12575_v61 = vcombine.low %v740_v52, %v744_v63 }
 0x23e   :  { %10386 = vmatpush2.bf16.msra.mxu1 %v12447_v60  ;;  %10420 = vmatprep.subr.bf16.mxu0 %v12600_v1  ;;  %v736_v46 = vld [vmem:[%s18571_s1 + $0x1668] sm:$0xff]  ;;  %v12671_v1 = vcombine.low %v836_v35, %v840_v2 }
 0x23f   :  { %10387 = vmatprep.subr.bf16.mxu1 %v12440_v4  ;;  %v828_v51 = vld [vmem:[%s18571_s1 + $0x1948] sm:$0xff]  ;;  %v12568_v4 = vcombine.high %v732_v34, %v736_v46  ;;  %v12567_v19 = vcombine.low %v732_v34, %v736_v46 }
 0x240   :  { %v832_v54 = vld [vmem:[%s18571_s1 + $0x1968] sm:$0xff] }
 0x241   :  { %10421 = vmatpush2.bf16.msra.mxu0 %v12599_v14  ;;  %v12664_v12 = vcombine.high %v828_v51, %v832_v54  ;;  %v728_v14 = vld [vmem:[%s18571_s1 + $0x1628] sm:$0xff]  ;;  %v12663_v20 = vcombine.low %v828_v51, %v832_v54 }
 0x242   :  { %10388 = vmatpush2.bf16.msra.mxu1 %v12439_v7  ;;  %10422 = vmatprep.subr.bf16.mxu0 %v12592_v16  ;;  %v820_v16 = vld [vmem:[%s18571_s1 + $0x1908] sm:$0xff] }
 0x243   :  { %10389 = vmatprep.subr.bf16.mxu1 %v12432_v8  ;;  %v976_v52 = vld [vmem:[%s18571_s1 + $0x1de8] sm:$0xff] }
 0x244   :  { %v812_v63 = vld [vmem:[%s18571_s1 + $0x18c8] sm:$0xff] }
 0x245   :  { %10423 = vmatpush2.bf16.msra.mxu0 %v12591_v36  ;;  %v816_v35 = vld [vmem:[%s18571_s1 + $0x18e8] sm:$0xff] }
 0x246   :  { %10390 = vmatpush2.bf16.msra.mxu1 %v12431_v27  ;;  %10424 = vmatprep.subr.bf16.mxu0 %v12584_v28  ;;  %v968_v34 = vld [vmem:[%s18571_s1 + $0x1da8] sm:$0xff]  ;;  %v12647_v54 = vcombine.low %v812_v63, %v816_v35 }
 0x247   :  { %10441 = vmatprep.subr.bf16.mxu1 %v12680_v49  ;;  %v972_v49 = vld [vmem:[%s18571_s1 + $0x1dc8] sm:$0xff] }
 0x248   :  { %v10106_v48 = vpop.f32.mrf.mxu0  ;;  %v804_v46 = vld [vmem:[%s18571_s1 + $0x1888] sm:$0xff]  ;;  %v12807_v51 = vcombine.low %v972_v49, %v976_v52 }
 0x249   :  { %v10107_v10 = vadd.f32 %v10106_v48, %v15246_v53  ;;  %v10147_v57 = vpop.f32.mrf.mxu1  ;;  %10392 = vmatmul.mubr.bf16.vlgmr.msra.gmra.mxu1 %v14135_v21  ;;  %10425 = vmatpush2.bf16.msra.mxu0 %v12583_v37  ;;  %v724_v53 = vld [vmem:[%s18571_s1 + $0x1608] sm:$0xff] }
 0x24a   :  { %10442 = vmatpush1.bf16.msra.mxu1 %v12679_v38  ;;  %v10108_v60 = vpop.f32.mrf.mxu0  ;;  %10426 = vmatprep.subr.bf16.mxu0 %v12576_v40  ;;  %v12560_v36 = vcombine.high %v724_v53, %v728_v14  ;;  %v12559_v2 = vcombine.low %v724_v53, %v728_v14  ;;  %v12808_v38 = vcombine.high %v972_v49, %v976_v52  ;;  %v808_v48 = vld [vmem:[%s18571_s1 + $0x18a8] sm:$0xff] }
 0x24b   :  { %v10148_v5 = vadd.f32 %v10147_v57, %v10107_v10  ;;  %v10109_v6 = vadd.f32 %v10108_v60, %v15262_v17  ;;  %v10149_v25 = vpop.f32.mrf.mxu1  ;;  %10443 = vmatprep.subr.bf16.mxu1 %v12672_v42  ;;  %10473 = vmatprep.mubr.bf16.mxu1 %v14150_v31  ;;  %v824_v17 = vld [vmem:[%s18571_s1 + $0x1928] sm:$0xff]  ;;  %v12648_v40 = vcombine.high %v812_v63, %v816_v35 }
 0x24c   :  { %v10110_v7 = vpop.f32.mrf.mxu0  ;;  %v12656_v28 = vcombine.high %v820_v16, %v824_v17  ;;  %v12655_v37 = vcombine.low %v820_v16, %v824_v17  ;;  %v964_v42 = vld [vmem:[%s18571_s1 + $0x1d88] sm:$0xff]  ;;  %v12640_v57 = vcombine.high %v804_v46, %v808_v48  ;;  %v12639_v14 = vcombine.low %v804_v46, %v808_v48 }
 0x24d   :  { %v10150_v8 = vadd.f32 %v10149_v25, %v10109_v6  ;;  %v10151_v24 = vpop.f32.mrf.mxu1  ;;  %10427 = vmatpush2.bf16.msra.mxu0 %v12575_v61  ;;  %v12800_v10 = vcombine.high %v964_v42, %v968_v34  ;;  %v956_v61 = vld [vmem:[%s18571_s1 + $0x1d48] sm:$0xff] }
 0x24e   :  { %10444 = vmatpush1.bf16.msra.mxu1 %v12671_v1  ;;  %v10111_v59 = vpop.f32.mrf.mxu0  ;;  %10428 = vmatprep.subr.bf16.mxu0 %v12568_v4  ;;  %v960_v60 = vld [vmem:[%s18571_s1 + $0x1d68] sm:$0xff] }
 0x24f   :  { %v10152_v27 = vpop.f32.mrf.mxu1  ;;  %10445 = vmatprep.subr.bf16.mxu1 %v12664_v12  ;;  %v796_v4 = vld [vmem:[%s18571_s1 + $0x1848] sm:$0xff]  ;;  %v12799_v12 = vcombine.low %v964_v42, %v968_v34  ;;  %v12792_v7 = vcombine.high %v956_v61, %v960_v60 }
 0x250   :  { %v800_v6 = vld [vmem:[%s18571_s1 + $0x1868] sm:$0xff]  ;;  %v12791_v27 = vcombine.low %v956_v61, %v960_v60 }
 0x251   :  { %10429 = vmatpush2.bf16.msra.mxu0 %v12567_v19  ;;  %v12632_v17 = vcombine.high %v796_v4, %v800_v6  ;;  %v948_v24 = vld [vmem:[%s18571_s1 + $0x1d08] sm:$0xff]  ;;  %v12631_v49 = vcombine.low %v796_v4, %v800_v6 }
 0x252   :  { %10446 = vmatpush1.bf16.msra.mxu1 %v12663_v20  ;;  %10430 = vmatprep.subr.bf16.mxu0 %v12560_v36  ;;  %v788_v59 = vld [vmem:[%s18571_s1 + $0x1808] sm:$0xff] }
 0x253   :  { %10447 = vmatprep.subr.bf16.mxu1 %v12656_v28  ;;  %v792_v20 = vld [vmem:[%s18571_s1 + $0x1828] sm:$0xff] }
 0x254   :  { %v12624_v35 = vcombine.high %v788_v59, %v792_v20  ;;  %v12623_v34 = vcombine.low %v788_v59, %v792_v20  ;;  %v924_v6 = vld [vmem:[%s18571_s1 + $0x1c48] sm:$0xff] }
 0x255   :  { %10431 = vmatpush2.bf16.msra.mxu0 %v12559_v2  ;;  %v940_v2 = vld [vmem:[%s18571_s1 + $0x1cc8] sm:$0xff] }
 0x256   :  { %10448 = vmatpush1.bf16.msra.mxu1 %v12655_v37  ;;  %10482 = vmatprep.subr.bf16.mxu0 %v12808_v38  ;;  %v944_v37 = vld [vmem:[%s18571_s1 + $0x1ce8] sm:$0xff] }
 0x257   :  { %10449 = vmatprep.subr.bf16.mxu1 %v12648_v40  ;;  %v908_v38 = vld [vmem:[%s18571_s1 + $0x1bc8] sm:$0xff]  ;;  %v12776_v46 = vcombine.high %v940_v2, %v944_v37  ;;  %v12775_v61 = vcombine.low %v940_v2, %v944_v37 }
 0x258   :  { %v10188_v1 = vpop.f32.mrf.mxu0  ;;  %10433 = vmatmul.mubr.bf16.vlgmr.msra.gmra.mxu0 %v14154_v32  ;;  %v912_v40 = vld [vmem:[%s18571_s1 + $0x1be8] sm:$0xff] }
 0x259   :  { %v10189_v25 = vadd.f32 %v10188_v1, %v10148_v5  ;;  %10483 = vmatpush1.bf16.msra.mxu0 %v12807_v51  ;;  %10514 = vmatprep.mubr.bf16.mxu0 %v14171_v44  ;;  %v952_v5 = vld [vmem:[%s18571_s1 + $0x1d28] sm:$0xff]  ;;  %v12744_v48 = vcombine.high %v908_v38, %v912_v40  ;;  %v12743_v60 = vcombine.low %v908_v38, %v912_v40 }
 0x25a   :  { %10450 = vmatpush1.bf16.msra.mxu1 %v12647_v54  ;;  %v10190_v53 = vpop.f32.mrf.mxu0  ;;  %10484 = vmatprep.subr.bf16.mxu0 %v12800_v10  ;;  %v12784_v52 = vcombine.high %v948_v24, %v952_v5  ;;  %v12783_v42 = vcombine.low %v948_v24, %v952_v5  ;;  %v932_v51 = vld [vmem:[%s18571_s1 + $0x1c88] sm:$0xff] }
 0x25b   :  { %v10191_v16 = vadd.f32 %v10190_v53, %v10150_v8  ;;  %10451 = vmatprep.subr.bf16.mxu1 %v12640_v57  ;;  %v11794_v8 = vmax.f32 %v10189_v25, 0.0  ;;  %v936_v54 = vld [vmem:[%s18571_s1 + $0x1ca8] sm:$0xff] }
 0x25c   :  { %v10192_v19 = vpop.f32.mrf.mxu0  ;;  %v900_v10 = vld [vmem:[%s18571_s1 + $0x1b88] sm:$0xff]  ;;  %v12768_v1 = vcombine.high %v932_v51, %v936_v54 }
 0x25d   :  { %v11795_v36 = vmax.f32 %v10191_v16, 0.0  ;;  %10485 = vmatpush1.bf16.msra.mxu0 %v12799_v12  ;;  %v904_v57 = vld [vmem:[%s18571_s1 + $0x1ba8] sm:$0xff] }
 0x25e   :  { %10452 = vmatpush1.bf16.msra.mxu1 %v12639_v14  ;;  %v10193_v28 = vpop.f32.mrf.mxu0  ;;  %10486 = vmatprep.subr.bf16.mxu0 %v12792_v7  ;;  %v12736_v4 = vcombine.high %v900_v10, %v904_v57  ;;  %v928_v25 = vld [vmem:[%s18571_s1 + $0x1c68] sm:$0xff]  ;;  %v12767_v14 = vcombine.low %v932_v51, %v936_v54  ;;  %v12735_v7 = vcombine.low %v900_v10, %v904_v57 }
 0x25f   :  { %v15512_v63 = vcombine.low %v11794_v8, %v11795_v36  ;;  %10453 = vmatprep.subr.bf16.mxu1 %v12632_v17  ;;  %v892_v12 = vld [vmem:[%s18571_s1 + $0x1b48] sm:$0xff]  ;;  %v12760_v16 = vcombine.high %v924_v6, %v928_v25  ;;  %v12759_v20 = vcombine.low %v924_v6, %v928_v25 }
 0x260   :  { %v896_v53 = vld [vmem:[%s18571_s1 + $0x1b68] sm:$0xff] }
 0x261   :  { %10487 = vmatpush1.bf16.msra.mxu0 %v12791_v27  ;;  %v12728_v17 = vcombine.high %v892_v12, %v896_v53  ;;  %v916_v24 = vld [vmem:[%s18571_s1 + $0x1c08] sm:$0xff]  ;;  %v12727_v8 = vcombine.low %v892_v12, %v896_v53 }
 0x262   :  { %10454 = vmatpush1.bf16.msra.mxu1 %v12631_v49  ;;  %10488 = vmatprep.subr.bf16.mxu0 %v12784_v52  ;;  %v920_v5 = vld [vmem:[%s18571_s1 + $0x1c28] sm:$0xff] }
 0x263   :  { %10455 = vmatprep.subr.bf16.mxu1 %v12624_v35  ;;  %v884_v19 = vld [vmem:[%s18571_s1 + $0x1b08] sm:$0xff]  ;;  %v12752_v36 = vcombine.high %v916_v24, %v920_v5  ;;  %v12751_v2 = vcombine.low %v916_v24, %v920_v5 }
 0x264   :  { %v888_v59 = vld [vmem:[%s18571_s1 + $0x1b28] sm:$0xff] }
 0x265   :  { %10489 = vmatpush1.bf16.msra.mxu0 %v12783_v42  ;;  %v12720_v27 = vcombine.high %v884_v19, %v888_v59  ;;  %v1036_v28 = vld [vmem:[%s18571_s1 + $0x1fc8] sm:$0xff]  ;;  %v12719_v37 = vcombine.low %v884_v19, %v888_v59 }
 0x266   :  { %10456 = vmatpush1.bf16.msra.mxu1 %v12623_v34  ;;  %10490 = vmatprep.subr.bf16.mxu0 %v12776_v46  ;;  %v1040_v49 = vld [vmem:[%s18571_s1 + $0x1fe8] sm:$0xff] }
 0x267   :  { %10457 = vmatprep.subr.bf16.mxu1 %v12744_v48  ;;  %v876_v52 = vld [vmem:[%s18571_s1 + $0x1ac8] sm:$0xff]  ;;  %v12872_v38 = vcombine.high %v1036_v28, %v1040_v49  ;;  %v12871_v51 = vcombine.low %v1036_v28, %v1040_v49 }
 0x268   :  { %v880_v35 = vld [vmem:[%s18571_s1 + $0x1ae8] sm:$0xff] }
 0x269   :  { %10491 = vmatpush1.bf16.msra.mxu0 %v12775_v61  ;;  %v12712_v40 = vcombine.high %v876_v52, %v880_v35  ;;  %v1028_v42 = vld [vmem:[%s18571_s1 + $0x1f88] sm:$0xff]  ;;  %v12711_v54 = vcombine.low %v876_v52, %v880_v35 }
 0x26a   :  { %10458 = vmatpush2.bf16.msra.mxu1 %v12743_v60  ;;  %10492 = vmatprep.subr.bf16.mxu0 %v12768_v1  ;;  %v1032_v34 = vld [vmem:[%s18571_s1 + $0x1fa8] sm:$0xff] }
 0x26b   :  { %10459 = vmatprep.subr.bf16.mxu1 %v12736_v4  ;;  %v868_v46 = vld [vmem:[%s18571_s1 + $0x1a88] sm:$0xff]  ;;  %v12864_v10 = vcombine.high %v1028_v42, %v1032_v34  ;;  %v12863_v6 = vcombine.low %v1028_v42, %v1032_v34 }
 0x26c   :  { %v872_v48 = vld [vmem:[%s18571_s1 + $0x1aa8] sm:$0xff] }
 0x26d   :  { %10493 = vmatpush1.bf16.msra.mxu0 %v12767_v14  ;;  %v12704_v57 = vcombine.high %v868_v46, %v872_v48  ;;  %v1020_v61 = vld [vmem:[%s18571_s1 + $0x1f48] sm:$0xff]  ;;  %v12703_v25 = vcombine.low %v868_v46, %v872_v48 }
 0x26e   :  { %10460 = vmatpush2.bf16.msra.mxu1 %v12735_v7  ;;  %10494 = vmatprep.subr.bf16.mxu0 %v12760_v16  ;;  %v1024_v60 = vld [vmem:[%s18571_s1 + $0x1f68] sm:$0xff] }
 0x26f   :  { %10461 = vmatprep.subr.bf16.mxu1 %v12728_v17  ;;  %v860_v1 = vld [vmem:[%s18571_s1 + $0x1a48] sm:$0xff]  ;;  %v12856_v12 = vcombine.high %v1020_v61, %v1024_v60  ;;  %v12855_v24 = vcombine.low %v1020_v61, %v1024_v60 }
 0x270   :  { %v864_v4 = vld [vmem:[%s18571_s1 + $0x1a68] sm:$0xff] }
 0x271   :  { %10495 = vmatpush1.bf16.msra.mxu0 %v12759_v20  ;;  %v12696_v53 = vcombine.high %v860_v1, %v864_v4  ;;  %v1012_v14 = vld [vmem:[%s18571_s1 + $0x1f08] sm:$0xff]  ;;  %v12695_v5 = vcombine.low %v860_v1, %v864_v4 }
 0x272   :  { %10462 = vmatpush2.bf16.msra.mxu1 %v12727_v8  ;;  %10496 = vmatprep.subr.bf16.mxu0 %v12752_v36  ;;  %v1016_v7 = vld [vmem:[%s18571_s1 + $0x1f28] sm:$0xff] }
 0x273   :  { %10463 = vmatprep.subr.bf16.mxu1 %v12720_v27  ;;  %v852_v16 = vld [vmem:[%s18571_s1 + $0x1a08] sm:$0xff]  ;;  %v12848_v19 = vcombine.high %v1012_v14, %v1016_v7  ;;  %v12847_v28 = vcombine.low %v1012_v14, %v1016_v7 }
 0x274   :  { %v856_v17 = vld [vmem:[%s18571_s1 + $0x1a28] sm:$0xff] }
 0x275   :  { %10497 = vmatpush1.bf16.msra.mxu0 %v12751_v2  ;;  %v12688_v59 = vcombine.high %v852_v16, %v856_v17  ;;  %v1004_v20 = vld [vmem:[%s18571_s1 + $0x1ec8] sm:$0xff]  ;;  %v12687_v49 = vcombine.low %v852_v16, %v856_v17 }
 0x276   :  { %10464 = vmatpush2.bf16.msra.mxu1 %v12719_v37  ;;  %10498 = vmatprep.subr.bf16.mxu0 %v12872_v38  ;;  %v1008_v8 = vld [vmem:[%s18571_s1 + $0x1ee8] sm:$0xff] }
 0x277   :  { %10465 = vmatprep.subr.bf16.mxu1 %v12712_v40  ;;  %v1100_v36 = vld [vmem:[%s18571_s1 + $0x21c8] sm:$0xff]  ;;  %v12840_v52 = vcombine.high %v1004_v20, %v1008_v8  ;;  %v12839_v42 = vcombine.low %v1004_v20, %v1008_v8 }
 0x278   :  { %v1104_v27 = vld [vmem:[%s18571_s1 + $0x21e8] sm:$0xff] }
 0x279   :  { %10499 = vmatpush2.bf16.msra.mxu0 %v12871_v51  ;;  %v12936_v35 = vcombine.high %v1100_v36, %v1104_v27  ;;  %v996_v2 = vld [vmem:[%s18571_s1 + $0x1e88] sm:$0xff]  ;;  %v12935_v34 = vcombine.low %v1100_v36, %v1104_v27 }
 0x27a   :  { %10466 = vmatpush2.bf16.msra.mxu1 %v12711_v54  ;;  %10500 = vmatprep.subr.bf16.mxu0 %v12864_v10  ;;  %v1000_v37 = vld [vmem:[%s18571_s1 + $0x1ea8] sm:$0xff] }
 0x27b   :  { %10467 = vmatprep.subr.bf16.mxu1 %v12704_v57  ;;  %v1092_v38 = vld [vmem:[%s18571_s1 + $0x2188] sm:$0xff]  ;;  %v12832_v46 = vcombine.high %v996_v2, %v1000_v37  ;;  %v12831_v60 = vcombine.low %v996_v2, %v1000_v37  ;;  %v13431_v37 = vld [vmem:[%s18573_s2] sm:$0xff] }
 0x27c   :  { %v1096_v40 = vld [vmem:[%s18571_s1 + $0x21a8] sm:$0xff] }
 0x27d   :  { %10501 = vmatpush2.bf16.msra.mxu0 %v12863_v6  ;;  %v12928_v48 = vcombine.high %v1092_v38, %v1096_v40  ;;  %v988_v51 = vld [vmem:[%s18571_s1 + $0x1e48] sm:$0xff]  ;;  %v12927_v1 = vcombine.low %v1092_v38, %v1096_v40 }
 0x27e   :  { %10468 = vmatpush2.bf16.msra.mxu1 %v12703_v25  ;;  %10502 = vmatprep.subr.bf16.mxu0 %v12856_v12  ;;  %v992_v54 = vld [vmem:[%s18571_s1 + $0x1e68] sm:$0xff] }
 0x27f   :  { %10469 = vmatprep.subr.bf16.mxu1 %v12696_v53  ;;  %v1084_v10 = vld [vmem:[%s18571_s1 + $0x2148] sm:$0xff]  ;;  %v12824_v4 = vcombine.high %v988_v51, %v992_v54  ;;  %v12823_v17 = vcombine.low %v988_v51, %v992_v54 }
 0x280   :  { %v1088_v57 = vld [vmem:[%s18571_s1 + $0x2168] sm:$0xff] }
 0x281   :  { %10503 = vmatpush2.bf16.msra.mxu0 %v12855_v24  ;;  %v12920_v25 = vcombine.high %v1084_v10, %v1088_v57  ;;  %v980_v12 = vld [vmem:[%s18571_s1 + $0x1e08] sm:$0xff]  ;;  %v12919_v24 = vcombine.low %v1084_v10, %v1088_v57 }
 0x282   :  { %10470 = vmatpush2.bf16.msra.mxu1 %v12695_v5  ;;  %10504 = vmatprep.subr.bf16.mxu0 %v12848_v19  ;;  %v984_v53 = vld [vmem:[%s18571_s1 + $0x1e28] sm:$0xff]  ;;  %v1599_v19 = vsub.s32 2, %v13523_v43 }
 0x283   :  { %10471 = vmatprep.subr.bf16.mxu1 %v12688_v59  ;;  %v1076_v14 = vld [vmem:[%s18571_s1 + $0x2108] sm:$0xff]  ;;  %v12816_v5 = vcombine.high %v980_v12, %v984_v53 }
 0x284   :  { %v1080_v7 = vld [vmem:[%s18571_s1 + $0x2128] sm:$0xff]  ;;  %v1600_v38 = vrot.slane %v13431_v37, %v1599_v19 }
 0x285   :  { %10505 = vmatpush2.bf16.msra.mxu0 %v12847_v28  ;;  %v12912_v20 = vcombine.high %v1076_v14, %v1080_v7  ;;  %v1228_v8 = vld [vmem:[%s18571_s1 + $0x25c8] sm:$0xff] }
 0x286   :  { %10472 = vmatpush2.bf16.msra.mxu1 %v12687_v49  ;;  %10506 = vmatprep.subr.bf16.mxu0 %v12840_v52  ;;  %v1232_v36 = vld [vmem:[%s18571_s1 + $0x25e8] sm:$0xff]  ;;  %v1603_v49 = vsub.s32 3, %v13523_v43  ;;  %v12815_v52 = vcombine.low %v980_v12, %v984_v53 }
 0x287   :  { %10523 = vmatprep.subr.bf16.mxu1 %v12936_v35  ;;  %v1068_v27 = vld [vmem:[%s18571_s1 + $0x20c8] sm:$0xff]  ;;  %v12911_v35 = vcombine.low %v1076_v14, %v1080_v7  ;;  %v13064_v2 = vcombine.high %v1228_v8, %v1232_v36  ;;  %v13063_v54 = vcombine.low %v1228_v8, %v1232_v36 }
 0x288   :  { %v1072_v28 = vld [vmem:[%s18571_s1 + $0x20e8] sm:$0xff]  ;;  %v1604_v51 = vrot.slane %v13431_v37, %v1603_v49 }
 0x289   :  { %v10229_v61 = vpop.f32.mrf.mxu1  ;;  %10474 = vmatmul.mubr.bf16.vlgmr.msra.gmra.mxu1 %v14358_v11  ;;  %10507 = vmatpush2.bf16.msra.mxu0 %v12839_v42  ;;  %v12904_v40 = vcombine.high %v1068_v27, %v1072_v28  ;;  %v1220_v42 = vld [vmem:[%s18571_s1 + $0x2588] sm:$0xff]  ;;  %v12903_v10 = vcombine.low %v1068_v27, %v1072_v28 }
 0x28a   :  { %10524 = vmatpush1.bf16.msra.mxu1 %v12935_v34  ;;  %10508 = vmatprep.subr.bf16.mxu0 %v12832_v46  ;;  %v1224_v34 = vld [vmem:[%s18571_s1 + $0x25a8] sm:$0xff] }
 0x28b   :  { %v10231_v6 = vpop.f32.mrf.mxu1  ;;  %10525 = vmatprep.subr.bf16.mxu1 %v12928_v48  ;;  %10555 = vmatprep.mubr.bf16.mxu1 %v14377_v23  ;;  %v1060_v46 = vld [vmem:[%s18571_s1 + $0x2088] sm:$0xff]  ;;  %v13056_v57 = vcombine.high %v1220_v42, %v1224_v34 }
 0x28c   :  { %v1064_v48 = vld [vmem:[%s18571_s1 + $0x20a8] sm:$0xff]  ;;  %v10232_v14 = vadd.f32 %v10231_v6, %v1604_v51 }
 0x28d   :  { %v10233_v16 = vpop.f32.mrf.mxu1  ;;  %10509 = vmatpush2.bf16.msra.mxu0 %v12831_v60  ;;  %v10230_v60 = vadd.f32 %v10229_v61, %v1600_v38  ;;  %v1052_v53 = vld [vmem:[%s18571_s1 + $0x2048] sm:$0xff] }
 0x28e   :  { %10526 = vmatpush1.bf16.msra.mxu1 %v12927_v1  ;;  %10510 = vmatprep.subr.bf16.mxu0 %v12824_v4  ;;  %v12896_v1 = vcombine.high %v1060_v46, %v1064_v48  ;;  %v1212_v4 = vld [vmem:[%s18571_s1 + $0x2548] sm:$0xff]  ;;  %v13055_v16 = vcombine.low %v1220_v42, %v1224_v34 }
 0x28f   :  { %v10234_v59 = vpop.f32.mrf.mxu1  ;;  %10527 = vmatprep.subr.bf16.mxu1 %v12920_v25  ;;  %v1216_v25 = vld [vmem:[%s18571_s1 + $0x2568] sm:$0xff] }
 0x290   :  { %v1056_v61 = vld [vmem:[%s18571_s1 + $0x2068] sm:$0xff]  ;;  %v13047_v28 = vcombine.low %v1212_v4, %v1216_v25 }
 0x291   :  { %10511 = vmatpush2.bf16.msra.mxu0 %v12823_v17  ;;  %v12888_v59 = vcombine.high %v1052_v53, %v1056_v61  ;;  %v1208_v6 = vld [vmem:[%s18571_s1 + $0x2528] sm:$0xff] }
 0x292   :  { %10528 = vmatpush1.bf16.msra.mxu1 %v12919_v24  ;;  %10512 = vmatprep.subr.bf16.mxu0 %v12816_v5  ;;  %v12895_v24 = vcombine.low %v1060_v46, %v1064_v48  ;;  %v13048_v5 = vcombine.high %v1212_v4, %v1216_v25  ;;  %v1044_v36 = vld [vmem:[%s18571_s1 + $0x2008] sm:$0xff] }
 0x293   :  { %10529 = vmatprep.subr.bf16.mxu1 %v12912_v20  ;;  %v1204_v20 = vld [vmem:[%s18571_s1 + $0x2508] sm:$0xff] }
 0x294   :  { %v1048_v27 = vld [vmem:[%s18571_s1 + $0x2028] sm:$0xff]  ;;  %v13039_v34 = vcombine.low %v1204_v20, %v1208_v6 }
 0x295   :  { %10513 = vmatpush2.bf16.msra.mxu0 %v12815_v52  ;;  %v12887_v52 = vcombine.low %v1052_v53, %v1056_v61  ;;  %v1196_v37 = vld [vmem:[%s18571_s1 + $0x24c8] sm:$0xff]  ;;  %v12879_v46 = vcombine.low %v1044_v36, %v1048_v27 }
 0x296   :  { %10530 = vmatpush1.bf16.msra.mxu1 %v12911_v35  ;;  %10564 = vmatprep.subr.bf16.mxu0 %v13064_v2  ;;  %v13040_v35 = vcombine.high %v1204_v20, %v1208_v6  ;;  %v12880_v2 = vcombine.high %v1044_v36, %v1048_v27  ;;  %v1200_v38 = vld [vmem:[%s18571_s1 + $0x24e8] sm:$0xff] }
 0x297   :  { %10531 = vmatprep.subr.bf16.mxu1 %v12904_v40  ;;  %v1164_v40 = vld [vmem:[%s18571_s1 + $0x23c8] sm:$0xff]  ;;  %v13032_v48 = vcombine.high %v1196_v37, %v1200_v38 }
 0x298   :  { %v10270_v12 = vpop.f32.mrf.mxu0  ;;  %10515 = vmatmul.mubr.bf16.vlgmr.msra.gmra.mxu0 %v14381_v26  ;;  %v1168_v42 = vld [vmem:[%s18571_s1 + $0x23e8] sm:$0xff] }
 0x299   :  { %v15702_v7 = vadd.f32 %v10270_v12, %v10230_v60  ;;  %10565 = vmatpush1.bf16.msra.mxu0 %v13063_v54  ;;  %10596 = vmatprep.mubr.bf16.mxu0 %v14398_v41  ;;  %v13000_v51 = vcombine.high %v1164_v40, %v1168_v42  ;;  %v1188_v54 = vld [vmem:[%s18571_s1 + $0x2488] sm:$0xff]  ;;  %v12999_v4 = vcombine.low %v1164_v40, %v1168_v42 }
 0x29a   :  { %10532 = vmatpush1.bf16.msra.mxu1 %v12903_v10  ;;  %v10272_v17 = vpop.f32.mrf.mxu0  ;;  %10566 = vmatprep.subr.bf16.mxu0 %v13056_v57  ;;  %v1192_v10 = vld [vmem:[%s18571_s1 + $0x24a8] sm:$0xff] }
 0x29b   :  { %v15705_v19 = vadd.f32 %v10272_v17, %v10232_v14  ;;  %10533 = vmatprep.subr.bf16.mxu1 %v12896_v1  ;;  %v1156_v57 = vld [vmem:[%s18571_s1 + $0x2388] sm:$0xff]  ;;  %v13031_v1 = vcombine.low %v1196_v37, %v1200_v38  ;;  %v13024_v25 = vcombine.high %v1188_v54, %v1192_v10  ;;  %v13023_v17 = vcombine.low %v1188_v54, %v1192_v10 }
 0x29c   :  { %v10274_v8 = vpop.f32.mrf.mxu0  ;;  %v1160_v60 = vld [vmem:[%s18571_s1 + $0x23a8] sm:$0xff] }
 0x29d   :  { %10567 = vmatpush1.bf16.msra.mxu0 %v13055_v16  ;;  %v12992_v12 = vcombine.high %v1156_v57, %v1160_v60  ;;  %v1180_v53 = vld [vmem:[%s18571_s1 + $0x2448] sm:$0xff] }
 0x29e   :  { %10534 = vmatpush1.bf16.msra.mxu1 %v12895_v24  ;;  %v10275_v49 = vpop.f32.mrf.mxu0  ;;  %10568 = vmatprep.subr.bf16.mxu0 %v13048_v5  ;;  %v1184_v61 = vld [vmem:[%s18571_s1 + $0x2468] sm:$0xff]  ;;  %v12991_v24 = vcombine.low %v1156_v57, %v1160_v60 }
 0x29f   :  { %10535 = vmatprep.subr.bf16.mxu1 %v12888_v59  ;;  %v1148_v14 = vld [vmem:[%s18571_s1 + $0x2348] sm:$0xff]  ;;  %v13016_v5 = vcombine.high %v1180_v53, %v1184_v61  ;;  %v13015_v27 = vcombine.low %v1180_v53, %v1184_v61 }
 0x2a0   :  { %v1152_v16 = vld [vmem:[%s18571_s1 + $0x2368] sm:$0xff] }
 0x2a1   :  { %10569 = vmatpush1.bf16.msra.mxu0 %v13047_v28  ;;  %v12984_v59 = vcombine.high %v1148_v14, %v1152_v16  ;;  %v1172_v20 = vld [vmem:[%s18571_s1 + $0x2408] sm:$0xff]  ;;  %v12983_v28 = vcombine.low %v1148_v14, %v1152_v16 }
 0x2a2   :  { %10536 = vmatpush1.bf16.msra.mxu1 %v12887_v52  ;;  %10570 = vmatprep.subr.bf16.mxu0 %v13040_v35  ;;  %v1176_v6 = vld [vmem:[%s18571_s1 + $0x2428] sm:$0xff] }
 0x2a3   :  { %10537 = vmatprep.subr.bf16.mxu1 %v12880_v2  ;;  %v1140_v8 = vld [vmem:[%s18571_s1 + $0x2308] sm:$0xff]  ;;  %v13008_v49 = vcombine.high %v1172_v20, %v1176_v6  ;;  %v13007_v40 = vcombine.low %v1172_v20, %v1176_v6 }
 0x2a4   :  { %v1144_v36 = vld [vmem:[%s18571_s1 + $0x2328] sm:$0xff] }
 0x2a5   :  { %10571 = vmatpush1.bf16.msra.mxu0 %v13039_v34  ;;  %v12976_v52 = vcombine.high %v1140_v8, %v1144_v36  ;;  %v1292_v35 = vld [vmem:[%s18571_s1 + $0x27c8] sm:$0xff]  ;;  %v12975_v42 = vcombine.low %v1140_v8, %v1144_v36 }
 0x2a6   :  { %10538 = vmatpush1.bf16.msra.mxu1 %v12879_v46  ;;  %10572 = vmatprep.subr.bf16.mxu0 %v13032_v48  ;;  %v1296_v2 = vld [vmem:[%s18571_s1 + $0x27e8] sm:$0xff] }
 0x2a7   :  { %10539 = vmatprep.subr.bf16.mxu1 %v13000_v51  ;;  %v1132_v37 = vld [vmem:[%s18571_s1 + $0x22c8] sm:$0xff]  ;;  %v13128_v34 = vcombine.high %v1292_v35, %v1296_v2  ;;  %v13127_v57 = vcombine.low %v1292_v35, %v1296_v2 }
 0x2a8   :  { %v1136_v38 = vld [vmem:[%s18571_s1 + $0x22e8] sm:$0xff] }
 0x2a9   :  { %10573 = vmatpush1.bf16.msra.mxu0 %v13031_v1  ;;  %v12968_v46 = vcombine.high %v1132_v37, %v1136_v38  ;;  %v1284_v48 = vld [vmem:[%s18571_s1 + $0x2788] sm:$0xff]  ;;  %v12967_v60 = vcombine.low %v1132_v37, %v1136_v38 }
 0x2aa   :  { %10540 = vmatpush2.bf16.msra.mxu1 %v12999_v4  ;;  %10574 = vmatprep.subr.bf16.mxu0 %v13024_v25  ;;  %v1288_v51 = vld [vmem:[%s18571_s1 + $0x27a8] sm:$0xff] }
 0x2ab   :  { %10541 = vmatprep.subr.bf16.mxu1 %v12992_v12  ;;  %v1124_v54 = vld [vmem:[%s18571_s1 + $0x2288] sm:$0xff]  ;;  %v13120_v1 = vcombine.high %v1284_v48, %v1288_v51  ;;  %v13119_v14 = vcombine.low %v1284_v48, %v1288_v51 }
 0x2ac   :  { %v1128_v10 = vld [vmem:[%s18571_s1 + $0x22a8] sm:$0xff] }
 0x2ad   :  { %10575 = vmatpush1.bf16.msra.mxu0 %v13023_v17  ;;  %v12960_v4 = vcombine.high %v1124_v54, %v1128_v10  ;;  %v1276_v25 = vld [vmem:[%s18571_s1 + $0x2748] sm:$0xff]  ;;  %v12959_v16 = vcombine.low %v1124_v54, %v1128_v10 }
 0x2ae   :  { %10542 = vmatpush2.bf16.msra.mxu1 %v12991_v24  ;;  %10576 = vmatprep.subr.bf16.mxu0 %v13016_v5  ;;  %v1280_v12 = vld [vmem:[%s18571_s1 + $0x2768] sm:$0xff] }
 0x2af   :  { %10543 = vmatprep.subr.bf16.mxu1 %v12984_v59  ;;  %v1116_v53 = vld [vmem:[%s18571_s1 + $0x2248] sm:$0xff]  ;;  %v13112_v17 = vcombine.high %v1276_v25, %v1280_v12  ;;  %v13111_v8 = vcombine.low %v1276_v25, %v1280_v12 }
 0x2b0   :  { %v1120_v61 = vld [vmem:[%s18571_s1 + $0x2268] sm:$0xff] }
 0x2b1   :  { %10577 = vmatpush1.bf16.msra.mxu0 %v13015_v27  ;;  %v12952_v24 = vcombine.high %v1116_v53, %v1120_v61  ;;  %v1268_v5 = vld [vmem:[%s18571_s1 + $0x2708] sm:$0xff]  ;;  %v12951_v36 = vcombine.low %v1116_v53, %v1120_v61 }
 0x2b2   :  { %10544 = vmatpush2.bf16.msra.mxu1 %v12983_v28  ;;  %10578 = vmatprep.subr.bf16.mxu0 %v13008_v49  ;;  %v1272_v59 = vld [vmem:[%s18571_s1 + $0x2728] sm:$0xff] }
 0x2b3   :  { %10545 = vmatprep.subr.bf16.mxu1 %v12976_v52  ;;  %v1108_v20 = vld [vmem:[%s18571_s1 + $0x2208] sm:$0xff]  ;;  %v13104_v27 = vcombine.high %v1268_v5, %v1272_v59  ;;  %v13103_v37 = vcombine.low %v1268_v5, %v1272_v59 }
 0x2b4   :  { %v1112_v6 = vld [vmem:[%s18571_s1 + $0x2228] sm:$0xff] }
 0x2b5   :  { %10579 = vmatpush1.bf16.msra.mxu0 %v13007_v40  ;;  %v12944_v28 = vcombine.high %v1108_v20, %v1112_v6  ;;  %v1260_v49 = vld [vmem:[%s18571_s1 + $0x26c8] sm:$0xff]  ;;  %v12943_v38 = vcombine.low %v1108_v20, %v1112_v6 }
 0x2b6   :  { %10546 = vmatpush2.bf16.msra.mxu1 %v12975_v42  ;;  %10580 = vmatprep.subr.bf16.mxu0 %v13128_v34  ;;  %v1264_v52 = vld [vmem:[%s18571_s1 + $0x26e8] sm:$0xff] }
 0x2b7   :  { %10547 = vmatprep.subr.bf16.mxu1 %v12968_v46  ;;  %v1356_v35 = vld [vmem:[%s18571_s1 + $0x29c8] sm:$0xff]  ;;  %v13096_v40 = vcombine.high %v1260_v49, %v1264_v52  ;;  %v13095_v54 = vcombine.low %v1260_v49, %v1264_v52 }
 0x2b8   :  { %v1360_v2 = vld [vmem:[%s18571_s1 + $0x29e8] sm:$0xff] }
 0x2b9   :  { %10581 = vmatpush2.bf16.msra.mxu0 %v13127_v57  ;;  %v13192_v42 = vcombine.high %v1356_v35, %v1360_v2  ;;  %v1252_v34 = vld [vmem:[%s18571_s1 + $0x2688] sm:$0xff]  ;;  %v13191_v10 = vcombine.low %v1356_v35, %v1360_v2 }
 0x2ba   :  { %10548 = vmatpush2.bf16.msra.mxu1 %v12967_v60  ;;  %10582 = vmatprep.subr.bf16.mxu0 %v13120_v1  ;;  %v1256_v46 = vld [vmem:[%s18571_s1 + $0x26a8] sm:$0xff] }
 0x2bb   :  { %10549 = vmatprep.subr.bf16.mxu1 %v12960_v4  ;;  %v1348_v48 = vld [vmem:[%s18571_s1 + $0x2988] sm:$0xff]  ;;  %v13088_v57 = vcombine.high %v1252_v34, %v1256_v46  ;;  %v13087_v61 = vcombine.low %v1252_v34, %v1256_v46 }
 0x2bc   :  { %v1352_v51 = vld [vmem:[%s18571_s1 + $0x29a8] sm:$0xff] }
 0x2bd   :  { %10583 = vmatpush2.bf16.msra.mxu0 %v13119_v14  ;;  %v13184_v60 = vcombine.high %v1348_v48, %v1352_v51  ;;  %v1244_v1 = vld [vmem:[%s18571_s1 + $0x2648] sm:$0xff] }
 0x2be   :  { %10550 = vmatpush2.bf16.msra.mxu1 %v12959_v16  ;;  %10584 = vmatprep.subr.bf16.mxu0 %v13112_v17  ;;  %v1248_v4 = vld [vmem:[%s18571_s1 + $0x2668] sm:$0xff]  ;;  %v13183_v16 = vcombine.low %v1348_v48, %v1352_v51 }
 0x2bf   :  { %10551 = vmatprep.subr.bf16.mxu1 %v12952_v24  ;;  %v1340_v25 = vld [vmem:[%s18571_s1 + $0x2948] sm:$0xff]  ;;  %v13080_v17 = vcombine.high %v1244_v1, %v1248_v4 }
 0x2c0   :  { %v1344_v12 = vld [vmem:[%s18571_s1 + $0x2968] sm:$0xff] }
 0x2c1   :  { %10585 = vmatpush2.bf16.msra.mxu0 %v13111_v8  ;;  %v13176_v5 = vcombine.high %v1340_v25, %v1344_v12  ;;  %v1236_v59 = vld [vmem:[%s18571_s1 + $0x2608] sm:$0xff] }
 0x2c2   :  { %10552 = vmatpush2.bf16.msra.mxu1 %v12951_v36  ;;  %10586 = vmatprep.subr.bf16.mxu0 %v13104_v27  ;;  %v1240_v20 = vld [vmem:[%s18571_s1 + $0x2628] sm:$0xff]  ;;  %v13079_v27 = vcombine.low %v1244_v1, %v1248_v4 }
 0x2c3   :  { %10553 = vmatprep.subr.bf16.mxu1 %v12944_v28  ;;  %v1336_v8 = vld [vmem:[%s18571_s1 + $0x2928] sm:$0xff]  ;;  %v13175_v28 = vcombine.low %v1340_v25, %v1344_v12  ;;  %v13072_v49 = vcombine.high %v1236_v59, %v1240_v20 }
 0x2c4   :  { %v1488_v2 = vld [vmem:[%s18571_s1 + $0x2de8] sm:$0xff] }
 0x2c5   :  { %10587 = vmatpush2.bf16.msra.mxu0 %v13103_v37  ;;  %v1324_v37 = vld [vmem:[%s18571_s1 + $0x28c8] sm:$0xff] }
 0x2c6   :  { %10554 = vmatpush2.bf16.msra.mxu1 %v12943_v38  ;;  %10588 = vmatprep.subr.bf16.mxu0 %v13096_v40  ;;  %v1328_v38 = vld [vmem:[%s18571_s1 + $0x28e8] sm:$0xff]  ;;  %v13071_v40 = vcombine.low %v1236_v59, %v1240_v20 }
 0x2c7   :  { %10605 = vmatprep.subr.bf16.mxu1 %v13192_v42  ;;  %v13160_v46 = vcombine.high %v1324_v37, %v1328_v38  ;;  %v1476_v48 = vld [vmem:[%s18571_s1 + $0x2d88] sm:$0xff] }
 0x2c8   :  { %v1480_v51 = vld [vmem:[%s18571_s1 + $0x2da8] sm:$0xff] }
 0x2c9   :  { %v10311_v53 = vpop.f32.mrf.mxu1  ;;  %10556 = vmatmul.mubr.bf16.vlgmr.msra.gmra.mxu1 %v14584_v50  ;;  %10589 = vmatpush2.bf16.msra.mxu0 %v13095_v54  ;;  %v1316_v54 = vld [vmem:[%s18571_s1 + $0x2888] sm:$0xff]  ;;  %v13312_v1 = vcombine.high %v1476_v48, %v1480_v51 }
 0x2ca   :  { %v10312_v14 = vadd.f32 %v10311_v53, %v15702_v7  ;;  %10606 = vmatpush1.bf16.msra.mxu1 %v13191_v10  ;;  %10590 = vmatprep.subr.bf16.mxu0 %v13088_v57  ;;  %v1332_v7 = vld [vmem:[%s18571_s1 + $0x2908] sm:$0xff] }
 0x2cb   :  { %v10313_v24 = vpop.f32.mrf.mxu1  ;;  %10607 = vmatprep.subr.bf16.mxu1 %v13184_v60  ;;  %10637 = vmatprep.mubr.bf16.mxu1 %v14599_v62  ;;  %v13168_v35 = vcombine.high %v1332_v7, %v1336_v8  ;;  %v13167_v42 = vcombine.low %v1332_v7, %v1336_v8  ;;  %v1320_v10 = vld [vmem:[%s18571_s1 + $0x28a8] sm:$0xff]  ;;  %v13159_v60 = vcombine.low %v1324_v37, %v1328_v38 }
 0x2cc   :  { %v10314_v6 = vadd.f32 %v10313_v24, %v15705_v19  ;;  %v1484_v19 = vld [vmem:[%s18571_s1 + $0x2dc8] sm:$0xff]  ;;  %v13152_v4 = vcombine.high %v1316_v54, %v1320_v10  ;;  %v13311_v24 = vcombine.low %v1476_v48, %v1480_v51  ;;  %v13151_v59 = vcombine.low %v1316_v54, %v1320_v10 }
 0x2cd   :  { %v10315_v36 = vpop.f32.mrf.mxu1  ;;  %10591 = vmatpush2.bf16.msra.mxu0 %v13087_v61  ;;  %v13320_v34 = vcombine.high %v1484_v19, %v1488_v2  ;;  %v13319_v57 = vcombine.low %v1484_v19, %v1488_v2  ;;  %v1468_v25 = vld [vmem:[%s18571_s1 + $0x2d48] sm:$0xff] }
 0x2ce   :  { %10608 = vmatpush1.bf16.msra.mxu1 %v13183_v16  ;;  %10592 = vmatprep.subr.bf16.mxu0 %v13080_v17  ;;  %v1472_v12 = vld [vmem:[%s18571_s1 + $0x2d68] sm:$0xff] }
 0x2cf   :  { %v10316_v52 = vpop.f32.mrf.mxu1  ;;  %10609 = vmatprep.subr.bf16.mxu1 %v13176_v5  ;;  %v1308_v61 = vld [vmem:[%s18571_s1 + $0x2848] sm:$0xff]  ;;  %v13304_v20 = vcombine.high %v1468_v25, %v1472_v12 }
 0x2d0   :  { %v1312_v16 = vld [vmem:[%s18571_s1 + $0x2868] sm:$0xff] }
 0x2d1   :  { %10593 = vmatpush2.bf16.msra.mxu0 %v13079_v27  ;;  %v13144_v8 = vcombine.high %v1308_v61, %v1312_v16  ;;  %v1460_v36 = vld [vmem:[%s18571_s1 + $0x2d08] sm:$0xff] }
 0x2d2   :  { %10610 = vmatpush1.bf16.msra.mxu1 %v13175_v28  ;;  %10594 = vmatprep.subr.bf16.mxu0 %v13072_v49  ;;  %v1300_v28 = vld [vmem:[%s18571_s1 + $0x2808] sm:$0xff]  ;;  %v13303_v49 = vcombine.low %v1468_v25, %v1472_v12 }
 0x2d3   :  { %10611 = vmatprep.subr.bf16.mxu1 %v13168_v35  ;;  %v13143_v35 = vcombine.low %v1308_v61, %v1312_v16  ;;  %v1452_v37 = vld [vmem:[%s18571_s1 + $0x2cc8] sm:$0xff] }
 0x2d4   :  { %v1456_v38 = vld [vmem:[%s18571_s1 + $0x2ce8] sm:$0xff] }
 0x2d5   :  { %10595 = vmatpush2.bf16.msra.mxu0 %v13071_v40  ;;  %v1420_v40 = vld [vmem:[%s18571_s1 + $0x2bc8] sm:$0xff]  ;;  %v13288_v48 = vcombine.high %v1452_v37, %v1456_v38 }
 0x2d6   :  { %10612 = vmatpush1.bf16.msra.mxu1 %v13167_v42  ;;  %10646 = vmatprep.subr.bf16.mxu0 %v13320_v34  ;;  %v1424_v42 = vld [vmem:[%s18571_s1 + $0x2be8] sm:$0xff] }
 0x2d7   :  { %10613 = vmatprep.subr.bf16.mxu1 %v13160_v46  ;;  %v13256_v51 = vcombine.high %v1420_v40, %v1424_v42  ;;  %v1444_v54 = vld [vmem:[%s18571_s1 + $0x2c88] sm:$0xff] }
 0x2d8   :  { %v10352_v53 = vpop.f32.mrf.mxu0  ;;  %10597 = vmatmul.mubr.bf16.vlgmr.msra.gmra.mxu0 %v14603_v0  ;;  %v1448_v10 = vld [vmem:[%s18571_s1 + $0x2ca8] sm:$0xff] }
 0x2d9   :  { %v15904_v17 = vadd.f32 %v10352_v53, %v10312_v14  ;;  %10647 = vmatpush1.bf16.msra.mxu0 %v13319_v57  ;;  %10678 = vmatprep.mubr.bf16.mxu0 %v14620_v15  ;;  %v1464_v14 = vld [vmem:[%s18571_s1 + $0x2d28] sm:$0xff]  ;;  %v13280_v25 = vcombine.high %v1444_v54, %v1448_v10 }
 0x2da   :  { %10614 = vmatpush1.bf16.msra.mxu1 %v13159_v60  ;;  %v10354_v5 = vpop.f32.mrf.mxu0  ;;  %10648 = vmatprep.subr.bf16.mxu0 %v13312_v1  ;;  %v13296_v19 = vcombine.high %v1460_v36, %v1464_v14  ;;  %v13295_v34 = vcombine.low %v1460_v36, %v1464_v14  ;;  %v1412_v57 = vld [vmem:[%s18571_s1 + $0x2b88] sm:$0xff]  ;;  %v13287_v1 = vcombine.low %v1452_v37, %v1456_v38 }
 0x2db   :  { %v15907_v7 = vadd.f32 %v10354_v5, %v10314_v6  ;;  %10615 = vmatprep.subr.bf16.mxu1 %v13152_v4  ;;  %v1304_v6 = vld [vmem:[%s18571_s1 + $0x2828] sm:$0xff]  ;;  %v13255_v4 = vcombine.low %v1420_v40, %v1424_v42  ;;  %v13279_v5 = vcombine.low %v1444_v54, %v1448_v10 }
 0x2dc   :  { %v10356_v27 = vpop.f32.mrf.mxu0  ;;  %v13136_v2 = vcombine.high %v1300_v28, %v1304_v6  ;;  %v13135_v46 = vcombine.low %v1300_v28, %v1304_v6  ;;  %v1416_v60 = vld [vmem:[%s18571_s1 + $0x2ba8] sm:$0xff] }
 0x2dd   :  { %10649 = vmatpush1.bf16.msra.mxu0 %v13311_v24  ;;  %v13248_v12 = vcombine.high %v1412_v57, %v1416_v60  ;;  %v1436_v53 = vld [vmem:[%s18571_s1 + $0x2c48] sm:$0xff] }
 0x2de   :  { %10616 = vmatpush1.bf16.msra.mxu1 %v13151_v59  ;;  %v10357_v52 = vpop.f32.mrf.mxu0  ;;  %10650 = vmatprep.subr.bf16.mxu0 %v13304_v20  ;;  %v1440_v61 = vld [vmem:[%s18571_s1 + $0x2c68] sm:$0xff]  ;;  %v13247_v59 = vcombine.low %v1412_v57, %v1416_v60 }
 0x2df   :  { %10617 = vmatprep.subr.bf16.mxu1 %v13144_v8  ;;  %v1404_v16 = vld [vmem:[%s18571_s1 + $0x2b48] sm:$0xff]  ;;  %v13272_v20 = vcombine.high %v1436_v53, %v1440_v61  ;;  %v13271_v6 = vcombine.low %v1436_v53, %v1440_v61 }
 0x2e0   :  { %v1408_v24 = vld [vmem:[%s18571_s1 + $0x2b68] sm:$0xff] }
 0x2e1   :  { %10651 = vmatpush1.bf16.msra.mxu0 %v13303_v49  ;;  %v13240_v8 = vcombine.high %v1404_v16, %v1408_v24  ;;  %v1428_v36 = vld [vmem:[%s18571_s1 + $0x2c08] sm:$0xff]  ;;  %v13239_v49 = vcombine.low %v1404_v16, %v1408_v24 }
 0x2e2   :  { %10618 = vmatpush1.bf16.msra.mxu1 %v13143_v35  ;;  %10652 = vmatprep.subr.bf16.mxu0 %v13296_v19  ;;  %v1432_v14 = vld [vmem:[%s18571_s1 + $0x2c28] sm:$0xff] }
 0x2e3   :  { %10619 = vmatprep.subr.bf16.mxu1 %v13136_v2  ;;  %v1396_v27 = vld [vmem:[%s18571_s1 + $0x2b08] sm:$0xff]  ;;  %v13264_v52 = vcombine.high %v1428_v36, %v1432_v14  ;;  %v13263_v40 = vcombine.low %v1428_v36, %v1432_v14 }
 0x2e4   :  { %v1400_v28 = vld [vmem:[%s18571_s1 + $0x2b28] sm:$0xff] }
 0x2e5   :  { %10653 = vmatpush1.bf16.msra.mxu0 %v13295_v34  ;;  %v13232_v35 = vcombine.high %v1396_v27, %v1400_v28  ;;  %v1548_v19 = vld [vmem:[%s18571_s1 + $0x2fc8] sm:$0xff]  ;;  %v13231_v42 = vcombine.low %v1396_v27, %v1400_v28 }
 0x2e6   :  { %10620 = vmatpush1.bf16.msra.mxu1 %v13135_v46  ;;  %10654 = vmatprep.subr.bf16.mxu0 %v13288_v48  ;;  %v1552_v2 = vld [vmem:[%s18571_s1 + $0x2fe8] sm:$0xff] }
 0x2e7   :  { %10621 = vmatprep.subr.bf16.mxu1 %v13256_v51  ;;  %v1388_v37 = vld [vmem:[%s18571_s1 + $0x2ac8] sm:$0xff]  ;;  %v13384_v34 = vcombine.high %v1548_v19, %v1552_v2  ;;  %v13383_v57 = vcombine.low %v1548_v19, %v1552_v2 }
 0x2e8   :  { %v1392_v38 = vld [vmem:[%s18571_s1 + $0x2ae8] sm:$0xff] }
 0x2e9   :  { %10655 = vmatpush1.bf16.msra.mxu0 %v13287_v1  ;;  %v13224_v46 = vcombine.high %v1388_v37, %v1392_v38  ;;  %v1540_v48 = vld [vmem:[%s18571_s1 + $0x2f88] sm:$0xff]  ;;  %v13223_v60 = vcombine.low %v1388_v37, %v1392_v38 }
 0x2ea   :  { %10622 = vmatpush2.bf16.msra.mxu1 %v13255_v4  ;;  %10656 = vmatprep.subr.bf16.mxu0 %v13280_v25  ;;  %v1544_v51 = vld [vmem:[%s18571_s1 + $0x2fa8] sm:$0xff] }
 0x2eb   :  { %10623 = vmatprep.subr.bf16.mxu1 %v13248_v12  ;;  %v1380_v54 = vld [vmem:[%s18571_s1 + $0x2a88] sm:$0xff]  ;;  %v13376_v1 = vcombine.high %v1540_v48, %v1544_v51  ;;  %v13375_v16 = vcombine.low %v1540_v48, %v1544_v51 }
 0x2ec   :  { %v1384_v10 = vld [vmem:[%s18571_s1 + $0x2aa8] sm:$0xff] }
 0x2ed   :  { %10657 = vmatpush1.bf16.msra.mxu0 %v13279_v5  ;;  %v13216_v4 = vcombine.high %v1380_v54, %v1384_v10  ;;  %v1532_v25 = vld [vmem:[%s18571_s1 + $0x2f48] sm:$0xff]  ;;  %v13215_v24 = vcombine.low %v1380_v54, %v1384_v10 }
 0x2ee   :  { %10624 = vmatpush2.bf16.msra.mxu1 %v13247_v59  ;;  %10658 = vmatprep.subr.bf16.mxu0 %v13272_v20  ;;  %v1536_v12 = vld [vmem:[%s18571_s1 + $0x2f68] sm:$0xff] }
 0x2ef   :  { %10625 = vmatprep.subr.bf16.mxu1 %v13240_v8  ;;  %v1372_v53 = vld [vmem:[%s18571_s1 + $0x2a48] sm:$0xff]  ;;  %v13368_v5 = vcombine.high %v1532_v25, %v1536_v12  ;;  %v13367_v27 = vcombine.low %v1532_v25, %v1536_v12 }
 0x2f0   :  { %v1376_v61 = vld [vmem:[%s18571_s1 + $0x2a68] sm:$0xff] }
 0x2f1   :  { %10659 = vmatpush1.bf16.msra.mxu0 %v13271_v6  ;;  %v13208_v59 = vcombine.high %v1372_v53, %v1376_v61  ;;  %v1524_v20 = vld [vmem:[%s18571_s1 + $0x2f08] sm:$0xff]  ;;  %v13207_v28 = vcombine.low %v1372_v53, %v1376_v61 }
 0x2f2   :  { %10626 = vmatpush2.bf16.msra.mxu1 %v13239_v49  ;;  %10660 = vmatprep.subr.bf16.mxu0 %v13264_v52  ;;  %v1528_v8 = vld [vmem:[%s18571_s1 + $0x2f28] sm:$0xff] }
 0x2f3   :  { %10627 = vmatprep.subr.bf16.mxu1 %v13232_v35  ;;  %v1364_v36 = vld [vmem:[%s18571_s1 + $0x2a08] sm:$0xff]  ;;  %v13360_v6 = vcombine.high %v1524_v20, %v1528_v8  ;;  %v13359_v37 = vcombine.low %v1524_v20, %v1528_v8 }
 0x2f4   :  { %v1368_v14 = vld [vmem:[%s18571_s1 + $0x2a28] sm:$0xff] }
 0x2f5   :  { %10661 = vmatpush1.bf16.msra.mxu0 %v13263_v40  ;;  %v13200_v49 = vcombine.high %v1364_v36, %v1368_v14  ;;  %v1516_v52 = vld [vmem:[%s18571_s1 + $0x2ec8] sm:$0xff]  ;;  %v13199_v38 = vcombine.low %v1364_v36, %v1368_v14 }
 0x2f6   :  { %10628 = vmatpush2.bf16.msra.mxu1 %v13231_v42  ;;  %10662 = vmatprep.subr.bf16.mxu0 %v13384_v34  ;;  %v1520_v35 = vld [vmem:[%s18571_s1 + $0x2ee8] sm:$0xff] }
 0x2f7   :  { %10629 = vmatprep.subr.bf16.mxu1 %v13224_v46  ;;  %v1580_v19 = vld [vmem:[%s18571_s1 + $0x30c8] sm:$0xff]  ;;  %v13352_v40 = vcombine.high %v1516_v52, %v1520_v35  ;;  %v13351_v54 = vcombine.low %v1516_v52, %v1520_v35 }
 0x2f8   :  { %v1584_v2 = vld [vmem:[%s18571_s1 + $0x30e8] sm:$0xff] }
 0x2f9   :  { %10663 = vmatpush2.bf16.msra.mxu0 %v13383_v57  ;;  %v13416_v42 = vcombine.high %v1580_v19, %v1584_v2  ;;  %v1508_v34 = vld [vmem:[%s18571_s1 + $0x2e88] sm:$0xff]  ;;  %v13415_v10 = vcombine.low %v1580_v19, %v1584_v2  ;;  %v81_v2 = vld [vmem:[%s18571_s1 + $0x1f0] sm:$0xff] }
 0x2fa   :  { %10630 = vmatpush2.bf16.msra.mxu1 %v13223_v60  ;;  %10664 = vmatprep.subr.bf16.mxu0 %v13376_v1  ;;  %v1512_v46 = vld [vmem:[%s18571_s1 + $0x2ea8] sm:$0xff] }
 0x2fb   :  { %10631 = vmatprep.subr.bf16.mxu1 %v13216_v4  ;;  %v1572_v48 = vld [vmem:[%s18571_s1 + $0x3088] sm:$0xff]  ;;  %v13344_v57 = vcombine.high %v1508_v34, %v1512_v46  ;;  %v13343_v61 = vcombine.low %v1508_v34, %v1512_v46 }
 0x2fc   :  { %v1576_v51 = vld [vmem:[%s18571_s1 + $0x30a8] sm:$0xff] }
 0x2fd   :  { %10665 = vmatpush2.bf16.msra.mxu0 %v13375_v16  ;;  %v13408_v60 = vcombine.high %v1572_v48, %v1576_v51  ;;  %v1500_v1 = vld [vmem:[%s18571_s1 + $0x2e48] sm:$0xff] }
 0x2fe   :  { %10632 = vmatpush2.bf16.msra.mxu1 %v13215_v24  ;;  %10666 = vmatprep.subr.bf16.mxu0 %v13368_v5  ;;  %v1504_v4 = vld [vmem:[%s18571_s1 + $0x2e68] sm:$0xff]  ;;  %v13407_v24 = vcombine.low %v1572_v48, %v1576_v51  ;;  %v69_v48 = vld [vmem:[%s18571_s1 + $0x190] sm:$0xff] }
 0x2ff   :  { %10633 = vmatprep.subr.bf16.mxu1 %v13208_v59  ;;  %v1564_v25 = vld [vmem:[%s18571_s1 + $0x3048] sm:$0xff]  ;;  %v13336_v5 = vcombine.high %v1500_v1, %v1504_v4  ;;  %v73_v51 = vld [vmem:[%s18571_s1 + $0x1b0] sm:$0xff] }
 0x300   :  { %v1568_v12 = vld [vmem:[%s18571_s1 + $0x3068] sm:$0xff] }
 0x301   :  { %10667 = vmatpush2.bf16.msra.mxu0 %v13367_v27  ;;  %v13400_v20 = vcombine.high %v1564_v25, %v1568_v12  ;;  %v1492_v8 = vld [vmem:[%s18571_s1 + $0x2e08] sm:$0xff] }
 0x302   :  { %10634 = vmatpush2.bf16.msra.mxu1 %v13207_v28  ;;  %10668 = vmatprep.subr.bf16.mxu0 %v13360_v6  ;;  %v1496_v36 = vld [vmem:[%s18571_s1 + $0x2e28] sm:$0xff]  ;;  %v13335_v6 = vcombine.low %v1500_v1, %v1504_v4  ;;  %v11906_v1 = vcombine.high %v69_v48, %v73_v51 }
 0x303   :  { %10635 = vmatprep.subr.bf16.mxu1 %v13200_v49  ;;  %v1560_v27 = vld [vmem:[%s18571_s1 + $0x3028] sm:$0xff]  ;;  %v13399_v49 = vcombine.low %v1564_v25, %v1568_v12  ;;  %v13328_v52 = vcombine.high %v1492_v8, %v1496_v36  ;;  %v61_v25 = vld [vmem:[%s18571_s1 + $0x150] sm:$0xff] }
 0x304   :  { %v65_v12 = vld [vmem:[%s18571_s1 + $0x170] sm:$0xff] }
 0x305   :  { %10669 = vmatpush2.bf16.msra.mxu0 %v13359_v37  ;;  %v205_v37 = vld [vmem:[%s18571_s1 + $0x5d0] sm:$0xff] }
 0x306   :  { %10636 = vmatpush2.bf16.msra.mxu1 %v13199_v38  ;;  %10670 = vmatprep.subr.bf16.mxu0 %v13352_v40  ;;  %v209_v38 = vld [vmem:[%s18571_s1 + $0x5f0] sm:$0xff]  ;;  %v13327_v40 = vcombine.low %v1492_v8, %v1496_v36  ;;  %v11898_v36 = vcombine.high %v61_v25, %v65_v12 }
 0x307   :  { %10695 = vmatprep.subr.bf16.mxu1 %v13416_v42  ;;  %v12042_v46 = vcombine.high %v205_v37, %v209_v38 }
 0x309   :  { %v10393_v53 = vpop.f32.mrf.mxu1  ;;  %10638 = vmatmul.mubr.bf16.vlgmr.msra.gmra.mxu1 %v14801_v33  ;;  %10671 = vmatpush2.bf16.msra.mxu0 %v13351_v54  ;;  %v197_v54 = vld [vmem:[%s18571_s1 + $0x590] sm:$0xff] }
 0x30a   :  { %v10394_v16 = vadd.f32 %v10393_v53, %v15904_v17  ;;  %10696 = vmatpush1.bf16.msra.mxu1 %v13415_v10  ;;  %10672 = vmatprep.subr.bf16.mxu0 %v13344_v57  ;;  %v1556_v17 = vld [vmem:[%s18571_s1 + $0x3008] sm:$0xff]  ;;  %v201_v10 = vld [vmem:[%s18571_s1 + $0x5b0] sm:$0xff] }
 0x30b   :  { %v10395_v59 = vpop.f32.mrf.mxu1  ;;  %10697 = vmatprep.subr.bf16.mxu1 %v13408_v60  ;;  %10719 = vmatprep.mubr.bf16.mxu1 %v13435_v18  ;;  %v13392_v19 = vcombine.high %v1556_v17, %v1560_v27  ;;  %v13391_v42 = vcombine.low %v1556_v17, %v1560_v27  ;;  %v12041_v60 = vcombine.low %v205_v37, %v209_v38  ;;  %v45_v37 = vld [vmem:[%s18571_s1 + $0xd0] sm:$0xff] }
 0x30c   :  { %v10396_v14 = vadd.f32 %v10395_v59, %v15907_v7  ;;  %v77_v7 = vld [vmem:[%s18571_s1 + $0x1d0] sm:$0xff]  ;;  %v12034_v4 = vcombine.high %v197_v54, %v201_v10  ;;  %v11905_v59 = vcombine.low %v69_v48, %v73_v51  ;;  %v12033_v8 = vcombine.low %v197_v54, %v201_v10 }
 0x30d   :  { %v10397_v28 = vpop.f32.mrf.mxu1  ;;  %10673 = vmatpush2.bf16.msra.mxu0 %v13343_v61  ;;  %v11914_v34 = vcombine.high %v77_v7, %v81_v2  ;;  %v11913_v57 = vcombine.low %v77_v7, %v81_v2  ;;  %v189_v61 = vld [vmem:[%s18571_s1 + $0x550] sm:$0xff] }
 0x30e   :  { %10698 = vmatpush1.bf16.msra.mxu1 %v13407_v24  ;;  %10674 = vmatprep.subr.bf16.mxu0 %v13336_v5  ;;  %v193_v24 = vld [vmem:[%s18571_s1 + $0x570] sm:$0xff] }
 0x30f   :  { %v10398_v35 = vpop.f32.mrf.mxu1  ;;  %10699 = vmatprep.subr.bf16.mxu1 %v13400_v20  ;;  %v12026_v27 = vcombine.high %v189_v61, %v193_v24  ;;  %v53_v28 = vld [vmem:[%s18571_s1 + $0x110] sm:$0xff] }
 0x310   :  { %v49_v38 = vld [vmem:[%s18571_s1 + $0xf0] sm:$0xff] }
 0x311   :  { %10675 = vmatpush2.bf16.msra.mxu0 %v13335_v6  ;;  %v11882_v48 = vcombine.high %v45_v37, %v49_v38  ;;  %v37_v54 = vld [vmem:[%s18571_s1 + $0x90] sm:$0xff] }
 0x312   :  { %10700 = vmatpush1.bf16.msra.mxu1 %v13399_v49  ;;  %10676 = vmatprep.subr.bf16.mxu0 %v13328_v52  ;;  %v181_v49 = vld [vmem:[%s18571_s1 + $0x510] sm:$0xff]  ;;  %v11897_v52 = vcombine.low %v61_v25, %v65_v12 }
 0x313   :  { %10701 = vmatprep.subr.bf16.mxu1 %v13392_v19  ;;  %v12025_v19 = vcombine.low %v189_v61, %v193_v24  ;;  %v41_v10 = vld [vmem:[%s18571_s1 + $0xb0] sm:$0xff] }
 0x314   :  { %v11874_v25 = vcombine.high %v37_v54, %v41_v10  ;;  %v33_v61 = vld [vmem:[%s18571_s1 + $0x70] sm:$0xff] }
 0x315   :  { %10677 = vmatpush2.bf16.msra.mxu0 %v13327_v40  ;;  %v173_v40 = vld [vmem:[%s18571_s1 + $0x4d0] sm:$0xff] }
 0x316   :  { %10702 = vmatpush1.bf16.msra.mxu1 %v13391_v42  ;;  %10728 = vmatprep.subr.bf16.mxu0 %v11914_v34  ;;  %v177_v42 = vld [vmem:[%s18571_s1 + $0x4f0] sm:$0xff] }
 0x317   :  { %10769 = vmatprep.subr.bf16.mxu1 %v12042_v46  ;;  %v12010_v51 = vcombine.high %v173_v40, %v177_v42  ;;  %v157_v24 = vld [vmem:[%s18571_s1 + $0x450] sm:$0xff] }
 0x318   :  { %v10434_v53 = vpop.f32.mrf.mxu0  ;;  %10679 = vmatmul.mubr.bf16.vlgmr.msra.gmra.mxu0 %v14817_v45 }
 0x319   :  { %v16106_v5 = vadd.f32 %v10434_v53, %v10394_v16  ;;  %13422 = vmatmul.mubr.msk.bf16.vlgmr.msra.gmra.mxu1 %vm9658_vm0, %v14875_v58  ;;  %10729 = vmatpush1.bf16.msra.mxu0 %v11913_v57  ;;  %v57_v16 = vld [vmem:[%s18571_s1 + $0x130] sm:$0xff] }
 0x31a   :  { %10770 = vmatpush1.bf16.msra.mxu1 %v12041_v60  ;;  %v10436_v20 = vpop.f32.mrf.mxu0  ;;  %10730 = vmatprep.subr.bf16.mxu0 %v11906_v1  ;;  %v11890_v7 = vcombine.high %v53_v28, %v57_v16  ;;  %v11889_v34 = vcombine.low %v53_v28, %v57_v16  ;;  %v165_v57 = vld [vmem:[%s18571_s1 + $0x490] sm:$0xff]  ;;  %v11881_v1 = vcombine.low %v45_v37, %v49_v38 }
 0x31b   :  { %v16110_v17 = vadd.f32 %v10436_v20, %v10396_v14  ;;  %10771 = vmatprep.subr.bf16.mxu1 %v12034_v4  ;;  %10760 = vmatprep.mubr.bf16.mxu0 %v13576_v9  ;;  %v185_v14 = vld [vmem:[%s18571_s1 + $0x530] sm:$0xff]  ;;  %v12009_v4 = vcombine.low %v173_v40, %v177_v42  ;;  %v11873_v20 = vcombine.low %v37_v54, %v41_v10 }
 0x31c   :  { %v10438_v6 = vpop.f32.mrf.mxu0  ;;  %10801 = vmatprep.mubr.bf16.mxu1 %v13587_v13  ;;  %v12018_v2 = vcombine.high %v181_v49, %v185_v14  ;;  %v12017_v46 = vcombine.low %v181_v49, %v185_v14  ;;  %v169_v60 = vld [vmem:[%s18571_s1 + $0x4b0] sm:$0xff] }
 0x31d   :  { %10731 = vmatpush1.bf16.msra.mxu0 %v11905_v59  ;;  %v12002_v12 = vcombine.high %v165_v57, %v169_v60  ;;  %v29_v53 = vld [vmem:[%s18571_s1 + $0x50] sm:$0xff] }
 0x31e   :  { %10772 = vmatpush1.bf16.msra.mxu1 %v12033_v8  ;;  %v10439_v35 = vpop.f32.mrf.mxu0  ;;  %10732 = vmatprep.subr.bf16.mxu0 %v11898_v36  ;;  %v161_v59 = vld [vmem:[%s18571_s1 + $0x470] sm:$0xff]  ;;  %v12001_v8 = vcombine.low %v165_v57, %v169_v60  ;;  %v11866_v36 = vcombine.high %v29_v53, %v33_v61  ;;  %v11865_v14 = vcombine.low %v29_v53, %v33_v61 }
 0x31f   :  { %10773 = vmatprep.subr.bf16.mxu1 %v12026_v27  ;;  %v11994_v27 = vcombine.high %v157_v24, %v161_v59  ;;  %v21_v28 = vld [vmem:[%s18571_s1 + $0x10] sm:$0xff] }
 0x320   :  { %v25_v16 = vld [vmem:[%s18571_s1 + $0x30] sm:$0xff] }
 0x321   :  { %10733 = vmatpush1.bf16.msra.mxu0 %v11897_v52  ;;  %v149_v6 = vld [vmem:[%s18571_s1 + $0x410] sm:$0xff]  ;;  %v11993_v52 = vcombine.low %v157_v24, %v161_v59  ;;  %v11858_v35 = vcombine.high %v21_v28, %v25_v16  ;;  %v11857_v40 = vcombine.low %v21_v28, %v25_v16 }
 0x322   :  { %10774 = vmatpush1.bf16.msra.mxu1 %v12025_v19  ;;  %10734 = vmatprep.subr.bf16.mxu0 %v11890_v7  ;;  %v153_v49 = vld [vmem:[%s18571_s1 + $0x430] sm:$0xff] }
 0x323   :  { %10775 = vmatprep.subr.bf16.mxu1 %v12018_v2  ;;  %v11986_v19 = vcombine.high %v149_v6, %v153_v49  ;;  %v141_v7 = vld [vmem:[%s18571_s1 + $0x3d0] sm:$0xff]  ;;  %v11985_v42 = vcombine.low %v149_v6, %v153_v49 }
 0x324   :  { %v145_v2 = vld [vmem:[%s18571_s1 + $0x3f0] sm:$0xff] }
 0x325   :  { %10735 = vmatpush1.bf16.msra.mxu0 %v11889_v34  ;;  %v269_v37 = vld [vmem:[%s18571_s1 + $0x7d0] sm:$0xff]  ;;  %v11978_v34 = vcombine.high %v141_v7, %v145_v2  ;;  %v11977_v57 = vcombine.low %v141_v7, %v145_v2 }
 0x326   :  { %10776 = vmatpush1.bf16.msra.mxu1 %v12017_v46  ;;  %10736 = vmatprep.subr.bf16.mxu0 %v11882_v48  ;;  %v273_v38 = vld [vmem:[%s18571_s1 + $0x7f0] sm:$0xff] }
 0x327   :  { %10777 = vmatprep.subr.bf16.mxu1 %v12010_v51  ;;  %v12106_v46 = vcombine.high %v269_v37, %v273_v38  ;;  %v133_v48 = vld [vmem:[%s18571_s1 + $0x390] sm:$0xff]  ;;  %v12105_v60 = vcombine.low %v269_v37, %v273_v38 }
 0x328   :  { %v137_v51 = vld [vmem:[%s18571_s1 + $0x3b0] sm:$0xff] }
 0x329   :  { %10737 = vmatpush1.bf16.msra.mxu0 %v11881_v1  ;;  %v261_v54 = vld [vmem:[%s18571_s1 + $0x790] sm:$0xff]  ;;  %v11970_v1 = vcombine.high %v133_v48, %v137_v51  ;;  %v11969_v24 = vcombine.low %v133_v48, %v137_v51 }
 0x32a   :  { %10778 = vmatpush1.bf16.msra.mxu1 %v12009_v4  ;;  %10738 = vmatprep.subr.bf16.mxu0 %v11874_v25  ;;  %v265_v10 = vld [vmem:[%s18571_s1 + $0x7b0] sm:$0xff] }
 0x32b   :  { %10779 = vmatprep.subr.bf16.mxu1 %v12002_v12  ;;  %v12098_v4 = vcombine.high %v261_v54, %v265_v10  ;;  %v125_v25 = vld [vmem:[%s18571_s1 + $0x350] sm:$0xff]  ;;  %v12097_v59 = vcombine.low %v261_v54, %v265_v10 }
 0x32c   :  { %v129_v12 = vld [vmem:[%s18571_s1 + $0x370] sm:$0xff] }
 0x32d   :  { %10739 = vmatpush1.bf16.msra.mxu0 %v11873_v20  ;;  %v253_v53 = vld [vmem:[%s18571_s1 + $0x750] sm:$0xff]  ;;  %v11962_v20 = vcombine.high %v125_v25, %v129_v12  ;;  %v11961_v6 = vcombine.low %v125_v25, %v129_v12 }
 0x32e   :  { %10780 = vmatpush1.bf16.msra.mxu1 %v12001_v8  ;;  %10740 = vmatprep.subr.bf16.mxu0 %v11866_v36  ;;  %v257_v61 = vld [vmem:[%s18571_s1 + $0x770] sm:$0xff] }
 0x32f   :  { %10781 = vmatprep.subr.bf16.mxu1 %v11994_v27  ;;  %v12090_v8 = vcombine.high %v253_v53, %v257_v61  ;;  %v117_v36 = vld [vmem:[%s18571_s1 + $0x310] sm:$0xff]  ;;  %v12089_v49 = vcombine.low %v253_v53, %v257_v61 }
 0x330   :  { %v121_v27 = vld [vmem:[%s18571_s1 + $0x330] sm:$0xff] }
 0x331   :  { %10741 = vmatpush1.bf16.msra.mxu0 %v11865_v14  ;;  %v245_v28 = vld [vmem:[%s18571_s1 + $0x710] sm:$0xff]  ;;  %v11954_v14 = vcombine.high %v117_v36, %v121_v27  ;;  %v11953_v37 = vcombine.low %v117_v36, %v121_v27 }
 0x332   :  { %10782 = vmatpush1.bf16.msra.mxu1 %v11993_v52  ;;  %10742 = vmatprep.subr.bf16.mxu0 %v11858_v35  ;;  %v249_v16 = vld [vmem:[%s18571_s1 + $0x730] sm:$0xff] }
 0x333   :  { %10783 = vmatprep.subr.bf16.mxu1 %v11986_v19  ;;  %v12082_v52 = vcombine.high %v245_v28, %v249_v16  ;;  %v109_v35 = vld [vmem:[%s18571_s1 + $0x2d0] sm:$0xff]  ;;  %v12081_v38 = vcombine.low %v245_v28, %v249_v16 }
 0x334   :  { %v113_v19 = vld [vmem:[%s18571_s1 + $0x2f0] sm:$0xff] }
 0x335   :  { %10743 = vmatpush1.bf16.msra.mxu0 %v11857_v40  ;;  %v237_v7 = vld [vmem:[%s18571_s1 + $0x6d0] sm:$0xff]  ;;  %v11946_v40 = vcombine.high %v109_v35, %v113_v19  ;;  %v11945_v54 = vcombine.low %v109_v35, %v113_v19 }
 0x336   :  { %10784 = vmatpush1.bf16.msra.mxu1 %v11985_v42  ;;  %10744 = vmatprep.subr.bf16.mxu0 %v11978_v34  ;;  %v241_v2 = vld [vmem:[%s18571_s1 + $0x6f0] sm:$0xff] }
 0x337   :  { %10785 = vmatprep.subr.bf16.mxu1 %v12106_v46  ;;  %v12074_v42 = vcombine.high %v237_v7, %v241_v2  ;;  %v101_v34 = vld [vmem:[%s18571_s1 + $0x290] sm:$0xff]  ;;  %v12073_v10 = vcombine.low %v237_v7, %v241_v2 }
 0x338   :  { %v105_v46 = vld [vmem:[%s18571_s1 + $0x2b0] sm:$0xff] }
 0x339   :  { %10745 = vmatpush2.bf16.msra.mxu0 %v11977_v57  ;;  %v229_v48 = vld [vmem:[%s18571_s1 + $0x690] sm:$0xff]  ;;  %v11938_v57 = vcombine.high %v101_v34, %v105_v46  ;;  %v11937_v61 = vcombine.low %v101_v34, %v105_v46 }
 0x33a   :  { %10786 = vmatpush2.bf16.msra.mxu1 %v12105_v60  ;;  %10746 = vmatprep.subr.bf16.mxu0 %v11970_v1  ;;  %v233_v51 = vld [vmem:[%s18571_s1 + $0x6b0] sm:$0xff] }
 0x33b   :  { %10787 = vmatprep.subr.bf16.mxu1 %v12098_v4  ;;  %v12066_v60 = vcombine.high %v229_v48, %v233_v51  ;;  %v93_v1 = vld [vmem:[%s18571_s1 + $0x250] sm:$0xff] }
 0x33c   :  { %v97_v4 = vld [vmem:[%s18571_s1 + $0x270] sm:$0xff] }
 0x33d   :  { %10747 = vmatpush2.bf16.msra.mxu0 %v11969_v24  ;;  %v221_v25 = vld [vmem:[%s18571_s1 + $0x650] sm:$0xff] }
 0x33e   :  { %10788 = vmatpush2.bf16.msra.mxu1 %v12097_v59  ;;  %10748 = vmatprep.subr.bf16.mxu0 %v11962_v20  ;;  %v225_v12 = vld [vmem:[%s18571_s1 + $0x670] sm:$0xff]  ;;  %v12065_v59 = vcombine.low %v229_v48, %v233_v51  ;;  %v11930_v20 = vcombine.high %v93_v1, %v97_v4 }
 0x33f   :  { %10789 = vmatprep.subr.bf16.mxu1 %v12090_v8  ;;  %v12058_v36 = vcombine.high %v221_v25, %v225_v12  ;;  %v85_v27 = vld [vmem:[%s18571_s1 + $0x210] sm:$0xff] }
 0x340   :  { %v89_v28 = vld [vmem:[%s18571_s1 + $0x230] sm:$0xff] }
 0x341   :  { %10749 = vmatpush2.bf16.msra.mxu0 %v11961_v6  ;;  %v217_v6 = vld [vmem:[%s18571_s1 + $0x630] sm:$0xff]  ;;  %v11922_v35 = vcombine.high %v85_v27, %v89_v28 }
 0x342   :  { %10790 = vmatpush2.bf16.msra.mxu1 %v12089_v49  ;;  %10750 = vmatprep.subr.bf16.mxu0 %v11954_v14  ;;  %v11929_v14 = vcombine.low %v93_v1, %v97_v4  ;;  %v337_v2 = vld [vmem:[%s18571_s1 + $0x9f0] sm:$0xff] }
 0x343   :  { %10791 = vmatprep.subr.bf16.mxu1 %v12082_v52  ;;  %v12057_v52 = vcombine.low %v221_v25, %v225_v12  ;;  %v325_v48 = vld [vmem:[%s18571_s1 + $0x990] sm:$0xff] }
 0x344   :  { %v329_v51 = vld [vmem:[%s18571_s1 + $0x9b0] sm:$0xff] }
 0x345   :  { %10751 = vmatpush2.bf16.msra.mxu0 %v11953_v37  ;;  %v461_v37 = vld [vmem:[%s18571_s1 + $0xdd0] sm:$0xff]  ;;  %v12162_v1 = vcombine.high %v325_v48, %v329_v51 }
 0x346   :  { %10792 = vmatpush2.bf16.msra.mxu1 %v12081_v38  ;;  %10752 = vmatprep.subr.bf16.mxu0 %v11946_v40  ;;  %v465_v38 = vld [vmem:[%s18571_s1 + $0xdf0] sm:$0xff]  ;;  %v11921_v40 = vcombine.low %v85_v27, %v89_v28 }
 0x347   :  { %10793 = vmatprep.subr.bf16.mxu1 %v12074_v42  ;;  %v12298_v46 = vcombine.high %v461_v37, %v465_v38  ;;  %v317_v25 = vld [vmem:[%s18571_s1 + $0x950] sm:$0xff] }
 0x348   :  { %v321_v12 = vld [vmem:[%s18571_s1 + $0x970] sm:$0xff] }
 0x349   :  { %v10475_v53 = vpop.f32.mrf.mxu1  ;;  %10753 = vmatpush2.bf16.msra.mxu0 %v11945_v54  ;;  %v453_v54 = vld [vmem:[%s18571_s1 + $0xd90] sm:$0xff]  ;;  %v12154_v28 = vcombine.high %v317_v25, %v321_v12 }
 0x34a   :  { %v10476_v24 = vadd.f32 %v10475_v53, %v16106_v5  ;;  %10794 = vmatpush2.bf16.msra.mxu1 %v12073_v10  ;;  %10754 = vmatprep.subr.bf16.mxu0 %v11938_v57  ;;  %v213_v5 = vld [vmem:[%s18571_s1 + $0x610] sm:$0xff] }
 0x34b   :  { %v10477_v8 = vpop.f32.mrf.mxu1  ;;  %10795 = vmatprep.subr.bf16.mxu1 %v12066_v60  ;;  %v12050_v7 = vcombine.high %v213_v5, %v217_v6  ;;  %v12049_v42 = vcombine.low %v213_v5, %v217_v6  ;;  %v457_v10 = vld [vmem:[%s18571_s1 + $0xdb0] sm:$0xff]  ;;  %v12297_v60 = vcombine.low %v461_v37, %v465_v38 }
 0x34c   :  { %v10478_v16 = vadd.f32 %v10477_v8, %v16110_v17  ;;  %v333_v17 = vld [vmem:[%s18571_s1 + $0x9d0] sm:$0xff]  ;;  %v12290_v4 = vcombine.high %v453_v54, %v457_v10  ;;  %v12161_v8 = vcombine.low %v325_v48, %v329_v51  ;;  %v12289_v27 = vcombine.low %v453_v54, %v457_v10 }
 0x34d   :  { %v10479_v49 = vpop.f32.mrf.mxu1  ;;  %10755 = vmatpush2.bf16.msra.mxu0 %v11937_v61  ;;  %v12170_v34 = vcombine.high %v333_v17, %v337_v2  ;;  %v12169_v57 = vcombine.low %v333_v17, %v337_v2  ;;  %v445_v61 = vld [vmem:[%s18571_s1 + $0xd50] sm:$0xff] }
 0x34e   :  { %10796 = vmatpush2.bf16.msra.mxu1 %v12065_v59  ;;  %10756 = vmatprep.subr.bf16.mxu0 %v11930_v20  ;;  %v449_v59 = vld [vmem:[%s18571_s1 + $0xd70] sm:$0xff] }
 0x34f   :  { %v10480_v19 = vpop.f32.mrf.mxu1  ;;  %10797 = vmatprep.subr.bf16.mxu1 %v12058_v36  ;;  %v12282_v6 = vcombine.high %v445_v61, %v449_v59  ;;  %v309_v49 = vld [vmem:[%s18571_s1 + $0x910] sm:$0xff] }
 0x350   :  { %v301_v37 = vld [vmem:[%s18571_s1 + $0x8d0] sm:$0xff] }
 0x351   :  { %10757 = vmatpush2.bf16.msra.mxu0 %v11929_v14  ;;  %v305_v38 = vld [vmem:[%s18571_s1 + $0x8f0] sm:$0xff] }
 0x352   :  { %10798 = vmatpush2.bf16.msra.mxu1 %v12057_v52  ;;  %10758 = vmatprep.subr.bf16.mxu0 %v11922_v35  ;;  %v437_v52 = vld [vmem:[%s18571_s1 + $0xd10] sm:$0xff]  ;;  %v12153_v35 = vcombine.low %v317_v25, %v321_v12  ;;  %v12138_v48 = vcombine.high %v301_v37, %v305_v38 }
 0x353   :  { %10799 = vmatprep.subr.bf16.mxu1 %v12050_v7  ;;  %v12281_v7 = vcombine.low %v445_v61, %v449_v59  ;;  %v293_v54 = vld [vmem:[%s18571_s1 + $0x890] sm:$0xff] }
 0x354   :  { %v297_v10 = vld [vmem:[%s18571_s1 + $0x8b0] sm:$0xff] }
 0x355   :  { %10759 = vmatpush2.bf16.msra.mxu0 %v11921_v40  ;;  %v429_v40 = vld [vmem:[%s18571_s1 + $0xcd0] sm:$0xff]  ;;  %v12130_v25 = vcombine.high %v293_v54, %v297_v10 }
 0x356   :  { %10800 = vmatpush2.bf16.msra.mxu1 %v12049_v42  ;;  %10810 = vmatprep.subr.bf16.mxu0 %v12170_v34  ;;  %v433_v42 = vld [vmem:[%s18571_s1 + $0xcf0] sm:$0xff] }
 0x357   :  { %10851 = vmatprep.subr.bf16.mxu1 %v12298_v46  ;;  %v12266_v51 = vcombine.high %v429_v40, %v433_v42  ;;  %v289_v61 = vld [vmem:[%s18571_s1 + $0x870] sm:$0xff] }
 0x358   :  { %v10516_v53 = vpop.f32.mrf.mxu0  ;;  %10761 = vmatmul.mubr.bf16.vlgmr.msra.gmra.mxu0 %v13695_v22  ;;  %v413_v59 = vld [vmem:[%s18571_s1 + $0xc50] sm:$0xff] }
 0x359   :  { %v16309_v20 = vadd.f32 %v10516_v53, %v10476_v24  ;;  %10802 = vmatmul.mubr.bf16.vlgmr.msra.gmra.mxu1 %v13714_v30  ;;  %10811 = vmatpush1.bf16.msra.mxu0 %v12169_v57  ;;  %v313_v24 = vld [vmem:[%s18571_s1 + $0x930] sm:$0xff] }
 0x35a   :  { %10852 = vmatpush1.bf16.msra.mxu1 %v12297_v60  ;;  %v10518_v36 = vpop.f32.mrf.mxu0  ;;  %10812 = vmatprep.subr.bf16.mxu0 %v12162_v1  ;;  %v12146_v17 = vcombine.high %v309_v49, %v313_v24  ;;  %v12145_v34 = vcombine.low %v309_v49, %v313_v24  ;;  %v421_v57 = vld [vmem:[%s18571_s1 + $0xc90] sm:$0xff]  ;;  %v12137_v1 = vcombine.low %v301_v37, %v305_v38 }
 0x35b   :  { %v16312_v5 = vadd.f32 %v10518_v36, %v10478_v16  ;;  %10853 = vmatprep.subr.bf16.mxu1 %v12290_v4  ;;  %10842 = vmatprep.mubr.bf16.mxu0 %v13710_v29  ;;  %v441_v16 = vld [vmem:[%s18571_s1 + $0xd30] sm:$0xff]  ;;  %v12265_v4 = vcombine.low %v429_v40, %v433_v42  ;;  %v12129_v36 = vcombine.low %v293_v54, %v297_v10 }
 0x35c   :  { %v10520_v14 = vpop.f32.mrf.mxu0  ;;  %10883 = vmatprep.mubr.bf16.mxu1 %v13731_v39  ;;  %v12274_v2 = vcombine.high %v437_v52, %v441_v16  ;;  %v12273_v46 = vcombine.low %v437_v52, %v441_v16  ;;  %v425_v60 = vld [vmem:[%s18571_s1 + $0xcb0] sm:$0xff] }
 0x35d   :  { %10813 = vmatpush1.bf16.msra.mxu0 %v12161_v8  ;;  %v12258_v12 = vcombine.high %v421_v57, %v425_v60  ;;  %v285_v53 = vld [vmem:[%s18571_s1 + $0x850] sm:$0xff] }
 0x35e   :  { %10854 = vmatpush1.bf16.msra.mxu1 %v12289_v27  ;;  %v10521_v19 = vpop.f32.mrf.mxu0  ;;  %10814 = vmatprep.subr.bf16.mxu0 %v12154_v28  ;;  %v417_v8 = vld [vmem:[%s18571_s1 + $0xc70] sm:$0xff]  ;;  %v12257_v27 = vcombine.low %v421_v57, %v425_v60  ;;  %v12122_v28 = vcombine.high %v285_v53, %v289_v61  ;;  %v12121_v16 = vcombine.low %v285_v53, %v289_v61 }
 0x35f   :  { %10855 = vmatprep.subr.bf16.mxu1 %v12282_v6  ;;  %v12250_v6 = vcombine.high %v413_v59, %v417_v8  ;;  %v277_v49 = vld [vmem:[%s18571_s1 + $0x810] sm:$0xff] }
 0x360   :  { %v281_v24 = vld [vmem:[%s18571_s1 + $0x830] sm:$0xff] }
 0x361   :  { %10815 = vmatpush1.bf16.msra.mxu0 %v12153_v35  ;;  %v405_v14 = vld [vmem:[%s18571_s1 + $0xc10] sm:$0xff]  ;;  %v12249_v35 = vcombine.low %v413_v59, %v417_v8  ;;  %v12114_v19 = vcombine.high %v277_v49, %v281_v24  ;;  %v12113_v40 = vcombine.low %v277_v49, %v281_v24 }
 0x362   :  { %10856 = vmatpush1.bf16.msra.mxu1 %v12281_v7  ;;  %10816 = vmatprep.subr.bf16.mxu0 %v12146_v17  ;;  %v409_v52 = vld [vmem:[%s18571_s1 + $0xc30] sm:$0xff] }
 0x363   :  { %10857 = vmatprep.subr.bf16.mxu1 %v12274_v2  ;;  %v12242_v7 = vcombine.high %v405_v14, %v409_v52  ;;  %v397_v17 = vld [vmem:[%s18571_s1 + $0xbd0] sm:$0xff]  ;;  %v12241_v42 = vcombine.low %v405_v14, %v409_v52 }
 0x364   :  { %v401_v2 = vld [vmem:[%s18571_s1 + $0xbf0] sm:$0xff] }
 0x365   :  { %10817 = vmatpush1.bf16.msra.mxu0 %v12145_v34  ;;  %v525_v37 = vld [vmem:[%s18571_s1 + $0xfd0] sm:$0xff]  ;;  %v12234_v34 = vcombine.high %v397_v17, %v401_v2  ;;  %v12233_v57 = vcombine.low %v397_v17, %v401_v2 }
 0x366   :  { %10858 = vmatpush1.bf16.msra.mxu1 %v12273_v46  ;;  %10818 = vmatprep.subr.bf16.mxu0 %v12138_v48  ;;  %v529_v38 = vld [vmem:[%s18571_s1 + $0xff0] sm:$0xff] }
 0x367   :  { %10859 = vmatprep.subr.bf16.mxu1 %v12266_v51  ;;  %v12362_v46 = vcombine.high %v525_v37, %v529_v38  ;;  %v389_v48 = vld [vmem:[%s18571_s1 + $0xb90] sm:$0xff]  ;;  %v12361_v60 = vcombine.low %v525_v37, %v529_v38 }
 0x368   :  { %v393_v51 = vld [vmem:[%s18571_s1 + $0xbb0] sm:$0xff] }
 0x369   :  { %10819 = vmatpush1.bf16.msra.mxu0 %v12137_v1  ;;  %v517_v54 = vld [vmem:[%s18571_s1 + $0xf90] sm:$0xff]  ;;  %v12226_v1 = vcombine.high %v389_v48, %v393_v51  ;;  %v12225_v59 = vcombine.low %v389_v48, %v393_v51 }
 0x36a   :  { %10860 = vmatpush1.bf16.msra.mxu1 %v12265_v4  ;;  %10820 = vmatprep.subr.bf16.mxu0 %v12130_v25  ;;  %v521_v10 = vld [vmem:[%s18571_s1 + $0xfb0] sm:$0xff] }
 0x36b   :  { %10861 = vmatprep.subr.bf16.mxu1 %v12258_v12  ;;  %v12354_v4 = vcombine.high %v517_v54, %v521_v10  ;;  %v381_v25 = vld [vmem:[%s18571_s1 + $0xb50] sm:$0xff]  ;;  %v12353_v8 = vcombine.low %v517_v54, %v521_v10 }
 0x36c   :  { %v385_v12 = vld [vmem:[%s18571_s1 + $0xb70] sm:$0xff] }
 0x36d   :  { %10821 = vmatpush1.bf16.msra.mxu0 %v12129_v36  ;;  %v509_v53 = vld [vmem:[%s18571_s1 + $0xf50] sm:$0xff]  ;;  %v12218_v36 = vcombine.high %v381_v25, %v385_v12  ;;  %v12217_v14 = vcombine.low %v381_v25, %v385_v12 }
 0x36e   :  { %10862 = vmatpush1.bf16.msra.mxu1 %v12257_v27  ;;  %10822 = vmatprep.subr.bf16.mxu0 %v12122_v28  ;;  %v513_v61 = vld [vmem:[%s18571_s1 + $0xf70] sm:$0xff] }
 0x36f   :  { %10863 = vmatprep.subr.bf16.mxu1 %v12250_v6  ;;  %v12346_v27 = vcombine.high %v509_v53, %v513_v61  ;;  %v373_v28 = vld [vmem:[%s18571_s1 + $0xb10] sm:$0xff]  ;;  %v12345_v52 = vcombine.low %v509_v53, %v513_v61 }
 0x370   :  { %v377_v6 = vld [vmem:[%s18571_s1 + $0xb30] sm:$0xff] }
 0x371   :  { %10823 = vmatpush1.bf16.msra.mxu0 %v12121_v16  ;;  %v501_v49 = vld [vmem:[%s18571_s1 + $0xf10] sm:$0xff]  ;;  %v12210_v16 = vcombine.high %v373_v28, %v377_v6  ;;  %v12209_v37 = vcombine.low %v373_v28, %v377_v6 }
 0x372   :  { %10864 = vmatpush1.bf16.msra.mxu1 %v12249_v35  ;;  %10824 = vmatprep.subr.bf16.mxu0 %v12114_v19  ;;  %v505_v24 = vld [vmem:[%s18571_s1 + $0xf30] sm:$0xff] }
 0x373   :  { %10865 = vmatprep.subr.bf16.mxu1 %v12242_v7  ;;  %v12338_v35 = vcombine.high %v501_v49, %v505_v24  ;;  %v365_v19 = vld [vmem:[%s18571_s1 + $0xad0] sm:$0xff]  ;;  %v12337_v38 = vcombine.low %v501_v49, %v505_v24 }
 0x374   :  { %v369_v7 = vld [vmem:[%s18571_s1 + $0xaf0] sm:$0xff] }
 0x375   :  { %10825 = vmatpush1.bf16.msra.mxu0 %v12113_v40  ;;  %v493_v17 = vld [vmem:[%s18571_s1 + $0xed0] sm:$0xff]  ;;  %v12202_v40 = vcombine.high %v365_v19, %v369_v7  ;;  %v12201_v54 = vcombine.low %v365_v19, %v369_v7 }
 0x376   :  { %10866 = vmatpush1.bf16.msra.mxu1 %v12241_v42  ;;  %10826 = vmatprep.subr.bf16.mxu0 %v12234_v34  ;;  %v497_v2 = vld [vmem:[%s18571_s1 + $0xef0] sm:$0xff] }
 0x377   :  { %10867 = vmatprep.subr.bf16.mxu1 %v12362_v46  ;;  %v12330_v42 = vcombine.high %v493_v17, %v497_v2  ;;  %v357_v34 = vld [vmem:[%s18571_s1 + $0xa90] sm:$0xff]  ;;  %v12329_v10 = vcombine.low %v493_v17, %v497_v2 }
 0x378   :  { %v361_v46 = vld [vmem:[%s18571_s1 + $0xab0] sm:$0xff] }
 0x379   :  { %10827 = vmatpush2.bf16.msra.mxu0 %v12233_v57  ;;  %v485_v48 = vld [vmem:[%s18571_s1 + $0xe90] sm:$0xff]  ;;  %v12194_v57 = vcombine.high %v357_v34, %v361_v46  ;;  %v12193_v61 = vcombine.low %v357_v34, %v361_v46 }
 0x37a   :  { %10868 = vmatpush2.bf16.msra.mxu1 %v12361_v60  ;;  %10828 = vmatprep.subr.bf16.mxu0 %v12226_v1  ;;  %v489_v51 = vld [vmem:[%s18571_s1 + $0xeb0] sm:$0xff] }
 0x37b   :  { %10869 = vmatprep.subr.bf16.mxu1 %v12354_v4  ;;  %v12322_v60 = vcombine.high %v485_v48, %v489_v51  ;;  %v349_v1 = vld [vmem:[%s18571_s1 + $0xa50] sm:$0xff] }
 0x37c   :  { %v353_v4 = vld [vmem:[%s18571_s1 + $0xa70] sm:$0xff] }
 0x37d   :  { %10829 = vmatpush2.bf16.msra.mxu0 %v12225_v59  ;;  %v477_v25 = vld [vmem:[%s18571_s1 + $0xe50] sm:$0xff] }
 0x37e   :  { %10870 = vmatpush2.bf16.msra.mxu1 %v12353_v8  ;;  %10830 = vmatprep.subr.bf16.mxu0 %v12218_v36  ;;  %v481_v12 = vld [vmem:[%s18571_s1 + $0xe70] sm:$0xff]  ;;  %v12321_v8 = vcombine.low %v485_v48, %v489_v51  ;;  %v12186_v36 = vcombine.high %v349_v1, %v353_v4 }
 0x37f   :  { %10871 = vmatprep.subr.bf16.mxu1 %v12346_v27  ;;  %v12314_v28 = vcombine.high %v477_v25, %v481_v12  ;;  %v341_v6 = vld [vmem:[%s18571_s1 + $0xa10] sm:$0xff] }
 0x380   :  { %v345_v49 = vld [vmem:[%s18571_s1 + $0xa30] sm:$0xff] }
 0x381   :  { %10831 = vmatpush2.bf16.msra.mxu0 %v12217_v14  ;;  %v473_v14 = vld [vmem:[%s18571_s1 + $0xe30] sm:$0xff]  ;;  %v12178_v19 = vcombine.high %v341_v6, %v345_v49 }
 0x382   :  { %10872 = vmatpush2.bf16.msra.mxu1 %v12345_v52  ;;  %10832 = vmatprep.subr.bf16.mxu0 %v12210_v16  ;;  %v12185_v16 = vcombine.low %v349_v1, %v353_v4  ;;  %v593_v2 = vld [vmem:[%s18571_s1 + $0x11f0] sm:$0xff] }
 0x383   :  { %10873 = vmatprep.subr.bf16.mxu1 %v12338_v35  ;;  %v12313_v35 = vcombine.low %v477_v25, %v481_v12  ;;  %v581_v48 = vld [vmem:[%s18571_s1 + $0x1190] sm:$0xff] }
 0x384   :  { %v585_v51 = vld [vmem:[%s18571_s1 + $0x11b0] sm:$0xff] }
 0x385   :  { %10833 = vmatpush2.bf16.msra.mxu0 %v12209_v37  ;;  %v717_v37 = vld [vmem:[%s18571_s1 + $0x15d0] sm:$0xff]  ;;  %v12418_v1 = vcombine.high %v581_v48, %v585_v51 }
 0x386   :  { %10874 = vmatpush2.bf16.msra.mxu1 %v12337_v38  ;;  %10834 = vmatprep.subr.bf16.mxu0 %v12202_v40  ;;  %v721_v38 = vld [vmem:[%s18571_s1 + $0x15f0] sm:$0xff]  ;;  %v12177_v40 = vcombine.low %v341_v6, %v345_v49 }
 0x387   :  { %10875 = vmatprep.subr.bf16.mxu1 %v12330_v42  ;;  %v12554_v46 = vcombine.high %v717_v37, %v721_v38  ;;  %v573_v25 = vld [vmem:[%s18571_s1 + $0x1150] sm:$0xff] }
 0x388   :  { %v577_v12 = vld [vmem:[%s18571_s1 + $0x1170] sm:$0xff] }
 0x389   :  { %v10557_v53 = vpop.f32.mrf.mxu1  ;;  %10835 = vmatpush2.bf16.msra.mxu0 %v12201_v54  ;;  %v709_v54 = vld [vmem:[%s18571_s1 + $0x1590] sm:$0xff]  ;;  %v12410_v6 = vcombine.high %v573_v25, %v577_v12 }
 0x38a   :  { %v16461_v59 = vadd.f32 %v10557_v53, %v16309_v20  ;;  %10876 = vmatpush2.bf16.msra.mxu1 %v12329_v10  ;;  %10836 = vmatprep.subr.bf16.mxu0 %v12194_v57  ;;  %v469_v20 = vld [vmem:[%s18571_s1 + $0xe10] sm:$0xff] }
 0x38b   :  { %v10559_v27 = vpop.f32.mrf.mxu1  ;;  %10877 = vmatprep.subr.bf16.mxu1 %v12322_v60  ;;  %v12306_v17 = vcombine.high %v469_v20, %v473_v14  ;;  %v12305_v42 = vcombine.low %v469_v20, %v473_v14  ;;  %v713_v10 = vld [vmem:[%s18571_s1 + $0x15b0] sm:$0xff]  ;;  %v12553_v60 = vcombine.low %v717_v37, %v721_v38 }
 0x38c   :  { %v16470_v24 = vadd.f32 %v10559_v27, %v16312_v5  ;;  %v589_v5 = vld [vmem:[%s18571_s1 + $0x11d0] sm:$0xff]  ;;  %v12546_v4 = vcombine.high %v709_v54, %v713_v10 }
 0x38d   :  { %v10561_v52 = vpop.f32.mrf.mxu1  ;;  %10837 = vmatpush2.bf16.msra.mxu0 %v12193_v61  ;;  %v12426_v34 = vcombine.high %v589_v5, %v593_v2  ;;  %v12425_v57 = vcombine.low %v589_v5, %v593_v2  ;;  %v701_v61 = vld [vmem:[%s18571_s1 + $0x1550] sm:$0xff] }
 0x38e   :  { %10878 = vmatpush2.bf16.msra.mxu1 %v12321_v8  ;;  %10838 = vmatprep.subr.bf16.mxu0 %v12186_v36  ;;  %v705_v8 = vld [vmem:[%s18571_s1 + $0x1570] sm:$0xff]  ;;  %v12417_v36 = vcombine.low %v581_v48, %v585_v51 }
 0x38f   :  { %v10562_v7 = vpop.f32.mrf.mxu1  ;;  %10879 = vmatprep.subr.bf16.mxu1 %v12314_v28  ;;  %v12545_v28 = vcombine.low %v709_v54, %v713_v10  ;;  %v12538_v49 = vcombine.high %v701_v61, %v705_v8  ;;  %v565_v20 = vld [vmem:[%s18571_s1 + $0x1110] sm:$0xff] }
 0x390   :  { %v569_v14 = vld [vmem:[%s18571_s1 + $0x1130] sm:$0xff] }
 0x391   :  { %10839 = vmatpush2.bf16.msra.mxu0 %v12185_v16  ;;  %v693_v16 = vld [vmem:[%s18571_s1 + $0x1510] sm:$0xff]  ;;  %v12402_v5 = vcombine.high %v565_v20, %v569_v14 }
 0x392   :  { %10880 = vmatpush2.bf16.msra.mxu1 %v12313_v35  ;;  %10840 = vmatprep.subr.bf16.mxu0 %v12178_v19  ;;  %v697_v35 = vld [vmem:[%s18571_s1 + $0x1530] sm:$0xff]  ;;  %v12409_v19 = vcombine.low %v573_v25, %v577_v12 }
 0x393   :  { %10881 = vmatprep.subr.bf16.mxu1 %v12306_v17  ;;  %v12537_v17 = vcombine.low %v701_v61, %v705_v8  ;;  %v12530_v2 = vcombine.high %v693_v16, %v697_v35  ;;  %v557_v37 = vld [vmem:[%s18571_s1 + $0x10d0] sm:$0xff] }
 0x394   :  { %v561_v38 = vld [vmem:[%s18571_s1 + $0x10f0] sm:$0xff] }
 0x395   :  { %10841 = vmatpush2.bf16.msra.mxu0 %v12177_v40  ;;  %v685_v40 = vld [vmem:[%s18571_s1 + $0x14d0] sm:$0xff]  ;;  %v12394_v48 = vcombine.high %v557_v37, %v561_v38 }
 0x396   :  { %10882 = vmatpush2.bf16.msra.mxu1 %v12305_v42  ;;  %10892 = vmatprep.subr.bf16.mxu0 %v12426_v34  ;;  %v689_v42 = vld [vmem:[%s18571_s1 + $0x14f0] sm:$0xff]  ;;  %v12401_v34 = vcombine.low %v565_v20, %v569_v14 }
 0x397   :  { %10933 = vmatprep.subr.bf16.mxu1 %v12554_v46  ;;  %v12529_v46 = vcombine.low %v693_v16, %v697_v35  ;;  %v12522_v51 = vcombine.high %v685_v40, %v689_v42  ;;  %v549_v54 = vld [vmem:[%s18571_s1 + $0x1090] sm:$0xff] }
 0x398   :  { %v16508_v53 = vpop.f32.mrf.mxu0  ;;  %10843 = vmatmul.mubr.bf16.vlgmr.msra.gmra.mxu0 %v13917_v47  ;;  %v553_v10 = vld [vmem:[%s18571_s1 + $0x10b0] sm:$0xff] }
 0x399   :  { %10884 = vmatmul.mubr.bf16.vlgmr.msra.gmra.mxu1 %v13936_v56  ;;  %10893 = vmatpush1.bf16.msra.mxu0 %v12425_v57  ;;  %v677_v57 = vld [vmem:[%s18571_s1 + $0x1490] sm:$0xff]  ;;  %v12386_v25 = vcombine.high %v549_v54, %v553_v10 }
 0x39a   :  { %10934 = vmatpush1.bf16.msra.mxu1 %v12553_v60  ;;  %v16518_v27 = vpop.f32.mrf.mxu0  ;;  %10894 = vmatprep.subr.bf16.mxu0 %v12418_v1  ;;  %v681_v60 = vld [vmem:[%s18571_s1 + $0x14b0] sm:$0xff]  ;;  %v12393_v1 = vcombine.low %v557_v37, %v561_v38 }
 0x39b   :  { %10935 = vmatprep.subr.bf16.mxu1 %v12546_v4  ;;  %10924 = vmatprep.mubr.bf16.mxu0 %v13932_v55  ;;  %v12521_v4 = vcombine.low %v685_v40, %v689_v42  ;;  %v12514_v12 = vcombine.high %v677_v57, %v681_v60  ;;  %v541_v61 = vld [vmem:[%s18571_s1 + $0x1050] sm:$0xff] }
 0x39c   :  { %v10602_v52 = vpop.f32.mrf.mxu0  ;;  %10965 = vmatprep.mubr.bf16.mxu1 %v13953_v3  ;;  %v545_v8 = vld [vmem:[%s18571_s1 + $0x1070] sm:$0xff] }
 0x39d   :  { %10895 = vmatpush1.bf16.msra.mxu0 %v12417_v36  ;;  %v669_v36 = vld [vmem:[%s18571_s1 + $0x1450] sm:$0xff]  ;;  %v12378_v20 = vcombine.high %v541_v61, %v545_v8 }
 0x39e   :  { %10936 = vmatpush1.bf16.msra.mxu1 %v12545_v28  ;;  %v10603_v7 = vpop.f32.mrf.mxu0  ;;  %10896 = vmatprep.subr.bf16.mxu0 %v12410_v6  ;;  %v673_v28 = vld [vmem:[%s18571_s1 + $0x1470] sm:$0xff]  ;;  %v12385_v6 = vcombine.low %v549_v54, %v553_v10 }
 0x39f   :  { %10937 = vmatprep.subr.bf16.mxu1 %v12538_v49  ;;  %v12513_v49 = vcombine.low %v677_v57, %v681_v60  ;;  %v12506_v14 = vcombine.high %v669_v36, %v673_v28  ;;  %v533_v52 = vld [vmem:[%s18571_s1 + $0x1010] sm:$0xff]  ;;  %v12377_v7 = vcombine.low %v541_v61, %v545_v8 }
 0x3a0   :  { %v537_v16 = vld [vmem:[%s18571_s1 + $0x1030] sm:$0xff] }
 0x3a1   :  { %10897 = vmatpush1.bf16.msra.mxu0 %v12409_v19  ;;  %v661_v35 = vld [vmem:[%s18571_s1 + $0x1410] sm:$0xff] }
 0x3a2   :  { %10938 = vmatpush1.bf16.msra.mxu1 %v12537_v17  ;;  %10898 = vmatprep.subr.bf16.mxu0 %v12402_v5  ;;  %v665_v19 = vld [vmem:[%s18571_s1 + $0x1430] sm:$0xff]  ;;  %v12505_v17 = vcombine.low %v669_v36, %v673_v28  ;;  %v12370_v5 = vcombine.high %v533_v52, %v537_v16 }
 0x3a3   :  { %10939 = vmatprep.subr.bf16.mxu1 %v12530_v2  ;;  %v12498_v2 = vcombine.high %v661_v35, %v665_v19  ;;  %v653_v37 = vld [vmem:[%s18571_s1 + $0x13d0] sm:$0xff] }
 0x3a4   :  { %v657_v38 = vld [vmem:[%s18571_s1 + $0x13f0] sm:$0xff] }
 0x3a5   :  { %10899 = vmatpush1.bf16.msra.mxu0 %v12401_v34  ;;  %v781_v40 = vld [vmem:[%s18571_s1 + $0x17d0] sm:$0xff]  ;;  %v12369_v34 = vcombine.low %v533_v52, %v537_v16 }
 0x3a6   :  { %10940 = vmatpush1.bf16.msra.mxu1 %v12529_v46  ;;  %10900 = vmatprep.subr.bf16.mxu0 %v12394_v48  ;;  %v785_v42 = vld [vmem:[%s18571_s1 + $0x17f0] sm:$0xff]  ;;  %v12497_v46 = vcombine.low %v661_v35, %v665_v19  ;;  %v12490_v48 = vcombine.high %v653_v37, %v657_v38 }
 0x3a7   :  { %10941 = vmatprep.subr.bf16.mxu1 %v12522_v51  ;;  %v12618_v51 = vcombine.high %v781_v40, %v785_v42  ;;  %v645_v54 = vld [vmem:[%s18571_s1 + $0x1390] sm:$0xff] }
 0x3a8   :  { %v649_v10 = vld [vmem:[%s18571_s1 + $0x13b0] sm:$0xff] }
 0x3a9   :  { %10901 = vmatpush1.bf16.msra.mxu0 %v12393_v1  ;;  %v773_v57 = vld [vmem:[%s18571_s1 + $0x1790] sm:$0xff]  ;;  %v12489_v1 = vcombine.low %v653_v37, %v657_v38 }
 0x3aa   :  { %10942 = vmatpush1.bf16.msra.mxu1 %v12521_v4  ;;  %10902 = vmatprep.subr.bf16.mxu0 %v12386_v25  ;;  %v777_v60 = vld [vmem:[%s18571_s1 + $0x17b0] sm:$0xff]  ;;  %v12617_v4 = vcombine.low %v781_v40, %v785_v42  ;;  %v12482_v25 = vcombine.high %v645_v54, %v649_v10 }
 0x3ab   :  { %10943 = vmatprep.subr.bf16.mxu1 %v12514_v12  ;;  %v12610_v12 = vcombine.high %v773_v57, %v777_v60  ;;  %v637_v61 = vld [vmem:[%s18571_s1 + $0x1350] sm:$0xff] }
 0x3ac   :  { %v641_v8 = vld [vmem:[%s18571_s1 + $0x1370] sm:$0xff] }
 0x3ad   :  { %10903 = vmatpush1.bf16.msra.mxu0 %v12385_v6  ;;  %v765_v36 = vld [vmem:[%s18571_s1 + $0x1750] sm:$0xff]  ;;  %v12481_v6 = vcombine.low %v645_v54, %v649_v10 }
 0x3ae   :  { %10944 = vmatpush1.bf16.msra.mxu1 %v12513_v49  ;;  %10904 = vmatprep.subr.bf16.mxu0 %v12378_v20  ;;  %v769_v28 = vld [vmem:[%s18571_s1 + $0x1770] sm:$0xff]  ;;  %v12609_v49 = vcombine.low %v773_v57, %v777_v60  ;;  %v12474_v20 = vcombine.high %v637_v61, %v641_v8 }
 0x3af   :  { %10945 = vmatprep.subr.bf16.mxu1 %v12506_v14  ;;  %v12602_v14 = vcombine.high %v765_v36, %v769_v28  ;;  %v629_v52 = vld [vmem:[%s18571_s1 + $0x1310] sm:$0xff] }
 0x3b0   :  { %v633_v16 = vld [vmem:[%s18571_s1 + $0x1330] sm:$0xff] }
 0x3b1   :  { %10905 = vmatpush1.bf16.msra.mxu0 %v12377_v7  ;;  %v757_v35 = vld [vmem:[%s18571_s1 + $0x1710] sm:$0xff]  ;;  %v12473_v7 = vcombine.low %v637_v61, %v641_v8 }
 0x3b2   :  { %10946 = vmatpush1.bf16.msra.mxu1 %v12505_v17  ;;  %10906 = vmatprep.subr.bf16.mxu0 %v12370_v5  ;;  %v761_v19 = vld [vmem:[%s18571_s1 + $0x1730] sm:$0xff]  ;;  %v12601_v17 = vcombine.low %v765_v36, %v769_v28  ;;  %v12466_v5 = vcombine.high %v629_v52, %v633_v16 }
 0x3b3   :  { %10947 = vmatprep.subr.bf16.mxu1 %v12498_v2  ;;  %v12594_v2 = vcombine.high %v757_v35, %v761_v19  ;;  %v621_v37 = vld [vmem:[%s18571_s1 + $0x12d0] sm:$0xff] }
 0x3b4   :  { %v625_v38 = vld [vmem:[%s18571_s1 + $0x12f0] sm:$0xff] }
 0x3b5   :  { %10907 = vmatpush1.bf16.msra.mxu0 %v12369_v34  ;;  %v749_v40 = vld [vmem:[%s18571_s1 + $0x16d0] sm:$0xff]  ;;  %v12465_v34 = vcombine.low %v629_v52, %v633_v16 }
 0x3b6   :  { %10948 = vmatpush1.bf16.msra.mxu1 %v12497_v46  ;;  %10908 = vmatprep.subr.bf16.mxu0 %v12490_v48  ;;  %v753_v42 = vld [vmem:[%s18571_s1 + $0x16f0] sm:$0xff]  ;;  %v12593_v46 = vcombine.low %v757_v35, %v761_v19  ;;  %v12458_v48 = vcombine.high %v621_v37, %v625_v38 }
 0x3b7   :  { %10949 = vmatprep.subr.bf16.mxu1 %v12618_v51  ;;  %v12586_v51 = vcombine.high %v749_v40, %v753_v42  ;;  %v613_v54 = vld [vmem:[%s18571_s1 + $0x1290] sm:$0xff] }
 0x3b8   :  { %v617_v10 = vld [vmem:[%s18571_s1 + $0x12b0] sm:$0xff] }
 0x3b9   :  { %10909 = vmatpush2.bf16.msra.mxu0 %v12489_v1  ;;  %v741_v57 = vld [vmem:[%s18571_s1 + $0x1690] sm:$0xff]  ;;  %v12457_v1 = vcombine.low %v621_v37, %v625_v38 }
 0x3ba   :  { %10950 = vmatpush2.bf16.msra.mxu1 %v12617_v4  ;;  %10910 = vmatprep.subr.bf16.mxu0 %v12482_v25  ;;  %v745_v60 = vld [vmem:[%s18571_s1 + $0x16b0] sm:$0xff]  ;;  %v12585_v4 = vcombine.low %v749_v40, %v753_v42  ;;  %v12450_v25 = vcombine.high %v613_v54, %v617_v10 }
 0x3bb   :  { %10951 = vmatprep.subr.bf16.mxu1 %v12610_v12  ;;  %v12578_v12 = vcombine.high %v741_v57, %v745_v60  ;;  %v605_v61 = vld [vmem:[%s18571_s1 + $0x1250] sm:$0xff] }
 0x3bc   :  { %v609_v8 = vld [vmem:[%s18571_s1 + $0x1270] sm:$0xff] }
 0x3bd   :  { %10911 = vmatpush2.bf16.msra.mxu0 %v12481_v6  ;;  %v733_v36 = vld [vmem:[%s18571_s1 + $0x1650] sm:$0xff] }
 0x3be   :  { %10952 = vmatpush2.bf16.msra.mxu1 %v12609_v49  ;;  %10912 = vmatprep.subr.bf16.mxu0 %v12474_v20  ;;  %v737_v28 = vld [vmem:[%s18571_s1 + $0x1670] sm:$0xff]  ;;  %v12449_v49 = vcombine.low %v613_v54, %v617_v10  ;;  %v12577_v20 = vcombine.low %v741_v57, %v745_v60 }
 0x3bf   :  { %10953 = vmatprep.subr.bf16.mxu1 %v12602_v14  ;;  %v12442_v14 = vcombine.high %v605_v61, %v609_v8  ;;  %v12570_v16 = vcombine.high %v733_v36, %v737_v28  ;;  %v597_v35 = vld [vmem:[%s18571_s1 + $0x1210] sm:$0xff]  ;;  %v12569_v37 = vcombine.low %v733_v36, %v737_v28 }
 0x3c0   :  { %v601_v19 = vld [vmem:[%s18571_s1 + $0x1230] sm:$0xff] }
 0x3c1   :  { %10913 = vmatpush2.bf16.msra.mxu0 %v12473_v7  ;;  %v725_v7 = vld [vmem:[%s18571_s1 + $0x1610] sm:$0xff]  ;;  %v12434_v38 = vcombine.high %v597_v35, %v601_v19  ;;  %v12433_v54 = vcombine.low %v597_v35, %v601_v19 }
 0x3c2   :  { %10954 = vmatpush2.bf16.msra.mxu1 %v12601_v17  ;;  %10914 = vmatprep.subr.bf16.mxu0 %v12466_v5  ;;  %v729_v17 = vld [vmem:[%s18571_s1 + $0x1630] sm:$0xff] }
 0x3c3   :  { %10955 = vmatprep.subr.bf16.mxu1 %v12594_v2  ;;  %v12441_v2 = vcombine.low %v605_v61, %v609_v8  ;;  %v12562_v42 = vcombine.high %v725_v7, %v729_v17  ;;  %v12561_v10 = vcombine.low %v725_v7, %v729_v17  ;;  %v10599_v61 = vadd.f32 %v16508_v53, %v16461_v59  ;;  %v829_v19 = vld [vmem:[%s18571_s1 + $0x1950] sm:$0xff] }
 0x3c4   :  { %v833_v59 = vld [vmem:[%s18571_s1 + $0x1970] sm:$0xff] }
 0x3c5   :  { %10915 = vmatpush2.bf16.msra.mxu0 %v12465_v34  ;;  %v845_v34 = vld [vmem:[%s18571_s1 + $0x19d0] sm:$0xff] }
 0x3c6   :  { %10956 = vmatpush2.bf16.msra.mxu1 %v12593_v46  ;;  %10916 = vmatprep.subr.bf16.mxu0 %v12458_v48  ;;  %v849_v46 = vld [vmem:[%s18571_s1 + $0x19f0] sm:$0xff] }
 0x3c7   :  { %10957 = vmatprep.subr.bf16.mxu1 %v12586_v51  ;;  %v973_v48 = vld [vmem:[%s18571_s1 + $0x1dd0] sm:$0xff]  ;;  %v12682_v57 = vcombine.high %v845_v34, %v849_v46  ;;  %v12681_v8 = vcombine.low %v845_v34, %v849_v46 }
 0x3c8   :  { %v977_v51 = vld [vmem:[%s18571_s1 + $0x1df0] sm:$0xff] }
 0x3c9   :  { %v10639_v6 = vpop.f32.mrf.mxu1  ;;  %10917 = vmatpush2.bf16.msra.mxu0 %v12457_v1  ;;  %v12810_v60 = vcombine.high %v973_v48, %v977_v51  ;;  %v837_v1 = vld [vmem:[%s18571_s1 + $0x1990] sm:$0xff]  ;;  %v12809_v36 = vcombine.low %v973_v48, %v977_v51 }
 0x3ca   :  { %10958 = vmatpush2.bf16.msra.mxu1 %v12585_v4  ;;  %10918 = vmatprep.subr.bf16.mxu0 %v12450_v25  ;;  %v841_v4 = vld [vmem:[%s18571_s1 + $0x19b0] sm:$0xff] }
 0x3cb   :  { %v10641_v52 = vpop.f32.mrf.mxu1  ;;  %10959 = vmatprep.subr.bf16.mxu1 %v12578_v12  ;;  %v965_v25 = vld [vmem:[%s18571_s1 + $0x1d90] sm:$0xff]  ;;  %v12674_v28 = vcombine.high %v837_v1, %v841_v4 }
 0x3cc   :  { %v969_v12 = vld [vmem:[%s18571_s1 + $0x1db0] sm:$0xff] }
 0x3cd   :  { %v10643_v5 = vpop.f32.mrf.mxu1  ;;  %10919 = vmatpush2.bf16.msra.mxu0 %v12449_v49  ;;  %v13436_v49 = vmov 1983009808   ;;  %v12802_v35 = vcombine.high %v965_v25, %v969_v12  ;;  %v957_v7 = vld [vmem:[%s18571_s1 + $0x1d50] sm:$0xff] }
 0x3ce   :  { %10960 = vmatpush2.bf16.msra.mxu1 %v12577_v20  ;;  %10920 = vmatprep.subr.bf16.mxu0 %v12442_v14  ;;  %v11813_v20 = vunpack.c.l.s4 %v13436_v49  ;;  %v10601_v14 = vadd.f32 %v16518_v27, %v16470_v24  ;;  %v961_v24 = vld [vmem:[%s18571_s1 + $0x1d70] sm:$0xff]  ;;  %v12673_v5 = vcombine.low %v837_v1, %v841_v4  ;;  %v12665_v4 = vcombine.low %v829_v19, %v833_v59 }
 0x3cf   :  { %v10644_v40 = vpop.f32.mrf.mxu1  ;;  %10961 = vmatprep.subr.bf16.mxu1 %v12570_v16  ;;  %v10640_v16 = vadd.f32 %v10639_v6, %v10599_v61  ;;  %v12794_v48 = vcombine.high %v957_v7, %v961_v24  ;;  %v825_v51 = vld [vmem:[%s18571_s1 + $0x1930] sm:$0xff] }
 0x3d0   :  { %v10642_v27 = vadd.f32 %v10641_v52, %v10601_v14  ;;  %v11814_v40 = vunpack.c.0.s8 %v11813_v20  ;;  %v821_v52 = vld [vmem:[%s18571_s1 + $0x1910] sm:$0xff] }
 0x3d1   :  { %10921 = vmatpush2.bf16.msra.mxu0 %v12441_v2  ;;  %v12658_v61 = vcombine.high %v821_v52, %v825_v51  ;;  %v813_v14 = vld [vmem:[%s18571_s1 + $0x18d0] sm:$0xff] }
 0x3d2   :  { %10962 = vmatpush2.bf16.msra.mxu1 %v12569_v37  ;;  %10922 = vmatprep.subr.bf16.mxu0 %v12434_v38  ;;  %v12801_v37 = vcombine.low %v965_v25, %v969_v12  ;;  %v12666_v38 = vcombine.high %v829_v19, %v833_v59  ;;  %v12793_v12 = vcombine.low %v957_v7, %v961_v24  ;;  %v945_v19 = vld [vmem:[%s18571_s1 + $0x1cf0] sm:$0xff] }
 0x3d3   :  { %10963 = vmatprep.subr.bf16.mxu1 %v12562_v42 }
 0x3d5   :  { %10923 = vmatpush2.bf16.msra.mxu0 %v12433_v54 }
 0x3d6   :  { %10964 = vmatpush2.bf16.msra.mxu1 %v12561_v10  ;;  %10974 = vmatprep.subr.bf16.mxu0 %v12682_v57  ;;  %v949_v10 = vld [vmem:[%s18571_s1 + $0x1d10] sm:$0xff] }
 0x3d7   :  { %11015 = vmatprep.subr.bf16.mxu1 %v12810_v60  ;;  %v953_v57 = vld [vmem:[%s18571_s1 + $0x1d30] sm:$0xff] }
 0x3d8   :  { %v10680_v53 = vpop.f32.mrf.mxu0  ;;  %10925 = vmatmul.mubr.bf16.vlgmr.msra.gmra.mxu0 %v14135_v21  ;;  %v12786_v20 = vcombine.high %v949_v10, %v953_v57  ;;  %v12785_v7 = vcombine.low %v949_v10, %v953_v57 }
 0x3d9   :  { %v10681_v6 = vadd.f32 %v10680_v53, %v10640_v16  ;;  %v10721_v17 = vpop.f32.mrf.mxu1  ;;  %10966 = vmatmul.mubr.bf16.vlgmr.msra.gmra.mxu1 %v14154_v32  ;;  %10975 = vmatpush1.bf16.msra.mxu0 %v12681_v8  ;;  %v16735_v8 = vsub.s32 %v11814_v40, %v13523_v43  ;;  %v817_v16 = vld [vmem:[%s18571_s1 + $0x18f0] sm:$0xff]  ;;  %v12657_v53 = vcombine.low %v821_v52, %v825_v51 }
 0x3da   :  { %11016 = vmatpush1.bf16.msra.mxu1 %v12809_v36  ;;  %v10682_v2 = vpop.f32.mrf.mxu0  ;;  %10976 = vmatprep.subr.bf16.mxu0 %v12674_v28  ;;  %v12650_v24 = vcombine.high %v813_v14, %v817_v16  ;;  %v12649_v40 = vcombine.low %v813_v14, %v817_v16  ;;  %v801_v52 = vld [vmem:[%s18571_s1 + $0x1870] sm:$0xff] }
 0x3db   :  { %v10722_v42 = vadd.f32 %v10721_v17, %v10681_v6  ;;  %v10683_v34 = vadd.f32 %v10682_v2, %v10642_v27  ;;  %v10723_v46 = vpop.f32.mrf.mxu1  ;;  %11017 = vmatprep.subr.bf16.mxu1 %v12802_v35  ;;  %11006 = vmatprep.mubr.bf16.mxu0 %v14150_v31  ;;  %v941_v35 = vld [vmem:[%s18571_s1 + $0x1cd0] sm:$0xff]  ;;  %v11818_v27 = vrot.slane %v15512_v63, %v16735_v8 }
 0x3dc   :  { %v10684_v54 = vpop.f32.mrf.mxu0  ;;  %11047 = vmatprep.mubr.bf16.mxu1 %v14171_v44  ;;  %v12778_v17 = vcombine.high %v941_v35, %v945_v19  ;;  %v809_v2 = vld [vmem:[%s18571_s1 + $0x18b0] sm:$0xff] }
 0x3dd   :  { %v10724_v60 = vadd.f32 %v10723_v46, %v10683_v34  ;;  %v10725_v1 = vpop.f32.mrf.mxu1  ;;  %10977 = vmatpush1.bf16.msra.mxu0 %v12673_v5  ;;  %v11796_v36 = vmax.f32 %v10722_v42, 0.0  ;;  %v805_v5 = vld [vmem:[%s18571_s1 + $0x1890] sm:$0xff]  ;;  %v12777_v42 = vcombine.low %v941_v35, %v945_v19 }
 0x3de   :  { %11018 = vmatpush1.bf16.msra.mxu1 %v12801_v37  ;;  %v10685_v25 = vpop.f32.mrf.mxu0  ;;  %10978 = vmatprep.subr.bf16.mxu0 %v12666_v38  ;;  %v933_v37 = vld [vmem:[%s18571_s1 + $0x1c90] sm:$0xff]  ;;  %v12642_v34 = vcombine.high %v805_v5, %v809_v2  ;;  %v12641_v10 = vcombine.low %v805_v5, %v809_v2 }
 0x3df   :  { %v11797_v28 = vmax.f32 %v10724_v60, 0.0  ;;  %v10726_v49 = vpop.f32.mrf.mxu1  ;;  %11019 = vmatprep.subr.bf16.mxu1 %v12794_v48  ;;  %v937_v63 = vld [vmem:[%s18571_s1 + $0x1cb0] sm:$0xff] }
 0x3e0   :  { %v12770_v46 = vcombine.high %v933_v37, %v937_v63  ;;  %v797_v48 = vld [vmem:[%s18571_s1 + $0x1850] sm:$0xff]  ;;  %v12769_v57 = vcombine.low %v933_v37, %v937_v63 }
 0x3e1   :  { %v11811_v59 = vcombine.low %v11796_v36, %v11797_v28  ;;  %10979 = vmatpush1.bf16.msra.mxu0 %v12665_v4  ;;  %v925_v51 = vld [vmem:[%s18571_s1 + $0x1c50] sm:$0xff]  ;;  %v12634_v60 = vcombine.high %v797_v48, %v801_v52  ;;  %v12633_v36 = vcombine.low %v797_v48, %v801_v52 }
 0x3e2   :  { %11020 = vmatpush1.bf16.msra.mxu1 %v12793_v12  ;;  %10980 = vmatprep.subr.bf16.mxu0 %v12658_v61  ;;  %v929_v54 = vld [vmem:[%s18571_s1 + $0x1c70] sm:$0xff] }
 0x3e3   :  { %v11825_v6 = vrot.slane %v11811_v59, %v16735_v8  ;;  %11021 = vmatprep.subr.bf16.mxu1 %v12786_v20  ;;  %v12762_v1 = vcombine.high %v925_v51, %v929_v54  ;;  %v789_v4 = vld [vmem:[%s18571_s1 + $0x1810] sm:$0xff]  ;;  %v12761_v28 = vcombine.low %v925_v51, %v929_v54 }
 0x3e4   :  { %v793_v25 = vld [vmem:[%s18571_s1 + $0x1830] sm:$0xff] }
 0x3e5   :  { %v11826_v38 = vcombine.low %v11818_v27, %v11825_v6  ;;  %10981 = vmatpush1.bf16.msra.mxu0 %v12657_v53  ;;  %v917_v12 = vld [vmem:[%s18571_s1 + $0x1c10] sm:$0xff]  ;;  %v12626_v49 = vcombine.high %v789_v4, %v793_v25  ;;  %v12625_v59 = vcombine.low %v789_v4, %v793_v25 }
 0x3e6   :  { %11022 = vmatpush1.bf16.msra.mxu1 %v12785_v7  ;;  %10982 = vmatprep.subr.bf16.mxu0 %v12650_v24  ;;  %v921_v61 = vld [vmem:[%s18571_s1 + $0x1c30] sm:$0xff] }
 0x3e7   :  { %11846 = vst [vmem:[%s18574_s3] sm:$0xff] %v11826_v38  ;;  %11023 = vmatprep.subr.bf16.mxu1 %v12778_v17  ;;  %v12754_v20 = vcombine.high %v917_v12, %v921_v61  ;;  %v909_v14 = vld [vmem:[%s18571_s1 + $0x1bd0] sm:$0xff]  ;;  %v12753_v53 = vcombine.low %v917_v12, %v921_v61 }
 0x3e8   :  { %v913_v16 = vld [vmem:[%s18571_s1 + $0x1bf0] sm:$0xff] }
 0x3e9   :  { %10983 = vmatpush1.bf16.msra.mxu0 %v12649_v40  ;;  %v1037_v35 = vld [vmem:[%s18571_s1 + $0x1fd0] sm:$0xff]  ;;  %v12746_v7 = vcombine.high %v909_v14, %v913_v16  ;;  %v12745_v2 = vcombine.low %v909_v14, %v913_v16 }
 0x3ea   :  { %11024 = vmatpush1.bf16.msra.mxu1 %v12777_v42  ;;  %10984 = vmatprep.subr.bf16.mxu0 %v12642_v34  ;;  %v1041_v19 = vld [vmem:[%s18571_s1 + $0x1ff0] sm:$0xff] }
 0x3eb   :  { %11025 = vmatprep.subr.bf16.mxu1 %v12770_v46  ;;  %v12874_v24 = vcombine.high %v1037_v35, %v1041_v19  ;;  %v901_v27 = vld [vmem:[%s18571_s1 + $0x1b90] sm:$0xff]  ;;  %v12873_v37 = vcombine.low %v1037_v35, %v1041_v19 }
 0x3ec   :  { %v905_v6 = vld [vmem:[%s18571_s1 + $0x1bb0] sm:$0xff] }
 0x3ed   :  { %10985 = vmatpush1.bf16.msra.mxu0 %v12641_v10  ;;  %v1029_v17 = vld [vmem:[%s18571_s1 + $0x1f90] sm:$0xff]  ;;  %v12738_v63 = vcombine.high %v901_v27, %v905_v6  ;;  %v12737_v48 = vcombine.low %v901_v27, %v905_v6 }
 0x3ee   :  { %11026 = vmatpush1.bf16.msra.mxu1 %v12769_v57  ;;  %10986 = vmatprep.subr.bf16.mxu0 %v12634_v60  ;;  %v1033_v5 = vld [vmem:[%s18571_s1 + $0x1fb0] sm:$0xff] }
 0x3ef   :  { %11027 = vmatprep.subr.bf16.mxu1 %v12762_v1  ;;  %v12866_v38 = vcombine.high %v1029_v17, %v1033_v5  ;;  %v893_v40 = vld [vmem:[%s18571_s1 + $0x1b50] sm:$0xff]  ;;  %v12865_v52 = vcombine.low %v1029_v17, %v1033_v5 }
 0x3f0   :  { %v897_v42 = vld [vmem:[%s18571_s1 + $0x1b70] sm:$0xff] }
 0x3f1   :  { %10987 = vmatpush1.bf16.msra.mxu0 %v12633_v36  ;;  %v1021_v34 = vld [vmem:[%s18571_s1 + $0x1f50] sm:$0xff]  ;;  %v12730_v51 = vcombine.high %v893_v40, %v897_v42  ;;  %v12729_v4 = vcombine.low %v893_v40, %v897_v42 }
 0x3f2   :  { %11028 = vmatpush1.bf16.msra.mxu1 %v12761_v28  ;;  %10988 = vmatprep.subr.bf16.mxu0 %v12626_v49  ;;  %v1025_v46 = vld [vmem:[%s18571_s1 + $0x1f70] sm:$0xff] }
 0x3f3   :  { %11029 = vmatprep.subr.bf16.mxu1 %v12754_v20  ;;  %v12858_v54 = vcombine.high %v1021_v34, %v1025_v46  ;;  %v885_v10 = vld [vmem:[%s18571_s1 + $0x1b10] sm:$0xff]  ;;  %v12857_v25 = vcombine.low %v1021_v34, %v1025_v46 }
 0x3f4   :  { %v889_v57 = vld [vmem:[%s18571_s1 + $0x1b30] sm:$0xff] }
 0x3f5   :  { %10989 = vmatpush1.bf16.msra.mxu0 %v12625_v59  ;;  %v1013_v60 = vld [vmem:[%s18571_s1 + $0x1f10] sm:$0xff]  ;;  %v12722_v12 = vcombine.high %v885_v10, %v889_v57  ;;  %v12721_v14 = vcombine.low %v885_v10, %v889_v57 }
 0x3f6   :  { %11030 = vmatpush1.bf16.msra.mxu1 %v12753_v53  ;;  %10990 = vmatprep.subr.bf16.mxu0 %v12746_v7  ;;  %v1017_v1 = vld [vmem:[%s18571_s1 + $0x1f30] sm:$0xff] }
 0x3f7   :  { %11031 = vmatprep.subr.bf16.mxu1 %v12874_v24  ;;  %v12850_v61 = vcombine.high %v1013_v60, %v1017_v1  ;;  %v877_v36 = vld [vmem:[%s18571_s1 + $0x1ad0] sm:$0xff]  ;;  %v12849_v16 = vcombine.low %v1013_v60, %v1017_v1 }
 0x3f8   :  { %v881_v28 = vld [vmem:[%s18571_s1 + $0x1af0] sm:$0xff] }
 0x3f9   :  { %10991 = vmatpush2.bf16.msra.mxu0 %v12745_v2  ;;  %v1005_v49 = vld [vmem:[%s18571_s1 + $0x1ed0] sm:$0xff]  ;;  %v12714_v35 = vcombine.high %v877_v36, %v881_v28  ;;  %v12713_v27 = vcombine.low %v877_v36, %v881_v28  ;;  %v1607_v28 = vsub.s32 4, %v13523_v43 }
 0x3fa   :  { %11032 = vmatpush2.bf16.msra.mxu1 %v12873_v37  ;;  %10992 = vmatprep.subr.bf16.mxu0 %v12738_v63  ;;  %v1009_v20 = vld [vmem:[%s18571_s1 + $0x1ef0] sm:$0xff] }
 0x3fb   :  { %11033 = vmatprep.subr.bf16.mxu1 %v12866_v38  ;;  %v12842_v19 = vcombine.high %v1005_v49, %v1009_v20  ;;  %v869_v59 = vld [vmem:[%s18571_s1 + $0x1a90] sm:$0xff]  ;;  %v12841_v6 = vcombine.low %v1005_v49, %v1009_v20 }
 0x3fc   :  { %v873_v53 = vld [vmem:[%s18571_s1 + $0x1ab0] sm:$0xff] }
 0x3fd   :  { %10993 = vmatpush2.bf16.msra.mxu0 %v12737_v48  ;;  %v997_v7 = vld [vmem:[%s18571_s1 + $0x1e90] sm:$0xff]  ;;  %v12706_v17 = vcombine.high %v869_v59, %v873_v53  ;;  %v12705_v40 = vcombine.low %v869_v59, %v873_v53 }
 0x3fe   :  { %11034 = vmatpush2.bf16.msra.mxu1 %v12865_v52  ;;  %10994 = vmatprep.subr.bf16.mxu0 %v12730_v51  ;;  %v1001_v24 = vld [vmem:[%s18571_s1 + $0x1eb0] sm:$0xff] }
 0x3ff   :  { %11035 = vmatprep.subr.bf16.mxu1 %v12858_v54  ;;  %v12834_v5 = vcombine.high %v997_v7, %v1001_v24  ;;  %v861_v2 = vld [vmem:[%s18571_s1 + $0x1a50] sm:$0xff]  ;;  %v12833_v42 = vcombine.low %v997_v7, %v1001_v24  ;;  %v13432_v7 = vld [vmem:[%s18573_s2] sm:$0xff] }
 0x400   :  { %v865_v37 = vld [vmem:[%s18571_s1 + $0x1a70] sm:$0xff]  ;;  %v1608_v24 = vrot.slane %v13432_v7, %v1607_v28 }
 0x401   :  { %10995 = vmatpush2.bf16.msra.mxu0 %v12729_v4  ;;  %v989_v63 = vld [vmem:[%s18571_s1 + $0x1e50] sm:$0xff]  ;;  %v12698_v34 = vcombine.high %v861_v2, %v865_v37  ;;  %v12697_v10 = vcombine.low %v861_v2, %v865_v37 }
 0x402   :  { %11036 = vmatpush2.bf16.msra.mxu1 %v12857_v25  ;;  %10996 = vmatprep.subr.bf16.mxu0 %v12722_v12  ;;  %v993_v38 = vld [vmem:[%s18571_s1 + $0x1e70] sm:$0xff] }
 0x403   :  { %11037 = vmatprep.subr.bf16.mxu1 %v12850_v61  ;;  %v12826_v46 = vcombine.high %v989_v63, %v993_v38  ;;  %v853_v48 = vld [vmem:[%s18571_s1 + $0x1a10] sm:$0xff]  ;;  %v12825_v57 = vcombine.low %v989_v63, %v993_v38 }
 0x404   :  { %v857_v52 = vld [vmem:[%s18571_s1 + $0x1a30] sm:$0xff] }
 0x405   :  { %10997 = vmatpush2.bf16.msra.mxu0 %v12721_v14  ;;  %v981_v51 = vld [vmem:[%s18571_s1 + $0x1e10] sm:$0xff]  ;;  %v12690_v60 = vcombine.high %v853_v48, %v857_v52  ;;  %v12689_v36 = vcombine.low %v853_v48, %v857_v52 }
 0x406   :  { %11038 = vmatpush2.bf16.msra.mxu1 %v12849_v16  ;;  %10998 = vmatprep.subr.bf16.mxu0 %v12714_v35  ;;  %v985_v54 = vld [vmem:[%s18571_s1 + $0x1e30] sm:$0xff]  ;;  %v1611_v16 = vsub.s32 5, %v13523_v43 }
 0x407   :  { %11039 = vmatprep.subr.bf16.mxu1 %v12842_v19  ;;  %v12818_v1 = vcombine.high %v981_v51, %v985_v54  ;;  %v1101_v4 = vld [vmem:[%s18571_s1 + $0x21d0] sm:$0xff]  ;;  %v12817_v49 = vcombine.low %v981_v51, %v985_v54 }
 0x408   :  { %v1105_v25 = vld [vmem:[%s18571_s1 + $0x21f0] sm:$0xff] }
 0x409   :  { %10999 = vmatpush2.bf16.msra.mxu0 %v12713_v27  ;;  %v1229_v12 = vld [vmem:[%s18571_s1 + $0x25d0] sm:$0xff]  ;;  %v12938_v20 = vcombine.high %v1101_v4, %v1105_v25  ;;  %v12937_v27 = vcombine.low %v1101_v4, %v1105_v25 }
 0x40a   :  { %11040 = vmatpush2.bf16.msra.mxu1 %v12841_v6  ;;  %11000 = vmatprep.subr.bf16.mxu0 %v12706_v17  ;;  %v1233_v61 = vld [vmem:[%s18571_s1 + $0x25f0] sm:$0xff] }
 0x40b   :  { %11041 = vmatprep.subr.bf16.mxu1 %v12834_v5  ;;  %v13066_v14 = vcombine.high %v1229_v12, %v1233_v61  ;;  %v1093_v35 = vld [vmem:[%s18571_s1 + $0x2190] sm:$0xff]  ;;  %v13065_v6 = vcombine.low %v1229_v12, %v1233_v61  ;;  %v1612_v5 = vrot.slane %v13432_v7, %v1611_v16 }
 0x40c   :  { %v1097_v19 = vld [vmem:[%s18571_s1 + $0x21b0] sm:$0xff] }
 0x40d   :  { %11001 = vmatpush2.bf16.msra.mxu0 %v12705_v40  ;;  %v1221_v59 = vld [vmem:[%s18571_s1 + $0x2590] sm:$0xff]  ;;  %v12930_v17 = vcombine.high %v1093_v35, %v1097_v19  ;;  %v12929_v48 = vcombine.low %v1093_v35, %v1097_v19 }
 0x40e   :  { %11042 = vmatpush2.bf16.msra.mxu1 %v12833_v42  ;;  %11002 = vmatprep.subr.bf16.mxu0 %v12698_v34  ;;  %v1225_v53 = vld [vmem:[%s18571_s1 + $0x25b0] sm:$0xff] }
 0x40f   :  { %11043 = vmatprep.subr.bf16.mxu1 %v12826_v46  ;;  %v13058_v2 = vcombine.high %v1221_v59, %v1225_v53  ;;  %v1085_v37 = vld [vmem:[%s18571_s1 + $0x2150] sm:$0xff]  ;;  %v13057_v51 = vcombine.low %v1221_v59, %v1225_v53 }
 0x410   :  { %v1089_v63 = vld [vmem:[%s18571_s1 + $0x2170] sm:$0xff] }
 0x411   :  { %11003 = vmatpush2.bf16.msra.mxu0 %v12697_v10  ;;  %v1213_v40 = vld [vmem:[%s18571_s1 + $0x2550] sm:$0xff]  ;;  %v12922_v54 = vcombine.high %v1085_v37, %v1089_v63 }
 0x412   :  { %11044 = vmatpush2.bf16.msra.mxu1 %v12825_v57  ;;  %11004 = vmatprep.subr.bf16.mxu0 %v12690_v60  ;;  %v1217_v42 = vld [vmem:[%s18571_s1 + $0x2570] sm:$0xff] }
 0x413   :  { %11045 = vmatprep.subr.bf16.mxu1 %v12818_v1  ;;  %v13050_v1 = vcombine.high %v1213_v40, %v1217_v42  ;;  %v1077_v4 = vld [vmem:[%s18571_s1 + $0x2110] sm:$0xff]  ;;  %v13049_v16 = vcombine.low %v1213_v40, %v1217_v42 }
 0x414   :  { %v1081_v25 = vld [vmem:[%s18571_s1 + $0x2130] sm:$0xff] }
 0x415   :  { %11005 = vmatpush2.bf16.msra.mxu0 %v12689_v36  ;;  %v1205_v61 = vld [vmem:[%s18571_s1 + $0x2510] sm:$0xff]  ;;  %v12914_v35 = vcombine.high %v1077_v4, %v1081_v25 }
 0x416   :  { %11046 = vmatpush2.bf16.msra.mxu1 %v12817_v49  ;;  %11056 = vmatprep.subr.bf16.mxu0 %v12938_v20  ;;  %v1209_v36 = vld [vmem:[%s18571_s1 + $0x2530] sm:$0xff]  ;;  %v12921_v20 = vcombine.low %v1085_v37, %v1089_v63 }
 0x417   :  { %11097 = vmatprep.subr.bf16.mxu1 %v13066_v14  ;;  %v13042_v59 = vcombine.high %v1205_v61, %v1209_v36  ;;  %v1069_v53 = vld [vmem:[%s18571_s1 + $0x20d0] sm:$0xff] }
 0x418   :  { %v10762_v38 = vpop.f32.mrf.mxu0  ;;  %11007 = vmatmul.mubr.bf16.vlgmr.msra.gmra.mxu0 %v14358_v11  ;;  %v1073_v7 = vld [vmem:[%s18571_s1 + $0x20f0] sm:$0xff] }
 0x419   :  { %v10763_v34 = vadd.f32 %v10762_v38, %v1608_v24  ;;  %v10803_v46 = vpop.f32.mrf.mxu1  ;;  %11048 = vmatmul.mubr.bf16.vlgmr.msra.gmra.mxu1 %v14381_v26  ;;  %11057 = vmatpush1.bf16.msra.mxu0 %v12937_v27  ;;  %v1197_v24 = vld [vmem:[%s18571_s1 + $0x24d0] sm:$0xff]  ;;  %v12905_v42 = vcombine.low %v1069_v53, %v1073_v7 }
 0x41a   :  { %11098 = vmatpush1.bf16.msra.mxu1 %v13065_v6  ;;  %v10764_v52 = vpop.f32.mrf.mxu0  ;;  %11058 = vmatprep.subr.bf16.mxu0 %v12930_v17  ;;  %v1201_v27 = vld [vmem:[%s18571_s1 + $0x24f0] sm:$0xff]  ;;  %v12913_v6 = vcombine.low %v1077_v4, %v1081_v25  ;;  %v13041_v17 = vcombine.low %v1205_v61, %v1209_v36 }
 0x41b   :  { %v16930_v10 = vadd.f32 %v10803_v46, %v10763_v34  ;;  %v10765_v57 = vadd.f32 %v10764_v52, %v1612_v5  ;;  %v10805_v60 = vpop.f32.mrf.mxu1  ;;  %11099 = vmatprep.subr.bf16.mxu1 %v13058_v2  ;;  %11088 = vmatprep.mubr.bf16.mxu0 %v14377_v23  ;;  %v12906_v5 = vcombine.high %v1069_v53, %v1073_v7  ;;  %v1061_v37 = vld [vmem:[%s18571_s1 + $0x2090] sm:$0xff] }
 0x41c   :  { %v10766_v12 = vpop.f32.mrf.mxu0  ;;  %11129 = vmatprep.mubr.bf16.mxu1 %v14398_v41  ;;  %v13034_v2 = vcombine.high %v1197_v24, %v1201_v27  ;;  %v1065_v63 = vld [vmem:[%s18571_s1 + $0x20b0] sm:$0xff]  ;;  %v13033_v34 = vcombine.low %v1197_v24, %v1201_v27 }
 0x41d   :  { %v16946_v28 = vadd.f32 %v10805_v60, %v10765_v57  ;;  %v10807_v49 = vpop.f32.mrf.mxu1  ;;  %11059 = vmatpush1.bf16.msra.mxu0 %v12929_v48  ;;  %v1189_v38 = vld [vmem:[%s18571_s1 + $0x2490] sm:$0xff]  ;;  %v12898_v46 = vcombine.high %v1061_v37, %v1065_v63  ;;  %v12897_v60 = vcombine.low %v1061_v37, %v1065_v63 }
 0x41e   :  { %11100 = vmatpush1.bf16.msra.mxu1 %v13057_v51  ;;  %v10767_v14 = vpop.f32.mrf.mxu0  ;;  %11060 = vmatprep.subr.bf16.mxu0 %v12922_v54  ;;  %v1193_v40 = vld [vmem:[%s18571_s1 + $0x24b0] sm:$0xff] }
 0x41f   :  { %v10808_v19 = vpop.f32.mrf.mxu1  ;;  %11101 = vmatprep.subr.bf16.mxu1 %v13050_v1  ;;  %v13026_v48 = vcombine.high %v1189_v38, %v1193_v40  ;;  %v1053_v52 = vld [vmem:[%s18571_s1 + $0x2050] sm:$0xff]  ;;  %v13025_v1 = vcombine.low %v1189_v38, %v1193_v40 }
 0x420   :  { %v1057_v51 = vld [vmem:[%s18571_s1 + $0x2070] sm:$0xff] }
 0x421   :  { %11061 = vmatpush1.bf16.msra.mxu0 %v12921_v20  ;;  %v1181_v54 = vld [vmem:[%s18571_s1 + $0x2450] sm:$0xff]  ;;  %v12890_v4 = vcombine.high %v1053_v52, %v1057_v51  ;;  %v12889_v20 = vcombine.low %v1053_v52, %v1057_v51 }
 0x422   :  { %11102 = vmatpush1.bf16.msra.mxu1 %v13049_v16  ;;  %11062 = vmatprep.subr.bf16.mxu0 %v12914_v35  ;;  %v1185_v57 = vld [vmem:[%s18571_s1 + $0x2470] sm:$0xff] }
 0x423   :  { %11103 = vmatprep.subr.bf16.mxu1 %v13042_v59  ;;  %v13018_v25 = vcombine.high %v1181_v54, %v1185_v57  ;;  %v1045_v12 = vld [vmem:[%s18571_s1 + $0x2010] sm:$0xff]  ;;  %v13017_v14 = vcombine.low %v1181_v54, %v1185_v57 }
 0x424   :  { %v1049_v61 = vld [vmem:[%s18571_s1 + $0x2030] sm:$0xff] }
 0x425   :  { %11063 = vmatpush1.bf16.msra.mxu0 %v12913_v6  ;;  %v1173_v36 = vld [vmem:[%s18571_s1 + $0x2410] sm:$0xff]  ;;  %v12882_v16 = vcombine.high %v1045_v12, %v1049_v61  ;;  %v12881_v24 = vcombine.low %v1045_v12, %v1049_v61 }
 0x426   :  { %11104 = vmatpush1.bf16.msra.mxu1 %v13041_v17  ;;  %11064 = vmatprep.subr.bf16.mxu0 %v12906_v5  ;;  %v1177_v49 = vld [vmem:[%s18571_s1 + $0x2430] sm:$0xff] }
 0x427   :  { %11105 = vmatprep.subr.bf16.mxu1 %v13034_v2  ;;  %v13010_v35 = vcombine.high %v1173_v36, %v1177_v49  ;;  %v1165_v19 = vld [vmem:[%s18571_s1 + $0x23d0] sm:$0xff]  ;;  %v13009_v27 = vcombine.low %v1173_v36, %v1177_v49 }
 0x428   :  { %v1169_v59 = vld [vmem:[%s18571_s1 + $0x23f0] sm:$0xff] }
 0x429   :  { %11065 = vmatpush1.bf16.msra.mxu0 %v12905_v42  ;;  %v1293_v53 = vld [vmem:[%s18571_s1 + $0x27d0] sm:$0xff]  ;;  %v13002_v6 = vcombine.high %v1165_v19, %v1169_v59  ;;  %v13001_v38 = vcombine.low %v1165_v19, %v1169_v59 }
 0x42a   :  { %11106 = vmatpush1.bf16.msra.mxu1 %v13033_v34  ;;  %11066 = vmatprep.subr.bf16.mxu0 %v12898_v46  ;;  %v1297_v7 = vld [vmem:[%s18571_s1 + $0x27f0] sm:$0xff] }
 0x42b   :  { %11107 = vmatprep.subr.bf16.mxu1 %v13026_v48  ;;  %v13130_v17 = vcombine.high %v1293_v53, %v1297_v7  ;;  %v1157_v5 = vld [vmem:[%s18571_s1 + $0x2390] sm:$0xff]  ;;  %v13129_v40 = vcombine.low %v1293_v53, %v1297_v7 }
 0x42c   :  { %v1161_v2 = vld [vmem:[%s18571_s1 + $0x23b0] sm:$0xff] }
 0x42d   :  { %11067 = vmatpush1.bf16.msra.mxu0 %v12897_v60  ;;  %v1285_v37 = vld [vmem:[%s18571_s1 + $0x2790] sm:$0xff]  ;;  %v12994_v42 = vcombine.high %v1157_v5, %v1161_v2  ;;  %v12993_v54 = vcombine.low %v1157_v5, %v1161_v2 }
 0x42e   :  { %11108 = vmatpush1.bf16.msra.mxu1 %v13025_v1  ;;  %11068 = vmatprep.subr.bf16.mxu0 %v12890_v4  ;;  %v1289_v63 = vld [vmem:[%s18571_s1 + $0x27b0] sm:$0xff] }
 0x42f   :  { %11109 = vmatprep.subr.bf16.mxu1 %v13018_v25  ;;  %v13122_v34 = vcombine.high %v1285_v37, %v1289_v63  ;;  %v1149_v46 = vld [vmem:[%s18571_s1 + $0x2350] sm:$0xff]  ;;  %v13121_v57 = vcombine.low %v1285_v37, %v1289_v63 }
 0x430   :  { %v1153_v48 = vld [vmem:[%s18571_s1 + $0x2370] sm:$0xff] }
 0x431   :  { %11069 = vmatpush1.bf16.msra.mxu0 %v12889_v20  ;;  %v1277_v52 = vld [vmem:[%s18571_s1 + $0x2750] sm:$0xff]  ;;  %v12986_v60 = vcombine.high %v1149_v46, %v1153_v48  ;;  %v12985_v36 = vcombine.low %v1149_v46, %v1153_v48 }
 0x432   :  { %11110 = vmatpush1.bf16.msra.mxu1 %v13017_v14  ;;  %11070 = vmatprep.subr.bf16.mxu0 %v12882_v16  ;;  %v1281_v51 = vld [vmem:[%s18571_s1 + $0x2770] sm:$0xff] }
 0x433   :  { %11111 = vmatprep.subr.bf16.mxu1 %v13010_v35  ;;  %v13114_v1 = vcombine.high %v1277_v52, %v1281_v51  ;;  %v1141_v4 = vld [vmem:[%s18571_s1 + $0x2310] sm:$0xff]  ;;  %v13113_v49 = vcombine.low %v1277_v52, %v1281_v51 }
 0x434   :  { %v1145_v25 = vld [vmem:[%s18571_s1 + $0x2330] sm:$0xff] }
 0x435   :  { %11071 = vmatpush1.bf16.msra.mxu0 %v12881_v24  ;;  %v1269_v12 = vld [vmem:[%s18571_s1 + $0x2710] sm:$0xff]  ;;  %v12978_v20 = vcombine.high %v1141_v4, %v1145_v25  ;;  %v12977_v53 = vcombine.low %v1141_v4, %v1145_v25 }
 0x436   :  { %11112 = vmatpush1.bf16.msra.mxu1 %v13009_v27  ;;  %11072 = vmatprep.subr.bf16.mxu0 %v13002_v6  ;;  %v1273_v61 = vld [vmem:[%s18571_s1 + $0x2730] sm:$0xff] }
 0x437   :  { %11113 = vmatprep.subr.bf16.mxu1 %v13130_v17  ;;  %v13106_v14 = vcombine.high %v1269_v12, %v1273_v61  ;;  %v1133_v16 = vld [vmem:[%s18571_s1 + $0x22d0] sm:$0xff]  ;;  %v13105_v7 = vcombine.low %v1269_v12, %v1273_v61 }
 0x438   :  { %v1137_v35 = vld [vmem:[%s18571_s1 + $0x22f0] sm:$0xff] }
 0x439   :  { %11073 = vmatpush2.bf16.msra.mxu0 %v13001_v38  ;;  %v1261_v19 = vld [vmem:[%s18571_s1 + $0x26d0] sm:$0xff]  ;;  %v12970_v24 = vcombine.high %v1133_v16, %v1137_v35  ;;  %v12969_v37 = vcombine.low %v1133_v16, %v1137_v35 }
 0x43a   :  { %11114 = vmatpush2.bf16.msra.mxu1 %v13129_v40  ;;  %11074 = vmatprep.subr.bf16.mxu0 %v12994_v42  ;;  %v1265_v59 = vld [vmem:[%s18571_s1 + $0x26f0] sm:$0xff] }
 0x43b   :  { %11115 = vmatprep.subr.bf16.mxu1 %v13122_v34  ;;  %v13098_v27 = vcombine.high %v1261_v19, %v1265_v59  ;;  %v1125_v6 = vld [vmem:[%s18571_s1 + $0x2290] sm:$0xff]  ;;  %v13097_v63 = vcombine.low %v1261_v19, %v1265_v59 }
 0x43c   :  { %v1129_v17 = vld [vmem:[%s18571_s1 + $0x22b0] sm:$0xff] }
 0x43d   :  { %11075 = vmatpush2.bf16.msra.mxu0 %v12993_v54  ;;  %v1253_v5 = vld [vmem:[%s18571_s1 + $0x2690] sm:$0xff]  ;;  %v12962_v38 = vcombine.high %v1125_v6, %v1129_v17  ;;  %v12961_v52 = vcombine.low %v1125_v6, %v1129_v17 }
 0x43e   :  { %11116 = vmatpush2.bf16.msra.mxu1 %v13121_v57  ;;  %11076 = vmatprep.subr.bf16.mxu0 %v12986_v60  ;;  %v1257_v2 = vld [vmem:[%s18571_s1 + $0x26b0] sm:$0xff] }
 0x43f   :  { %11117 = vmatprep.subr.bf16.mxu1 %v13114_v1  ;;  %v13090_v40 = vcombine.high %v1253_v5, %v1257_v2  ;;  %v1117_v42 = vld [vmem:[%s18571_s1 + $0x2250] sm:$0xff]  ;;  %v13089_v51 = vcombine.low %v1253_v5, %v1257_v2 }
 0x440   :  { %v1121_v34 = vld [vmem:[%s18571_s1 + $0x2270] sm:$0xff] }
 0x441   :  { %11077 = vmatpush2.bf16.msra.mxu0 %v12985_v36  ;;  %v1245_v46 = vld [vmem:[%s18571_s1 + $0x2650] sm:$0xff]  ;;  %v12954_v54 = vcombine.high %v1117_v42, %v1121_v34  ;;  %v12953_v12 = vcombine.low %v1117_v42, %v1121_v34 }
 0x442   :  { %11118 = vmatpush2.bf16.msra.mxu1 %v13113_v49  ;;  %11078 = vmatprep.subr.bf16.mxu0 %v12978_v20  ;;  %v1249_v48 = vld [vmem:[%s18571_s1 + $0x2670] sm:$0xff] }
 0x443   :  { %11119 = vmatprep.subr.bf16.mxu1 %v13106_v14  ;;  %v13082_v57 = vcombine.high %v1245_v46, %v1249_v48  ;;  %v1109_v60 = vld [vmem:[%s18571_s1 + $0x2210] sm:$0xff]  ;;  %v13081_v61 = vcombine.low %v1245_v46, %v1249_v48 }
 0x444   :  { %v1113_v1 = vld [vmem:[%s18571_s1 + $0x2230] sm:$0xff] }
 0x445   :  { %11079 = vmatpush2.bf16.msra.mxu0 %v12977_v53  ;;  %v1237_v4 = vld [vmem:[%s18571_s1 + $0x2610] sm:$0xff]  ;;  %v12946_v36 = vcombine.high %v1109_v60, %v1113_v1  ;;  %v12945_v19 = vcombine.low %v1109_v60, %v1113_v1 }
 0x446   :  { %11120 = vmatpush2.bf16.msra.mxu1 %v13105_v7  ;;  %11080 = vmatprep.subr.bf16.mxu0 %v12970_v24  ;;  %v1241_v25 = vld [vmem:[%s18571_s1 + $0x2630] sm:$0xff] }
 0x447   :  { %11121 = vmatprep.subr.bf16.mxu1 %v13098_v27  ;;  %v13074_v49 = vcombine.high %v1237_v4, %v1241_v25  ;;  %v1357_v20 = vld [vmem:[%s18571_s1 + $0x29d0] sm:$0xff]  ;;  %v13073_v59 = vcombine.low %v1237_v4, %v1241_v25 }
 0x448   :  { %v1361_v14 = vld [vmem:[%s18571_s1 + $0x29f0] sm:$0xff] }
 0x449   :  { %11081 = vmatpush2.bf16.msra.mxu0 %v12969_v37  ;;  %v1485_v16 = vld [vmem:[%s18571_s1 + $0x2dd0] sm:$0xff]  ;;  %v13194_v53 = vcombine.high %v1357_v20, %v1361_v14  ;;  %v13193_v5 = vcombine.low %v1357_v20, %v1361_v14 }
 0x44a   :  { %11122 = vmatpush2.bf16.msra.mxu1 %v13097_v63  ;;  %11082 = vmatprep.subr.bf16.mxu0 %v12962_v38  ;;  %v1489_v35 = vld [vmem:[%s18571_s1 + $0x2df0] sm:$0xff] }
 0x44b   :  { %11123 = vmatprep.subr.bf16.mxu1 %v13090_v40  ;;  %v13322_v7 = vcombine.high %v1485_v16, %v1489_v35  ;;  %v1349_v24 = vld [vmem:[%s18571_s1 + $0x2990] sm:$0xff]  ;;  %v13321_v2 = vcombine.low %v1485_v16, %v1489_v35 }
 0x44c   :  { %v1353_v27 = vld [vmem:[%s18571_s1 + $0x29b0] sm:$0xff] }
 0x44d   :  { %11083 = vmatpush2.bf16.msra.mxu0 %v12961_v52  ;;  %v1477_v6 = vld [vmem:[%s18571_s1 + $0x2d90] sm:$0xff]  ;;  %v13186_v37 = vcombine.high %v1349_v24, %v1353_v27 }
 0x44e   :  { %11124 = vmatpush2.bf16.msra.mxu1 %v13089_v51  ;;  %11084 = vmatprep.subr.bf16.mxu0 %v12954_v54  ;;  %v1481_v17 = vld [vmem:[%s18571_s1 + $0x2db0] sm:$0xff]  ;;  %v13185_v51 = vcombine.low %v1349_v24, %v1353_v27 }
 0x44f   :  { %11125 = vmatprep.subr.bf16.mxu1 %v13082_v57  ;;  %v13314_v63 = vcombine.high %v1477_v6, %v1481_v17  ;;  %v1341_v38 = vld [vmem:[%s18571_s1 + $0x2950] sm:$0xff]  ;;  %v13313_v57 = vcombine.low %v1477_v6, %v1481_v17 }
 0x450   :  { %v1345_v40 = vld [vmem:[%s18571_s1 + $0x2970] sm:$0xff] }
 0x451   :  { %11085 = vmatpush2.bf16.msra.mxu0 %v12953_v12  ;;  %v1469_v34 = vld [vmem:[%s18571_s1 + $0x2d50] sm:$0xff]  ;;  %v13178_v60 = vcombine.high %v1341_v38, %v1345_v40  ;;  %v13177_v16 = vcombine.low %v1341_v38, %v1345_v40 }
 0x452   :  { %11126 = vmatpush2.bf16.msra.mxu1 %v13081_v61  ;;  %11086 = vmatprep.subr.bf16.mxu0 %v12946_v36  ;;  %v1473_v46 = vld [vmem:[%s18571_s1 + $0x2d70] sm:$0xff] }
 0x453   :  { %11127 = vmatprep.subr.bf16.mxu1 %v13074_v49  ;;  %v13306_v12 = vcombine.high %v1469_v34, %v1473_v46  ;;  %v1337_v61 = vld [vmem:[%s18571_s1 + $0x2930] sm:$0xff] }
 0x454   :  { %v1461_v49 = vld [vmem:[%s18571_s1 + $0x2d10] sm:$0xff] }
 0x455   :  { %11087 = vmatpush2.bf16.msra.mxu0 %v12945_v19  ;;  %v13305_v19 = vcombine.low %v1469_v34, %v1473_v46  ;;  %v1325_v24 = vld [vmem:[%s18571_s1 + $0x28d0] sm:$0xff] }
 0x456   :  { %11128 = vmatpush2.bf16.msra.mxu1 %v13073_v59  ;;  %11138 = vmatprep.subr.bf16.mxu0 %v13194_v53  ;;  %v1329_v27 = vld [vmem:[%s18571_s1 + $0x28f0] sm:$0xff] }
 0x457   :  { %11179 = vmatprep.subr.bf16.mxu1 %v13322_v7  ;;  %v1453_v6 = vld [vmem:[%s18571_s1 + $0x2cd0] sm:$0xff]  ;;  %v13161_v46 = vcombine.low %v1325_v24, %v1329_v27 }
 0x458   :  { %v10844_v42 = vpop.f32.mrf.mxu0  ;;  %11089 = vmatmul.mubr.bf16.vlgmr.msra.gmra.mxu0 %v14584_v50  ;;  %v1457_v17 = vld [vmem:[%s18571_s1 + $0x2cf0] sm:$0xff] }
 0x459   :  { %v10845_v48 = vadd.f32 %v10844_v42, %v16930_v10  ;;  %v10885_v52 = vpop.f32.mrf.mxu1  ;;  %11130 = vmatmul.mubr.bf16.vlgmr.msra.gmra.mxu1 %v14603_v0  ;;  %11139 = vmatpush1.bf16.msra.mxu0 %v13193_v5  ;;  %v1333_v10 = vld [vmem:[%s18571_s1 + $0x2910] sm:$0xff] }
 0x45a   :  { %11180 = vmatpush1.bf16.msra.mxu1 %v13321_v2  ;;  %v10846_v54 = vpop.f32.mrf.mxu0  ;;  %11140 = vmatprep.subr.bf16.mxu0 %v13186_v37  ;;  %v13170_v59 = vcombine.high %v1333_v10, %v1337_v61  ;;  %v13169_v5 = vcombine.low %v1333_v10, %v1337_v61  ;;  %v13162_v37 = vcombine.high %v1325_v24, %v1329_v27  ;;  %v1317_v38 = vld [vmem:[%s18571_s1 + $0x2890] sm:$0xff] }
 0x45b   :  { %v17131_v1 = vadd.f32 %v10885_v52, %v10845_v48  ;;  %v10847_v4 = vadd.f32 %v10846_v54, %v16946_v28  ;;  %v10887_v25 = vpop.f32.mrf.mxu1  ;;  %11181 = vmatprep.subr.bf16.mxu1 %v13314_v63  ;;  %11170 = vmatprep.mubr.bf16.mxu0 %v14599_v62  ;;  %v1465_v28 = vld [vmem:[%s18571_s1 + $0x2d30] sm:$0xff]  ;;  %v13290_v63 = vcombine.high %v1453_v6, %v1457_v17 }
 0x45c   :  { %v10848_v36 = vpop.f32.mrf.mxu0  ;;  %11211 = vmatprep.mubr.bf16.mxu1 %v14620_v15  ;;  %v13298_v7 = vcombine.high %v1461_v49, %v1465_v28  ;;  %v13297_v2 = vcombine.low %v1461_v49, %v1465_v28  ;;  %v1321_v40 = vld [vmem:[%s18571_s1 + $0x28b0] sm:$0xff]  ;;  %v13289_v48 = vcombine.low %v1453_v6, %v1457_v17 }
 0x45d   :  { %v17148_v20 = vadd.f32 %v10887_v25, %v10847_v4  ;;  %v10889_v14 = vpop.f32.mrf.mxu1  ;;  %11141 = vmatpush1.bf16.msra.mxu0 %v13185_v51  ;;  %v1445_v42 = vld [vmem:[%s18571_s1 + $0x2c90] sm:$0xff]  ;;  %v13154_v52 = vcombine.high %v1317_v38, %v1321_v40  ;;  %v13153_v25 = vcombine.low %v1317_v38, %v1321_v40 }
 0x45e   :  { %11182 = vmatpush1.bf16.msra.mxu1 %v13313_v57  ;;  %v10849_v35 = vpop.f32.mrf.mxu0  ;;  %11142 = vmatprep.subr.bf16.mxu0 %v13178_v60  ;;  %v1449_v34 = vld [vmem:[%s18571_s1 + $0x2cb0] sm:$0xff] }
 0x45f   :  { %v10890_v53 = vpop.f32.mrf.mxu1  ;;  %11183 = vmatprep.subr.bf16.mxu1 %v13306_v12  ;;  %v13282_v51 = vcombine.high %v1445_v42, %v1449_v34  ;;  %v1309_v54 = vld [vmem:[%s18571_s1 + $0x2850] sm:$0xff]  ;;  %v13281_v12 = vcombine.low %v1445_v42, %v1449_v34 }
 0x460   :  { %v1313_v57 = vld [vmem:[%s18571_s1 + $0x2870] sm:$0xff] }
 0x461   :  { %11143 = vmatpush1.bf16.msra.mxu0 %v13177_v16  ;;  %v1437_v60 = vld [vmem:[%s18571_s1 + $0x2c50] sm:$0xff]  ;;  %v13146_v10 = vcombine.high %v1309_v54, %v1313_v57  ;;  %v13145_v16 = vcombine.low %v1309_v54, %v1313_v57 }
 0x462   :  { %11184 = vmatpush1.bf16.msra.mxu1 %v13305_v19  ;;  %11144 = vmatprep.subr.bf16.mxu0 %v13170_v59  ;;  %v1441_v4 = vld [vmem:[%s18571_s1 + $0x2c70] sm:$0xff] }
 0x463   :  { %11185 = vmatprep.subr.bf16.mxu1 %v13298_v7  ;;  %v13274_v61 = vcombine.high %v1437_v60, %v1441_v4  ;;  %v1301_v36 = vld [vmem:[%s18571_s1 + $0x2810] sm:$0xff]  ;;  %v13273_v35 = vcombine.low %v1437_v60, %v1441_v4 }
 0x464   :  { %v1305_v49 = vld [vmem:[%s18571_s1 + $0x2830] sm:$0xff] }
 0x465   :  { %11145 = vmatpush1.bf16.msra.mxu0 %v13169_v5  ;;  %v1429_v28 = vld [vmem:[%s18571_s1 + $0x2c10] sm:$0xff]  ;;  %v13138_v19 = vcombine.high %v1301_v36, %v1305_v49  ;;  %v13137_v6 = vcombine.low %v1301_v36, %v1305_v49 }
 0x466   :  { %11186 = vmatpush1.bf16.msra.mxu1 %v13297_v2  ;;  %11146 = vmatprep.subr.bf16.mxu0 %v13162_v37  ;;  %v1433_v14 = vld [vmem:[%s18571_s1 + $0x2c30] sm:$0xff] }
 0x467   :  { %11187 = vmatprep.subr.bf16.mxu1 %v13290_v63  ;;  %v13266_v59 = vcombine.high %v1429_v28, %v1433_v14  ;;  %v1421_v53 = vld [vmem:[%s18571_s1 + $0x2bd0] sm:$0xff]  ;;  %v13265_v17 = vcombine.low %v1429_v28, %v1433_v14 }
 0x468   :  { %v1425_v7 = vld [vmem:[%s18571_s1 + $0x2bf0] sm:$0xff] }
 0x469   :  { %11147 = vmatpush1.bf16.msra.mxu0 %v13161_v46  ;;  %v1549_v24 = vld [vmem:[%s18571_s1 + $0x2fd0] sm:$0xff]  ;;  %v13258_v5 = vcombine.high %v1421_v53, %v1425_v7  ;;  %v13257_v42 = vcombine.low %v1421_v53, %v1425_v7 }
 0x46a   :  { %11188 = vmatpush1.bf16.msra.mxu1 %v13289_v48  ;;  %11148 = vmatprep.subr.bf16.mxu0 %v13154_v52  ;;  %v1553_v27 = vld [vmem:[%s18571_s1 + $0x2ff0] sm:$0xff] }
 0x46b   :  { %11189 = vmatprep.subr.bf16.mxu1 %v13282_v51  ;;  %v13386_v2 = vcombine.high %v1549_v24, %v1553_v27  ;;  %v1413_v37 = vld [vmem:[%s18571_s1 + $0x2b90] sm:$0xff]  ;;  %v13385_v34 = vcombine.low %v1549_v24, %v1553_v27 }
 0x46c   :  { %v1417_v63 = vld [vmem:[%s18571_s1 + $0x2bb0] sm:$0xff] }
 0x46d   :  { %11149 = vmatpush1.bf16.msra.mxu0 %v13153_v25  ;;  %v1541_v38 = vld [vmem:[%s18571_s1 + $0x2f90] sm:$0xff]  ;;  %v13250_v46 = vcombine.high %v1413_v37, %v1417_v63  ;;  %v13249_v60 = vcombine.low %v1413_v37, %v1417_v63 }
 0x46e   :  { %11190 = vmatpush1.bf16.msra.mxu1 %v13281_v12  ;;  %11150 = vmatprep.subr.bf16.mxu0 %v13146_v10  ;;  %v1545_v40 = vld [vmem:[%s18571_s1 + $0x2fb0] sm:$0xff] }
 0x46f   :  { %11191 = vmatprep.subr.bf16.mxu1 %v13274_v61  ;;  %v13378_v48 = vcombine.high %v1541_v38, %v1545_v40  ;;  %v1405_v52 = vld [vmem:[%s18571_s1 + $0x2b50] sm:$0xff]  ;;  %v13377_v4 = vcombine.low %v1541_v38, %v1545_v40 }
 0x470   :  { %v1409_v51 = vld [vmem:[%s18571_s1 + $0x2b70] sm:$0xff] }
 0x471   :  { %11151 = vmatpush1.bf16.msra.mxu0 %v13145_v16  ;;  %v1533_v54 = vld [vmem:[%s18571_s1 + $0x2f50] sm:$0xff]  ;;  %v13242_v25 = vcombine.high %v1405_v52, %v1409_v51  ;;  %v13241_v28 = vcombine.low %v1405_v52, %v1409_v51 }
 0x472   :  { %11192 = vmatpush1.bf16.msra.mxu1 %v13273_v35  ;;  %11152 = vmatprep.subr.bf16.mxu0 %v13138_v19  ;;  %v1537_v57 = vld [vmem:[%s18571_s1 + $0x2f70] sm:$0xff] }
 0x473   :  { %11193 = vmatprep.subr.bf16.mxu1 %v13266_v59  ;;  %v13370_v12 = vcombine.high %v1533_v54, %v1537_v57  ;;  %v1397_v10 = vld [vmem:[%s18571_s1 + $0x2b10] sm:$0xff]  ;;  %v13369_v14 = vcombine.low %v1533_v54, %v1537_v57 }
 0x474   :  { %v1401_v61 = vld [vmem:[%s18571_s1 + $0x2b30] sm:$0xff] }
 0x475   :  { %11153 = vmatpush1.bf16.msra.mxu0 %v13137_v6  ;;  %v1525_v36 = vld [vmem:[%s18571_s1 + $0x2f10] sm:$0xff]  ;;  %v13234_v16 = vcombine.high %v1397_v10, %v1401_v61  ;;  %v13233_v24 = vcombine.low %v1397_v10, %v1401_v61 }
 0x476   :  { %11194 = vmatpush1.bf16.msra.mxu1 %v13265_v17  ;;  %11154 = vmatprep.subr.bf16.mxu0 %v13258_v5  ;;  %v1529_v49 = vld [vmem:[%s18571_s1 + $0x2f30] sm:$0xff] }
 0x477   :  { %11195 = vmatprep.subr.bf16.mxu1 %v13386_v2  ;;  %v13362_v35 = vcombine.high %v1525_v36, %v1529_v49  ;;  %v1389_v19 = vld [vmem:[%s18571_s1 + $0x2ad0] sm:$0xff]  ;;  %v13361_v27 = vcombine.low %v1525_v36, %v1529_v49 }
 0x478   :  { %v1393_v59 = vld [vmem:[%s18571_s1 + $0x2af0] sm:$0xff] }
 0x479   :  { %11155 = vmatpush2.bf16.msra.mxu0 %v13257_v42  ;;  %v1517_v53 = vld [vmem:[%s18571_s1 + $0x2ed0] sm:$0xff]  ;;  %v13226_v6 = vcombine.high %v1389_v19, %v1393_v59  ;;  %v13225_v38 = vcombine.low %v1389_v19, %v1393_v59  ;;  %v78_v19 = vld [vmem:[%s18571_s1 + $0x1d8] sm:$0xff] }
 0x47a   :  { %11196 = vmatpush2.bf16.msra.mxu1 %v13385_v34  ;;  %11156 = vmatprep.subr.bf16.mxu0 %v13250_v46  ;;  %v1521_v7 = vld [vmem:[%s18571_s1 + $0x2ef0] sm:$0xff]  ;;  %v82_v59 = vld [vmem:[%s18571_s1 + $0x1f8] sm:$0xff] }
 0x47b   :  { %11197 = vmatprep.subr.bf16.mxu1 %v13378_v48  ;;  %v13354_v17 = vcombine.high %v1517_v53, %v1521_v7  ;;  %v1381_v5 = vld [vmem:[%s18571_s1 + $0x2a90] sm:$0xff]  ;;  %v13353_v40 = vcombine.low %v1517_v53, %v1521_v7 }
 0x47c   :  { %v1385_v2 = vld [vmem:[%s18571_s1 + $0x2ab0] sm:$0xff] }
 0x47d   :  { %11157 = vmatpush2.bf16.msra.mxu0 %v13249_v60  ;;  %v1509_v37 = vld [vmem:[%s18571_s1 + $0x2e90] sm:$0xff]  ;;  %v13218_v42 = vcombine.high %v1381_v5, %v1385_v2  ;;  %v13217_v54 = vcombine.low %v1381_v5, %v1385_v2  ;;  %v70_v5 = vld [vmem:[%s18571_s1 + $0x198] sm:$0xff] }
 0x47e   :  { %11198 = vmatpush2.bf16.msra.mxu1 %v13377_v4  ;;  %11158 = vmatprep.subr.bf16.mxu0 %v13242_v25  ;;  %v1513_v63 = vld [vmem:[%s18571_s1 + $0x2eb0] sm:$0xff]  ;;  %v74_v2 = vld [vmem:[%s18571_s1 + $0x1b8] sm:$0xff] }
 0x47f   :  { %11199 = vmatprep.subr.bf16.mxu1 %v13370_v12  ;;  %v13346_v34 = vcombine.high %v1509_v37, %v1513_v63  ;;  %v1373_v46 = vld [vmem:[%s18571_s1 + $0x2a50] sm:$0xff]  ;;  %v13345_v57 = vcombine.low %v1509_v37, %v1513_v63  ;;  %v11915_v63 = vcombine.low %v78_v19, %v82_v59 }
 0x480   :  { %v1377_v48 = vld [vmem:[%s18571_s1 + $0x2a70] sm:$0xff] }
 0x481   :  { %11159 = vmatpush2.bf16.msra.mxu0 %v13241_v28  ;;  %v1501_v52 = vld [vmem:[%s18571_s1 + $0x2e50] sm:$0xff]  ;;  %v13210_v60 = vcombine.high %v1373_v46, %v1377_v48  ;;  %v13209_v36 = vcombine.low %v1373_v46, %v1377_v48  ;;  %v62_v48 = vld [vmem:[%s18571_s1 + $0x158] sm:$0xff] }
 0x482   :  { %11200 = vmatpush2.bf16.msra.mxu1 %v13369_v14  ;;  %11160 = vmatprep.subr.bf16.mxu0 %v13234_v16  ;;  %v1505_v51 = vld [vmem:[%s18571_s1 + $0x2e70] sm:$0xff] }
 0x483   :  { %11201 = vmatprep.subr.bf16.mxu1 %v13362_v35  ;;  %v13338_v4 = vcombine.high %v1501_v52, %v1505_v51  ;;  %v1365_v25 = vld [vmem:[%s18571_s1 + $0x2a10] sm:$0xff]  ;;  %v13337_v49 = vcombine.low %v1501_v52, %v1505_v51  ;;  %v66_v52 = vld [vmem:[%s18571_s1 + $0x178] sm:$0xff] }
 0x484   :  { %v1369_v12 = vld [vmem:[%s18571_s1 + $0x2a30] sm:$0xff] }
 0x485   :  { %11161 = vmatpush2.bf16.msra.mxu0 %v13233_v24  ;;  %v1493_v10 = vld [vmem:[%s18571_s1 + $0x2e10] sm:$0xff]  ;;  %v13202_v28 = vcombine.high %v1365_v25, %v1369_v12  ;;  %v13201_v53 = vcombine.low %v1365_v25, %v1369_v12 }
 0x486   :  { %11202 = vmatpush2.bf16.msra.mxu1 %v13361_v27  ;;  %11162 = vmatprep.subr.bf16.mxu0 %v13226_v6  ;;  %v1497_v61 = vld [vmem:[%s18571_s1 + $0x2e30] sm:$0xff]  ;;  %v11916_v27 = vcombine.high %v78_v19, %v82_v59 }
 0x487   :  { %11203 = vmatprep.subr.bf16.mxu1 %v13354_v17  ;;  %v13330_v14 = vcombine.high %v1493_v10, %v1497_v61  ;;  %v1581_v16 = vld [vmem:[%s18571_s1 + $0x30d0] sm:$0xff]  ;;  %v13329_v7 = vcombine.low %v1493_v10, %v1497_v61 }
 0x488   :  { %v1585_v35 = vld [vmem:[%s18571_s1 + $0x30f0] sm:$0xff] }
 0x489   :  { %11163 = vmatpush2.bf16.msra.mxu0 %v13225_v38  ;;  %v13418_v24 = vcombine.high %v1581_v16, %v1585_v35  ;;  %v1573_v6 = vld [vmem:[%s18571_s1 + $0x3090] sm:$0xff]  ;;  %v13417_v37 = vcombine.low %v1581_v16, %v1585_v35 }
 0x48a   :  { %11204 = vmatpush2.bf16.msra.mxu1 %v13353_v40  ;;  %11164 = vmatprep.subr.bf16.mxu0 %v13218_v42  ;;  %v1577_v17 = vld [vmem:[%s18571_s1 + $0x30b0] sm:$0xff]  ;;  %v11908_v40 = vcombine.high %v70_v5, %v74_v2 }
 0x48b   :  { %11205 = vmatprep.subr.bf16.mxu1 %v13346_v34  ;;  %v13410_v38 = vcombine.high %v1573_v6, %v1577_v17  ;;  %v1565_v42 = vld [vmem:[%s18571_s1 + $0x3050] sm:$0xff] }
 0x48c   :  { %v1569_v34 = vld [vmem:[%s18571_s1 + $0x3070] sm:$0xff] }
 0x48d   :  { %11165 = vmatpush2.bf16.msra.mxu0 %v13217_v54  ;;  %v13402_v25 = vcombine.high %v1565_v42, %v1569_v34  ;;  %v13401_v19 = vcombine.low %v1565_v42, %v1569_v34  ;;  %v202_v42 = vld [vmem:[%s18571_s1 + $0x5b8] sm:$0xff] }
 0x48e   :  { %11206 = vmatpush2.bf16.msra.mxu1 %v13345_v57  ;;  %11166 = vmatprep.subr.bf16.mxu0 %v13210_v60  ;;  %v13409_v57 = vcombine.low %v1573_v6, %v1577_v17  ;;  %v206_v6 = vld [vmem:[%s18571_s1 + $0x5d8] sm:$0xff] }
 0x48f   :  { %11207 = vmatprep.subr.bf16.mxu1 %v13338_v4  ;;  %v11907_v4 = vcombine.low %v70_v5, %v74_v2  ;;  %v46_v17 = vld [vmem:[%s18571_s1 + $0xd8] sm:$0xff] }
 0x490   :  { %v50_v5 = vld [vmem:[%s18571_s1 + $0xf8] sm:$0xff] }
 0x491   :  { %11167 = vmatpush2.bf16.msra.mxu0 %v13209_v36  ;;  %v11900_v36 = vcombine.high %v62_v48, %v66_v52  ;;  %v38_v34 = vld [vmem:[%s18571_s1 + $0x98] sm:$0xff] }
 0x492   :  { %11208 = vmatpush2.bf16.msra.mxu1 %v13337_v49  ;;  %11168 = vmatprep.subr.bf16.mxu0 %v13202_v28  ;;  %v1561_v49 = vld [vmem:[%s18571_s1 + $0x3030] sm:$0xff] }
 0x493   :  { %11209 = vmatprep.subr.bf16.mxu1 %v13330_v14  ;;  %v54_v14 = vld [vmem:[%s18571_s1 + $0x118] sm:$0xff] }
 0x495   :  { %11169 = vmatpush2.bf16.msra.mxu0 %v13201_v53  ;;  %v11899_v53 = vcombine.low %v62_v48, %v66_v52  ;;  %v11883_v52 = vcombine.low %v46_v17, %v50_v5 }
 0x496   :  { %11210 = vmatpush2.bf16.msra.mxu1 %v13329_v7  ;;  %11228 = vmatprep.subr.bf16.mxu0 %v13418_v24 }
 0x497   :  { %11261 = vmatprep.subr.bf16.mxu1 %v11916_v27 }
 0x498   :  { %v10926_v46 = vpop.f32.mrf.mxu0  ;;  %11171 = vmatmul.mubr.bf16.vlgmr.msra.gmra.mxu0 %v14801_v33 }
 0x499   :  { %v10927_v51 = vadd.f32 %v10926_v46, %v17131_v1  ;;  %v10967_v54 = vpop.f32.mrf.mxu1  ;;  %11212 = vmatmul.mubr.bf16.vlgmr.msra.gmra.mxu1 %v14817_v45  ;;  %11229 = vmatpush1.bf16.msra.mxu0 %v13417_v37  ;;  %v1557_v1 = vld [vmem:[%s18571_s1 + $0x3010] sm:$0xff]  ;;  %v42_v46 = vld [vmem:[%s18571_s1 + $0xb8] sm:$0xff] }
 0x49a   :  { %11262 = vmatpush1.bf16.msra.mxu1 %v11915_v63  ;;  %v10928_v60 = vpop.f32.mrf.mxu0  ;;  %11230 = vmatprep.subr.bf16.mxu0 %v13410_v38  ;;  %v13394_v7 = vcombine.high %v1557_v1, %v1561_v49  ;;  %v13393_v2 = vcombine.low %v1557_v1, %v1561_v49  ;;  %v11884_v38 = vcombine.high %v46_v17, %v50_v5  ;;  %v182_v49 = vld [vmem:[%s18571_s1 + $0x518] sm:$0xff] }
 0x49b   :  { %v17333_v12 = vadd.f32 %v10967_v54, %v10927_v51  ;;  %v10929_v10 = vadd.f32 %v10928_v60, %v17148_v20  ;;  %v10969_v61 = vpop.f32.mrf.mxu1  ;;  %11263 = vmatprep.subr.bf16.mxu1 %v11908_v40  ;;  %11252 = vmatprep.mubr.bf16.mxu0 %v13435_v18  ;;  %v58_v20 = vld [vmem:[%s18571_s1 + $0x138] sm:$0xff]  ;;  %v11876_v54 = vcombine.high %v38_v34, %v42_v46 }
 0x49c   :  { %v10930_v28 = vpop.f32.mrf.mxu0  ;;  %11293 = vmatprep.mubr.bf16.mxu1 %v13576_v9  ;;  %v11892_v27 = vcombine.high %v54_v14, %v58_v20  ;;  %v210_v9 = vld [vmem:[%s18571_s1 + $0x5f8] sm:$0xff]  ;;  %v11891_v37 = vcombine.low %v54_v14, %v58_v20 }
 0x49d   :  { %v17350_v16 = vadd.f32 %v10969_v61, %v10929_v10  ;;  %v10971_v35 = vpop.f32.mrf.mxu1  ;;  %11231 = vmatpush1.bf16.msra.mxu0 %v13409_v57  ;;  %v12044_v63 = vcombine.high %v206_v6, %v210_v9  ;;  %v198_v40 = vld [vmem:[%s18571_s1 + $0x598] sm:$0xff]  ;;  %v12043_v48 = vcombine.low %v206_v6, %v210_v9  ;;  %v11875_v61 = vcombine.low %v38_v34, %v42_v46 }
 0x49e   :  { %11264 = vmatpush1.bf16.msra.mxu1 %v11907_v4  ;;  %v10931_v59 = vpop.f32.mrf.mxu0  ;;  %11232 = vmatprep.subr.bf16.mxu0 %v13402_v25  ;;  %v12036_v51 = vcombine.high %v198_v40, %v202_v42  ;;  %v190_v57 = vld [vmem:[%s18571_s1 + $0x558] sm:$0xff]  ;;  %v12035_v10 = vcombine.low %v198_v40, %v202_v42 }
 0x49f   :  { %v10972_v24 = vpop.f32.mrf.mxu1  ;;  %11265 = vmatprep.subr.bf16.mxu1 %v11900_v36  ;;  %v194_v60 = vld [vmem:[%s18571_s1 + $0x578] sm:$0xff] }
 0x4a0   :  { %v30_v4 = vld [vmem:[%s18571_s1 + $0x58] sm:$0xff]  ;;  %v12028_v36 = vcombine.high %v190_v57, %v194_v60  ;;  %v12027_v20 = vcombine.low %v190_v57, %v194_v60 }
 0x4a1   :  { %11233 = vmatpush1.bf16.msra.mxu0 %v13401_v19  ;;  %v34_v25 = vld [vmem:[%s18571_s1 + $0x78] sm:$0xff] }
 0x4a2   :  { %11266 = vmatpush1.bf16.msra.mxu1 %v11899_v53  ;;  %11234 = vmatprep.subr.bf16.mxu0 %v13394_v7  ;;  %v11868_v1 = vcombine.high %v30_v4, %v34_v25  ;;  %v186_v28 = vld [vmem:[%s18571_s1 + $0x538] sm:$0xff]  ;;  %v11867_v35 = vcombine.low %v30_v4, %v34_v25 }
 0x4a3   :  { %11267 = vmatprep.subr.bf16.mxu1 %v11892_v27  ;;  %v22_v14 = vld [vmem:[%s18571_s1 + $0x18] sm:$0xff]  ;;  %v12020_v19 = vcombine.high %v182_v49, %v186_v28  ;;  %v12019_v6 = vcombine.low %v182_v49, %v186_v28 }
 0x4a4   :  { %v174_v53 = vld [vmem:[%s18571_s1 + $0x4d8] sm:$0xff] }
 0x4a5   :  { %11235 = vmatpush1.bf16.msra.mxu0 %v13393_v2  ;;  %v178_v7 = vld [vmem:[%s18571_s1 + $0x4f8] sm:$0xff] }
 0x4a6   :  { %11268 = vmatpush1.bf16.msra.mxu1 %v11891_v37  ;;  %11302 = vmatprep.subr.bf16.mxu0 %v12044_v63  ;;  %v142_v24 = vld [vmem:[%s18571_s1 + $0x3d8] sm:$0xff]  ;;  %v12012_v17 = vcombine.high %v174_v53, %v178_v7  ;;  %v12011_v40 = vcombine.low %v174_v53, %v178_v7 }
 0x4a7   :  { %11269 = vmatprep.subr.bf16.mxu1 %v11884_v38  ;;  %v146_v27 = vld [vmem:[%s18571_s1 + $0x3f8] sm:$0xff] }
 0x4a8   :  { %13423 = vmatmul.mubr.msk.bf16.vlgmr.msra.gmra.mxu0 %vm9658_vm0, %v14875_v58  ;;  %v11980_v5 = vcombine.high %v142_v24, %v146_v27  ;;  %v166_v2 = vld [vmem:[%s18571_s1 + $0x498] sm:$0xff]  ;;  %v11979_v42 = vcombine.low %v142_v24, %v146_v27 }
 0x4a9   :  { %11303 = vmatpush1.bf16.msra.mxu0 %v12043_v48  ;;  %11334 = vmatprep.mubr.bf16.mxu0 %v13587_v13  ;;  %v26_v13 = vld [vmem:[%s18571_s1 + $0x38] sm:$0xff] }
 0x4aa   :  { %11270 = vmatpush1.bf16.msra.mxu1 %v11883_v52  ;;  %11304 = vmatprep.subr.bf16.mxu0 %v12036_v51  ;;  %v11860_v59 = vcombine.high %v22_v14, %v26_v13  ;;  %v11859_v9 = vcombine.low %v22_v14, %v26_v13  ;;  %v170_v37 = vld [vmem:[%s18571_s1 + $0x4b8] sm:$0xff] }
 0x4ab   :  { %11271 = vmatprep.subr.bf16.mxu1 %v11876_v54  ;;  %v134_v63 = vld [vmem:[%s18571_s1 + $0x398] sm:$0xff]  ;;  %v12004_v34 = vcombine.high %v166_v2, %v170_v37  ;;  %v12003_v57 = vcombine.low %v166_v2, %v170_v37 }
 0x4ac   :  { %v138_v38 = vld [vmem:[%s18571_s1 + $0x3b8] sm:$0xff] }
 0x4ad   :  { %11305 = vmatpush1.bf16.msra.mxu0 %v12035_v10  ;;  %v11972_v46 = vcombine.high %v134_v63, %v138_v38  ;;  %v158_v48 = vld [vmem:[%s18571_s1 + $0x458] sm:$0xff]  ;;  %v11971_v60 = vcombine.low %v134_v63, %v138_v38 }
 0x4ae   :  { %11272 = vmatpush1.bf16.msra.mxu1 %v11875_v61  ;;  %11306 = vmatprep.subr.bf16.mxu0 %v12028_v36  ;;  %v162_v52 = vld [vmem:[%s18571_s1 + $0x478] sm:$0xff] }
 0x4af   :  { %11273 = vmatprep.subr.bf16.mxu1 %v11868_v1  ;;  %v126_v51 = vld [vmem:[%s18571_s1 + $0x358] sm:$0xff]  ;;  %v11996_v4 = vcombine.high %v158_v48, %v162_v52  ;;  %v11995_v49 = vcombine.low %v158_v48, %v162_v52 }
 0x4b0   :  { %v130_v54 = vld [vmem:[%s18571_s1 + $0x378] sm:$0xff] }
 0x4b1   :  { %11307 = vmatpush1.bf16.msra.mxu0 %v12027_v20  ;;  %v11964_v25 = vcombine.high %v126_v51, %v130_v54  ;;  %v150_v10 = vld [vmem:[%s18571_s1 + $0x418] sm:$0xff]  ;;  %v11963_v28 = vcombine.low %v126_v51, %v130_v54 }
 0x4b2   :  { %11274 = vmatpush1.bf16.msra.mxu1 %v11867_v35  ;;  %11308 = vmatprep.subr.bf16.mxu0 %v12020_v19  ;;  %v154_v61 = vld [vmem:[%s18571_s1 + $0x438] sm:$0xff] }
 0x4b3   :  { %11275 = vmatprep.subr.bf16.mxu1 %v11860_v59  ;;  %v118_v36 = vld [vmem:[%s18571_s1 + $0x318] sm:$0xff]  ;;  %v11988_v14 = vcombine.high %v150_v10, %v154_v61  ;;  %v11987_v53 = vcombine.low %v150_v10, %v154_v61 }
 0x4b4   :  { %v122_v1 = vld [vmem:[%s18571_s1 + $0x338] sm:$0xff] }
 0x4b5   :  { %11309 = vmatpush1.bf16.msra.mxu0 %v12019_v6  ;;  %v11956_v13 = vcombine.high %v118_v36, %v122_v1  ;;  %v270_v20 = vld [vmem:[%s18571_s1 + $0x7d8] sm:$0xff]  ;;  %v11955_v7 = vcombine.low %v118_v36, %v122_v1 }
 0x4b6   :  { %11276 = vmatpush1.bf16.msra.mxu1 %v11859_v9  ;;  %11310 = vmatprep.subr.bf16.mxu0 %v12012_v17  ;;  %v274_v35 = vld [vmem:[%s18571_s1 + $0x7f8] sm:$0xff] }
 0x4b7   :  { %11277 = vmatprep.subr.bf16.mxu1 %v11980_v5  ;;  %v110_v19 = vld [vmem:[%s18571_s1 + $0x2d8] sm:$0xff]  ;;  %v12108_v24 = vcombine.high %v270_v20, %v274_v35  ;;  %v12107_v2 = vcombine.low %v270_v20, %v274_v35 }
 0x4b8   :  { %v114_v59 = vld [vmem:[%s18571_s1 + $0x2f8] sm:$0xff] }
 0x4b9   :  { %11311 = vmatpush1.bf16.msra.mxu0 %v12011_v40  ;;  %v11948_v27 = vcombine.high %v110_v19, %v114_v59  ;;  %v262_v6 = vld [vmem:[%s18571_s1 + $0x798] sm:$0xff]  ;;  %v11947_v37 = vcombine.low %v110_v19, %v114_v59 }
 0x4ba   :  { %11278 = vmatpush2.bf16.msra.mxu1 %v11979_v42  ;;  %11312 = vmatprep.subr.bf16.mxu0 %v12004_v34  ;;  %v266_v9 = vld [vmem:[%s18571_s1 + $0x7b8] sm:$0xff] }
 0x4bb   :  { %11279 = vmatprep.subr.bf16.mxu1 %v11972_v46  ;;  %v102_v17 = vld [vmem:[%s18571_s1 + $0x298] sm:$0xff]  ;;  %v12100_v63 = vcombine.high %v262_v6, %v266_v9  ;;  %v12099_v48 = vcombine.low %v262_v6, %v266_v9 }
 0x4bc   :  { %v106_v5 = vld [vmem:[%s18571_s1 + $0x2b8] sm:$0xff] }
 0x4bd   :  { %11313 = vmatpush1.bf16.msra.mxu0 %v12003_v57  ;;  %v11940_v38 = vcombine.high %v102_v17, %v106_v5  ;;  %v254_v40 = vld [vmem:[%s18571_s1 + $0x758] sm:$0xff]  ;;  %v11939_v52 = vcombine.low %v102_v17, %v106_v5 }
 0x4be   :  { %11280 = vmatpush2.bf16.msra.mxu1 %v11971_v60  ;;  %11314 = vmatprep.subr.bf16.mxu0 %v11996_v4  ;;  %v258_v42 = vld [vmem:[%s18571_s1 + $0x778] sm:$0xff] }
 0x4bf   :  { %11281 = vmatprep.subr.bf16.mxu1 %v11964_v25  ;;  %v94_v34 = vld [vmem:[%s18571_s1 + $0x258] sm:$0xff]  ;;  %v12092_v51 = vcombine.high %v254_v40, %v258_v42  ;;  %v12091_v10 = vcombine.low %v254_v40, %v258_v42 }
 0x4c0   :  { %v98_v46 = vld [vmem:[%s18571_s1 + $0x278] sm:$0xff] }
 0x4c1   :  { %11315 = vmatpush1.bf16.msra.mxu0 %v11995_v49  ;;  %v11932_v54 = vcombine.high %v94_v34, %v98_v46  ;;  %v246_v57 = vld [vmem:[%s18571_s1 + $0x718] sm:$0xff]  ;;  %v11931_v61 = vcombine.low %v94_v34, %v98_v46 }
 0x4c2   :  { %11282 = vmatpush2.bf16.msra.mxu1 %v11963_v28  ;;  %11316 = vmatprep.subr.bf16.mxu0 %v11988_v14  ;;  %v250_v60 = vld [vmem:[%s18571_s1 + $0x738] sm:$0xff] }
 0x4c3   :  { %11283 = vmatprep.subr.bf16.mxu1 %v11956_v13  ;;  %v86_v4 = vld [vmem:[%s18571_s1 + $0x218] sm:$0xff]  ;;  %v12084_v36 = vcombine.high %v246_v57, %v250_v60  ;;  %v12083_v20 = vcombine.low %v246_v57, %v250_v60 }
 0x4c4   :  { %v90_v25 = vld [vmem:[%s18571_s1 + $0x238] sm:$0xff] }
 0x4c5   :  { %11317 = vmatpush1.bf16.msra.mxu0 %v11987_v53  ;;  %v11924_v1 = vcombine.high %v86_v4, %v90_v25  ;;  %v238_v49 = vld [vmem:[%s18571_s1 + $0x6d8] sm:$0xff]  ;;  %v11923_v35 = vcombine.low %v86_v4, %v90_v25 }
 0x4c6   :  { %11284 = vmatpush2.bf16.msra.mxu1 %v11955_v7  ;;  %11318 = vmatprep.subr.bf16.mxu0 %v12108_v24  ;;  %v242_v28 = vld [vmem:[%s18571_s1 + $0x6f8] sm:$0xff] }
 0x4c7   :  { %11285 = vmatprep.subr.bf16.mxu1 %v11948_v27  ;;  %v334_v14 = vld [vmem:[%s18571_s1 + $0x9d8] sm:$0xff]  ;;  %v12076_v19 = vcombine.high %v238_v49, %v242_v28  ;;  %v12075_v6 = vcombine.low %v238_v49, %v242_v28 }
 0x4c8   :  { %v338_v13 = vld [vmem:[%s18571_s1 + $0x9f8] sm:$0xff] }
 0x4c9   :  { %11319 = vmatpush2.bf16.msra.mxu0 %v12107_v2  ;;  %v12172_v59 = vcombine.high %v334_v14, %v338_v13  ;;  %v230_v53 = vld [vmem:[%s18571_s1 + $0x698] sm:$0xff]  ;;  %v12171_v9 = vcombine.low %v334_v14, %v338_v13 }
 0x4ca   :  { %11286 = vmatpush2.bf16.msra.mxu1 %v11947_v37  ;;  %11320 = vmatprep.subr.bf16.mxu0 %v12100_v63  ;;  %v234_v7 = vld [vmem:[%s18571_s1 + $0x6b8] sm:$0xff] }
 0x4cb   :  { %11287 = vmatprep.subr.bf16.mxu1 %v11940_v38  ;;  %v326_v24 = vld [vmem:[%s18571_s1 + $0x998] sm:$0xff]  ;;  %v12068_v17 = vcombine.high %v230_v53, %v234_v7  ;;  %v12067_v46 = vcombine.low %v230_v53, %v234_v7 }
 0x4cc   :  { %v330_v27 = vld [vmem:[%s18571_s1 + $0x9b8] sm:$0xff] }
 0x4cd   :  { %11321 = vmatpush2.bf16.msra.mxu0 %v12099_v48  ;;  %v12164_v5 = vcombine.high %v326_v24, %v330_v27  ;;  %v222_v2 = vld [vmem:[%s18571_s1 + $0x658] sm:$0xff] }
 0x4ce   :  { %11288 = vmatpush2.bf16.msra.mxu1 %v11939_v52  ;;  %11322 = vmatprep.subr.bf16.mxu0 %v12092_v51  ;;  %v226_v37 = vld [vmem:[%s18571_s1 + $0x678] sm:$0xff]  ;;  %v12163_v52 = vcombine.low %v326_v24, %v330_v27 }
 0x4cf   :  { %11289 = vmatprep.subr.bf16.mxu1 %v11932_v54  ;;  %v318_v38 = vld [vmem:[%s18571_s1 + $0x958] sm:$0xff]  ;;  %v12060_v51 = vcombine.high %v222_v2, %v226_v37 }
 0x4d0   :  { %v322_v40 = vld [vmem:[%s18571_s1 + $0x978] sm:$0xff] }
 0x4d1   :  { %11323 = vmatpush2.bf16.msra.mxu0 %v12091_v10  ;;  %v12156_v4 = vcombine.high %v318_v38, %v322_v40  ;;  %v310_v10 = vld [vmem:[%s18571_s1 + $0x918] sm:$0xff]  ;;  %v12155_v28 = vcombine.low %v318_v38, %v322_v40 }
 0x4d2   :  { %11290 = vmatpush2.bf16.msra.mxu1 %v11931_v61  ;;  %11324 = vmatprep.subr.bf16.mxu0 %v12084_v36  ;;  %v446_v40 = vld [vmem:[%s18571_s1 + $0xd58] sm:$0xff] }
 0x4d3   :  { %11291 = vmatprep.subr.bf16.mxu1 %v11924_v1  ;;  %v12059_v1 = vcombine.low %v222_v2, %v226_v37 }
 0x4d5   :  { %11325 = vmatpush2.bf16.msra.mxu0 %v12083_v20  ;;  %v462_v20 = vld [vmem:[%s18571_s1 + $0xdd8] sm:$0xff] }
 0x4d6   :  { %11292 = vmatpush2.bf16.msra.mxu1 %v11923_v35  ;;  %11326 = vmatprep.subr.bf16.mxu0 %v12076_v19  ;;  %v466_v35 = vld [vmem:[%s18571_s1 + $0xdf8] sm:$0xff] }
 0x4d7   :  { %11343 = vmatprep.subr.bf16.mxu1 %v12172_v59  ;;  %v302_v19 = vld [vmem:[%s18571_s1 + $0x8d8] sm:$0xff]  ;;  %v12300_v24 = vcombine.high %v462_v20, %v466_v35  ;;  %v12299_v2 = vcombine.low %v462_v20, %v466_v35 }
 0x4d8   :  { %v11008_v63 = vpop.f32.mrf.mxu0  ;;  %v306_v59 = vld [vmem:[%s18571_s1 + $0x8f8] sm:$0xff] }
 0x4d9   :  { %v11009_v42 = vadd.f32 %v11008_v63, %v17333_v12  ;;  %v11049_v34 = vpop.f32.mrf.mxu1  ;;  %11294 = vmatmul.mubr.bf16.vlgmr.msra.gmra.mxu1 %v13695_v22  ;;  %11327 = vmatpush2.bf16.msra.mxu0 %v12075_v6  ;;  %v214_v12 = vld [vmem:[%s18571_s1 + $0x618] sm:$0xff]  ;;  %v12140_v27 = vcombine.high %v302_v19, %v306_v59  ;;  %v12139_v37 = vcombine.low %v302_v19, %v306_v59 }
 0x4da   :  { %11344 = vmatpush1.bf16.msra.mxu1 %v12171_v9  ;;  %v11010_v48 = vpop.f32.mrf.mxu0  ;;  %11328 = vmatprep.subr.bf16.mxu0 %v12068_v17  ;;  %v218_v22 = vld [vmem:[%s18571_s1 + $0x638] sm:$0xff] }
 0x4db   :  { %v17537_v54 = vadd.f32 %v11049_v34, %v11009_v42  ;;  %v11011_v57 = vadd.f32 %v11010_v48, %v17350_v16  ;;  %v11051_v60 = vpop.f32.mrf.mxu1  ;;  %11345 = vmatprep.subr.bf16.mxu1 %v12164_v5  ;;  %11375 = vmatprep.mubr.bf16.mxu1 %v13710_v29  ;;  %v314_v16 = vld [vmem:[%s18571_s1 + $0x938] sm:$0xff]  ;;  %v12052_v14 = vcombine.high %v214_v12, %v218_v22 }
 0x4dc   :  { %v11012_v25 = vpop.f32.mrf.mxu0  ;;  %v12148_v13 = vcombine.high %v310_v10, %v314_v16  ;;  %v12051_v53 = vcombine.low %v214_v12, %v218_v22  ;;  %v12147_v7 = vcombine.low %v310_v10, %v314_v16  ;;  %v454_v6 = vld [vmem:[%s18571_s1 + $0xd98] sm:$0xff] }
 0x4dd   :  { %v17553_v61 = vadd.f32 %v11051_v60, %v11011_v57  ;;  %v11053_v36 = vpop.f32.mrf.mxu1  ;;  %11329 = vmatpush2.bf16.msra.mxu0 %v12067_v46  ;;  %v458_v9 = vld [vmem:[%s18571_s1 + $0xdb8] sm:$0xff] }
 0x4de   :  { %11346 = vmatpush1.bf16.msra.mxu1 %v12163_v52  ;;  %v11013_v49 = vpop.f32.mrf.mxu0  ;;  %11330 = vmatprep.subr.bf16.mxu0 %v12060_v51  ;;  %v294_v17 = vld [vmem:[%s18571_s1 + $0x898] sm:$0xff]  ;;  %v12292_v63 = vcombine.high %v454_v6, %v458_v9  ;;  %v12291_v48 = vcombine.low %v454_v6, %v458_v9 }
 0x4df   :  { %v11054_v29 = vpop.f32.mrf.mxu1  ;;  %11347 = vmatprep.subr.bf16.mxu1 %v12156_v4  ;;  %v298_v5 = vld [vmem:[%s18571_s1 + $0x8b8] sm:$0xff] }
 0x4e0   :  { %v12132_v38 = vcombine.high %v294_v17, %v298_v5  ;;  %v450_v42 = vld [vmem:[%s18571_s1 + $0xd78] sm:$0xff]  ;;  %v12131_v52 = vcombine.low %v294_v17, %v298_v5 }
 0x4e1   :  { %11331 = vmatpush2.bf16.msra.mxu0 %v12059_v1  ;;  %v286_v34 = vld [vmem:[%s18571_s1 + $0x858] sm:$0xff]  ;;  %v12284_v51 = vcombine.high %v446_v40, %v450_v42  ;;  %v12283_v12 = vcombine.low %v446_v40, %v450_v42 }
 0x4e2   :  { %11348 = vmatpush1.bf16.msra.mxu1 %v12155_v28  ;;  %11332 = vmatprep.subr.bf16.mxu0 %v12052_v14  ;;  %v290_v46 = vld [vmem:[%s18571_s1 + $0x878] sm:$0xff] }
 0x4e3   :  { %11349 = vmatprep.subr.bf16.mxu1 %v12148_v13  ;;  %v12124_v57 = vcombine.high %v286_v34, %v290_v46  ;;  %v442_v60 = vld [vmem:[%s18571_s1 + $0xd38] sm:$0xff]  ;;  %v12123_v22 = vcombine.low %v286_v34, %v290_v46 }
 0x4e4   :  { %v278_v4 = vld [vmem:[%s18571_s1 + $0x818] sm:$0xff] }
 0x4e5   :  { %11333 = vmatpush2.bf16.msra.mxu0 %v12051_v53  ;;  %v430_v16 = vld [vmem:[%s18571_s1 + $0xcd8] sm:$0xff] }
 0x4e6   :  { %11350 = vmatpush1.bf16.msra.mxu1 %v12147_v7  ;;  %11384 = vmatprep.subr.bf16.mxu0 %v12300_v24  ;;  %v434_v36 = vld [vmem:[%s18571_s1 + $0xcf8] sm:$0xff] }
 0x4e7   :  { %11351 = vmatprep.subr.bf16.mxu1 %v12140_v27  ;;  %v398_v1 = vld [vmem:[%s18571_s1 + $0xbd8] sm:$0xff]  ;;  %v12268_v29 = vcombine.high %v430_v16, %v434_v36  ;;  %v12267_v53 = vcombine.low %v430_v16, %v434_v36 }
 0x4e8   :  { %11335 = vmatmul.mubr.bf16.vlgmr.msra.gmra.mxu0 %v13714_v30  ;;  %v438_v30 = vld [vmem:[%s18571_s1 + $0xd18] sm:$0xff] }
 0x4e9   :  { %11385 = vmatpush1.bf16.msra.mxu0 %v12299_v2  ;;  %11416 = vmatprep.mubr.bf16.mxu0 %v13731_v39  ;;  %v282_v39 = vld [vmem:[%s18571_s1 + $0x838] sm:$0xff]  ;;  %v12276_v25 = vcombine.high %v438_v30, %v442_v60  ;;  %v12275_v28 = vcombine.low %v438_v30, %v442_v60 }
 0x4ea   :  { %11352 = vmatpush1.bf16.msra.mxu1 %v12139_v37  ;;  %11386 = vmatprep.subr.bf16.mxu0 %v12292_v63  ;;  %v12116_v10 = vcombine.high %v278_v4, %v282_v39  ;;  %v402_v49 = vld [vmem:[%s18571_s1 + $0xbf8] sm:$0xff]  ;;  %v12115_v14 = vcombine.low %v278_v4, %v282_v39 }
 0x4eb   :  { %11353 = vmatprep.subr.bf16.mxu1 %v12132_v38  ;;  %v12236_v13 = vcombine.high %v398_v1, %v402_v49  ;;  %v422_v20 = vld [vmem:[%s18571_s1 + $0xc98] sm:$0xff]  ;;  %v12235_v7 = vcombine.low %v398_v1, %v402_v49 }
 0x4ec   :  { %v426_v35 = vld [vmem:[%s18571_s1 + $0xcb8] sm:$0xff] }
 0x4ed   :  { %11387 = vmatpush1.bf16.msra.mxu0 %v12291_v48  ;;  %v390_v19 = vld [vmem:[%s18571_s1 + $0xb98] sm:$0xff]  ;;  %v12260_v24 = vcombine.high %v422_v20, %v426_v35  ;;  %v12259_v2 = vcombine.low %v422_v20, %v426_v35 }
 0x4ee   :  { %11354 = vmatpush1.bf16.msra.mxu1 %v12131_v52  ;;  %11388 = vmatprep.subr.bf16.mxu0 %v12284_v51  ;;  %v394_v59 = vld [vmem:[%s18571_s1 + $0xbb8] sm:$0xff] }
 0x4ef   :  { %11355 = vmatprep.subr.bf16.mxu1 %v12124_v57  ;;  %v12228_v27 = vcombine.high %v390_v19, %v394_v59  ;;  %v414_v6 = vld [vmem:[%s18571_s1 + $0xc58] sm:$0xff]  ;;  %v12227_v37 = vcombine.low %v390_v19, %v394_v59 }
 0x4f0   :  { %v418_v9 = vld [vmem:[%s18571_s1 + $0xc78] sm:$0xff] }
 0x4f1   :  { %11389 = vmatpush1.bf16.msra.mxu0 %v12283_v12  ;;  %v382_v17 = vld [vmem:[%s18571_s1 + $0xb58] sm:$0xff]  ;;  %v12252_v63 = vcombine.high %v414_v6, %v418_v9  ;;  %v12251_v48 = vcombine.low %v414_v6, %v418_v9 }
 0x4f2   :  { %11356 = vmatpush1.bf16.msra.mxu1 %v12123_v22  ;;  %11390 = vmatprep.subr.bf16.mxu0 %v12276_v25  ;;  %v386_v5 = vld [vmem:[%s18571_s1 + $0xb78] sm:$0xff] }
 0x4f3   :  { %11357 = vmatprep.subr.bf16.mxu1 %v12116_v10  ;;  %v12220_v38 = vcombine.high %v382_v17, %v386_v5  ;;  %v406_v40 = vld [vmem:[%s18571_s1 + $0xc18] sm:$0xff]  ;;  %v12219_v52 = vcombine.low %v382_v17, %v386_v5 }
 0x4f4   :  { %v410_v42 = vld [vmem:[%s18571_s1 + $0xc38] sm:$0xff] }
 0x4f5   :  { %11391 = vmatpush1.bf16.msra.mxu0 %v12275_v28  ;;  %v374_v34 = vld [vmem:[%s18571_s1 + $0xb18] sm:$0xff]  ;;  %v12244_v51 = vcombine.high %v406_v40, %v410_v42  ;;  %v12243_v12 = vcombine.low %v406_v40, %v410_v42 }
 0x4f6   :  { %11358 = vmatpush1.bf16.msra.mxu1 %v12115_v14  ;;  %11392 = vmatprep.subr.bf16.mxu0 %v12268_v29  ;;  %v378_v46 = vld [vmem:[%s18571_s1 + $0xb38] sm:$0xff] }
 0x4f7   :  { %11359 = vmatprep.subr.bf16.mxu1 %v12236_v13  ;;  %v12212_v57 = vcombine.high %v374_v34, %v378_v46  ;;  %v526_v30 = vld [vmem:[%s18571_s1 + $0xfd8] sm:$0xff]  ;;  %v12211_v22 = vcombine.low %v374_v34, %v378_v46 }
 0x4f8   :  { %v530_v60 = vld [vmem:[%s18571_s1 + $0xff8] sm:$0xff] }
 0x4f9   :  { %11393 = vmatpush1.bf16.msra.mxu0 %v12267_v53  ;;  %v366_v4 = vld [vmem:[%s18571_s1 + $0xad8] sm:$0xff]  ;;  %v12364_v25 = vcombine.high %v526_v30, %v530_v60  ;;  %v12363_v28 = vcombine.low %v526_v30, %v530_v60 }
 0x4fa   :  { %11360 = vmatpush2.bf16.msra.mxu1 %v12235_v7  ;;  %11394 = vmatprep.subr.bf16.mxu0 %v12260_v24  ;;  %v370_v39 = vld [vmem:[%s18571_s1 + $0xaf8] sm:$0xff] }
 0x4fb   :  { %11361 = vmatprep.subr.bf16.mxu1 %v12228_v27  ;;  %v12204_v10 = vcombine.high %v366_v4, %v370_v39  ;;  %v518_v16 = vld [vmem:[%s18571_s1 + $0xf98] sm:$0xff]  ;;  %v12203_v14 = vcombine.low %v366_v4, %v370_v39 }
 0x4fc   :  { %v522_v36 = vld [vmem:[%s18571_s1 + $0xfb8] sm:$0xff] }
 0x4fd   :  { %11395 = vmatpush1.bf16.msra.mxu0 %v12259_v2  ;;  %v358_v1 = vld [vmem:[%s18571_s1 + $0xa98] sm:$0xff]  ;;  %v12356_v29 = vcombine.high %v518_v16, %v522_v36  ;;  %v12355_v53 = vcombine.low %v518_v16, %v522_v36 }
 0x4fe   :  { %11362 = vmatpush2.bf16.msra.mxu1 %v12227_v37  ;;  %11396 = vmatprep.subr.bf16.mxu0 %v12252_v63  ;;  %v362_v49 = vld [vmem:[%s18571_s1 + $0xab8] sm:$0xff] }
 0x4ff   :  { %11363 = vmatprep.subr.bf16.mxu1 %v12220_v38  ;;  %v12196_v13 = vcombine.high %v358_v1, %v362_v49  ;;  %v510_v20 = vld [vmem:[%s18571_s1 + $0xf58] sm:$0xff]  ;;  %v12195_v7 = vcombine.low %v358_v1, %v362_v49 }
 0x500   :  { %v514_v35 = vld [vmem:[%s18571_s1 + $0xf78] sm:$0xff] }
 0x501   :  { %11397 = vmatpush1.bf16.msra.mxu0 %v12251_v48  ;;  %v350_v19 = vld [vmem:[%s18571_s1 + $0xa58] sm:$0xff]  ;;  %v12348_v24 = vcombine.high %v510_v20, %v514_v35  ;;  %v12347_v2 = vcombine.low %v510_v20, %v514_v35 }
 0x502   :  { %11364 = vmatpush2.bf16.msra.mxu1 %v12219_v52  ;;  %11398 = vmatprep.subr.bf16.mxu0 %v12244_v51  ;;  %v354_v59 = vld [vmem:[%s18571_s1 + $0xa78] sm:$0xff] }
 0x503   :  { %11365 = vmatprep.subr.bf16.mxu1 %v12212_v57  ;;  %v12188_v27 = vcombine.high %v350_v19, %v354_v59  ;;  %v502_v6 = vld [vmem:[%s18571_s1 + $0xf18] sm:$0xff]  ;;  %v12187_v37 = vcombine.low %v350_v19, %v354_v59 }
 0x504   :  { %v506_v9 = vld [vmem:[%s18571_s1 + $0xf38] sm:$0xff] }
 0x505   :  { %11399 = vmatpush1.bf16.msra.mxu0 %v12243_v12  ;;  %v342_v17 = vld [vmem:[%s18571_s1 + $0xa18] sm:$0xff]  ;;  %v12340_v63 = vcombine.high %v502_v6, %v506_v9  ;;  %v12339_v48 = vcombine.low %v502_v6, %v506_v9 }
 0x506   :  { %11366 = vmatpush2.bf16.msra.mxu1 %v12211_v22  ;;  %11400 = vmatprep.subr.bf16.mxu0 %v12364_v25  ;;  %v346_v5 = vld [vmem:[%s18571_s1 + $0xa38] sm:$0xff] }
 0x507   :  { %11367 = vmatprep.subr.bf16.mxu1 %v12204_v10  ;;  %v12180_v38 = vcombine.high %v342_v17, %v346_v5  ;;  %v494_v40 = vld [vmem:[%s18571_s1 + $0xed8] sm:$0xff]  ;;  %v12179_v52 = vcombine.low %v342_v17, %v346_v5 }
 0x508   :  { %v498_v42 = vld [vmem:[%s18571_s1 + $0xef8] sm:$0xff] }
 0x509   :  { %11401 = vmatpush2.bf16.msra.mxu0 %v12363_v28  ;;  %v590_v34 = vld [vmem:[%s18571_s1 + $0x11d8] sm:$0xff]  ;;  %v12332_v51 = vcombine.high %v494_v40, %v498_v42  ;;  %v12331_v12 = vcombine.low %v494_v40, %v498_v42 }
 0x50a   :  { %11368 = vmatpush2.bf16.msra.mxu1 %v12203_v14  ;;  %11402 = vmatprep.subr.bf16.mxu0 %v12356_v29  ;;  %v594_v46 = vld [vmem:[%s18571_s1 + $0x11f8] sm:$0xff] }
 0x50b   :  { %11369 = vmatprep.subr.bf16.mxu1 %v12196_v13  ;;  %v12428_v57 = vcombine.high %v590_v34, %v594_v46  ;;  %v486_v30 = vld [vmem:[%s18571_s1 + $0xe98] sm:$0xff]  ;;  %v12427_v22 = vcombine.low %v590_v34, %v594_v46 }
 0x50c   :  { %v490_v60 = vld [vmem:[%s18571_s1 + $0xeb8] sm:$0xff] }
 0x50d   :  { %11403 = vmatpush2.bf16.msra.mxu0 %v12355_v53  ;;  %v582_v4 = vld [vmem:[%s18571_s1 + $0x1198] sm:$0xff]  ;;  %v12324_v25 = vcombine.high %v486_v30, %v490_v60  ;;  %v12323_v13 = vcombine.low %v486_v30, %v490_v60 }
 0x50e   :  { %11370 = vmatpush2.bf16.msra.mxu1 %v12195_v7  ;;  %11404 = vmatprep.subr.bf16.mxu0 %v12348_v24  ;;  %v586_v39 = vld [vmem:[%s18571_s1 + $0x11b8] sm:$0xff] }
 0x50f   :  { %11371 = vmatprep.subr.bf16.mxu1 %v12188_v27  ;;  %v12420_v10 = vcombine.high %v582_v4, %v586_v39  ;;  %v478_v16 = vld [vmem:[%s18571_s1 + $0xe58] sm:$0xff]  ;;  %v12419_v35 = vcombine.low %v582_v4, %v586_v39 }
 0x510   :  { %v482_v36 = vld [vmem:[%s18571_s1 + $0xe78] sm:$0xff] }
 0x511   :  { %11405 = vmatpush2.bf16.msra.mxu0 %v12347_v2  ;;  %v574_v49 = vld [vmem:[%s18571_s1 + $0x1158] sm:$0xff]  ;;  %v12316_v19 = vcombine.high %v478_v16, %v482_v36  ;;  %v12315_v5 = vcombine.low %v478_v16, %v482_v36 }
 0x512   :  { %11372 = vmatpush2.bf16.msra.mxu1 %v12187_v37  ;;  %11406 = vmatprep.subr.bf16.mxu0 %v12340_v63  ;;  %v578_v28 = vld [vmem:[%s18571_s1 + $0x1178] sm:$0xff] }
 0x513   :  { %11373 = vmatprep.subr.bf16.mxu1 %v12180_v38  ;;  %v12412_v24 = vcombine.high %v574_v49, %v578_v28  ;;  %v566_v6 = vld [vmem:[%s18571_s1 + $0x1118] sm:$0xff]  ;;  %v12411_v37 = vcombine.low %v574_v49, %v578_v28 }
 0x514   :  { %v718_v40 = vld [vmem:[%s18571_s1 + $0x15d8] sm:$0xff] }
 0x515   :  { %11407 = vmatpush2.bf16.msra.mxu0 %v12339_v48  ;;  %v722_v42 = vld [vmem:[%s18571_s1 + $0x15f8] sm:$0xff] }
 0x516   :  { %11374 = vmatpush2.bf16.msra.mxu1 %v12179_v52  ;;  %11408 = vmatprep.subr.bf16.mxu0 %v12332_v51  ;;  %v558_v34 = vld [vmem:[%s18571_s1 + $0x10d8] sm:$0xff]  ;;  %v12556_v51 = vcombine.high %v718_v40, %v722_v42 }
 0x517   :  { %11425 = vmatprep.subr.bf16.mxu1 %v12428_v57  ;;  %v562_v46 = vld [vmem:[%s18571_s1 + $0x10f8] sm:$0xff] }
 0x518   :  { %v11090_v1 = vpop.f32.mrf.mxu0  ;;  %v12396_v57 = vcombine.high %v558_v34, %v562_v46  ;;  %v710_v30 = vld [vmem:[%s18571_s1 + $0x1598] sm:$0xff] }
 0x519   :  { %v11091_v14 = vadd.f32 %v11090_v1, %v17537_v54  ;;  %v11131_v29 = vpop.f32.mrf.mxu1  ;;  %11376 = vmatmul.mubr.bf16.vlgmr.msra.gmra.mxu1 %v13917_v47  ;;  %11409 = vmatpush2.bf16.msra.mxu0 %v12331_v12  ;;  %v470_v54 = vld [vmem:[%s18571_s1 + $0xe18] sm:$0xff]  ;;  %v12555_v12 = vcombine.low %v718_v40, %v722_v42 }
 0x51a   :  { %11426 = vmatpush1.bf16.msra.mxu1 %v12427_v22  ;;  %v11092_v20 = vpop.f32.mrf.mxu0  ;;  %11410 = vmatprep.subr.bf16.mxu0 %v12324_v25  ;;  %v474_v47 = vld [vmem:[%s18571_s1 + $0xe38] sm:$0xff]  ;;  %v12395_v22 = vcombine.low %v558_v34, %v562_v46 }
 0x51b   :  { %v17739_v59 = vadd.f32 %v11131_v29, %v11091_v14  ;;  %v11093_v53 = vadd.f32 %v11092_v20, %v17553_v61  ;;  %v11133_v7 = vpop.f32.mrf.mxu1  ;;  %11427 = vmatprep.subr.bf16.mxu1 %v12420_v10  ;;  %11457 = vmatprep.mubr.bf16.mxu1 %v13932_v55  ;;  %v570_v61 = vld [vmem:[%s18571_s1 + $0x1138] sm:$0xff]  ;;  %v12308_v63 = vcombine.high %v470_v54, %v474_v47 }
 0x51c   :  { %v11094_v27 = vpop.f32.mrf.mxu0  ;;  %v12404_v38 = vcombine.high %v566_v6, %v570_v61  ;;  %v12307_v48 = vcombine.low %v470_v54, %v474_v47  ;;  %v12403_v52 = vcombine.low %v566_v6, %v570_v61  ;;  %v714_v60 = vld [vmem:[%s18571_s1 + $0x15b8] sm:$0xff] }
 0x51d   :  { %v17755_v9 = vadd.f32 %v11133_v7, %v11093_v53  ;;  %v11135_v17 = vpop.f32.mrf.mxu1  ;;  %11411 = vmatpush2.bf16.msra.mxu0 %v12323_v13  ;;  %v550_v4 = vld [vmem:[%s18571_s1 + $0x1098] sm:$0xff]  ;;  %v12548_v25 = vcombine.high %v710_v30, %v714_v60  ;;  %v12547_v28 = vcombine.low %v710_v30, %v714_v60 }
 0x51e   :  { %11428 = vmatpush1.bf16.msra.mxu1 %v12419_v35  ;;  %v11095_v2 = vpop.f32.mrf.mxu0  ;;  %11412 = vmatprep.subr.bf16.mxu0 %v12316_v19  ;;  %v554_v39 = vld [vmem:[%s18571_s1 + $0x10b8] sm:$0xff] }
 0x51f   :  { %v11136_v55 = vpop.f32.mrf.mxu1  ;;  %11429 = vmatprep.subr.bf16.mxu1 %v12412_v24  ;;  %v12388_v10 = vcombine.high %v550_v4, %v554_v39  ;;  %v702_v16 = vld [vmem:[%s18571_s1 + $0x1558] sm:$0xff]  ;;  %v12387_v14 = vcombine.low %v550_v4, %v554_v39 }
 0x520   :  { %v706_v36 = vld [vmem:[%s18571_s1 + $0x1578] sm:$0xff] }
 0x521   :  { %11413 = vmatpush2.bf16.msra.mxu0 %v12315_v5  ;;  %v542_v1 = vld [vmem:[%s18571_s1 + $0x1058] sm:$0xff]  ;;  %v12540_v29 = vcombine.high %v702_v16, %v706_v36  ;;  %v12539_v19 = vcombine.low %v702_v16, %v706_v36 }
 0x522   :  { %11430 = vmatpush1.bf16.msra.mxu1 %v12411_v37  ;;  %11414 = vmatprep.subr.bf16.mxu0 %v12308_v63  ;;  %v546_v49 = vld [vmem:[%s18571_s1 + $0x1078] sm:$0xff] }
 0x523   :  { %11431 = vmatprep.subr.bf16.mxu1 %v12404_v38  ;;  %v12380_v13 = vcombine.high %v542_v1, %v546_v49  ;;  %v698_v20 = vld [vmem:[%s18571_s1 + $0x1538] sm:$0xff]  ;;  %v12379_v53 = vcombine.low %v542_v1, %v546_v49 }
 0x524   :  { %v534_v35 = vld [vmem:[%s18571_s1 + $0x1018] sm:$0xff] }
 0x525   :  { %11415 = vmatpush2.bf16.msra.mxu0 %v12307_v48  ;;  %v686_v54 = vld [vmem:[%s18571_s1 + $0x14d8] sm:$0xff] }
 0x526   :  { %11432 = vmatpush1.bf16.msra.mxu1 %v12403_v52  ;;  %11466 = vmatprep.subr.bf16.mxu0 %v12556_v51  ;;  %v690_v47 = vld [vmem:[%s18571_s1 + $0x14f8] sm:$0xff] }
 0x527   :  { %11433 = vmatprep.subr.bf16.mxu1 %v12396_v57  ;;  %v654_v27 = vld [vmem:[%s18571_s1 + $0x13d8] sm:$0xff]  ;;  %v12524_v5 = vcombine.high %v686_v54, %v690_v47  ;;  %v12523_v40 = vcombine.low %v686_v54, %v690_v47 }
 0x528   :  { %11417 = vmatmul.mubr.bf16.vlgmr.msra.gmra.mxu0 %v13936_v56  ;;  %v694_v56 = vld [vmem:[%s18571_s1 + $0x1518] sm:$0xff] }
 0x529   :  { %11467 = vmatpush1.bf16.msra.mxu0 %v12555_v12  ;;  %11498 = vmatprep.mubr.bf16.mxu0 %v13953_v3  ;;  %v538_v3 = vld [vmem:[%s18571_s1 + $0x1038] sm:$0xff]  ;;  %v12532_v7 = vcombine.high %v694_v56, %v698_v20  ;;  %v12531_v61 = vcombine.low %v694_v56, %v698_v20 }
 0x52a   :  { %11434 = vmatpush1.bf16.msra.mxu1 %v12395_v22  ;;  %11468 = vmatprep.subr.bf16.mxu0 %v12548_v25  ;;  %v12372_v24 = vcombine.high %v534_v35, %v538_v3  ;;  %v658_v6 = vld [vmem:[%s18571_s1 + $0x13f8] sm:$0xff]  ;;  %v12371_v17 = vcombine.low %v534_v35, %v538_v3 }
 0x52b   :  { %11435 = vmatprep.subr.bf16.mxu1 %v12388_v10  ;;  %v12492_v2 = vcombine.high %v654_v27, %v658_v6  ;;  %v678_v37 = vld [vmem:[%s18571_s1 + $0x1498] sm:$0xff]  ;;  %v12491_v42 = vcombine.low %v654_v27, %v658_v6 }
 0x52c   :  { %v682_v63 = vld [vmem:[%s18571_s1 + $0x14b8] sm:$0xff] }
 0x52d   :  { %11469 = vmatpush1.bf16.msra.mxu0 %v12547_v28  ;;  %v646_v55 = vld [vmem:[%s18571_s1 + $0x1398] sm:$0xff]  ;;  %v12516_v34 = vcombine.high %v678_v37, %v682_v63  ;;  %v12515_v30 = vcombine.low %v678_v37, %v682_v63 }
 0x52e   :  { %11436 = vmatpush1.bf16.msra.mxu1 %v12387_v14  ;;  %11470 = vmatprep.subr.bf16.mxu0 %v12540_v29  ;;  %v650_v38 = vld [vmem:[%s18571_s1 + $0x13b8] sm:$0xff] }
 0x52f   :  { %11437 = vmatprep.subr.bf16.mxu1 %v12380_v13  ;;  %v12484_v46 = vcombine.high %v646_v55, %v650_v38  ;;  %v670_v48 = vld [vmem:[%s18571_s1 + $0x1458] sm:$0xff]  ;;  %v12483_v60 = vcombine.low %v646_v55, %v650_v38 }
 0x530   :  { %v674_v52 = vld [vmem:[%s18571_s1 + $0x1478] sm:$0xff] }
 0x531   :  { %11471 = vmatpush1.bf16.msra.mxu0 %v12539_v19  ;;  %v638_v51 = vld [vmem:[%s18571_s1 + $0x1358] sm:$0xff]  ;;  %v12508_v4 = vcombine.high %v670_v48, %v674_v52  ;;  %v12507_v16 = vcombine.low %v670_v48, %v674_v52 }
 0x532   :  { %11438 = vmatpush1.bf16.msra.mxu1 %v12379_v53  ;;  %11472 = vmatprep.subr.bf16.mxu0 %v12532_v7  ;;  %v642_v57 = vld [vmem:[%s18571_s1 + $0x1378] sm:$0xff] }
 0x533   :  { %11439 = vmatprep.subr.bf16.mxu1 %v12372_v24  ;;  %v12476_v39 = vcombine.high %v638_v51, %v642_v57  ;;  %v662_v12 = vld [vmem:[%s18571_s1 + $0x1418] sm:$0xff]  ;;  %v12475_v36 = vcombine.low %v638_v51, %v642_v57 }
 0x534   :  { %v666_v22 = vld [vmem:[%s18571_s1 + $0x1438] sm:$0xff] }
 0x535   :  { %11473 = vmatpush1.bf16.msra.mxu0 %v12531_v61  ;;  %v630_v25 = vld [vmem:[%s18571_s1 + $0x1318] sm:$0xff]  ;;  %v12500_v1 = vcombine.high %v662_v12, %v666_v22  ;;  %v12499_v56 = vcombine.low %v662_v12, %v666_v22 }
 0x536   :  { %11440 = vmatpush1.bf16.msra.mxu1 %v12371_v17  ;;  %11474 = vmatprep.subr.bf16.mxu0 %v12524_v5  ;;  %v634_v10 = vld [vmem:[%s18571_s1 + $0x1338] sm:$0xff] }
 0x537   :  { %11441 = vmatprep.subr.bf16.mxu1 %v12492_v2  ;;  %v12468_v49 = vcombine.high %v630_v25, %v634_v10  ;;  %v782_v28 = vld [vmem:[%s18571_s1 + $0x17d8] sm:$0xff]  ;;  %v12467_v20 = vcombine.low %v630_v25, %v634_v10 }
 0x538   :  { %v786_v14 = vld [vmem:[%s18571_s1 + $0x17f8] sm:$0xff] }
 0x539   :  { %11475 = vmatpush1.bf16.msra.mxu0 %v12523_v40  ;;  %v622_v29 = vld [vmem:[%s18571_s1 + $0x12d8] sm:$0xff]  ;;  %v12620_v35 = vcombine.high %v782_v28, %v786_v14  ;;  %v12619_v54 = vcombine.low %v782_v28, %v786_v14 }
 0x53a   :  { %11442 = vmatpush2.bf16.msra.mxu1 %v12491_v42  ;;  %11476 = vmatprep.subr.bf16.mxu0 %v12516_v34  ;;  %v626_v13 = vld [vmem:[%s18571_s1 + $0x12f8] sm:$0xff] }
 0x53b   :  { %11443 = vmatprep.subr.bf16.mxu1 %v12484_v46  ;;  %v12460_v3 = vcombine.high %v622_v29, %v626_v13  ;;  %v774_v19 = vld [vmem:[%s18571_s1 + $0x1798] sm:$0xff]  ;;  %v12459_v47 = vcombine.low %v622_v29, %v626_v13 }
 0x53c   :  { %v778_v53 = vld [vmem:[%s18571_s1 + $0x17b8] sm:$0xff] }
 0x53d   :  { %11477 = vmatpush1.bf16.msra.mxu0 %v12515_v30  ;;  %v614_v7 = vld [vmem:[%s18571_s1 + $0x1298] sm:$0xff]  ;;  %v12612_v27 = vcombine.high %v774_v19, %v778_v53  ;;  %v12611_v37 = vcombine.low %v774_v19, %v778_v53 }
 0x53e   :  { %11444 = vmatpush2.bf16.msra.mxu1 %v12483_v60  ;;  %11478 = vmatprep.subr.bf16.mxu0 %v12508_v4  ;;  %v618_v24 = vld [vmem:[%s18571_s1 + $0x12b8] sm:$0xff] }
 0x53f   :  { %11445 = vmatprep.subr.bf16.mxu1 %v12476_v39  ;;  %v12452_v6 = vcombine.high %v614_v7, %v618_v24  ;;  %v766_v61 = vld [vmem:[%s18571_s1 + $0x1758] sm:$0xff]  ;;  %v12451_v63 = vcombine.low %v614_v7, %v618_v24 }
 0x540   :  { %v770_v17 = vld [vmem:[%s18571_s1 + $0x1778] sm:$0xff] }
 0x541   :  { %11479 = vmatpush1.bf16.msra.mxu0 %v12507_v16  ;;  %v606_v5 = vld [vmem:[%s18571_s1 + $0x1258] sm:$0xff]  ;;  %v12604_v55 = vcombine.high %v766_v61, %v770_v17  ;;  %v12603_v48 = vcombine.low %v766_v61, %v770_v17 }
 0x542   :  { %11446 = vmatpush2.bf16.msra.mxu1 %v12475_v36  ;;  %11480 = vmatprep.subr.bf16.mxu0 %v12500_v1  ;;  %v610_v2 = vld [vmem:[%s18571_s1 + $0x1278] sm:$0xff] }
 0x543   :  { %11447 = vmatprep.subr.bf16.mxu1 %v12468_v49  ;;  %v12444_v38 = vcombine.high %v606_v5, %v610_v2  ;;  %v758_v40 = vld [vmem:[%s18571_s1 + $0x1718] sm:$0xff]  ;;  %v12443_v52 = vcombine.low %v606_v5, %v610_v2 }
 0x544   :  { %v762_v42 = vld [vmem:[%s18571_s1 + $0x1738] sm:$0xff] }
 0x545   :  { %11481 = vmatpush1.bf16.msra.mxu0 %v12499_v56  ;;  %v598_v34 = vld [vmem:[%s18571_s1 + $0x1218] sm:$0xff]  ;;  %v12596_v51 = vcombine.high %v758_v40, %v762_v42  ;;  %v12595_v12 = vcombine.low %v758_v40, %v762_v42 }
 0x546   :  { %11448 = vmatpush2.bf16.msra.mxu1 %v12467_v20  ;;  %11482 = vmatprep.subr.bf16.mxu0 %v12620_v35  ;;  %v602_v46 = vld [vmem:[%s18571_s1 + $0x1238] sm:$0xff] }
 0x547   :  { %11449 = vmatprep.subr.bf16.mxu1 %v12460_v3  ;;  %v12436_v57 = vcombine.high %v598_v34, %v602_v46  ;;  %v750_v30 = vld [vmem:[%s18571_s1 + $0x16d8] sm:$0xff]  ;;  %v12435_v22 = vcombine.low %v598_v34, %v602_v46 }
 0x548   :  { %v754_v60 = vld [vmem:[%s18571_s1 + $0x16f8] sm:$0xff] }
 0x549   :  { %11483 = vmatpush2.bf16.msra.mxu0 %v12619_v54  ;;  %v846_v4 = vld [vmem:[%s18571_s1 + $0x19d8] sm:$0xff]  ;;  %v12588_v25 = vcombine.high %v750_v30, %v754_v60  ;;  %v12587_v28 = vcombine.low %v750_v30, %v754_v60 }
 0x54a   :  { %11450 = vmatpush2.bf16.msra.mxu1 %v12459_v47  ;;  %11484 = vmatprep.subr.bf16.mxu0 %v12612_v27  ;;  %v850_v39 = vld [vmem:[%s18571_s1 + $0x19f8] sm:$0xff] }
 0x54b   :  { %11451 = vmatprep.subr.bf16.mxu1 %v12452_v6  ;;  %v12684_v10 = vcombine.high %v846_v4, %v850_v39  ;;  %v742_v16 = vld [vmem:[%s18571_s1 + $0x1698] sm:$0xff]  ;;  %v12683_v14 = vcombine.low %v846_v4, %v850_v39 }
 0x54c   :  { %v746_v36 = vld [vmem:[%s18571_s1 + $0x16b8] sm:$0xff] }
 0x54d   :  { %11485 = vmatpush2.bf16.msra.mxu0 %v12611_v37  ;;  %v838_v1 = vld [vmem:[%s18571_s1 + $0x1998] sm:$0xff]  ;;  %v12580_v29 = vcombine.high %v742_v16, %v746_v36  ;;  %v12579_v24 = vcombine.low %v742_v16, %v746_v36 }
 0x54e   :  { %11452 = vmatpush2.bf16.msra.mxu1 %v12451_v63  ;;  %11486 = vmatprep.subr.bf16.mxu0 %v12604_v55  ;;  %v842_v49 = vld [vmem:[%s18571_s1 + $0x19b8] sm:$0xff] }
 0x54f   :  { %11453 = vmatprep.subr.bf16.mxu1 %v12444_v38  ;;  %v12676_v13 = vcombine.high %v838_v1, %v842_v49  ;;  %v734_v56 = vld [vmem:[%s18571_s1 + $0x1658] sm:$0xff]  ;;  %v12675_v47 = vcombine.low %v838_v1, %v842_v49 }
 0x550   :  { %v738_v20 = vld [vmem:[%s18571_s1 + $0x1678] sm:$0xff] }
 0x551   :  { %11487 = vmatpush2.bf16.msra.mxu0 %v12603_v48  ;;  %v830_v3 = vld [vmem:[%s18571_s1 + $0x1958] sm:$0xff]  ;;  %v12572_v27 = vcombine.high %v734_v56, %v738_v20  ;;  %v12571_v38 = vcombine.low %v734_v56, %v738_v20 }
 0x552   :  { %11454 = vmatpush2.bf16.msra.mxu1 %v12443_v52  ;;  %11488 = vmatprep.subr.bf16.mxu0 %v12596_v51  ;;  %v834_v19 = vld [vmem:[%s18571_s1 + $0x1978] sm:$0xff] }
 0x553   :  { %11455 = vmatprep.subr.bf16.mxu1 %v12436_v57  ;;  %v12668_v5 = vcombine.high %v830_v3, %v834_v19  ;;  %v822_v37 = vld [vmem:[%s18571_s1 + $0x1918] sm:$0xff]  ;;  %v12667_v42 = vcombine.low %v830_v3, %v834_v19 }
 0x554   :  { %v974_v48 = vld [vmem:[%s18571_s1 + $0x1dd8] sm:$0xff] }
 0x555   :  { %11489 = vmatpush2.bf16.msra.mxu0 %v12595_v12  ;;  %v978_v52 = vld [vmem:[%s18571_s1 + $0x1df8] sm:$0xff] }
 0x556   :  { %11456 = vmatpush2.bf16.msra.mxu1 %v12435_v22  ;;  %11490 = vmatprep.subr.bf16.mxu0 %v12588_v25  ;;  %v814_v51 = vld [vmem:[%s18571_s1 + $0x18d8] sm:$0xff]  ;;  %v12812_v4 = vcombine.high %v974_v48, %v978_v52  ;;  %v12811_v16 = vcombine.low %v974_v48, %v978_v52 }
 0x557   :  { %11507 = vmatprep.subr.bf16.mxu1 %v12684_v10  ;;  %v818_v57 = vld [vmem:[%s18571_s1 + $0x18f8] sm:$0xff] }
 0x558   :  { %v11172_v35 = vpop.f32.mrf.mxu0  ;;  %v12652_v39 = vcombine.high %v814_v51, %v818_v57  ;;  %v966_v12 = vld [vmem:[%s18571_s1 + $0x1d98] sm:$0xff]  ;;  %v12651_v36 = vcombine.low %v814_v51, %v818_v57 }
 0x559   :  { %v11173_v53 = vadd.f32 %v11172_v35, %v17739_v59  ;;  %v11213_v7 = vpop.f32.mrf.mxu1  ;;  %11458 = vmatmul.mubr.bf16.vlgmr.msra.gmra.mxu1 %v14135_v21  ;;  %11491 = vmatpush2.bf16.msra.mxu0 %v12587_v28  ;;  %v726_v59 = vld [vmem:[%s18571_s1 + $0x1618] sm:$0xff] }
 0x55a   :  { %11508 = vmatpush1.bf16.msra.mxu1 %v12683_v14  ;;  %v11174_v54 = vpop.f32.mrf.mxu0  ;;  %11492 = vmatprep.subr.bf16.mxu0 %v12580_v29  ;;  %v730_v21 = vld [vmem:[%s18571_s1 + $0x1638] sm:$0xff] }
 0x55b   :  { %v11214_v6 = vadd.f32 %v11213_v7, %v11173_v53  ;;  %v11175_v61 = vadd.f32 %v11174_v54, %v17755_v9  ;;  %v11215_v17 = vpop.f32.mrf.mxu1  ;;  %11509 = vmatprep.subr.bf16.mxu1 %v12676_v13  ;;  %11539 = vmatprep.mubr.bf16.mxu1 %v14150_v31  ;;  %v826_v9 = vld [vmem:[%s18571_s1 + $0x1938] sm:$0xff]  ;;  %v12564_v34 = vcombine.high %v726_v59, %v730_v21 }
 0x55c   :  { %v11176_v2 = vpop.f32.mrf.mxu0  ;;  %v12660_v31 = vcombine.high %v822_v37, %v826_v9  ;;  %v12563_v30 = vcombine.low %v726_v59, %v730_v21  ;;  %v12659_v60 = vcombine.low %v822_v37, %v826_v9  ;;  %v970_v22 = vld [vmem:[%s18571_s1 + $0x1db8] sm:$0xff] }
 0x55d   :  { %v11216_v63 = vadd.f32 %v11215_v17, %v11175_v61  ;;  %v11217_v55 = vpop.f32.mrf.mxu1  ;;  %11493 = vmatpush2.bf16.msra.mxu0 %v12579_v24  ;;  %v806_v25 = vld [vmem:[%s18571_s1 + $0x1898] sm:$0xff]  ;;  %v12804_v1 = vcombine.high %v966_v12, %v970_v22  ;;  %v12803_v35 = vcombine.low %v966_v12, %v970_v22 }
 0x55e   :  { %11510 = vmatpush1.bf16.msra.mxu1 %v12675_v47  ;;  %v11177_v40 = vpop.f32.mrf.mxu0  ;;  %11494 = vmatprep.subr.bf16.mxu0 %v12572_v27  ;;  %v810_v10 = vld [vmem:[%s18571_s1 + $0x18b8] sm:$0xff] }
 0x55f   :  { %v11218_v46 = vpop.f32.mrf.mxu1  ;;  %11511 = vmatprep.subr.bf16.mxu1 %v12668_v5  ;;  %v12644_v49 = vcombine.high %v806_v25, %v810_v10  ;;  %v958_v28 = vld [vmem:[%s18571_s1 + $0x1d58] sm:$0xff]  ;;  %v12643_v19 = vcombine.low %v806_v25, %v810_v10 }
 0x560   :  { %v962_v14 = vld [vmem:[%s18571_s1 + $0x1d78] sm:$0xff] }
 0x561   :  { %11495 = vmatpush2.bf16.msra.mxu0 %v12571_v38  ;;  %v798_v13 = vld [vmem:[%s18571_s1 + $0x1858] sm:$0xff]  ;;  %v12796_v53 = vcombine.high %v958_v28, %v962_v14  ;;  %v12795_v17 = vcombine.low %v958_v28, %v962_v14 }
 0x562   :  { %11512 = vmatpush1.bf16.msra.mxu1 %v12667_v42  ;;  %11496 = vmatprep.subr.bf16.mxu0 %v12564_v34  ;;  %v802_v56 = vld [vmem:[%s18571_s1 + $0x1878] sm:$0xff] }
 0x563   :  { %11513 = vmatprep.subr.bf16.mxu1 %v12660_v31  ;;  %v950_v24 = vld [vmem:[%s18571_s1 + $0x1d18] sm:$0xff]  ;;  %v12635_v59 = vcombine.low %v798_v13, %v802_v56 }
 0x564   :  { %v954_v54 = vld [vmem:[%s18571_s1 + $0x1d38] sm:$0xff] }
 0x565   :  { %11497 = vmatpush2.bf16.msra.mxu0 %v12563_v30  ;;  %v794_v27 = vld [vmem:[%s18571_s1 + $0x1838] sm:$0xff]  ;;  %v12788_v21 = vcombine.high %v950_v24, %v954_v54  ;;  %v12787_v40 = vcombine.low %v950_v24, %v954_v54 }
 0x566   :  { %11514 = vmatpush1.bf16.msra.mxu1 %v12659_v60  ;;  %11548 = vmatprep.subr.bf16.mxu0 %v12812_v4  ;;  %v942_v9 = vld [vmem:[%s18571_s1 + $0x1cd8] sm:$0xff] }
 0x567   :  { %11515 = vmatprep.subr.bf16.mxu1 %v12652_v39  ;;  %v910_v55 = vld [vmem:[%s18571_s1 + $0x1bd8] sm:$0xff] }
 0x568   :  { %v11254_v29 = vpop.f32.mrf.mxu0  ;;  %11499 = vmatmul.mubr.bf16.vlgmr.msra.gmra.mxu0 %v14154_v32  ;;  %v12636_v32 = vcombine.high %v798_v13, %v802_v56  ;;  %v914_v38 = vld [vmem:[%s18571_s1 + $0x1bf8] sm:$0xff] }
 0x569   :  { %v11255_v20 = vadd.f32 %v11254_v29, %v11214_v6  ;;  %11549 = vmatpush1.bf16.msra.mxu0 %v12811_v16  ;;  %11580 = vmatprep.mubr.bf16.mxu0 %v14171_v44  ;;  %v790_v44 = vld [vmem:[%s18571_s1 + $0x1818] sm:$0xff]  ;;  %v12748_v46 = vcombine.high %v910_v55, %v914_v38  ;;  %v12747_v30 = vcombine.low %v910_v55, %v914_v38 }
 0x56a   :  { %11516 = vmatpush1.bf16.msra.mxu1 %v12651_v36  ;;  %v11256_v3 = vpop.f32.mrf.mxu0  ;;  %11550 = vmatprep.subr.bf16.mxu0 %v12804_v1  ;;  %v12628_v37 = vcombine.high %v790_v44, %v794_v27  ;;  %v12627_v42 = vcombine.low %v790_v44, %v794_v27  ;;  %v934_v31 = vld [vmem:[%s18571_s1 + $0x1c98] sm:$0xff] }
 0x56b   :  { %v11257_v7 = vadd.f32 %v11256_v3, %v11216_v63  ;;  %11517 = vmatprep.subr.bf16.mxu1 %v12644_v49  ;;  %v11798_v6 = vmax.f32 %v11255_v20, 0.0  ;;  %v946_v63 = vld [vmem:[%s18571_s1 + $0x1cf8] sm:$0xff] }
 0x56c   :  { %v11258_v47 = vpop.f32.mrf.mxu0  ;;  %v12780_v34 = vcombine.high %v942_v9, %v946_v63  ;;  %v938_v48 = vld [vmem:[%s18571_s1 + $0x1cb8] sm:$0xff]  ;;  %v12779_v57 = vcombine.low %v942_v9, %v946_v63 }
 0x56d   :  { %v11799_v61 = vmax.f32 %v11257_v7, 0.0  ;;  %11551 = vmatpush1.bf16.msra.mxu0 %v12803_v35  ;;  %v902_v52 = vld [vmem:[%s18571_s1 + $0x1b98] sm:$0xff]  ;;  %v12772_v60 = vcombine.high %v934_v31, %v938_v48  ;;  %v12771_v10 = vcombine.low %v934_v31, %v938_v48 }
 0x56e   :  { %11518 = vmatpush1.bf16.msra.mxu1 %v12643_v19  ;;  %v11259_v5 = vpop.f32.mrf.mxu0  ;;  %11552 = vmatprep.subr.bf16.mxu0 %v12796_v53  ;;  %v906_v51 = vld [vmem:[%s18571_s1 + $0x1bb8] sm:$0xff] }
 0x56f   :  { %v18005_v2 = vcombine.low %v11798_v6, %v11799_v61  ;;  %11519 = vmatprep.subr.bf16.mxu1 %v12636_v32  ;;  %v12740_v4 = vcombine.high %v902_v52, %v906_v51  ;;  %v926_v39 = vld [vmem:[%s18571_s1 + $0x1c58] sm:$0xff]  ;;  %v12739_v16 = vcombine.low %v902_v52, %v906_v51 }
 0x570   :  { %v930_v12 = vld [vmem:[%s18571_s1 + $0x1c78] sm:$0xff] }
 0x571   :  { %11553 = vmatpush1.bf16.msra.mxu0 %v12795_v17  ;;  %v894_v22 = vld [vmem:[%s18571_s1 + $0x1b58] sm:$0xff]  ;;  %v12764_v36 = vcombine.high %v926_v39, %v930_v12  ;;  %v12763_v13 = vcombine.low %v926_v39, %v930_v12 }
 0x572   :  { %11520 = vmatpush1.bf16.msra.mxu1 %v12635_v59  ;;  %11554 = vmatprep.subr.bf16.mxu0 %v12788_v21  ;;  %v898_v25 = vld [vmem:[%s18571_s1 + $0x1b78] sm:$0xff] }
 0x573   :  { %11521 = vmatprep.subr.bf16.mxu1 %v12628_v37  ;;  %v12732_v1 = vcombine.high %v894_v22, %v898_v25  ;;  %v918_v49 = vld [vmem:[%s18571_s1 + $0x1c18] sm:$0xff]  ;;  %v12731_v56 = vcombine.low %v894_v22, %v898_v25 }
 0x574   :  { %v922_v28 = vld [vmem:[%s18571_s1 + $0x1c38] sm:$0xff] }
 0x575   :  { %11555 = vmatpush1.bf16.msra.mxu0 %v12787_v40  ;;  %v886_v14 = vld [vmem:[%s18571_s1 + $0x1b18] sm:$0xff]  ;;  %v12756_v20 = vcombine.high %v918_v49, %v922_v28  ;;  %v12755_v32 = vcombine.low %v918_v49, %v922_v28 }
 0x576   :  { %11522 = vmatpush1.bf16.msra.mxu1 %v12627_v42  ;;  %11556 = vmatprep.subr.bf16.mxu0 %v12780_v34  ;;  %v890_v29 = vld [vmem:[%s18571_s1 + $0x1b38] sm:$0xff] }
 0x577   :  { %11523 = vmatprep.subr.bf16.mxu1 %v12748_v46  ;;  %v12724_v35 = vcombine.high %v886_v14, %v890_v29  ;;  %v1038_v3 = vld [vmem:[%s18571_s1 + $0x1fd8] sm:$0xff]  ;;  %v12723_v24 = vcombine.low %v886_v14, %v890_v29 }
 0x578   :  { %v1042_v19 = vld [vmem:[%s18571_s1 + $0x1ff8] sm:$0xff] }
 0x579   :  { %11557 = vmatpush1.bf16.msra.mxu0 %v12779_v57  ;;  %v878_v53 = vld [vmem:[%s18571_s1 + $0x1ad8] sm:$0xff]  ;;  %v12876_v54 = vcombine.high %v1038_v3, %v1042_v19  ;;  %v12875_v17 = vcombine.low %v1038_v3, %v1042_v19 }
 0x57a   :  { %11524 = vmatpush2.bf16.msra.mxu1 %v12747_v30  ;;  %11558 = vmatprep.subr.bf16.mxu0 %v12772_v60  ;;  %v882_v7 = vld [vmem:[%s18571_s1 + $0x1af8] sm:$0xff] }
 0x57b   :  { %11525 = vmatprep.subr.bf16.mxu1 %v12740_v4  ;;  %v12716_v47 = vcombine.high %v878_v53, %v882_v7  ;;  %v1030_v44 = vld [vmem:[%s18571_s1 + $0x1f98] sm:$0xff]  ;;  %v12715_v5 = vcombine.low %v878_v53, %v882_v7 }
 0x57c   :  { %v1034_v27 = vld [vmem:[%s18571_s1 + $0x1fb8] sm:$0xff] }
 0x57d   :  { %11559 = vmatpush1.bf16.msra.mxu0 %v12771_v10  ;;  %v870_v6 = vld [vmem:[%s18571_s1 + $0x1a98] sm:$0xff]  ;;  %v12868_v59 = vcombine.high %v1030_v44, %v1034_v27  ;;  %v12867_v38 = vcombine.low %v1030_v44, %v1034_v27 }
 0x57e   :  { %11526 = vmatpush2.bf16.msra.mxu1 %v12739_v16  ;;  %11560 = vmatprep.subr.bf16.mxu0 %v12764_v36  ;;  %v874_v61 = vld [vmem:[%s18571_s1 + $0x1ab8] sm:$0xff] }
 0x57f   :  { %11527 = vmatprep.subr.bf16.mxu1 %v12732_v1  ;;  %v12708_v21 = vcombine.high %v870_v6, %v874_v61  ;;  %v1022_v37 = vld [vmem:[%s18571_s1 + $0x1f58] sm:$0xff]  ;;  %v12707_v40 = vcombine.low %v870_v6, %v874_v61 }
 0x580   :  { %v1026_v9 = vld [vmem:[%s18571_s1 + $0x1f78] sm:$0xff] }
 0x581   :  { %11561 = vmatpush1.bf16.msra.mxu0 %v12763_v13  ;;  %v862_v63 = vld [vmem:[%s18571_s1 + $0x1a58] sm:$0xff]  ;;  %v12860_v42 = vcombine.high %v1022_v37, %v1026_v9  ;;  %v12859_v51 = vcombine.low %v1022_v37, %v1026_v9  ;;  %v1615_v37 = vsub.s32 6, %v13523_v43 }
 0x582   :  { %11528 = vmatpush2.bf16.msra.mxu1 %v12731_v56  ;;  %11562 = vmatprep.subr.bf16.mxu0 %v12756_v20  ;;  %v866_v55 = vld [vmem:[%s18571_s1 + $0x1a78] sm:$0xff] }
 0x583   :  { %11529 = vmatprep.subr.bf16.mxu1 %v12724_v35  ;;  %v12700_v34 = vcombine.high %v862_v63, %v866_v55  ;;  %v1014_v46 = vld [vmem:[%s18571_s1 + $0x1f18] sm:$0xff]  ;;  %v12699_v57 = vcombine.low %v862_v63, %v866_v55 }
 0x584   :  { %v1018_v31 = vld [vmem:[%s18571_s1 + $0x1f38] sm:$0xff] }
 0x585   :  { %11563 = vmatpush1.bf16.msra.mxu0 %v12755_v32  ;;  %v854_v48 = vld [vmem:[%s18571_s1 + $0x1a18] sm:$0xff]  ;;  %v12852_v30 = vcombine.high %v1014_v46, %v1018_v31  ;;  %v12851_v25 = vcombine.low %v1014_v46, %v1018_v31 }
 0x586   :  { %11530 = vmatpush2.bf16.msra.mxu1 %v12723_v24  ;;  %11564 = vmatprep.subr.bf16.mxu0 %v12876_v54  ;;  %v858_v52 = vld [vmem:[%s18571_s1 + $0x1a38] sm:$0xff] }
 0x587   :  { %11531 = vmatprep.subr.bf16.mxu1 %v12716_v47  ;;  %v12692_v60 = vcombine.high %v854_v48, %v858_v52  ;;  %v1006_v4 = vld [vmem:[%s18571_s1 + $0x1ed8] sm:$0xff]  ;;  %v12691_v10 = vcombine.low %v854_v48, %v858_v52  ;;  %v13433_v48 = vld [vmem:[%s18573_s2] sm:$0xff] }
 0x588   :  { %v1010_v39 = vld [vmem:[%s18571_s1 + $0x1ef8] sm:$0xff]  ;;  %v1616_v52 = vrot.slane %v13433_v48, %v1615_v37 }
 0x589   :  { %11565 = vmatpush2.bf16.msra.mxu0 %v12875_v17  ;;  %v1102_v12 = vld [vmem:[%s18571_s1 + $0x21d8] sm:$0xff]  ;;  %v12844_v16 = vcombine.high %v1006_v4, %v1010_v39  ;;  %v12843_v29 = vcombine.low %v1006_v4, %v1010_v39 }
 0x58a   :  { %11532 = vmatpush2.bf16.msra.mxu1 %v12715_v5  ;;  %11566 = vmatprep.subr.bf16.mxu0 %v12868_v59  ;;  %v1106_v22 = vld [vmem:[%s18571_s1 + $0x21f8] sm:$0xff] }
 0x58b   :  { %11533 = vmatprep.subr.bf16.mxu1 %v12708_v21  ;;  %v12940_v36 = vcombine.high %v1102_v12, %v1106_v22  ;;  %v998_v1 = vld [vmem:[%s18571_s1 + $0x1e98] sm:$0xff]  ;;  %v12939_v13 = vcombine.low %v1102_v12, %v1106_v22 }
 0x58c   :  { %v1002_v49 = vld [vmem:[%s18571_s1 + $0x1eb8] sm:$0xff] }
 0x58d   :  { %11567 = vmatpush2.bf16.msra.mxu0 %v12867_v38  ;;  %v1094_v28 = vld [vmem:[%s18571_s1 + $0x2198] sm:$0xff]  ;;  %v12836_v56 = vcombine.high %v998_v1, %v1002_v49  ;;  %v12835_v32 = vcombine.low %v998_v1, %v1002_v49 }
 0x58e   :  { %11534 = vmatpush2.bf16.msra.mxu1 %v12707_v40  ;;  %11568 = vmatprep.subr.bf16.mxu0 %v12860_v42  ;;  %v1098_v14 = vld [vmem:[%s18571_s1 + $0x21b8] sm:$0xff]  ;;  %v1619_v42 = vsub.s32 7, %v13523_v43 }
 0x58f   :  { %11535 = vmatprep.subr.bf16.mxu1 %v12700_v34  ;;  %v12932_v20 = vcombine.high %v1094_v28, %v1098_v14  ;;  %v990_v35 = vld [vmem:[%s18571_s1 + $0x1e58] sm:$0xff]  ;;  %v12931_v24 = vcombine.low %v1094_v28, %v1098_v14 }
 0x590   :  { %v994_v3 = vld [vmem:[%s18571_s1 + $0x1e78] sm:$0xff]  ;;  %v1620_v4 = vrot.slane %v13433_v48, %v1619_v42 }
 0x591   :  { %11569 = vmatpush2.bf16.msra.mxu0 %v12859_v51  ;;  %v1086_v19 = vld [vmem:[%s18571_s1 + $0x2158] sm:$0xff]  ;;  %v12828_v54 = vcombine.high %v990_v35, %v994_v3  ;;  %v12827_v5 = vcombine.low %v990_v35, %v994_v3 }
 0x592   :  { %11536 = vmatpush2.bf16.msra.mxu1 %v12699_v57  ;;  %11570 = vmatprep.subr.bf16.mxu0 %v12852_v30  ;;  %v1090_v53 = vld [vmem:[%s18571_s1 + $0x2178] sm:$0xff] }
 0x593   :  { %11537 = vmatprep.subr.bf16.mxu1 %v12692_v60  ;;  %v12924_v44 = vcombine.high %v1086_v19, %v1090_v53  ;;  %v982_v27 = vld [vmem:[%s18571_s1 + $0x1e18] sm:$0xff]  ;;  %v12923_v59 = vcombine.low %v1086_v19, %v1090_v53 }
 0x594   :  { %v986_v6 = vld [vmem:[%s18571_s1 + $0x1e38] sm:$0xff] }
 0x595   :  { %11571 = vmatpush2.bf16.msra.mxu0 %v12851_v25  ;;  %v1082_v61 = vld [vmem:[%s18571_s1 + $0x2138] sm:$0xff]  ;;  %v12820_v21 = vcombine.high %v982_v27, %v986_v6  ;;  %v12819_v34 = vcombine.low %v982_v27, %v986_v6 }
 0x596   :  { %11538 = vmatpush2.bf16.msra.mxu1 %v12691_v10  ;;  %11572 = vmatprep.subr.bf16.mxu0 %v12844_v16  ;;  %v1230_v63 = vld [vmem:[%s18571_s1 + $0x25d8] sm:$0xff] }
 0x597   :  { %11589 = vmatprep.subr.bf16.mxu1 %v12940_v36  ;;  %v1234_v55 = vld [vmem:[%s18571_s1 + $0x25f8] sm:$0xff] }
 0x598   :  { %v1070_v38 = vld [vmem:[%s18571_s1 + $0x20d8] sm:$0xff]  ;;  %v13068_v31 = vcombine.high %v1230_v63, %v1234_v55  ;;  %v13067_v39 = vcombine.low %v1230_v63, %v1234_v55 }
 0x599   :  { %v11295_v7 = vpop.f32.mrf.mxu1  ;;  %11540 = vmatmul.mubr.bf16.vlgmr.msra.gmra.mxu1 %v14358_v11  ;;  %11573 = vmatpush2.bf16.msra.mxu0 %v12843_v29  ;;  %v1078_v11 = vld [vmem:[%s18571_s1 + $0x2118] sm:$0xff] }
 0x59a   :  { %11590 = vmatpush1.bf16.msra.mxu1 %v12939_v13  ;;  %11574 = vmatprep.subr.bf16.mxu0 %v12836_v56  ;;  %v1074_v40 = vld [vmem:[%s18571_s1 + $0x20f8] sm:$0xff]  ;;  %v12915_v46 = vcombine.low %v1078_v11, %v1082_v61  ;;  %v11296_v25 = vadd.f32 %v11295_v7, %v1616_v52 }
 0x59b   :  { %v11297_v47 = vpop.f32.mrf.mxu1  ;;  %11591 = vmatprep.subr.bf16.mxu1 %v12932_v20  ;;  %11621 = vmatprep.mubr.bf16.mxu1 %v14377_v23  ;;  %v12916_v23 = vcombine.high %v1078_v11, %v1082_v61  ;;  %v12908_v51 = vcombine.high %v1070_v38, %v1074_v40  ;;  %v1222_v57 = vld [vmem:[%s18571_s1 + $0x2598] sm:$0xff]  ;;  %v12907_v12 = vcombine.low %v1070_v38, %v1074_v40 }
 0x59c   :  { %v1226_v43 = vld [vmem:[%s18571_s1 + $0x25b8] sm:$0xff]  ;;  %v11298_v14 = vadd.f32 %v11297_v47, %v1620_v4 }
 0x59d   :  { %v11299_v17 = vpop.f32.mrf.mxu1  ;;  %11575 = vmatpush2.bf16.msra.mxu0 %v12835_v32  ;;  %v1062_v30 = vld [vmem:[%s18571_s1 + $0x2098] sm:$0xff]  ;;  %v13060_v22 = vcombine.high %v1222_v57, %v1226_v43  ;;  %v13059_v13 = vcombine.low %v1222_v57, %v1226_v43 }
 0x59e   :  { %11592 = vmatpush1.bf16.msra.mxu1 %v12931_v24  ;;  %11576 = vmatprep.subr.bf16.mxu0 %v12828_v54  ;;  %v1066_v60 = vld [vmem:[%s18571_s1 + $0x20b8] sm:$0xff] }
 0x59f   :  { %v11300_v9 = vpop.f32.mrf.mxu1  ;;  %11593 = vmatprep.subr.bf16.mxu1 %v12924_v44  ;;  %v12900_v10 = vcombine.high %v1062_v30, %v1066_v60  ;;  %v1214_v16 = vld [vmem:[%s18571_s1 + $0x2558] sm:$0xff]  ;;  %v12899_v20 = vcombine.low %v1062_v30, %v1066_v60 }
 0x5a0   :  { %v1218_v36 = vld [vmem:[%s18571_s1 + $0x2578] sm:$0xff] }
 0x5a1   :  { %11577 = vmatpush2.bf16.msra.mxu0 %v12827_v5  ;;  %v1054_v49 = vld [vmem:[%s18571_s1 + $0x2058] sm:$0xff]  ;;  %v13051_v24 = vcombine.low %v1214_v16, %v1218_v36 }
 0x5a2   :  { %11594 = vmatpush1.bf16.msra.mxu1 %v12923_v59  ;;  %11578 = vmatprep.subr.bf16.mxu0 %v12820_v21  ;;  %v1058_v28 = vld [vmem:[%s18571_s1 + $0x2078] sm:$0xff] }
 0x5a3   :  { %11595 = vmatprep.subr.bf16.mxu1 %v12916_v23  ;;  %v12892_v3 = vcombine.high %v1054_v49, %v1058_v28  ;;  %v1206_v19 = vld [vmem:[%s18571_s1 + $0x2518] sm:$0xff]  ;;  %v12891_v47 = vcombine.low %v1054_v49, %v1058_v28 }
 0x5a4   :  { %v1210_v53 = vld [vmem:[%s18571_s1 + $0x2538] sm:$0xff] }
 0x5a5   :  { %11579 = vmatpush2.bf16.msra.mxu0 %v12819_v34  ;;  %v1050_v32 = vld [vmem:[%s18571_s1 + $0x2038] sm:$0xff]  ;;  %v13044_v44 = vcombine.high %v1206_v19, %v1210_v53  ;;  %v13043_v5 = vcombine.low %v1206_v19, %v1210_v53 }
 0x5a6   :  { %11596 = vmatpush1.bf16.msra.mxu1 %v12915_v46  ;;  %11630 = vmatprep.subr.bf16.mxu0 %v13068_v31  ;;  %v1198_v6 = vld [vmem:[%s18571_s1 + $0x24d8] sm:$0xff] }
 0x5a7   :  { %11597 = vmatprep.subr.bf16.mxu1 %v12908_v51  ;;  %v1202_v11 = vld [vmem:[%s18571_s1 + $0x24f8] sm:$0xff] }
 0x5a8   :  { %v11336_v1 = vpop.f32.mrf.mxu0  ;;  %11581 = vmatmul.mubr.bf16.vlgmr.msra.gmra.mxu0 %v14381_v26  ;;  %v13052_v26 = vcombine.high %v1214_v16, %v1218_v36  ;;  %v1166_v61 = vld [vmem:[%s18571_s1 + $0x23d8] sm:$0xff]  ;;  %v13036_v21 = vcombine.high %v1198_v6, %v1202_v11  ;;  %v13035_v38 = vcombine.low %v1198_v6, %v1202_v11 }
 0x5a9   :  { %v18195_v29 = vadd.f32 %v11336_v1, %v11296_v25  ;;  %11631 = vmatpush1.bf16.msra.mxu0 %v13067_v39  ;;  %11662 = vmatprep.mubr.bf16.mxu0 %v14398_v41  ;;  %v1046_v41 = vld [vmem:[%s18571_s1 + $0x2018] sm:$0xff] }
 0x5aa   :  { %11598 = vmatpush1.bf16.msra.mxu1 %v12907_v12  ;;  %v11338_v56 = vpop.f32.mrf.mxu0  ;;  %11632 = vmatprep.subr.bf16.mxu0 %v13060_v22  ;;  %v12884_v27 = vcombine.high %v1046_v41, %v1050_v32  ;;  %v1170_v17 = vld [vmem:[%s18571_s1 + $0x23f8] sm:$0xff]  ;;  %v12883_v59 = vcombine.low %v1046_v41, %v1050_v32 }
 0x5ab   :  { %v18198_v35 = vadd.f32 %v11338_v56, %v11298_v14  ;;  %11599 = vmatprep.subr.bf16.mxu1 %v12900_v10  ;;  %v13004_v37 = vcombine.high %v1166_v61, %v1170_v17  ;;  %v1190_v9 = vld [vmem:[%s18571_s1 + $0x2498] sm:$0xff]  ;;  %v13003_v40 = vcombine.low %v1166_v61, %v1170_v17 }
 0x5ac   :  { %v11340_v7 = vpop.f32.mrf.mxu0  ;;  %v1194_v23 = vld [vmem:[%s18571_s1 + $0x24b8] sm:$0xff] }
 0x5ad   :  { %11633 = vmatpush1.bf16.msra.mxu0 %v13059_v13  ;;  %v1158_v63 = vld [vmem:[%s18571_s1 + $0x2398] sm:$0xff]  ;;  %v13028_v42 = vcombine.high %v1190_v9, %v1194_v23  ;;  %v13027_v51 = vcombine.low %v1190_v9, %v1194_v23 }
 0x5ae   :  { %11600 = vmatpush1.bf16.msra.mxu1 %v12899_v20  ;;  %v11341_v54 = vpop.f32.mrf.mxu0  ;;  %11634 = vmatprep.subr.bf16.mxu0 %v13052_v26  ;;  %v1162_v55 = vld [vmem:[%s18571_s1 + $0x23b8] sm:$0xff] }
 0x5af   :  { %11601 = vmatprep.subr.bf16.mxu1 %v12892_v3  ;;  %v12996_v34 = vcombine.high %v1158_v63, %v1162_v55  ;;  %v1182_v46 = vld [vmem:[%s18571_s1 + $0x2458] sm:$0xff]  ;;  %v12995_v57 = vcombine.low %v1158_v63, %v1162_v55 }
 0x5b0   :  { %v1186_v31 = vld [vmem:[%s18571_s1 + $0x2478] sm:$0xff] }
 0x5b1   :  { %11635 = vmatpush1.bf16.msra.mxu0 %v13051_v24  ;;  %v1150_v48 = vld [vmem:[%s18571_s1 + $0x2358] sm:$0xff]  ;;  %v13020_v43 = vcombine.high %v1182_v46, %v1186_v31  ;;  %v13019_v22 = vcombine.low %v1182_v46, %v1186_v31 }
 0x5b2   :  { %11602 = vmatpush1.bf16.msra.mxu1 %v12891_v47  ;;  %11636 = vmatprep.subr.bf16.mxu0 %v13044_v44  ;;  %v1154_v52 = vld [vmem:[%s18571_s1 + $0x2378] sm:$0xff] }
 0x5b3   :  { %11603 = vmatprep.subr.bf16.mxu1 %v12884_v27  ;;  %v12988_v30 = vcombine.high %v1150_v48, %v1154_v52  ;;  %v1174_v60 = vld [vmem:[%s18571_s1 + $0x2418] sm:$0xff]  ;;  %v12987_v25 = vcombine.low %v1150_v48, %v1154_v52 }
 0x5b4   :  { %v1178_v4 = vld [vmem:[%s18571_s1 + $0x2438] sm:$0xff] }
 0x5b5   :  { %11637 = vmatpush1.bf16.msra.mxu0 %v13043_v5  ;;  %v1142_v39 = vld [vmem:[%s18571_s1 + $0x2318] sm:$0xff]  ;;  %v13012_v10 = vcombine.high %v1174_v60, %v1178_v4  ;;  %v13011_v14 = vcombine.low %v1174_v60, %v1178_v4 }
 0x5b6   :  { %11604 = vmatpush1.bf16.msra.mxu1 %v12883_v59  ;;  %11638 = vmatprep.subr.bf16.mxu0 %v13036_v21  ;;  %v1146_v12 = vld [vmem:[%s18571_s1 + $0x2338] sm:$0xff] }
 0x5b7   :  { %11605 = vmatprep.subr.bf16.mxu1 %v13004_v37  ;;  %v12980_v16 = vcombine.high %v1142_v39, %v1146_v12  ;;  %v1294_v36 = vld [vmem:[%s18571_s1 + $0x27d8] sm:$0xff]  ;;  %v12979_v13 = vcombine.low %v1142_v39, %v1146_v12 }
 0x5b8   :  { %v1298_v1 = vld [vmem:[%s18571_s1 + $0x27f8] sm:$0xff] }
 0x5b9   :  { %11639 = vmatpush1.bf16.msra.mxu0 %v13035_v38  ;;  %v1134_v49 = vld [vmem:[%s18571_s1 + $0x22d8] sm:$0xff]  ;;  %v13132_v56 = vcombine.high %v1294_v36, %v1298_v1  ;;  %v13131_v7 = vcombine.low %v1294_v36, %v1298_v1 }
 0x5ba   :  { %11606 = vmatpush2.bf16.msra.mxu1 %v13003_v40  ;;  %11640 = vmatprep.subr.bf16.mxu0 %v13028_v42  ;;  %v1138_v28 = vld [vmem:[%s18571_s1 + $0x22f8] sm:$0xff] }
 0x5bb   :  { %11607 = vmatprep.subr.bf16.mxu1 %v12996_v34  ;;  %v12972_v20 = vcombine.high %v1134_v49, %v1138_v28  ;;  %v1286_v26 = vld [vmem:[%s18571_s1 + $0x2798] sm:$0xff]  ;;  %v12971_v41 = vcombine.low %v1134_v49, %v1138_v28 }
 0x5bc   :  { %v1290_v3 = vld [vmem:[%s18571_s1 + $0x27b8] sm:$0xff] }
 0x5bd   :  { %11641 = vmatpush1.bf16.msra.mxu0 %v13027_v51  ;;  %v1126_v19 = vld [vmem:[%s18571_s1 + $0x2298] sm:$0xff]  ;;  %v13124_v32 = vcombine.high %v1286_v26, %v1290_v3  ;;  %v13123_v6 = vcombine.low %v1286_v26, %v1290_v3 }
 0x5be   :  { %11608 = vmatpush2.bf16.msra.mxu1 %v12995_v57  ;;  %11642 = vmatprep.subr.bf16.mxu0 %v13020_v43  ;;  %v1130_v53 = vld [vmem:[%s18571_s1 + $0x22b8] sm:$0xff] }
 0x5bf   :  { %11609 = vmatprep.subr.bf16.mxu1 %v12988_v30  ;;  %v12964_v24 = vcombine.high %v1126_v19, %v1130_v53  ;;  %v1278_v54 = vld [vmem:[%s18571_s1 + $0x2758] sm:$0xff]  ;;  %v12963_v11 = vcombine.low %v1126_v19, %v1130_v53 }
 0x5c0   :  { %v1282_v47 = vld [vmem:[%s18571_s1 + $0x2778] sm:$0xff] }
 0x5c1   :  { %11643 = vmatpush1.bf16.msra.mxu0 %v13019_v22  ;;  %v1118_v44 = vld [vmem:[%s18571_s1 + $0x2258] sm:$0xff]  ;;  %v13116_v61 = vcombine.high %v1278_v54, %v1282_v47  ;;  %v13115_v9 = vcombine.low %v1278_v54, %v1282_v47 }
 0x5c2   :  { %11610 = vmatpush2.bf16.msra.mxu1 %v12987_v25  ;;  %11644 = vmatprep.subr.bf16.mxu0 %v13012_v10  ;;  %v1122_v27 = vld [vmem:[%s18571_s1 + $0x2278] sm:$0xff] }
 0x5c3   :  { %11611 = vmatprep.subr.bf16.mxu1 %v12980_v16  ;;  %v12956_v17 = vcombine.high %v1118_v44, %v1122_v27  ;;  %v1270_v5 = vld [vmem:[%s18571_s1 + $0x2718] sm:$0xff]  ;;  %v12955_v23 = vcombine.low %v1118_v44, %v1122_v27 }
 0x5c4   :  { %v1274_v59 = vld [vmem:[%s18571_s1 + $0x2738] sm:$0xff] }
 0x5c5   :  { %11645 = vmatpush1.bf16.msra.mxu0 %v13011_v14  ;;  %v1110_v21 = vld [vmem:[%s18571_s1 + $0x2218] sm:$0xff]  ;;  %v13108_v63 = vcombine.high %v1270_v5, %v1274_v59  ;;  %v13107_v46 = vcombine.low %v1270_v5, %v1274_v59 }
 0x5c6   :  { %11612 = vmatpush2.bf16.msra.mxu1 %v12979_v13  ;;  %11646 = vmatprep.subr.bf16.mxu0 %v13132_v56  ;;  %v1114_v37 = vld [vmem:[%s18571_s1 + $0x2238] sm:$0xff] }
 0x5c7   :  { %11613 = vmatprep.subr.bf16.mxu1 %v12972_v20  ;;  %v12948_v55 = vcombine.high %v1110_v21, %v1114_v37  ;;  %v1262_v38 = vld [vmem:[%s18571_s1 + $0x26d8] sm:$0xff]  ;;  %v12947_v31 = vcombine.low %v1110_v21, %v1114_v37 }
 0x5c8   :  { %v1266_v40 = vld [vmem:[%s18571_s1 + $0x26f8] sm:$0xff] }
 0x5c9   :  { %11647 = vmatpush2.bf16.msra.mxu0 %v13131_v7  ;;  %v1358_v42 = vld [vmem:[%s18571_s1 + $0x29d8] sm:$0xff]  ;;  %v13100_v48 = vcombine.high %v1262_v38, %v1266_v40  ;;  %v13099_v60 = vcombine.low %v1262_v38, %v1266_v40 }
 0x5ca   :  { %11614 = vmatpush2.bf16.msra.mxu1 %v12971_v41  ;;  %11648 = vmatprep.subr.bf16.mxu0 %v13124_v32  ;;  %v1362_v34 = vld [vmem:[%s18571_s1 + $0x29f8] sm:$0xff] }
 0x5cb   :  { %11615 = vmatprep.subr.bf16.mxu1 %v12964_v24  ;;  %v13196_v52 = vcombine.high %v1358_v42, %v1362_v34  ;;  %v1254_v51 = vld [vmem:[%s18571_s1 + $0x2698] sm:$0xff]  ;;  %v13195_v4 = vcombine.low %v1358_v42, %v1362_v34 }
 0x5cc   :  { %v1258_v57 = vld [vmem:[%s18571_s1 + $0x26b8] sm:$0xff] }
 0x5cd   :  { %11649 = vmatpush2.bf16.msra.mxu0 %v13123_v6  ;;  %v1350_v43 = vld [vmem:[%s18571_s1 + $0x2998] sm:$0xff]  ;;  %v13092_v39 = vcombine.high %v1254_v51, %v1258_v57  ;;  %v13091_v1 = vcombine.low %v1254_v51, %v1258_v57 }
 0x5ce   :  { %11616 = vmatpush2.bf16.msra.mxu1 %v12963_v11  ;;  %11650 = vmatprep.subr.bf16.mxu0 %v13116_v61  ;;  %v1354_v30 = vld [vmem:[%s18571_s1 + $0x29b8] sm:$0xff] }
 0x5cf   :  { %11617 = vmatprep.subr.bf16.mxu1 %v12956_v17  ;;  %v13188_v12 = vcombine.high %v1350_v43, %v1354_v30  ;;  %v1246_v22 = vld [vmem:[%s18571_s1 + $0x2658] sm:$0xff]  ;;  %v13187_v28 = vcombine.low %v1350_v43, %v1354_v30 }
 0x5d0   :  { %v1250_v25 = vld [vmem:[%s18571_s1 + $0x2678] sm:$0xff] }
 0x5d1   :  { %11651 = vmatpush2.bf16.msra.mxu0 %v13115_v9  ;;  %v1342_v10 = vld [vmem:[%s18571_s1 + $0x2958] sm:$0xff]  ;;  %v13084_v14 = vcombine.high %v1246_v22, %v1250_v25  ;;  %v13083_v53 = vcombine.low %v1246_v22, %v1250_v25 }
 0x5d2   :  { %11618 = vmatpush2.bf16.msra.mxu1 %v12955_v23  ;;  %11652 = vmatprep.subr.bf16.mxu0 %v13108_v63  ;;  %v1346_v16 = vld [vmem:[%s18571_s1 + $0x2978] sm:$0xff] }
 0x5d3   :  { %11619 = vmatprep.subr.bf16.mxu1 %v12948_v55  ;;  %v13180_v56 = vcombine.high %v1342_v10, %v1346_v16  ;;  %v1238_v20 = vld [vmem:[%s18571_s1 + $0x2618] sm:$0xff]  ;;  %v13179_v7 = vcombine.low %v1342_v10, %v1346_v16 }
 0x5d4   :  { %v1242_v26 = vld [vmem:[%s18571_s1 + $0x2638] sm:$0xff] }
 0x5d5   :  { %11653 = vmatpush2.bf16.msra.mxu0 %v13107_v46  ;;  %v1338_v3 = vld [vmem:[%s18571_s1 + $0x2938] sm:$0xff]  ;;  %v13076_v41 = vcombine.high %v1238_v20, %v1242_v26  ;;  %v13075_v44 = vcombine.low %v1238_v20, %v1242_v26 }
 0x5d6   :  { %11620 = vmatpush2.bf16.msra.mxu1 %v12947_v31  ;;  %11654 = vmatprep.subr.bf16.mxu0 %v13100_v48  ;;  %v1490_v24 = vld [vmem:[%s18571_s1 + $0x2df8] sm:$0xff] }
 0x5d7   :  { %11671 = vmatprep.subr.bf16.mxu1 %v13196_v52  ;;  %v1326_v54 = vld [vmem:[%s18571_s1 + $0x28d8] sm:$0xff] }
 0x5d8   :  { %v1330_v47 = vld [vmem:[%s18571_s1 + $0x28f8] sm:$0xff] }
 0x5d9   :  { %v11377_v36 = vpop.f32.mrf.mxu1  ;;  %11622 = vmatmul.mubr.bf16.vlgmr.msra.gmra.mxu1 %v14584_v50  ;;  %11655 = vmatpush2.bf16.msra.mxu0 %v13099_v60  ;;  %v13164_v11 = vcombine.high %v1326_v54, %v1330_v47  ;;  %v1478_v61 = vld [vmem:[%s18571_s1 + $0x2d98] sm:$0xff]  ;;  %v13163_v37 = vcombine.low %v1326_v54, %v1330_v47 }
 0x5da   :  { %v11378_v49 = vadd.f32 %v11377_v36, %v18195_v29  ;;  %11672 = vmatpush1.bf16.msra.mxu1 %v13195_v4  ;;  %11656 = vmatprep.subr.bf16.mxu0 %v13092_v39  ;;  %v1334_v29 = vld [vmem:[%s18571_s1 + $0x2918] sm:$0xff] }
 0x5db   :  { %v11379_v13 = vpop.f32.mrf.mxu1  ;;  %11673 = vmatprep.subr.bf16.mxu1 %v13188_v12  ;;  %11703 = vmatprep.mubr.bf16.mxu1 %v14599_v62  ;;  %v13172_v62 = vcombine.high %v1334_v29, %v1338_v3  ;;  %v13171_v27 = vcombine.low %v1334_v29, %v1338_v3  ;;  %v1482_v17 = vld [vmem:[%s18571_s1 + $0x2db8] sm:$0xff] }
 0x5dc   :  { %v11380_v50 = vadd.f32 %v11379_v13, %v18198_v35  ;;  %v1486_v35 = vld [vmem:[%s18571_s1 + $0x2dd8] sm:$0xff]  ;;  %v13316_v9 = vcombine.high %v1478_v61, %v1482_v17  ;;  %v13315_v46 = vcombine.low %v1478_v61, %v1482_v17 }
 0x5dd   :  { %v11381_v19 = vpop.f32.mrf.mxu1  ;;  %11657 = vmatpush2.bf16.msra.mxu0 %v13091_v1  ;;  %v13324_v6 = vcombine.high %v1486_v35, %v1490_v24  ;;  %v1318_v5 = vld [vmem:[%s18571_s1 + $0x2898] sm:$0xff]  ;;  %v13323_v21 = vcombine.low %v1486_v35, %v1490_v24 }
 0x5de   :  { %11674 = vmatpush1.bf16.msra.mxu1 %v13187_v28  ;;  %11658 = vmatprep.subr.bf16.mxu0 %v13084_v14  ;;  %v1322_v59 = vld [vmem:[%s18571_s1 + $0x28b8] sm:$0xff] }
 0x5df   :  { %v11382_v32 = vpop.f32.mrf.mxu1  ;;  %11675 = vmatprep.subr.bf16.mxu1 %v13180_v56  ;;  %v13156_v23 = vcombine.high %v1318_v5, %v1322_v59  ;;  %v1470_v63 = vld [vmem:[%s18571_s1 + $0x2d58] sm:$0xff]  ;;  %v13155_v48 = vcombine.low %v1318_v5, %v1322_v59 }
 0x5e0   :  { %v1474_v55 = vld [vmem:[%s18571_s1 + $0x2d78] sm:$0xff] }
 0x5e1   :  { %11659 = vmatpush2.bf16.msra.mxu0 %v13083_v53  ;;  %v1310_v40 = vld [vmem:[%s18571_s1 + $0x2858] sm:$0xff]  ;;  %v13308_v52 = vcombine.high %v1470_v63, %v1474_v55  ;;  %v13307_v4 = vcombine.low %v1470_v63, %v1474_v55 }
 0x5e2   :  { %11676 = vmatpush1.bf16.msra.mxu1 %v13179_v7  ;;  %11660 = vmatprep.subr.bf16.mxu0 %v13076_v41  ;;  %v1314_v42 = vld [vmem:[%s18571_s1 + $0x2878] sm:$0xff] }
 0x5e3   :  { %11677 = vmatprep.subr.bf16.mxu1 %v13172_v62  ;;  %v13148_v51 = vcombine.high %v1310_v40, %v1314_v42  ;;  %v1462_v57 = vld [vmem:[%s18571_s1 + $0x2d18] sm:$0xff]  ;;  %v13147_v12 = vcombine.low %v1310_v40, %v1314_v42 }
 0x5e4   :  { %v1466_v43 = vld [vmem:[%s18571_s1 + $0x2d38] sm:$0xff] }
 0x5e5   :  { %11661 = vmatpush2.bf16.msra.mxu0 %v13075_v44  ;;  %v1306_v60 = vld [vmem:[%s18571_s1 + $0x2838] sm:$0xff]  ;;  %v13300_v22 = vcombine.high %v1462_v57, %v1466_v43 }
 0x5e6   :  { %11678 = vmatpush1.bf16.msra.mxu1 %v13171_v27  ;;  %11712 = vmatprep.subr.bf16.mxu0 %v13324_v6  ;;  %v1454_v10 = vld [vmem:[%s18571_s1 + $0x2cd8] sm:$0xff] }
 0x5e7   :  { %11679 = vmatprep.subr.bf16.mxu1 %v13164_v11  ;;  %v1458_v16 = vld [vmem:[%s18571_s1 + $0x2cf8] sm:$0xff] }
 0x5e8   :  { %v11418_v38 = vpop.f32.mrf.mxu0  ;;  %11663 = vmatmul.mubr.bf16.vlgmr.msra.gmra.mxu0 %v14603_v0  ;;  %v1422_v36 = vld [vmem:[%s18571_s1 + $0x2bd8] sm:$0xff]  ;;  %v13292_v14 = vcombine.high %v1454_v10, %v1458_v16  ;;  %v13291_v29 = vcombine.low %v1454_v10, %v1458_v16 }
 0x5e9   :  { %v18397_v34 = vadd.f32 %v11418_v38, %v11378_v49  ;;  %11713 = vmatpush1.bf16.msra.mxu0 %v13323_v21  ;;  %11744 = vmatprep.mubr.bf16.mxu0 %v14620_v15  ;;  %v1302_v15 = vld [vmem:[%s18571_s1 + $0x2818] sm:$0xff]  ;;  %v13299_v49 = vcombine.low %v1462_v57, %v1466_v43 }
 0x5ea   :  { %11680 = vmatpush1.bf16.msra.mxu1 %v13163_v37  ;;  %v11420_v31 = vpop.f32.mrf.mxu0  ;;  %11714 = vmatprep.subr.bf16.mxu0 %v13316_v9  ;;  %v13140_v25 = vcombine.high %v1302_v15, %v1306_v60  ;;  %v1426_v1 = vld [vmem:[%s18571_s1 + $0x2bf8] sm:$0xff]  ;;  %v13139_v28 = vcombine.low %v1302_v15, %v1306_v60 }
 0x5eb   :  { %v18400_v0 = vadd.f32 %v11420_v31, %v11380_v50  ;;  %11681 = vmatprep.subr.bf16.mxu1 %v13156_v23  ;;  %v13260_v13 = vcombine.high %v1422_v36, %v1426_v1  ;;  %v1446_v56 = vld [vmem:[%s18571_s1 + $0x2c98] sm:$0xff]  ;;  %v13259_v3 = vcombine.low %v1422_v36, %v1426_v1 }
 0x5ec   :  { %v11422_v30 = vpop.f32.mrf.mxu0  ;;  %v1450_v20 = vld [vmem:[%s18571_s1 + $0x2cb8] sm:$0xff] }
 0x5ed   :  { %11715 = vmatpush1.bf16.msra.mxu0 %v13315_v46  ;;  %v1414_v26 = vld [vmem:[%s18571_s1 + $0x2b98] sm:$0xff]  ;;  %v13284_v19 = vcombine.high %v1446_v56, %v1450_v20  ;;  %v13283_v35 = vcombine.low %v1446_v56, %v1450_v20 }
 0x5ee   :  { %11682 = vmatpush1.bf16.msra.mxu1 %v13155_v48  ;;  %v11423_v39 = vpop.f32.mrf.mxu0  ;;  %11716 = vmatprep.subr.bf16.mxu0 %v13308_v52  ;;  %v1418_v50 = vld [vmem:[%s18571_s1 + $0x2bb8] sm:$0xff] }
 0x5ef   :  { %11683 = vmatprep.subr.bf16.mxu1 %v13148_v51  ;;  %v13252_v53 = vcombine.high %v1414_v26, %v1418_v50  ;;  %v1438_v7 = vld [vmem:[%s18571_s1 + $0x2c58] sm:$0xff]  ;;  %v13251_v24 = vcombine.low %v1414_v26, %v1418_v50 }
 0x5f0   :  { %v1442_v41 = vld [vmem:[%s18571_s1 + $0x2c78] sm:$0xff] }
 0x5f1   :  { %11717 = vmatpush1.bf16.msra.mxu0 %v13307_v4  ;;  %v1406_v32 = vld [vmem:[%s18571_s1 + $0x2b58] sm:$0xff]  ;;  %v13276_v54 = vcombine.high %v1438_v7, %v1442_v41  ;;  %v13275_v61 = vcombine.low %v1438_v7, %v1442_v41 }
 0x5f2   :  { %11684 = vmatpush1.bf16.msra.mxu1 %v13147_v12  ;;  %11718 = vmatprep.subr.bf16.mxu0 %v13300_v22  ;;  %v1410_v62 = vld [vmem:[%s18571_s1 + $0x2b78] sm:$0xff] }
 0x5f3   :  { %11685 = vmatprep.subr.bf16.mxu1 %v13140_v25  ;;  %v13244_v47 = vcombine.high %v1406_v32, %v1410_v62  ;;  %v1430_v44 = vld [vmem:[%s18571_s1 + $0x2c18] sm:$0xff]  ;;  %v13243_v17 = vcombine.low %v1406_v32, %v1410_v62 }
 0x5f4   :  { %v1434_v27 = vld [vmem:[%s18571_s1 + $0x2c38] sm:$0xff] }
 0x5f5   :  { %11719 = vmatpush1.bf16.msra.mxu0 %v13299_v49  ;;  %v1398_v6 = vld [vmem:[%s18571_s1 + $0x2b18] sm:$0xff]  ;;  %v13268_v5 = vcombine.high %v1430_v44, %v1434_v27  ;;  %v13267_v63 = vcombine.low %v1430_v44, %v1434_v27 }
 0x5f6   :  { %11686 = vmatpush1.bf16.msra.mxu1 %v13139_v28  ;;  %11720 = vmatprep.subr.bf16.mxu0 %v13292_v14  ;;  %v1402_v11 = vld [vmem:[%s18571_s1 + $0x2b38] sm:$0xff] }
 0x5f7   :  { %11687 = vmatprep.subr.bf16.mxu1 %v13260_v13  ;;  %v13236_v59 = vcombine.high %v1398_v6, %v1402_v11  ;;  %v1550_v21 = vld [vmem:[%s18571_s1 + $0x2fd8] sm:$0xff]  ;;  %v13235_v55 = vcombine.low %v1398_v6, %v1402_v11 }
 0x5f8   :  { %v1554_v37 = vld [vmem:[%s18571_s1 + $0x2ff8] sm:$0xff] }
 0x5f9   :  { %11721 = vmatpush1.bf16.msra.mxu0 %v13291_v29  ;;  %v1390_v9 = vld [vmem:[%s18571_s1 + $0x2ad8] sm:$0xff]  ;;  %v13388_v38 = vcombine.high %v1550_v21, %v1554_v37  ;;  %v13387_v52 = vcombine.low %v1550_v21, %v1554_v37 }
 0x5fa   :  { %11688 = vmatpush2.bf16.msra.mxu1 %v13259_v3  ;;  %11722 = vmatprep.subr.bf16.mxu0 %v13284_v19  ;;  %v1394_v23 = vld [vmem:[%s18571_s1 + $0x2af8] sm:$0xff] }
 0x5fb   :  { %11689 = vmatprep.subr.bf16.mxu1 %v13252_v53  ;;  %v13228_v40 = vcombine.high %v1390_v9, %v1394_v23  ;;  %v1542_v42 = vld [vmem:[%s18571_s1 + $0x2f98] sm:$0xff]  ;;  %v13227_v51 = vcombine.low %v1390_v9, %v1394_v23 }
 0x5fc   :  { %v1546_v46 = vld [vmem:[%s18571_s1 + $0x2fb8] sm:$0xff] }
 0x5fd   :  { %11723 = vmatpush1.bf16.msra.mxu0 %v13283_v35  ;;  %v1382_v31 = vld [vmem:[%s18571_s1 + $0x2a98] sm:$0xff]  ;;  %v13380_v57 = vcombine.high %v1542_v42, %v1546_v46  ;;  %v13379_v39 = vcombine.low %v1542_v42, %v1546_v46 }
 0x5fe   :  { %11690 = vmatpush2.bf16.msra.mxu1 %v13251_v24  ;;  %11724 = vmatprep.subr.bf16.mxu0 %v13276_v54  ;;  %v1386_v48 = vld [vmem:[%s18571_s1 + $0x2ab8] sm:$0xff] }
 0x5ff   :  { %11691 = vmatprep.subr.bf16.mxu1 %v13244_v47  ;;  %v13220_v43 = vcombine.high %v1382_v31, %v1386_v48  ;;  %v1534_v30 = vld [vmem:[%s18571_s1 + $0x2f58] sm:$0xff]  ;;  %v13219_v12 = vcombine.low %v1382_v31, %v1386_v48 }
 0x600   :  { %v1538_v15 = vld [vmem:[%s18571_s1 + $0x2f78] sm:$0xff] }
 0x601   :  { %11725 = vmatpush1.bf16.msra.mxu0 %v13275_v61  ;;  %v1374_v60 = vld [vmem:[%s18571_s1 + $0x2a58] sm:$0xff]  ;;  %v13372_v22 = vcombine.high %v1534_v30, %v1538_v15  ;;  %v13371_v49 = vcombine.low %v1534_v30, %v1538_v15 }
 0x602   :  { %11692 = vmatpush2.bf16.msra.mxu1 %v13243_v17  ;;  %11726 = vmatprep.subr.bf16.mxu0 %v13268_v5  ;;  %v1378_v4 = vld [vmem:[%s18571_s1 + $0x2a78] sm:$0xff] }
 0x603   :  { %11693 = vmatprep.subr.bf16.mxu1 %v13236_v59  ;;  %v13212_v25 = vcombine.high %v1374_v60, %v1378_v4  ;;  %v1526_v10 = vld [vmem:[%s18571_s1 + $0x2f18] sm:$0xff]  ;;  %v13211_v28 = vcombine.low %v1374_v60, %v1378_v4 }
 0x604   :  { %v1530_v16 = vld [vmem:[%s18571_s1 + $0x2f38] sm:$0xff] }
 0x605   :  { %11727 = vmatpush1.bf16.msra.mxu0 %v13267_v63  ;;  %v1366_v36 = vld [vmem:[%s18571_s1 + $0x2a18] sm:$0xff]  ;;  %v13364_v14 = vcombine.high %v1526_v10, %v1530_v16  ;;  %v13363_v29 = vcombine.low %v1526_v10, %v1530_v16 }
 0x606   :  { %11694 = vmatpush2.bf16.msra.mxu1 %v13235_v55  ;;  %11728 = vmatprep.subr.bf16.mxu0 %v13388_v38  ;;  %v1370_v1 = vld [vmem:[%s18571_s1 + $0x2a38] sm:$0xff] }
 0x607   :  { %11695 = vmatprep.subr.bf16.mxu1 %v13228_v40  ;;  %v13204_v13 = vcombine.high %v1366_v36, %v1370_v1  ;;  %v1518_v56 = vld [vmem:[%s18571_s1 + $0x2ed8] sm:$0xff]  ;;  %v13203_v3 = vcombine.low %v1366_v36, %v1370_v1 }
 0x608   :  { %v1522_v20 = vld [vmem:[%s18571_s1 + $0x2ef8] sm:$0xff] }
 0x609   :  { %11729 = vmatpush2.bf16.msra.mxu0 %v13387_v52  ;;  %v1582_v26 = vld [vmem:[%s18571_s1 + $0x30d8] sm:$0xff]  ;;  %v13356_v19 = vcombine.high %v1518_v56, %v1522_v20  ;;  %v13355_v35 = vcombine.low %v1518_v56, %v1522_v20 }
 0x60a   :  { %11696 = vmatpush2.bf16.msra.mxu1 %v13227_v51  ;;  %11730 = vmatprep.subr.bf16.mxu0 %v13380_v57  ;;  %v1586_v50 = vld [vmem:[%s18571_s1 + $0x30f8] sm:$0xff] }
 0x60b   :  { %11697 = vmatprep.subr.bf16.mxu1 %v13220_v43  ;;  %v13420_v53 = vcombine.high %v1582_v26, %v1586_v50  ;;  %v1510_v7 = vld [vmem:[%s18571_s1 + $0x2e98] sm:$0xff]  ;;  %v13419_v24 = vcombine.low %v1582_v26, %v1586_v50 }
 0x60c   :  { %v1514_v41 = vld [vmem:[%s18571_s1 + $0x2eb8] sm:$0xff] }
 0x60d   :  { %11731 = vmatpush2.bf16.msra.mxu0 %v13379_v39  ;;  %v1574_v32 = vld [vmem:[%s18571_s1 + $0x3098] sm:$0xff]  ;;  %v13348_v54 = vcombine.high %v1510_v7, %v1514_v41  ;;  %v13347_v17 = vcombine.low %v1510_v7, %v1514_v41 }
 0x60e   :  { %11698 = vmatpush2.bf16.msra.mxu1 %v13219_v12  ;;  %11732 = vmatprep.subr.bf16.mxu0 %v13372_v22  ;;  %v1578_v62 = vld [vmem:[%s18571_s1 + $0x30b8] sm:$0xff] }
 0x60f   :  { %11699 = vmatprep.subr.bf16.mxu1 %v13212_v25  ;;  %v13412_v47 = vcombine.high %v1574_v32, %v1578_v62  ;;  %v1502_v44 = vld [vmem:[%s18571_s1 + $0x2e58] sm:$0xff]  ;;  %v13411_v59 = vcombine.low %v1574_v32, %v1578_v62 }
 0x610   :  { %v1506_v27 = vld [vmem:[%s18571_s1 + $0x2e78] sm:$0xff] }
 0x611   :  { %11733 = vmatpush2.bf16.msra.mxu0 %v13371_v49  ;;  %v1566_v6 = vld [vmem:[%s18571_s1 + $0x3058] sm:$0xff]  ;;  %v13340_v21 = vcombine.high %v1502_v44, %v1506_v27  ;;  %v13339_v40 = vcombine.low %v1502_v44, %v1506_v27 }
 0x612   :  { %11700 = vmatpush2.bf16.msra.mxu1 %v13211_v28  ;;  %11734 = vmatprep.subr.bf16.mxu0 %v13364_v14  ;;  %v1570_v11 = vld [vmem:[%s18571_s1 + $0x3078] sm:$0xff] }
 0x613   :  { %11701 = vmatprep.subr.bf16.mxu1 %v13204_v13  ;;  %v13404_v9 = vcombine.high %v1566_v6, %v1570_v11  ;;  %v1494_v23 = vld [vmem:[%s18571_s1 + $0x2e18] sm:$0xff]  ;;  %v13403_v42 = vcombine.low %v1566_v6, %v1570_v11 }
 0x614   :  { %v1498_v63 = vld [vmem:[%s18571_s1 + $0x2e38] sm:$0xff] }
 0x615   :  { %11735 = vmatpush2.bf16.msra.mxu0 %v13363_v29  ;;  %v1562_v55 = vld [vmem:[%s18571_s1 + $0x3038] sm:$0xff]  ;;  %v13332_v46 = vcombine.high %v1494_v23, %v1498_v63 }
 0x616   :  { %11702 = vmatpush2.bf16.msra.mxu1 %v13203_v3  ;;  %11736 = vmatprep.subr.bf16.mxu0 %v13356_v19 }
 0x617   :  { %11761 = vmatprep.subr.bf16.mxu1 %v13420_v53 }
 0x619   :  { %v11459_v61 = vpop.f32.mrf.mxu1  ;;  %11704 = vmatmul.mubr.bf16.vlgmr.msra.gmra.mxu1 %v14801_v33  ;;  %11737 = vmatpush2.bf16.msra.mxu0 %v13355_v35 }
 0x61a   :  { %v11460_v5 = vadd.f32 %v11459_v61, %v18397_v34  ;;  %11762 = vmatpush1.bf16.msra.mxu1 %v13419_v24  ;;  %11738 = vmatprep.subr.bf16.mxu0 %v13348_v54  ;;  %v1558_v34 = vld [vmem:[%s18571_s1 + $0x3018] sm:$0xff] }
 0x61b   :  { %v11461_v37 = vpop.f32.mrf.mxu1  ;;  %11763 = vmatprep.subr.bf16.mxu1 %v13412_v47  ;;  %11785 = vmatprep.mubr.bf16.mxu1 %v13435_v18  ;;  %v13396_v18 = vcombine.high %v1558_v34, %v1562_v55  ;;  %v13395_v48 = vcombine.low %v1558_v34, %v1562_v55 }
 0x61c   :  { %v11462_v33 = vadd.f32 %v11461_v37, %v18400_v0  ;;  %v13331_v0 = vcombine.low %v1494_v23, %v1498_v63 }
 0x61d   :  { %v11463_v38 = vpop.f32.mrf.mxu1  ;;  %11739 = vmatpush2.bf16.msra.mxu0 %v13347_v17 }
 0x61e   :  { %11764 = vmatpush1.bf16.msra.mxu1 %v13411_v59  ;;  %11740 = vmatprep.subr.bf16.mxu0 %v13340_v21 }
 0x61f   :  { %v11464_v31 = vpop.f32.mrf.mxu1  ;;  %11765 = vmatprep.subr.bf16.mxu1 %v13404_v9 }
 0x621   :  { %11741 = vmatpush2.bf16.msra.mxu0 %v13339_v40 }
 0x622   :  { %11766 = vmatpush1.bf16.msra.mxu1 %v13403_v42  ;;  %11742 = vmatprep.subr.bf16.mxu0 %v13332_v46 }
 0x623   :  { %11767 = vmatprep.subr.bf16.mxu1 %v13396_v18 }
 0x625   :  { %11743 = vmatpush2.bf16.msra.mxu0 %v13331_v0 }
 0x626   :  { %11768 = vmatpush1.bf16.msra.mxu1 %v13395_v48 }
 0x628   :  { %v11500_v52 = vpop.f32.mrf.mxu0  ;;  %11745 = vmatmul.mubr.bf16.vlgmr.msra.gmra.mxu0 %v14817_v45 }
 0x629   :  { %v11501_v51 = vadd.f32 %v11500_v52, %v11460_v5  ;;  %13424 = vmatmul.mubr.msk.bf16.vlgmr.msra.gmra.mxu1 %vm9658_vm0, %v14875_v58 }
 0x62a   :  { %v11502_v57 = vpop.f32.mrf.mxu0 }
 0x62b   :  { %v11503_v43 = vadd.f32 %v11502_v57, %v11462_v33  ;;  %v11835_v33 = vrot.slane %v18005_v2, %v16735_v8 }
 0x62c   :  { %v11504_v30 = vpop.f32.mrf.mxu0 }
 0x62e   :  { %v11505_v15 = vpop.f32.mrf.mxu0 }
 0x659   :  { %v11541_v60 = vpop.f32.mrf.mxu1 }
 0x65a   :  { %v11542_v4 = vadd.f32 %v11541_v60, %v11501_v51 }
 0x65b   :  { %v11543_v39 = vpop.f32.mrf.mxu1 }
 0x65c   :  { %v11544_v12 = vadd.f32 %v11543_v39, %v11503_v43 }
 0x65d   :  { %v11545_v22 = vpop.f32.mrf.mxu1 }
 0x65f   :  { %v11546_v25 = vpop.f32.mrf.mxu1 }
 0x668   :  { %v11582_v10 = vpop.f32.mrf.mxu0 }
 0x669   :  { %v11583_v16 = vadd.f32 %v11582_v10, %v11542_v4 }
 0x66a   :  { %v11584_v36 = vpop.f32.mrf.mxu0 }
 0x66b   :  { %v11585_v1 = vadd.f32 %v11584_v36, %v11544_v12 }
 0x66c   :  { %v11586_v49 = vpop.f32.mrf.mxu0 }
 0x66e   :  { %v11587_v45 = vpop.f32.mrf.mxu0 }
 0x699   :  { %v11623_v28 = vpop.f32.mrf.mxu1 }
 0x69a   :  { %v11624_v14 = vadd.f32 %v11623_v28, %v11583_v16 }
 0x69b   :  { %v11625_v13 = vpop.f32.mrf.mxu1 }
 0x69c   :  { %v11626_v58 = vadd.f32 %v11625_v13, %v11585_v1 }
 0x69d   :  { %v11627_v56 = vpop.f32.mrf.mxu1 }
 0x69f   :  { %v11628_v20 = vpop.f32.mrf.mxu1 }
 0x6a8   :  { %v11664_v26 = vpop.f32.mrf.mxu0 }
 0x6a9   :  { %v11665_v32 = vadd.f32 %v11664_v26, %v11624_v14 }
 0x6aa   :  { %v11666_v50 = vpop.f32.mrf.mxu0 }
 0x6ab   :  { %v11667_v62 = vadd.f32 %v11666_v50, %v11626_v58 }
 0x6ac   :  { %v11668_v29 = vpop.f32.mrf.mxu0 }
 0x6ae   :  { %v11669_v3 = vpop.f32.mrf.mxu0 }
 0x6d9   :  { %v11705_v19 = vpop.f32.mrf.mxu1 }
 0x6da   :  { %v11706_v35 = vadd.f32 %v11705_v19, %v11665_v32 }
 0x6db   :  { %v11707_v53 = vpop.f32.mrf.mxu1 }
 0x6dc   :  { %v11708_v54 = vadd.f32 %v11707_v53, %v11667_v62 }
 0x6dd   :  { %v11709_v7 = vpop.f32.mrf.mxu1 }
 0x6df   :  { %v11710_v41 = vpop.f32.mrf.mxu1 }
 0x6e8   :  { %v11746_v24 = vpop.f32.mrf.mxu0 }
 0x6e9   :  { %v11747_v47 = vadd.f32 %v11746_v24, %v11706_v35  ;;  %v11787_v44 = vpop.f32.mrf.mxu1 }
 0x6ea   :  { %v11748_v27 = vpop.f32.mrf.mxu0 }
 0x6eb   :  { %v11788_v6 = vadd.f32 %v11787_v44, %v11747_v47  ;;  %v11749_v11 = vadd.f32 %v11748_v27, %v11708_v54  ;;  %v11789_v61 = vpop.f32.mrf.mxu1 }
 0x6ec   :  { %v11750_v17 = vpop.f32.mrf.mxu0 }
 0x6ed   :  { %v11790_v5 = vadd.f32 %v11789_v61, %v11749_v11  ;;  %v11791_v59 = vpop.f32.mrf.mxu1  ;;  %v11800_v37 = vmax.f32 %v11788_v6, 0.0 }
 0x6ee   :  { %v11751_v21 = vpop.f32.mrf.mxu0 }
 0x6ef   :  { %v11801_v9 = vmax.f32 %v11790_v5, 0.0  ;;  %v11792_v23 = vpop.f32.mrf.mxu1 }
 0x6f1   :  { %v11828_v63 = vcombine.low %v11800_v37, %v11801_v9 }
 0x6f3   :  { %v11842_v34 = vrot.slane %v11828_v63, %v16735_v8 }
 0x6f5   :  { %v11843_v55 = vcombine.low %v11835_v33, %v11842_v34 }
 0x6f7   :  { %11847 = vst [vmem:[%s18574_s3 + $0x8] sm:$0xff] %v11843_v55 }

</bundles_post_ra>
